<compile_context>
chip_gen: v5e
topology: v5e:2x2
jax: 0.10.0
libtpu: 0.0.40
codegen_flags: <defaults>
</compile_context>

<pallas_src>
import jax
import jax.numpy as jnp
from jax import lax
from jax.experimental import pallas as pl
from jax.experimental.pallas import tpu as pltpu

PREC = jax.lax.Precision.HIGHEST


def conv_net_kernel(t_ref, w1p_ref, b1p_ref, w2f_ref, b2p_ref,
                    wf1t_ref, bf1_ref, wf2t_ref, bf2_ref, out_ref):
    T = t_ref[0]                                                   # (32, 163)

    # ---- conv1 (k=100) + ReLU + maxpool(25): one Toeplitz matmul -------------
    #   X1[32*q + r, j] = T[r, j + q] = x[25*(j+q) + r]
    X1 = jnp.concatenate([T[:, q:q + 159] for q in range(5)], axis=0)   # (160, 159)
    y1 = jnp.dot(w1p_ref[...], X1, precision=PREC,
                 preferred_element_type=jnp.float32)               # (256, 159)
    # Row 32*c + k holds conv1 channel c at pool offset k (k >= 25 duplicates k=24,
    # padded channels c >= 3 are all-zero), so the group max is the pooled output.
    h1 = jnp.concatenate(
        [jnp.max(y1[32 * c:32 * c + 32, :], axis=0, keepdims=True)
         for c in range(8)], axis=0)                               # (8, 159)
    # ReLU(max(.) + b) == max(ReLU(. + b)) since b is constant over the window.
    h1 = jnp.maximum(h1 + b1p_ref[...], 0.0)

    # ---- conv2 (3->6, k=10) + ReLU: one matmul over a stacked-shift view -----
    S = jnp.concatenate([h1[:, t:t + 150] for t in range(10)], axis=0)  # (80, 150)
    y2 = jnp.dot(w2f_ref[...], S, precision=PREC,
                 preferred_element_type=jnp.float32) + b2p_ref[...]     # (8, 150)
    y2 = jnp.maximum(y2, 0.0)

    # ---- maxpool(25): 150 -> 6, then channel-major flatten (torch .view order)
    h2 = jnp.concatenate(
        [jnp.max(y2[:, 25 * j:25 * j + 25], axis=-1, keepdims=True)
         for j in range(6)], axis=-1)                              # (8, 6)
    flat = jnp.concatenate([h2[c:c + 1, :] for c in range(6)], axis=-1)  # (1, 36)

    # ---- fc1 + ReLU, fc2 + sigmoid (lane-dense 128-wide output) --------------
    z1 = jnp.maximum(
        jnp.dot(flat, wf1t_ref[...], precision=PREC,
                preferred_element_type=jnp.float32) + bf1_ref[...], 0.0)  # (1, 128)
    z2 = jnp.dot(z1, wf2t_ref[...], precision=PREC,
                 preferred_element_type=jnp.float32) + bf2_ref[...]       # (1, 128)
    out_ref[0] = jax.nn.sigmoid(z2)


def _prep_params(params):
    """Reshape / pad / Toeplitz-expand the PyTorch parameters (cheap one-time glue)."""
    w1, b1, w2, b2, wf1, bf1, wf2, bf2 = params

    # conv1 Toeplitz weight: W1p[32*c + k, 32*q + r] = w1[c, 25*q + r - k]
    # (zero outside [0,100) or r>=25; k>=25 duplicates k=24; channels padded 3->8).
    w1f = jnp.zeros((8, 100), jnp.float32).at[:3].set(w1[:, 0, :])
    k = jnp.minimum(jnp.arange(32), 24)                          # (32,)
    qr = 25 * jnp.arange(5)[:, None] + jnp.arange(32)[None, :]   # (5, 32) = 25q + r
    t = qr[None, :, :] - k[:, None, None]                        # (32, 5, 32)
    valid = (t >= 0) & (t < 100) & (jnp.arange(32)[None, None, :] < 25)
    w1p = jnp.where(valid[None], w1f[:, jnp.clip(t, 0, 99)], 0.0).reshape(256, 160)
    b1p = jnp.zeros((8, 1), jnp.float32).at[:3, 0].set(b1)

    # conv2 weight as dense 2-D: w2f[co, 8*t + ci] = w2[co, ci, t] (padded 6->8, 3->8).
    w2f = jnp.zeros((8, 10, 8), jnp.float32).at[:6, :, :3].set(
        jnp.transpose(w2, (0, 2, 1))).reshape(8, 80)
    b2p = jnp.zeros((8, 1), jnp.float32).at[:6, 0].set(b2)

    wf1t = wf1.T                                                 # (36, 128)
    bf1r = bf1.reshape(1, 128)
    wf2tp = jnp.zeros((128, 128), jnp.float32).at[:, :88].set(wf2.T)
    bf2p = jnp.zeros((1, 128), jnp.float32).at[0, :88].set(bf2)
    return w1p, b1p, w2f, b2p, wf1t, bf1r, wf2tp, bf2p


@jax.jit
def conv_net_1d_forward(x, params):
    """x: (N, 1, 4096) float32 (NCL, like PyTorch). Returns (N, 88)."""
    n = x.shape[0]
    w1p, b1p, w2f, b2p, wf1t, bf1r, wf2tp, bf2p = _prep_params(params)

    # Cheap reblocking glue (no im2col blow-up): T[n, r, j] = x[n, 0, 25*j + r].
    T = jnp.transpose(x[:, 0, :25 * 163].reshape(n, 163, 25), (0, 2, 1))
    T = jnp.pad(T, ((0, 0), (0, 7), (0, 0)))                     # (N, 32, 163)

    full = lambda i: (0, 0)
    out = pl.pallas_call(
        conv_net_kernel,
        out_shape=jax.ShapeDtypeStruct((n, 1, 128), jnp.float32),
        grid=(n,),
        in_specs=[
            pl.BlockSpec((1, 32, 163), lambda i: (i, 0, 0)),  # per-sample input block
            pl.BlockSpec((256, 160), full),                   # W1p (Toeplitz conv1)
            pl.BlockSpec((8, 1), full),                       # b1 (padded)
            pl.BlockSpec((8, 80), full),                      # w2 as (co, 8t+ci)
            pl.BlockSpec((8, 1), full),                       # b2 (padded)
            pl.BlockSpec((36, 128), full),                    # fc1 weight (transposed)
            pl.BlockSpec((1, 128), full),                     # fc1 bias
            pl.BlockSpec((128, 128), full),                   # fc2 weight (transposed, padded)
            pl.BlockSpec((1, 128), full),                     # fc2 bias (padded)
        ],
        out_specs=pl.BlockSpec((1, 1, 128), lambda i: (i, 0, 0)),
        compiler_params=pltpu.CompilerParams(
            dimension_semantics=("parallel",)),
    )(T, w1p, b1p, w2f, b2p, wf1t, bf1r, wf2tp, bf2p)
    return out[:, 0, :88]


def reference_forward(x, params):
    """Pure-JAX reference mirroring the PyTorch module."""
    w1, b1, w2, b2, wf1, bf1, wf2, bf2 = params
    dn = ('NCH', 'OIH', 'NCH')
    y = lax.conv_general_dilated(x, w1, (1,), 'VALID', dimension_numbers=dn,
                                 precision=PREC) + b1[None, :, None]
    y = jnp.maximum(y, 0.0)
    y = lax.reduce_window(y, -jnp.inf, lax.max, (1, 1, 25), (1, 1, 25), 'VALID')
    y = lax.conv_general_dilated(y, w2, (1,), 'VALID', dimension_numbers=dn,
                                 precision=PREC) + b2[None, :, None]
    y = jnp.maximum(y, 0.0)
    y = lax.reduce_window(y, -jnp.inf, lax.max, (1, 1, 25), (1, 1, 25), 'VALID')
    y = y.reshape(y.shape[0], -1)                                # (N, 36)
    y = jnp.maximum(jnp.dot(y, wf1.T, precision=PREC) + bf1, 0.0)
    y = jax.nn.sigmoid(jnp.dot(y, wf2.T, precision=PREC) + bf2)
    return y


def init_params(key):
    ks = jax.random.split(key, 8)

    def u(k, shape, fan_in):
        bound = float(fan_in) ** -0.5
        return jax.random.uniform(k, shape, jnp.float32, -bound, bound)

    w1 = u(ks[0], (3, 1, 100), 100)      # Conv1d(1, 3, 100)
    b1 = u(ks[1], (3,), 100)
    w2 = u(ks[2], (6, 3, 10), 30)        # Conv1d(3, 6, 10)
    b2 = u(ks[3], (6,), 30)
    wf1 = u(ks[4], (128, 36), 36)        # Linear(36, 128)
    bf1 = u(ks[5], (128,), 36)
    wf2 = u(ks[6], (88, 128), 128)       # Linear(128, 88)
    bf2 = u(ks[7], (88,), 128)
    return (w1, b1, w2, b2, wf1, bf1, wf2, bf2)


if __name__ == "__main__":
    root = jax.random.PRNGKey(0)
    kx, kp = jax.random.split(root)

    # Length 4096 is required so the flattened feature count is exactly 36
    # (the fc1 input size hard-coded in the PyTorch module).
    x = jax.random.normal(kx, (2, 1, 4096), dtype=jnp.float32)
    params = init_params(kp)

    out = jax.block_until_ready(conv_net_1d_forward(x, params))
    ref = jax.block_until_ready(reference_forward(x, params))

    assert out.shape == (2, 88), out.shape
    max_err = float(jnp.max(jnp.abs(out - ref)))
    assert max_err < 1e-4, f"mismatch vs reference, max abs err = {max_err}"
    print("KERNEL_OK")
</pallas_src>

<mosaic_0001>
module attributes {stable_mosaic.version = 11 : i64} {
  func.func @conv_net_kernel(%arg0: i32, %arg1: memref<1x32x163xf32, #tpu.memory_space<vmem>>, %arg2: memref<256x160xf32, #tpu.memory_space<vmem>>, %arg3: memref<8x1xf32, #tpu.memory_space<vmem>>, %arg4: memref<8x80xf32, #tpu.memory_space<vmem>>, %arg5: memref<8x1xf32, #tpu.memory_space<vmem>>, %arg6: memref<36x128xf32, #tpu.memory_space<vmem>>, %arg7: memref<1x128xf32, #tpu.memory_space<vmem>>, %arg8: memref<128x128xf32, #tpu.memory_space<vmem>>, %arg9: memref<1x128xf32, #tpu.memory_space<vmem>>, %arg10: memref<1x1x128xf32, #tpu.memory_space<vmem>>) attributes {dimension_semantics = [#tpu.dimension_semantics<parallel>], iteration_bounds = array<i64: 2>, scalar_prefetch = 0 : i64, scratch_operands = 0 : i64, tpu.core_type = #tpu.core_type<tc>, window_params = [{transform_indices = @transform_0, window_bounds = array<i64: 1, 32, 163>}, {pipeline_mode = #tpu.pipeline_mode<synchronous>, transform_indices = @transform_1, window_bounds = array<i64: 256, 160>}, {pipeline_mode = #tpu.pipeline_mode<synchronous>, transform_indices = @transform_2, window_bounds = array<i64: 8, 1>}, {pipeline_mode = #tpu.pipeline_mode<synchronous>, transform_indices = @transform_3, window_bounds = array<i64: 8, 80>}, {pipeline_mode = #tpu.pipeline_mode<synchronous>, transform_indices = @transform_4, window_bounds = array<i64: 8, 1>}, {pipeline_mode = #tpu.pipeline_mode<synchronous>, transform_indices = @transform_5, window_bounds = array<i64: 36, 128>}, {pipeline_mode = #tpu.pipeline_mode<synchronous>, transform_indices = @transform_6, window_bounds = array<i64: 1, 128>}, {pipeline_mode = #tpu.pipeline_mode<synchronous>, transform_indices = @transform_7, window_bounds = array<i64: 128, 128>}, {pipeline_mode = #tpu.pipeline_mode<synchronous>, transform_indices = @transform_8, window_bounds = array<i64: 1, 128>}, {transform_indices = @transform_9, window_bounds = array<i64: 1, 1, 128>}]} {
    %c0 = arith.constant 0 : index
    %c0_0 = arith.constant 0 : index
    %c0_1 = arith.constant 0 : index
    %0 = vector.load %arg1[%c0, %c0_0, %c0_1] : memref<1x32x163xf32, #tpu.memory_space<vmem>>, vector<1x32x163xf32>
    %1 = vector.shape_cast %0 : vector<1x32x163xf32> to vector<32x163xf32>
    %2 = vector.extract_strided_slice %1 {offsets = [0, 0], sizes = [32, 159], strides = [1, 1]} : vector<32x163xf32> to vector<32x159xf32>
    %3 = vector.extract_strided_slice %1 {offsets = [0, 1], sizes = [32, 159], strides = [1, 1]} : vector<32x163xf32> to vector<32x159xf32>
    %4 = vector.extract_strided_slice %1 {offsets = [0, 2], sizes = [32, 159], strides = [1, 1]} : vector<32x163xf32> to vector<32x159xf32>
    %5 = vector.extract_strided_slice %1 {offsets = [0, 3], sizes = [32, 159], strides = [1, 1]} : vector<32x163xf32> to vector<32x159xf32>
    %6 = vector.extract_strided_slice %1 {offsets = [0, 4], sizes = [32, 159], strides = [1, 1]} : vector<32x163xf32> to vector<32x159xf32>
    %7 = tpu.concatenate %2, %3, %4, %5, %6 in 0 : vector<32x159xf32>, vector<32x159xf32>, vector<32x159xf32>, vector<32x159xf32>, vector<32x159xf32> -> vector<160x159xf32>
    %c0_2 = arith.constant 0 : index
    %c0_3 = arith.constant 0 : index
    %8 = vector.load %arg2[%c0_2, %c0_3] : memref<256x160xf32, #tpu.memory_space<vmem>>, vector<256x160xf32>
    %cst = arith.constant dense<0.000000e+00> : vector<256x159xf32>
    %9 = tpu.matmul %8, %7, %cst {dimension_numbers = #tpu.dot_dimension_numbers<[1], [0], [0], [1], [0, 0, 1, 1], [], []>, precision = #tpu.contract_precision<fp32>} : vector<256x160xf32>, vector<160x159xf32>, vector<256x159xf32> -> vector<256x159xf32>
    %10 = vector.extract_strided_slice %9 {offsets = [0, 0], sizes = [32, 159], strides = [1, 1]} : vector<256x159xf32> to vector<32x159xf32>
    %cst_4 = arith.constant dense<0xFF800000> : vector<159xf32>
    %11 = vector.multi_reduction <maximumf>, %10, %cst_4 [0] : vector<32x159xf32> to vector<159xf32>
    %12 = vector.shape_cast %11 : vector<159xf32> to vector<1x159xf32>
    %13 = vector.extract_strided_slice %9 {offsets = [32, 0], sizes = [32, 159], strides = [1, 1]} : vector<256x159xf32> to vector<32x159xf32>
    %cst_5 = arith.constant dense<0xFF800000> : vector<159xf32>
    %14 = vector.multi_reduction <maximumf>, %13, %cst_5 [0] : vector<32x159xf32> to vector<159xf32>
    %15 = vector.shape_cast %14 : vector<159xf32> to vector<1x159xf32>
    %16 = vector.extract_strided_slice %9 {offsets = [64, 0], sizes = [32, 159], strides = [1, 1]} : vector<256x159xf32> to vector<32x159xf32>
    %cst_6 = arith.constant dense<0xFF800000> : vector<159xf32>
    %17 = vector.multi_reduction <maximumf>, %16, %cst_6 [0] : vector<32x159xf32> to vector<159xf32>
    %18 = vector.shape_cast %17 : vector<159xf32> to vector<1x159xf32>
    %19 = vector.extract_strided_slice %9 {offsets = [96, 0], sizes = [32, 159], strides = [1, 1]} : vector<256x159xf32> to vector<32x159xf32>
    %cst_7 = arith.constant dense<0xFF800000> : vector<159xf32>
    %20 = vector.multi_reduction <maximumf>, %19, %cst_7 [0] : vector<32x159xf32> to vector<159xf32>
    %21 = vector.shape_cast %20 : vector<159xf32> to vector<1x159xf32>
    %22 = vector.extract_strided_slice %9 {offsets = [128, 0], sizes = [32, 159], strides = [1, 1]} : vector<256x159xf32> to vector<32x159xf32>
    %cst_8 = arith.constant dense<0xFF800000> : vector<159xf32>
    %23 = vector.multi_reduction <maximumf>, %22, %cst_8 [0] : vector<32x159xf32> to vector<159xf32>
    %24 = vector.shape_cast %23 : vector<159xf32> to vector<1x159xf32>
    %25 = vector.extract_strided_slice %9 {offsets = [160, 0], sizes = [32, 159], strides = [1, 1]} : vector<256x159xf32> to vector<32x159xf32>
    %cst_9 = arith.constant dense<0xFF800000> : vector<159xf32>
    %26 = vector.multi_reduction <maximumf>, %25, %cst_9 [0] : vector<32x159xf32> to vector<159xf32>
    %27 = vector.shape_cast %26 : vector<159xf32> to vector<1x159xf32>
    %28 = vector.extract_strided_slice %9 {offsets = [192, 0], sizes = [32, 159], strides = [1, 1]} : vector<256x159xf32> to vector<32x159xf32>
    %cst_10 = arith.constant dense<0xFF800000> : vector<159xf32>
    %29 = vector.multi_reduction <maximumf>, %28, %cst_10 [0] : vector<32x159xf32> to vector<159xf32>
    %30 = vector.shape_cast %29 : vector<159xf32> to vector<1x159xf32>
    %31 = vector.extract_strided_slice %9 {offsets = [224, 0], sizes = [32, 159], strides = [1, 1]} : vector<256x159xf32> to vector<32x159xf32>
    %cst_11 = arith.constant dense<0xFF800000> : vector<159xf32>
    %32 = vector.multi_reduction <maximumf>, %31, %cst_11 [0] : vector<32x159xf32> to vector<159xf32>
    %33 = vector.shape_cast %32 : vector<159xf32> to vector<1x159xf32>
    %34 = tpu.concatenate %12, %15, %18, %21, %24, %27, %30, %33 in 0 : vector<1x159xf32>, vector<1x159xf32>, vector<1x159xf32>, vector<1x159xf32>, vector<1x159xf32>, vector<1x159xf32>, vector<1x159xf32>, vector<1x159xf32> -> vector<8x159xf32>
    %c0_12 = arith.constant 0 : index
    %c0_13 = arith.constant 0 : index
    %35 = vector.load %arg3[%c0_12, %c0_13] : memref<8x1xf32, #tpu.memory_space<vmem>>, vector<8x1xf32>
    %36 = vector.broadcast %35 : vector<8x1xf32> to vector<8x159xf32>
    %37 = arith.addf %34, %36 : vector<8x159xf32>
    %cst_14 = arith.constant 0.000000e+00 : f32
    %38 = vector.broadcast %cst_14 : f32 to vector<8x159xf32>
    %39 = arith.maximumf %37, %38 : vector<8x159xf32>
    %40 = vector.extract_strided_slice %39 {offsets = [0, 0], sizes = [8, 150], strides = [1, 1]} : vector<8x159xf32> to vector<8x150xf32>
    %41 = vector.extract_strided_slice %39 {offsets = [0, 1], sizes = [8, 150], strides = [1, 1]} : vector<8x159xf32> to vector<8x150xf32>
    %42 = vector.extract_strided_slice %39 {offsets = [0, 2], sizes = [8, 150], strides = [1, 1]} : vector<8x159xf32> to vector<8x150xf32>
    %43 = vector.extract_strided_slice %39 {offsets = [0, 3], sizes = [8, 150], strides = [1, 1]} : vector<8x159xf32> to vector<8x150xf32>
    %44 = vector.extract_strided_slice %39 {offsets = [0, 4], sizes = [8, 150], strides = [1, 1]} : vector<8x159xf32> to vector<8x150xf32>
    %45 = vector.extract_strided_slice %39 {offsets = [0, 5], sizes = [8, 150], strides = [1, 1]} : vector<8x159xf32> to vector<8x150xf32>
    %46 = vector.extract_strided_slice %39 {offsets = [0, 6], sizes = [8, 150], strides = [1, 1]} : vector<8x159xf32> to vector<8x150xf32>
    %47 = vector.extract_strided_slice %39 {offsets = [0, 7], sizes = [8, 150], strides = [1, 1]} : vector<8x159xf32> to vector<8x150xf32>
    %48 = vector.extract_strided_slice %39 {offsets = [0, 8], sizes = [8, 150], strides = [1, 1]} : vector<8x159xf32> to vector<8x150xf32>
    %49 = vector.extract_strided_slice %39 {offsets = [0, 9], sizes = [8, 150], strides = [1, 1]} : vector<8x159xf32> to vector<8x150xf32>
    %50 = tpu.concatenate %40, %41, %42, %43, %44, %45, %46, %47, %48, %49 in 0 : vector<8x150xf32>, vector<8x150xf32>, vector<8x150xf32>, vector<8x150xf32>, vector<8x150xf32>, vector<8x150xf32>, vector<8x150xf32>, vector<8x150xf32>, vector<8x150xf32>, vector<8x150xf32> -> vector<80x150xf32>
    %c0_15 = arith.constant 0 : index
    %c0_16 = arith.constant 0 : index
    %51 = vector.load %arg4[%c0_15, %c0_16] : memref<8x80xf32, #tpu.memory_space<vmem>>, vector<8x80xf32>
    %cst_17 = arith.constant dense<0.000000e+00> : vector<8x150xf32>
    %52 = tpu.matmul %51, %50, %cst_17 {dimension_numbers = #tpu.dot_dimension_numbers<[1], [0], [0], [1], [0, 0, 1, 1], [], []>, precision = #tpu.contract_precision<fp32>} : vector<8x80xf32>, vector<80x150xf32>, vector<8x150xf32> -> vector<8x150xf32>
    %c0_18 = arith.constant 0 : index
    %c0_19 = arith.constant 0 : index
    %53 = vector.load %arg5[%c0_18, %c0_19] : memref<8x1xf32, #tpu.memory_space<vmem>>, vector<8x1xf32>
    %54 = vector.broadcast %53 : vector<8x1xf32> to vector<8x150xf32>
    %55 = arith.addf %52, %54 : vector<8x150xf32>
    %cst_20 = arith.constant 0.000000e+00 : f32
    %56 = vector.broadcast %cst_20 : f32 to vector<8x150xf32>
    %57 = arith.maximumf %55, %56 : vector<8x150xf32>
    %58 = vector.extract_strided_slice %57 {offsets = [0, 0], sizes = [8, 25], strides = [1, 1]} : vector<8x150xf32> to vector<8x25xf32>
    %cst_21 = arith.constant dense<0xFF800000> : vector<8xf32>
    %59 = vector.multi_reduction <maximumf>, %58, %cst_21 [1] : vector<8x25xf32> to vector<8xf32>
    %60 = vector.shape_cast %59 : vector<8xf32> to vector<8x1xf32>
    %61 = vector.extract_strided_slice %57 {offsets = [0, 25], sizes = [8, 25], strides = [1, 1]} : vector<8x150xf32> to vector<8x25xf32>
    %cst_22 = arith.constant dense<0xFF800000> : vector<8xf32>
    %62 = vector.multi_reduction <maximumf>, %61, %cst_22 [1] : vector<8x25xf32> to vector<8xf32>
    %63 = vector.shape_cast %62 : vector<8xf32> to vector<8x1xf32>
    %64 = vector.extract_strided_slice %57 {offsets = [0, 50], sizes = [8, 25], strides = [1, 1]} : vector<8x150xf32> to vector<8x25xf32>
    %cst_23 = arith.constant dense<0xFF800000> : vector<8xf32>
    %65 = vector.multi_reduction <maximumf>, %64, %cst_23 [1] : vector<8x25xf32> to vector<8xf32>
    %66 = vector.shape_cast %65 : vector<8xf32> to vector<8x1xf32>
    %67 = vector.extract_strided_slice %57 {offsets = [0, 75], sizes = [8, 25], strides = [1, 1]} : vector<8x150xf32> to vector<8x25xf32>
    %cst_24 = arith.constant dense<0xFF800000> : vector<8xf32>
    %68 = vector.multi_reduction <maximumf>, %67, %cst_24 [1] : vector<8x25xf32> to vector<8xf32>
    %69 = vector.shape_cast %68 : vector<8xf32> to vector<8x1xf32>
    %70 = vector.extract_strided_slice %57 {offsets = [0, 100], sizes = [8, 25], strides = [1, 1]} : vector<8x150xf32> to vector<8x25xf32>
    %cst_25 = arith.constant dense<0xFF800000> : vector<8xf32>
    %71 = vector.multi_reduction <maximumf>, %70, %cst_25 [1] : vector<8x25xf32> to vector<8xf32>
    %72 = vector.shape_cast %71 : vector<8xf32> to vector<8x1xf32>
    %73 = vector.extract_strided_slice %57 {offsets = [0, 125], sizes = [8, 25], strides = [1, 1]} : vector<8x150xf32> to vector<8x25xf32>
    %cst_26 = arith.constant dense<0xFF800000> : vector<8xf32>
    %74 = vector.multi_reduction <maximumf>, %73, %cst_26 [1] : vector<8x25xf32> to vector<8xf32>
    %75 = vector.shape_cast %74 : vector<8xf32> to vector<8x1xf32>
    %76 = tpu.concatenate %60, %63, %66, %69, %72, %75 in 1 : vector<8x1xf32>, vector<8x1xf32>, vector<8x1xf32>, vector<8x1xf32>, vector<8x1xf32>, vector<8x1xf32> -> vector<8x6xf32>
    %77 = vector.extract_strided_slice %76 {offsets = [0, 0], sizes = [1, 6], strides = [1, 1]} : vector<8x6xf32> to vector<1x6xf32>
    %78 = vector.extract_strided_slice %76 {offsets = [1, 0], sizes = [1, 6], strides = [1, 1]} : vector<8x6xf32> to vector<1x6xf32>
    %79 = vector.extract_strided_slice %76 {offsets = [2, 0], sizes = [1, 6], strides = [1, 1]} : vector<8x6xf32> to vector<1x6xf32>
    %80 = vector.extract_strided_slice %76 {offsets = [3, 0], sizes = [1, 6], strides = [1, 1]} : vector<8x6xf32> to vector<1x6xf32>
    %81 = vector.extract_strided_slice %76 {offsets = [4, 0], sizes = [1, 6], strides = [1, 1]} : vector<8x6xf32> to vector<1x6xf32>
    %82 = vector.extract_strided_slice %76 {offsets = [5, 0], sizes = [1, 6], strides = [1, 1]} : vector<8x6xf32> to vector<1x6xf32>
    %83 = tpu.concatenate %77, %78, %79, %80, %81, %82 in 1 : vector<1x6xf32>, vector<1x6xf32>, vector<1x6xf32>, vector<1x6xf32>, vector<1x6xf32>, vector<1x6xf32> -> vector<1x36xf32>
    %c0_27 = arith.constant 0 : index
    %c0_28 = arith.constant 0 : index
    %84 = vector.load %arg6[%c0_27, %c0_28] : memref<36x128xf32, #tpu.memory_space<vmem>>, vector<36x128xf32>
    %cst_29 = arith.constant dense<0.000000e+00> : vector<1x128xf32>
    %85 = tpu.matmul %83, %84, %cst_29 {dimension_numbers = #tpu.dot_dimension_numbers<[1], [0], [0], [1], [0, 0, 1, 1], [], []>, precision = #tpu.contract_precision<fp32>} : vector<1x36xf32>, vector<36x128xf32>, vector<1x128xf32> -> vector<1x128xf32>
    %c0_30 = arith.constant 0 : index
    %c0_31 = arith.constant 0 : index
    %86 = vector.load %arg7[%c0_30, %c0_31] : memref<1x128xf32, #tpu.memory_space<vmem>>, vector<1x128xf32>
    %87 = arith.addf %85, %86 : vector<1x128xf32>
    %cst_32 = arith.constant 0.000000e+00 : f32
    %88 = vector.broadcast %cst_32 : f32 to vector<1x128xf32>
    %89 = arith.maximumf %87, %88 : vector<1x128xf32>
    %c0_33 = arith.constant 0 : index
    %c0_34 = arith.constant 0 : index
    %90 = vector.load %arg8[%c0_33, %c0_34] : memref<128x128xf32, #tpu.memory_space<vmem>>, vector<128x128xf32>
    %cst_35 = arith.constant dense<0.000000e+00> : vector<1x128xf32>
    %91 = tpu.matmul %89, %90, %cst_35 {dimension_numbers = #tpu.dot_dimension_numbers<[1], [0], [0], [1], [0, 0, 1, 1], [], []>, precision = #tpu.contract_precision<fp32>} : vector<1x128xf32>, vector<128x128xf32>, vector<1x128xf32> -> vector<1x128xf32>
    %c0_36 = arith.constant 0 : index
    %c0_37 = arith.constant 0 : index
    %92 = vector.load %arg9[%c0_36, %c0_37] : memref<1x128xf32, #tpu.memory_space<vmem>>, vector<1x128xf32>
    %93 = arith.addf %91, %92 : vector<1x128xf32>
    %94 = arith.negf %93 : vector<1x128xf32>
    %95 = math.exp %94 : vector<1x128xf32>
    %cst_38 = arith.constant 1.000000e+00 : f32
    %96 = vector.broadcast %cst_38 : f32 to vector<1x128xf32>
    %97 = arith.addf %96, %95 : vector<1x128xf32>
    %98 = arith.divf %96, %97 : vector<1x128xf32>
    %c0_39 = arith.constant 0 : index
    %c0_40 = arith.constant 0 : index
    %c0_41 = arith.constant 0 : index
    %99 = vector.load %arg10[%c0_39, %c0_40, %c0_41] : memref<1x1x128xf32, #tpu.memory_space<vmem>>, vector<1x1x128xf32>
    %100 = vector.shape_cast %99 : vector<1x1x128xf32> to vector<1x128xf32>
    %101 = vector.shape_cast %98 : vector<1x128xf32> to vector<1x1x128xf32>
    tpu.vector_store %arg10[%c0_39, %c0_40, %c0_41], %101 {strides = array<i32>} : memref<1x1x128xf32, #tpu.memory_space<vmem>>, vector<1x1x128xf32>,
    return
  }
  func.func @transform_0(%arg0: i32) -> (i32, i32, i32) {
    %c0_i32 = arith.constant 0 : i32
    %c0_i32_0 = arith.constant 0 : i32
    %c0_i32_1 = arith.constant 0 : i32
    return %arg0, %c0_i32, %c0_i32_0 : i32, i32, i32
  }
  func.func @transform_1(%arg0: i32) -> (i32, i32) {
    %c0_i32 = arith.constant 0 : i32
    %c0_i32_0 = arith.constant 0 : i32
    %c0_i32_1 = arith.constant 0 : i32
    return %c0_i32, %c0_i32_0 : i32, i32
  }
  func.func @transform_2(%arg0: i32) -> (i32, i32) {
    %c0_i32 = arith.constant 0 : i32
    %c0_i32_0 = arith.constant 0 : i32
    %c0_i32_1 = arith.constant 0 : i32
    return %c0_i32, %c0_i32_0 : i32, i32
  }
  func.func @transform_3(%arg0: i32) -> (i32, i32) {
    %c0_i32 = arith.constant 0 : i32
    %c0_i32_0 = arith.constant 0 : i32
    %c0_i32_1 = arith.constant 0 : i32
    return %c0_i32, %c0_i32_0 : i32, i32
  }
  func.func @transform_4(%arg0: i32) -> (i32, i32) {
    %c0_i32 = arith.constant 0 : i32
    %c0_i32_0 = arith.constant 0 : i32
    %c0_i32_1 = arith.constant 0 : i32
    return %c0_i32, %c0_i32_0 : i32, i32
  }
  func.func @transform_5(%arg0: i32) -> (i32, i32) {
    %c0_i32 = arith.constant 0 : i32
    %c0_i32_0 = arith.constant 0 : i32
    %c0_i32_1 = arith.constant 0 : i32
    return %c0_i32, %c0_i32_0 : i32, i32
  }
  func.func @transform_6(%arg0: i32) -> (i32, i32) {
    %c0_i32 = arith.constant 0 : i32
    %c0_i32_0 = arith.constant 0 : i32
    %c0_i32_1 = arith.constant 0 : i32
    return %c0_i32, %c0_i32_0 : i32, i32
  }
  func.func @transform_7(%arg0: i32) -> (i32, i32) {
    %c0_i32 = arith.constant 0 : i32
    %c0_i32_0 = arith.constant 0 : i32
    %c0_i32_1 = arith.constant 0 : i32
    return %c0_i32, %c0_i32_0 : i32, i32
  }
  func.func @transform_8(%arg0: i32) -> (i32, i32) {
    %c0_i32 = arith.constant 0 : i32
    %c0_i32_0 = arith.constant 0 : i32
    %c0_i32_1 = arith.constant 0 : i32
    return %c0_i32, %c0_i32_0 : i32, i32
  }
  func.func @transform_9(%arg0: i32) -> (i32, i32, i32) {
    %c0_i32 = arith.constant 0 : i32
    %c0_i32_0 = arith.constant 0 : i32
    %c0_i32_1 = arith.constant 0 : i32
    return %arg0, %c0_i32, %c0_i32_0 : i32, i32, i32
  }
}

</mosaic_0001>

<bundles_post_ra>
// kernel: squeeze.4
= control target key start
LH: loop header
LB: loop body
LE: loop exit
PB: predicated region body
PF: predicated region fallthrough
CT: control target
= control target key end

     0   :  { %s153_s18 = smov 3  ;;  %s1828_s27 = smov 127   ;;  %vm187_vm0 = vcmask 1043458   ;;  %vm131_vm1 = vcmask 203776   ;;  %vm1059_vm2 = vcmask 850944   ;;  %vm1089_vm3 = vcmask 867328   ;;  %s2816_s0 = inlined_call_operand.vmem [shape: f32[2,4075], index: 0, kind: input, shape index: {}]   ;;  %s2817_s1 = inlined_call_operand.vmem [shape: f32[2,163,25], index: 1, kind: output, shape index: {}]  }
   0x1   :  { %v1501_v0 = vld [vmem:[%s2816_s0 + $0x10] sm:$0x3]  ;;  %v1493_v2 = vld [vmem:[%s2816_s0 + $0x20] sm:$0x3]  ;;  %v1502_v3 = vld [vmem:[%s2816_s0 + $0xe] sm:$0x3] }
   0x2   :  { %v1485_v1 = vld [vmem:[%s2816_s0 + $0x30] sm:$0x3]  ;;  %99 = vst [vmem:[#allocation0 + $0x40] sm:$0x3] %v1501_v0  ;;  %v1478_v4 = vld [vmem:[%s2816_s0 + $0x3e] sm:$0x3] }
   0x3   :  { %35 = vst [vmem:[#allocation0 + $0xc0] sm:$0x3] %v1485_v1  ;;  %v1503_v5 = vld [vmem:[%s2816_s0 + $0xc] sm:$0x3]  ;;  %v1495_v6 = vld [vmem:[%s2816_s0 + $0x1c] sm:$0x3] }
   0x4   :  { %67 = vst [vmem:[#allocation0 + $0x80] sm:$0x3] %v1493_v2  ;;  %v1479_v7 = vld [vmem:[%s2816_s0 + $0x3c] sm:$0x3]  ;;  %v1504_v8 = vld [vmem:[%s2816_s0 + $0xa] sm:$0x3] }
   0x5   :  { %103 = vst [vmem:[#allocation0 + $0x38] sm:$0x3] %v1502_v3  ;;  %v1494_v9 = vld [vmem:[%s2816_s0 + $0x1e] sm:$0x3]  ;;  %v1496_v12 = vld [vmem:[%s2816_s0 + $0x1a] sm:$0x3] }
   0x6   :  { %7 = vst [vmem:[#allocation0 + $0xf8] sm:$0x3] %v1478_v4  ;;  %s1829_s30 = smov 125   ;;  %v1480_v13 = vld [vmem:[%s2816_s0 + $0x3a] sm:$0x3]  ;;  %s185_s10 = smov 12 }
   0x7   :  { %107 = vst [vmem:[#allocation0 + $0x30] sm:$0x3] %v1503_v5  ;;  %v1505_v14 = vld [vmem:[%s2816_s0 + $0x8] sm:$0x3]  ;;  %v1486_v15 = vld [vmem:[%s2816_s0 + $0x2e] sm:$0x3] }
   0x8   :  { %75 = vst [vmem:[#allocation0 + $0x70] sm:$0x3] %v1495_v6  ;;  %v1497_v17 = vld [vmem:[%s2816_s0 + $0x18] sm:$0x3]  ;;  %s182_s11 = smov 3  ;;  %s1830_s16 = smov 126  }
   0x9   :  { %v139_v10 = vld [vmem:[#allocation0 + $0x40] sm:$0x3]   ;;  %11 = vst [vmem:[#allocation0 + $0xf0] sm:$0x3] %v1479_v7  ;;  %v1481_v19 = vld [vmem:[%s2816_s0 + $0x38] sm:$0x3] }
   0xa   :  { %140 = vrot.lane.b32.xlu0 %v139_v10, %s1828_s27  ;;  %v154_v11 = vld [vmem:[#allocation0 + $0xc1] ss:$-1 sm:%s153_s18]   ;;  %111 = vst [vmem:[#allocation0 + $0x28] sm:$0x3] %v1504_v8  ;;  %v1506_v20 = vld [vmem:[%s2816_s0 + $0x6] sm:$0x3] }
   0xb   :  { %155 = vrot.lane.b32.xlu1 %v154_v11, %s1829_s30  ;;  %71 = vst [vmem:[#allocation0 + $0x78] sm:$0x3] %v1494_v9  ;;  %v146_v16 = vld [vmem:[#allocation0 + $0x80] sm:$0x3]   ;;  %s1831_s17 = smov 124   ;;  %s1832_s18 = smov 123  }
   0xc   :  { %79 = vst [vmem:[#allocation0 + $0x68] sm:$0x3] %v1496_v12  ;;  %v161_v18 = vld [vmem:[#allocation0 + $0x38] sm:$0x3]   ;;  %v1487_v23 = vld [vmem:[%s2816_s0 + $0x2c] sm:$0x3] }
   0xd   :  { %15 = vst [vmem:[#allocation0 + $0xe8] sm:$0x3] %v1480_v13  ;;  %v186_v22 = vld [vmem:[#allocation0 + $0xfb] ss:$-1 sm:%s185_s10]   ;;  %v1507_v27 = vld [vmem:[%s2816_s0 + $0x4] sm:$0x3] }
   0xe   :  { %115 = vst [vmem:[#allocation0 + $0x20] sm:$0x3] %v1505_v14  ;;  %v183_v24 = vld [vmem:[#allocation0 + $0x31] ss:$-1 sm:%s182_s11]   ;;  %v1498_v25 = vld [vmem:[%s2816_s0 + $0x16] sm:$0x3] }
   0xf   :  { %39 = vst [vmem:[#allocation0 + $0xb8] sm:$0x3] %v1486_v15  ;;  %v1482_v26 = vld [vmem:[%s2816_s0 + $0x36] sm:$0x3]  ;;  %v188_v28 = vsel %vm187_vm0, %v186_v22, %v183_v24  ;;  %v197_v29 = vld [vmem:[#allocation0 + $0x70] sm:$0x3]  }
  0x10   :  { %83 = vst [vmem:[#allocation0 + $0x60] sm:$0x3] %v1497_v17  ;;  %v1488_v31 = vld [vmem:[%s2816_s0 + $0x2a] sm:$0x3]  ;;  %v1499_v32 = vld [vmem:[%s2816_s0 + $0x14] sm:$0x3] }
  0x11   :  { %19 = vst [vmem:[#allocation0 + $0xe0] sm:$0x3] %v1481_v19  ;;  %s211_s2 = smov 3  ;;  %s214_s3 = smov 12  ;;  %v1483_v33 = vld [vmem:[%s2816_s0 + $0x34] sm:$0x3] }
  0x12   :  { %147 = vrot.lane.b32.xlu0 %v146_v16, %s1830_s16  ;;  %v168_v21 = vld [vmem:[#allocation0 + $0x78] sm:$0x3]   ;;  %119 = vst [vmem:[#allocation0 + $0x18] sm:$0x3] %v1506_v20  ;;  %s1833_s4 = smov 121   ;;  %s1834_s7 = smov 120  }
  0x13   :  { %162 = vrot.lane.b32.xlu1 %v161_v18, %s1831_s17  ;;  %169 = vrot.lane.b32.xlu2 %v168_v21, %s1832_s18  ;;  %43 = vst [vmem:[#allocation0 + $0xb0] sm:$0x3] %v1487_v23  ;;  %s1835_s8 = smov 122   ;;  %v1508_v34 = vld [vmem:[%s2816_s0 + $0x2] sm:$0x3]  ;;  %s1836_s17 = smov 118  }
  0x14   :  { %87 = vst [vmem:[#allocation0 + $0x58] sm:$0x3] %v1498_v25  ;;  %v212_v35 = vld [vmem:[#allocation0 + $0x29] ss:$-1 sm:%s211_s2]   ;;  %v215_v36 = vld [vmem:[#allocation0 + $0xf3] ss:$-1 sm:%s214_s3]  }
  0x15   :  { %23 = vst [vmem:[#allocation0 + $0xd8] sm:$0x3] %v1482_v26  ;;  %v217_v37 = vsel %vm187_vm0, %v215_v36, %v212_v35  ;;  %v226_v38 = vld [vmem:[#allocation0 + $0x68] sm:$0x3]   ;;  %v1500_v41 = vld [vmem:[%s2816_s0 + $0x12] sm:$0x3] }
  0x16   :  { %v175_v30 = vld [vmem:[#allocation0 + $0xb8] sm:$0x3]   ;;  %123 = vst [vmem:[#allocation0 + $0x10] sm:$0x3] %v1507_v27  ;;  %v1489_v40 = vld [vmem:[%s2816_s0 + $0x28] sm:$0x3] }
  0x17   :  { %47 = vst [vmem:[#allocation0 + $0xa8] sm:$0x3] %v1488_v31  ;;  %v1484_v42 = vld [vmem:[%s2816_s0 + $0x32] sm:$0x3]  ;;  %v128_v43 = vld [vmem:[%s2816_s0] sm:$0x3] }
  0x18   :  { %91 = vst [vmem:[#allocation0 + $0x50] sm:$0x3] %v1499_v32  ;;  %s1837_s20 = smov 117   ;;  %s253_s21 = smov 3  ;;  %v240_v44 = vld [vmem:[#allocation0 + $0x20] sm:$0x3]  }
  0x19   :  { %27 = vst [vmem:[#allocation0 + $0xd0] sm:$0x3] %v1483_v33  ;;  %s1838_s22 = smov 119   ;;  %v242_v45 = vld [vmem:[#allocation0 + $0xe6] sm:$0xc]   ;;  %s1839_s25 = smov 115  }
  0x1a   :  { %189 = vrot.lane.b32.xlu0 %v188_v28, %s1833_s4  ;;  %127 = vst [vmem:[#allocation0 + $0x8] sm:$0x3] %v1508_v34  ;;  %v204_v39 = vld [vmem:[#allocation0 + $0xb0] sm:$0x3]   ;;  %v244_v46 = vsel %vm187_vm0, %v242_v45, %v240_v44  ;;  %v254_v47 = vld [vmem:[#allocation0 + $0x61] ss:$-1 sm:%s253_s21]  }
  0x1b   :  { %198 = vrot.lane.b32.xlu1 %v197_v29, %s1834_s7  ;;  %176 = vrot.lane.b32.xlu2 %v175_v30, %s1835_s8  ;;  %51 = vst [vmem:[#allocation0 + $0xa0] sm:$0x3] %v1489_v40  ;;  %v1490_v49 = vld [vmem:[%s2816_s0 + $0x26] sm:$0x3]  ;;  %s1840_s26 = smov 114   ;;  %s1841_s27 = smov 116  }
  0x1c   :  { %95 = vst [vmem:[#allocation0 + $0x48] sm:$0x3] %v1500_v41  ;;  %v268_v50 = vld [vmem:[#allocation0 + $0x18] sm:$0x3]   ;;  %v270_v51 = vld [vmem:[#allocation0 + $0xde] sm:$0xc]  }
  0x1d   :  { %31 = vst [vmem:[#allocation0 + $0xc8] sm:$0x3] %v1484_v42  ;;  %s281_s28 = smov 3  ;;  %v272_v52 = vsel %vm187_vm0, %v270_v51, %v268_v50  ;;  %v1491_v55 = vld [vmem:[%s2816_s0 + $0x24] sm:$0x3]  ;;  %s1842_s2 = smov 112  }
  0x1e   :  { %129 = vst [vmem:[#allocation0] sm:$0x3] %v128_v43  ;;  %v233_v48 = vld [vmem:[#allocation0 + $0xa8] sm:$0x3]   ;;  %v282_v53 = vld [vmem:[#allocation0 + $0x59] ss:$-1 sm:%s281_s28]  }
  0x1f   :  { %55 = vst [vmem:[#allocation0 + $0x98] sm:$0x3] %v1490_v49  ;;  %s1843_s3 = smov 111   ;;  %s1844_s4 = smov 113   ;;  %v296_v56 = vld [vmem:[#allocation0 + $0x10] sm:$0x3]  }
  0x20   :  { %59 = vst [vmem:[#allocation0 + $0x90] sm:$0x3] %v1491_v55  ;;  %v298_v57 = vld [vmem:[#allocation0 + $0xd6] sm:$0xc]   ;;  %v309_v59 = vld [vmem:[#allocation0 + $0x50] sm:$0x3]  }
  0x21   :  { %v300_v58 = vsel %vm187_vm0, %v298_v57, %v296_v56  ;;  %v1492_v61 = vld [vmem:[%s2816_s0 + $0x22] sm:$0x3]  ;;  %s1845_s0 = smov 109   ;;  %s1846_s7 = smov 108   ;;  %v324_v62 = vld [vmem:[#allocation0 + $0x8] sm:$0x3]  }
  0x22   :  { %218 = vrot.lane.b32.xlu0 %v217_v37, %s1836_s17  ;;  %v261_v54 = vld [vmem:[#allocation0 + $0xa0] sm:$0x3]   ;;  %63 = vst [vmem:[#allocation0 + $0x88] sm:$0x3] %v1492_v61  ;;  %s1847_s8 = smov 110   ;;  %s316_s9 = smov 3 }
  0x23   :  { %227 = vrot.lane.b32.xlu1 %v226_v38, %s1837_s20  ;;  %205 = vrot.lane.b32.xlu2 %v204_v39, %s1838_s22  ;;  %v326_v63 = vld [vmem:[#allocation0 + $0xce] sm:$0xc]   ;;  %v337_v1 = vld [vmem:[#allocation0 + $0x48] sm:$0x3]   ;;  %s1848_s10 = smov 106   ;;  %s1849_s11 = smov 105  }
  0x24   :  { %v328_v0 = vsel %vm187_vm0, %v326_v63, %v324_v62  ;;  %s1850_s12 = smov 107   ;;  %v353_v4 = vld [vmem:[#allocation0 + $0xc6] sm:$0xc]   ;;  %s344_s13 = smov 3  ;;  %v364_v6 = vld [vmem:[#allocation0 + $0x40] sm:$0x3]  }
  0x25   :  { %v351_v3 = vld [vmem:[#allocation0] sm:$0x3]   ;;  %s1851_s14 = smov 103   ;;  %s1852_s15 = smov 102   ;;  %v386_v9 = vld [vmem:[#allocation0 + $0x38] sm:$0x3]  }
  0x26   :  { %v289_v60 = vld [vmem:[#allocation0 + $0x98] sm:$0x3]   ;;  %v355_v5 = vsel %vm187_vm0, %v353_v4, %v351_v3  ;;  %s1853_s16 = smov 104   ;;  %s378_s17 = smov 3  ;;  %v371_v10 = vld [vmem:[#allocation0 + $0x80] sm:$0x3]  }
  0x27   :  { %v317_v2 = vld [vmem:[#allocation0 + $0x91] ss:$-1 sm:%s316_s9]   ;;  %v379_v8 = vld [vmem:[#allocation0 + $0xc1] ss:$-1 sm:%s378_s17]   ;;  %s1854_s18 = smov 100   ;;  %s1855_s19 = smov 99  }
  0x28   :  { %s1856_s20 = smov 101   ;;  %v407_v11 = vld [vmem:[#allocation0 + $0x30] sm:$0x3]   ;;  %v409_v12 = vld [vmem:[#allocation0 + $0xf6] sm:$0xc]   ;;  %s1857_s21 = smov 97  }
  0x29   :  { %v345_v7 = vld [vmem:[#allocation0 + $0x89] ss:$-1 sm:%s344_s13]   ;;  %v400_v13 = vld [vmem:[#allocation0 + $0xb8] sm:$0x3]   ;;  %v411_v14 = vsel %vm187_vm0, %v409_v12, %v407_v11  ;;  %s434_s22 = smov 3  ;;  %s437_s23 = smov 12 }
  0x2a   :  { %245 = vrot.lane.b32.xlu0 %v244_v46, %s1839_s25  ;;  %v393_v15 = vld [vmem:[#allocation0 + $0x78] sm:$0x3]   ;;  %s1858_s24 = smov 96   ;;  %s1859_s25 = smov 98   ;;  %v435_v16 = vld [vmem:[#allocation0 + $0x29] ss:$-1 sm:%s434_s22]  }
  0x2b   :  { %255 = vrot.lane.b32.xlu1 %v254_v47, %s1840_s26  ;;  %234 = vrot.lane.b32.xlu2 %v233_v48, %s1841_s27  ;;  %v438_v17 = vld [vmem:[#allocation0 + $0xf3] ss:$-1 sm:%s437_s23]   ;;  %s1860_s26 = smov 94   ;;  %s1861_s27 = smov 93   ;;  %v463_v21 = vld [vmem:[#allocation0 + $0x20] sm:$0x3]  }
  0x2c   :  { %v427_v18 = vld [vmem:[#allocation0 + $0xb0] sm:$0x3]   ;;  %v440_v19 = vsel %vm187_vm0, %v438_v17, %v435_v16  ;;  %s1862_s28 = smov 95   ;;  %v465_v22 = vld [vmem:[#allocation0 + $0xe6] sm:$0xc]   ;;  %s1863_s29 = smov 91  }
  0x2d   :  { %v420_v20 = vld [vmem:[#allocation0 + $0x70] sm:$0x3]   ;;  %v456_v23 = vld [vmem:[#allocation0 + $0xa8] sm:$0x3]   ;;  %v467_v24 = vsel %vm187_vm0, %v465_v22, %v463_v21  ;;  %s1864_s30 = smov 90   ;;  %s1866_s6 = smov 88  }
  0x2e   :  { %v449_v25 = vld [vmem:[#allocation0 + $0x68] sm:$0x3]   ;;  %v491_v26 = vld [vmem:[#allocation0 + $0x18] sm:$0x3]   ;;  %v493_v27 = vld [vmem:[#allocation0 + $0xde] sm:$0xc]  }
  0x2f   :  { %v484_v29 = vld [vmem:[#allocation0 + $0xa0] sm:$0x3]   ;;  %v495_v30 = vsel %vm187_vm0, %v493_v27, %v491_v26  ;;  %v519_v32 = vld [vmem:[#allocation0 + $0x10] sm:$0x3]   ;;  %v521_v33 = vld [vmem:[#allocation0 + $0xd6] sm:$0xc]  }
  0x30   :  { %v512_v35 = vld [vmem:[#allocation0 + $0x98] sm:$0x3]   ;;  %v523_v36 = vsel %vm187_vm0, %v521_v33, %v519_v32  ;;  %s1871_s13 = smov 86   ;;  %v547_v39 = vld [vmem:[#allocation0 + $0x8] sm:$0x3]   ;;  %s1873_s22 = smov 81  }
  0x31   :  { %v549_v41 = vld [vmem:[#allocation0 + $0xce] sm:$0xc]   ;;  %s1874_s23 = smov 83   ;;  %v574_v47 = vld [vmem:[#allocation0] sm:$0x3]   ;;  %s601_s5 = smov 3 }
  0x32   :  { %273 = vrot.lane.b32.xlu0 %v272_v52, %s1842_s2  ;;  %s1865_s2 = smov 92   ;;  %v551_v44 = vsel %vm187_vm0, %v549_v41, %v547_v39  ;;  %v532_v45 = vld [vmem:[#allocation0 + $0x50] sm:$0x3]   ;;  %v576_v49 = vld [vmem:[#allocation0 + $0xc6] sm:$0xc]   ;;  %s1885_s9 = smov 69  }
  0x33   :  { %283 = vrot.lane.b32.xlu1 %v282_v53, %s1843_s3  ;;  %262 = vrot.lane.b32.xlu2 %v261_v54, %s1844_s4  ;;  %s476_s3 = smov 3  ;;  %v578_v52 = vsel %vm187_vm0, %v576_v49, %v574_v47  ;;  %v560_v53 = vld [vmem:[#allocation0 + $0x48] sm:$0x3]   ;;  %s1877_s4 = smov 80   ;;  %v594_v57 = vld [vmem:[#allocation0 + $0x80] sm:$0x3]  }
  0x34   :  { %v477_v31 = vld [vmem:[#allocation0 + $0x61] ss:$-1 sm:%s476_s3]   ;;  %s1876_s3 = smov 78   ;;  %v616_v63 = vld [vmem:[#allocation0 + $0x78] sm:$0x3]   ;;  %s762_s17 = smov 3 }
  0x35   :  { %v631_v3 = vld [vmem:[#allocation0 + $0x30] sm:$0x3]   ;;  %v680_v16 = vld [vmem:[#allocation0 + $0xa8] sm:$0x3]   ;;  %v714_v27 = vld [vmem:[#allocation0 + $0x18] sm:$0x3]  }
  0x36   :  { %v689_v22 = vld [vmem:[#allocation0 + $0xe6] sm:$0xc]   ;;  %v735_v32 = vld [vmem:[#allocation0 + $0x98] sm:$0x3]   ;;  %v755_v39 = vld [vmem:[#allocation0 + $0x50] sm:$0x3]  }
  0x37   :  { %v130_v47 = vld [vmem:[#allocation0] sm:$0x3]   ;;  %v783_v49 = vld [vmem:[#allocation0 + $0x48] sm:$0x3]   ;;  %vm1103_vm4 = vcmask 875520   ;;  %vm1073_vm5 = vcmask 859136  }
  0x38   :  { %132 = vst.msk [vmem:[%s2817_s1] ss:$168 sm:$0x3] %vm131_vm1, %v130_v47   ;;  %vm1131_vm6 = vcmask 891904   ;;  %vm1157_vm7 = vcmask 900096   ;;  %vm1117_vm8 = vcmask 883712  }
  0x39   :  { %vm1189_vm9 = vcmask 916480   ;;  %vm1215_vm10 = vcmask 924672   ;;  %vm1175_vm11 = vcmask 908288   ;;  %vm1247_vm12 = vcmask 941056  }
  0x3a   :  { %301 = vrot.lane.b32.xlu0 %v300_v58, %s1845_s0  ;;  %s1867_s0 = smov 87   ;;  %v602_v58 = vld [vmem:[#allocation0 + $0xc1] ss:$-1 sm:%s601_s5]   ;;  %s1920_s5 = smov 34   ;;  %vm1269_vm13 = vcmask 949248   ;;  %vm1233_vm14 = vcmask 932864  }
  0x3b   :  { %310 = vrot.lane.b32.xlu1 %v309_v59, %s1846_s7  ;;  %290 = vrot.lane.b32.xlu2 %v289_v60, %s1847_s8  ;;  %s1868_s7 = smov 89   ;;  %s504_s8 = smov 3  ;;  %v587_v59 = vld [vmem:[#allocation0 + $0x40] sm:$0x3]   ;;  %vm1303_vm15 = vcmask 965632  }
  0x3c   :  { %v505_v37 = vld [vmem:[#allocation0 + $0x59] ss:$-1 sm:%s504_s8]   ;;  %s661_s8 = smov 12 }
  0x42   :  { %329 = vrot.lane.b32.xlu0 %v328_v0, %s1848_s10  ;;  %s1886_s10 = smov 71  }
  0x43   :  { %338 = vrot.lane.b32.xlu1 %v337_v1, %s1849_s11  ;;  %318 = vrot.lane.b32.xlu2 %v317_v2, %s1850_s12  ;;  %s1869_s11 = smov 85   ;;  %s1870_s12 = smov 84   ;;  %v609_v1 = vld [vmem:[#allocation0 + $0x38] sm:$0x3]  }
  0x4a   :  { %356 = vrot.lane.b32.xlu0 %v355_v5, %s1851_s14  ;;  %s539_s14 = smov 3 }
  0x4b   :  { %365 = vrot.lane.b32.xlu1 %v364_v6, %s1852_s15  ;;  %346 = vrot.lane.b32.xlu2 %v345_v7, %s1853_s16  ;;  %v540_v43 = vld [vmem:[#allocation0 + $0x91] ss:$-1 sm:%s539_s14]   ;;  %s1879_s14 = smov 75   ;;  %s1880_s15 = smov 77   ;;  %v633_v6 = vld [vmem:[#allocation0 + $0xf6] sm:$0xc]  }
  0x4c   :  { %s623_s16 = smov 3  ;;  %v644_v7 = vld [vmem:[#allocation0 + $0x70] sm:$0x3]  }
  0x4d   :  { %v624_v0 = vld [vmem:[#allocation0 + $0xb9] ss:$-1 sm:%s623_s16]   ;;  %s1909_s16 = smov 45  }
  0x52   :  { %380 = vrot.lane.b32.xlu0 %v379_v8, %s1854_s18  ;;  %v651_v8 = vld [vmem:[#allocation0 + $0xb0] sm:$0x3]   ;;  %s1142_s18 = smov 3 }
  0x53   :  { %387 = vrot.lane.b32.xlu1 %v386_v9, %s1855_s19  ;;  %372 = vrot.lane.b32.xlu2 %v371_v10, %s1856_s20  ;;  %v635_v9 = vsel %vm187_vm0, %v633_v6, %v631_v3  ;;  %s1887_s19 = smov 67   ;;  %s1888_s20 = smov 66   ;;  %v854_v3 = vld [vmem:[#allocation0 + $0x30] sm:$0x3]  }
  0x5a   :  { %401 = vrot.lane.b32.xlu0 %v400_v13, %s1857_s21  ;;  %s1872_s21 = smov 82  }
  0x5b   :  { %412 = vrot.lane.b32.xlu1 %v411_v14, %s1858_s24  ;;  %394 = vrot.lane.b32.xlu2 %v393_v15, %s1859_s25  ;;  %s567_s24 = smov 3  ;;  %s1881_s25 = smov 73   ;;  %v662_v14 = vld [vmem:[#allocation0 + $0xf3] ss:$-1 sm:%s661_s8]   ;;  %v673_v15 = vld [vmem:[#allocation0 + $0x68] sm:$0x3]  }
  0x5c   :  { %v568_v51 = vld [vmem:[#allocation0 + $0x89] ss:$-1 sm:%s567_s24]   ;;  %s1896_s24 = smov 58   ;;  %s1899_s8 = smov 55  }
  0x62   :  { %428 = vrot.lane.b32.xlu0 %v427_v18, %s1860_s26  ;;  %s1882_s26 = smov 72  }
  0x63   :  { %441 = vrot.lane.b32.xlu1 %v440_v19, %s1861_s27  ;;  %421 = vrot.lane.b32.xlu2 %v420_v20, %s1862_s28  ;;  %s1883_s27 = smov 74   ;;  %v687_v19 = vld [vmem:[#allocation0 + $0x20] sm:$0x3]   ;;  %s1911_s28 = smov 43  }
  0x6a   :  { %457 = vrot.lane.b32.xlu0 %v456_v23, %s1863_s29  ;;  %v700_v23 = vld [vmem:[#allocation0 + $0x60] sm:$0x3]   ;;  %s790_s29 = smov 3 }
  0x6b   :  { %468 = vrot.lane.b32.xlu1 %v467_v24, %s1864_s30  ;;  %450 = vrot.lane.b32.xlu2 %v449_v25, %s1865_s2  ;;  %s1875_s2 = smov 79   ;;  %v707_v24 = vld [vmem:[#allocation0 + $0xa0] sm:$0x3]   ;;  %v691_v25 = vsel %vm187_vm0, %v689_v22, %v687_v19  ;;  %s1890_s30 = smov 64  }
  0x6d   :  { %v170_v28 = vpop.permute.xlu2 %169  }
  0x6e   :  { %1514 = vst.msk [vmem:[%s2817_s1 + $0x4d] ss:$168 sm:$0x3] %vm131_vm1, %v170_v28  }
  0x72   :  { %485 = vrot.lane.b32.xlu0 %v484_v29, %s1866_s6  ;;  %s1921_s6 = smov 33  }
  0x73   :  { %496 = vrot.lane.b32.xlu1 %v495_v30, %s1867_s0  ;;  %478 = vrot.lane.b32.xlu2 %v477_v31, %s1868_s7  ;;  %s658_s0 = smov 3  ;;  %s1884_s7 = smov 70   ;;  %v716_v30 = vld [vmem:[#allocation0 + $0xde] sm:$0xc]  }
  0x74   :  { %v659_v11 = vld [vmem:[#allocation0 + $0x29] ss:$-1 sm:%s658_s0]   ;;  %v718_v33 = vsel %vm187_vm0, %v716_v30, %v714_v27  ;;  %s846_s0 = smov 3  ;;  %v939_v27 = vld [vmem:[#allocation0 + $0x18] sm:$0x3]  }
  0x75   :  { %v177_v34 = vpop.permute.xlu2 %176   ;;  %v664_v17 = vsel %vm187_vm0, %v662_v14, %v659_v11 }
  0x76   :  { %1515 = vst.msk [vmem:[%s2817_s1 + $0x76] ss:$168 sm:$0x3] %vm131_vm1, %v177_v34  }
  0x7a   :  { %513 = vrot.lane.b32.xlu0 %v512_v35, %s1869_s11  ;;  %v742_v35 = vld [vmem:[#allocation0 + $0x10] sm:$0x3]   ;;  %s1916_s11 = smov 41  }
  0x7b   :  { %524 = vrot.lane.b32.xlu1 %v523_v36, %s1870_s12  ;;  %506 = vrot.lane.b32.xlu2 %v505_v37, %s1871_s13  ;;  %s1878_s13 = smov 76   ;;  %s1893_s12 = smov 61  }
  0x7c   :  { %v141_v38 = vpop.permute.xlu0 %140  }
  0x7d   :  { %1510 = vst.msk [vmem:[%s2817_s1 + $0x29] ss:$168 sm:$0x3] %vm131_vm1, %v141_v38   ;;  %v156_v40 = vpop.permute.xlu1 %155   ;;  %v206_v42 = vpop.permute.xlu2 %205   ;;  %v744_v38 = vld [vmem:[#allocation0 + $0xd6] sm:$0xc]  }
  0x7e   :  { %1512 = vst.msk [vmem:[%s2817_s1 + $0x123] ss:$-168 sm:$0x3] %vm131_vm1, %v156_v40   ;;  %v763_v40 = vld [vmem:[#allocation0 + $0x91] ss:$-1 sm:%s762_s17]   ;;  %v746_v41 = vsel %vm187_vm0, %v744_v38, %v742_v35  ;;  %s1910_s17 = smov 47  }
  0x7f   :  { %1519 = vst.msk [vmem:[%s2817_s1 + $0x71] ss:$168 sm:$0x3] %vm131_vm1, %v206_v42   ;;  %v967_v35 = vld [vmem:[#allocation0 + $0x10] sm:$0x3]  }
  0x82   :  { %541 = vrot.lane.b32.xlu0 %v540_v43, %s1872_s21  ;;  %s1889_s21 = smov 68   ;;  %v770_v43 = vld [vmem:[#allocation0 + $0x8] sm:$0x3]  }
  0x83   :  { %552 = vrot.lane.b32.xlu1 %v551_v44, %s1873_s22  ;;  %533 = vrot.lane.b32.xlu2 %v532_v45, %s1874_s23  ;;  %v772_v44 = vld [vmem:[#allocation0 + $0xce] sm:$0xc]   ;;  %s1918_s22 = smov 36   ;;  %s1919_s23 = smov 38  }
  0x84   :  { %v148_v46 = vpop.permute.xlu0 %147  }
  0x85   :  { %1511 = vst.msk [vmem:[%s2817_s1 + $0x52] ss:$168 sm:$0x3] %vm131_vm1, %v148_v46   ;;  %v163_v48 = vpop.permute.xlu1 %162   ;;  %v235_v50 = vpop.permute.xlu2 %234  }
  0x86   :  { %1513 = vst.msk [vmem:[%s2817_s1 + $0x24] ss:$168 sm:$0x3] %vm131_vm1, %v163_v48   ;;  %v134_v48 = vld [vmem:[#allocation0 + $0xc8] sm:$0x3]  }
  0x87   :  { %1523 = vst.msk [vmem:[%s2817_s1 + $0x6c] ss:$168 sm:$0x3] %vm131_vm1, %v235_v50   ;;  %v791_v50 = vld [vmem:[#allocation0 + $0x89] ss:$-1 sm:%s790_s29]   ;;  %s1912_s29 = smov 42  }
  0x88   :  { %1509 = vst.msk [vmem:[%s2817_s1 + $0x80] ss:$168 sm:$0x3] %vm131_vm1, %v134_v48   ;;  %v1007_v48 = vld [vmem:[#allocation0 + $0x48] sm:$0x3]  }
  0x8a   :  { %569 = vrot.lane.b32.xlu0 %v568_v51, %s1875_s2  ;;  %s1891_s2 = smov 63   ;;  %v774_v51 = vsel %vm187_vm0, %v772_v44, %v770_v43  ;;  %v994_v43 = vld [vmem:[#allocation0 + $0x8] sm:$0x3]   ;;  %v996_v44 = vld [vmem:[#allocation0 + $0xce] sm:$0xc]  }
  0x8b   :  { %579 = vrot.lane.b32.xlu1 %v578_v52, %s1876_s3  ;;  %561 = vrot.lane.b32.xlu2 %v560_v53, %s1877_s4  ;;  %s1892_s3 = smov 65   ;;  %s727_s4 = smov 3  ;;  %v797_v53 = vld [vmem:[#allocation0] sm:$0x3]   ;;  %v998_v47 = vsel %vm187_vm0, %v996_v44, %v994_v43 }
  0x8c   :  { %v190_v54 = vpop.permute.xlu0 %189   ;;  %v728_v31 = vld [vmem:[#allocation0 + $0x59] ss:$-1 sm:%s727_s4]   ;;  %s1907_s4 = smov 50  }
  0x8d   :  { %1516 = vst.msk [vmem:[%s2817_s1 + $0xc7] ss:$-168 sm:$0x3] %vm131_vm1, %v190_v54   ;;  %v199_v55 = vpop.permute.xlu1 %198   ;;  %v263_v56 = vpop.permute.xlu2 %262  }
  0x8e   :  { %1517 = vst.msk [vmem:[%s2817_s1 + $0x297] ss:$-168 sm:$0xc] %vm131_vm1, %v190_v54  }
  0x8f   :  { %1518 = vst.msk [vmem:[%s2817_s1 + $0x48] ss:$168 sm:$0x3] %vm131_vm1, %v199_v55  }
  0x90   :  { %1527 = vst.msk [vmem:[%s2817_s1 + $0x67] ss:$168 sm:$0x3] %vm131_vm1, %v263_v56   ;;  %v799_v56 = vld [vmem:[#allocation0 + $0xc6] sm:$0xc]  }
  0x92   :  { %595 = vrot.lane.b32.xlu0 %v594_v57, %s1878_s13  ;;  %s1894_s13 = smov 60   ;;  %v810_v57 = vld [vmem:[#allocation0 + $0x40] sm:$0x3]  }
  0x93   :  { %603 = vrot.lane.b32.xlu1 %v602_v58, %s1879_s14  ;;  %588 = vrot.lane.b32.xlu2 %v587_v59, %s1880_s15  ;;  %s1895_s14 = smov 62   ;;  %v817_v58 = vld [vmem:[#allocation0 + $0x80] sm:$0x3]   ;;  %v801_v59 = vsel %vm187_vm0, %v799_v56, %v797_v53  ;;  %s1908_s15 = smov 46  }
  0x94   :  { %v219_v60 = vpop.permute.xlu0 %218   ;;  %v1034_v56 = vld [vmem:[#allocation0 + $0x40] sm:$0x3]  }
  0x95   :  { %1520 = vst.msk [vmem:[%s2817_s1 + $0xc2] ss:$-168 sm:$0x3] %vm131_vm1, %v219_v60   ;;  %v228_v61 = vpop.permute.xlu1 %227   ;;  %v291_v62 = vpop.permute.xlu2 %290  }
  0x96   :  { %1521 = vst.msk [vmem:[%s2817_s1 + $0x292] ss:$-168 sm:$0xc] %vm131_vm1, %v219_v60  }
  0x97   :  { %1522 = vst.msk [vmem:[%s2817_s1 + $0x43] ss:$168 sm:$0x3] %vm131_vm1, %v228_v61  }
  0x98   :  { %1531 = vst.msk [vmem:[%s2817_s1 + $0x62] ss:$168 sm:$0x3] %vm131_vm1, %v291_v62  }
  0x9a   :  { %617 = vrot.lane.b32.xlu0 %v616_v63, %s1881_s25  ;;  %s1897_s25 = smov 57   ;;  %v832_v63 = vld [vmem:[#allocation0 + $0x38] sm:$0x3]  }
  0x9b   :  { %625 = vrot.lane.b32.xlu1 %v624_v0, %s1882_s26  ;;  %610 = vrot.lane.b32.xlu2 %v609_v1, %s1883_s27  ;;  %s1898_s26 = smov 59   ;;  %v839_v0 = vld [vmem:[#allocation0 + $0x78] sm:$0x3]   ;;  %s913_s27 = smov 12 }
  0x9c   :  { %v246_v2 = vpop.permute.xlu0 %245  }
  0x9d   :  { %1524 = vst.msk [vmem:[%s2817_s1 + $0x15] ss:$168 sm:$0x3] %vm131_vm1, %v246_v2   ;;  %v256_v4 = vpop.permute.xlu1 %255   ;;  %v319_v5 = vpop.permute.xlu2 %318  }
  0x9e   :  { %1525 = vst.msk [vmem:[%s2817_s1 - $0xbb] ss:$168 sm:$0xc] %vm131_vm1, %v246_v2  }
  0x9f   :  { %1526 = vst.msk [vmem:[%s2817_s1 + $0xe6] ss:$-168 sm:$0x3] %vm131_vm1, %v256_v4   ;;  %v856_v4 = vld [vmem:[#allocation0 + $0xf6] sm:$0xc]  }
  0xa0   :  { %1535 = vst.msk [vmem:[%s2817_s1 + $0x105] ss:$-168 sm:$0x3] %vm131_vm1, %v319_v5  }
  0xa2   :  { %645 = vrot.lane.b32.xlu0 %v644_v7, %s1884_s7  ;;  %v858_v7 = vsel %vm187_vm0, %v856_v4, %v854_v3 }
  0xa3   :  { %652 = vrot.lane.b32.xlu1 %v651_v8, %s1885_s9  ;;  %636 = vrot.lane.b32.xlu2 %v635_v9, %s1886_s10  ;;  %s1900_s9 = smov 54   ;;  %s1901_s10 = smov 56   ;;  %v867_v8 = vld [vmem:[#allocation0 + $0x70] sm:$0x3]   ;;  %v847_v9 = vld [vmem:[#allocation0 + $0xb9] ss:$-1 sm:%s846_s0]  }
  0xa4   :  { %v274_v10 = vpop.permute.xlu0 %273   ;;  %s1922_s0 = smov 35  }
  0xa5   :  { %1528 = vst.msk [vmem:[%s2817_s1 + $0x10] ss:$168 sm:$0x3] %vm131_vm1, %v274_v10   ;;  %v284_v12 = vpop.permute.xlu1 %283   ;;  %v347_v13 = vpop.permute.xlu2 %346  }
  0xa6   :  { %1529 = vst.msk [vmem:[%s2817_s1 - $0xc0] ss:$168 sm:$0xc] %vm131_vm1, %v274_v10  }
  0xa7   :  { %1530 = vst.msk [vmem:[%s2817_s1 + $0xe1] ss:$-168 sm:$0x3] %vm131_vm1, %v284_v12  }
  0xa8   :  { %1539 = vst.msk [vmem:[%s2817_s1 + $0x100] ss:$-168 sm:$0x3] %vm131_vm1, %v347_v13  }
  0xaa   :  { %674 = vrot.lane.b32.xlu0 %v673_v15, %s1887_s19  ;;  %s1902_s19 = smov 52  }
  0xab   :  { %681 = vrot.lane.b32.xlu1 %v680_v16, %s1888_s20  ;;  %665 = vrot.lane.b32.xlu2 %v664_v17, %s1889_s21  ;;  %s1903_s20 = smov 51   ;;  %s1904_s21 = smov 53   ;;  %v896_v16 = vld [vmem:[#allocation0 + $0x68] sm:$0x3]   ;;  %v874_v17 = vld [vmem:[#allocation0 + $0xb0] sm:$0x3]  }
  0xac   :  { %v302_v18 = vpop.permute.xlu0 %301  }
  0xad   :  { %1532 = vst.msk [vmem:[%s2817_s1 + $0xb] ss:$168 sm:$0x3] %vm131_vm1, %v302_v18   ;;  %v311_v20 = vpop.permute.xlu1 %310   ;;  %v373_v21 = vpop.permute.xlu2 %372  }
  0xae   :  { %1533 = vst.msk [vmem:[%s2817_s1 - $0xc5] ss:$168 sm:$0xc] %vm131_vm1, %v302_v18  }
  0xaf   :  { %1534 = vst.msk [vmem:[%s2817_s1 + $0x34] ss:$168 sm:$0x3] %vm131_vm1, %v311_v20   ;;  %v914_v20 = vld [vmem:[#allocation0 + $0xeb] ss:$-1 sm:%s913_s27]   ;;  %s1926_s27 = smov 28  }
  0xb0   :  { %1543 = vst.msk [vmem:[%s2817_s1 + $0x53] ss:$168 sm:$0x3] %vm131_vm1, %v373_v21  }
  0xb2   :  { %701 = vrot.lane.b32.xlu0 %v700_v23, %s1890_s30  ;;  %s1913_s30 = smov 44  }
  0xb3   :  { %708 = vrot.lane.b32.xlu1 %v707_v24, %s1891_s2  ;;  %692 = vrot.lane.b32.xlu2 %v691_v25, %s1892_s3  ;;  %s1905_s2 = smov 49   ;;  %s1906_s3 = smov 48   ;;  %v925_v24 = vld [vmem:[#allocation0 + $0x60] sm:$0x3]   ;;  %v903_v25 = vld [vmem:[#allocation0 + $0xa8] sm:$0x3]  }
  0xb4   :  { %v330_v26 = vpop.permute.xlu0 %329  }
  0xb5   :  { %1536 = vst.msk [vmem:[%s2817_s1 + $0x6] ss:$168 sm:$0x3] %vm131_vm1, %v330_v26   ;;  %v339_v28 = vpop.permute.xlu1 %338   ;;  %v395_v29 = vpop.permute.xlu2 %394  }
  0xb6   :  { %1537 = vst.msk [vmem:[%s2817_s1 - $0xca] ss:$168 sm:$0xc] %vm131_vm1, %v330_v26  }
  0xb7   :  { %1538 = vst.msk [vmem:[%s2817_s1 + $0x2f] ss:$168 sm:$0x3] %vm131_vm1, %v339_v28   ;;  %v941_v28 = vld [vmem:[#allocation0 + $0xde] sm:$0xc]  }
  0xb8   :  { %1546 = vst.msk [vmem:[%s2817_s1 + $0x4e] ss:$168 sm:$0x3] %vm131_vm1, %v395_v29  }
  0xba   :  { %729 = vrot.lane.b32.xlu0 %v728_v31, %s1893_s12  ;;  %s952_s12 = smov 3  ;;  %v943_v31 = vsel %vm187_vm0, %v941_v28, %v939_v27 }
  0xbb   :  { %736 = vrot.lane.b32.xlu1 %v735_v32, %s1894_s13  ;;  %719 = vrot.lane.b32.xlu2 %v718_v33, %s1895_s14  ;;  %s881_s13 = smov 3  ;;  %s884_s14 = smov 12  ;;  %v953_v32 = vld [vmem:[#allocation0 + $0x59] ss:$-1 sm:%s952_s12]   ;;  %v932_v33 = vld [vmem:[#allocation0 + $0xa0] sm:$0x3]  }
  0xbc   :  { %v357_v34 = vpop.permute.xlu0 %356   ;;  %v882_v11 = vld [vmem:[#allocation0 + $0x29] ss:$-1 sm:%s881_s13]   ;;  %v885_v12 = vld [vmem:[#allocation0 + $0xf3] ss:$-1 sm:%s884_s14]   ;;  %s1930_s12 = smov 24   ;;  %s1931_s13 = smov 26  }
  0xbd   :  { %1540 = vst.msk [vmem:[%s2817_s1 + $0x1] ss:$168 sm:$0x3] %vm131_vm1, %v357_v34   ;;  %v366_v36 = vpop.permute.xlu1 %365   ;;  %v422_v37 = vpop.permute.xlu2 %421   ;;  %v887_v15 = vsel %vm187_vm0, %v885_v12, %v882_v11  ;;  %s1944_s14 = smov 10  }
  0xbe   :  { %1541 = vst.msk [vmem:[%s2817_s1 - $0xcf] ss:$168 sm:$0xc] %vm131_vm1, %v357_v34  }
  0xbf   :  { %1542 = vst.msk [vmem:[%s2817_s1 + $0x2a] ss:$168 sm:$0x3] %vm131_vm1, %v366_v36   ;;  %v969_v36 = vld [vmem:[#allocation0 + $0xd6] sm:$0xc]  }
  0xc0   :  { %1550 = vst.msk [vmem:[%s2817_s1 + $0x49] ss:$168 sm:$0x3] %vm131_vm1, %v422_v37  }
  0xc2   :  { %756 = vrot.lane.b32.xlu0 %v755_v39, %s1896_s24  ;;  %s824_s24 = smov 3  ;;  %v971_v39 = vsel %vm187_vm0, %v969_v36, %v967_v35  ;;  %v1188_v36 = vld [vmem:[#allocation0 + $0xb0] sm:$0x3]  }
  0xc3   :  { %764 = vrot.lane.b32.xlu1 %v763_v40, %s1897_s25  ;;  %747 = vrot.lane.b32.xlu2 %v746_v41, %s1898_s26  ;;  %v825_v1 = vld [vmem:[#allocation0 + $0xc1] ss:$-1 sm:%s824_s24]   ;;  %s910_s26 = smov 3  ;;  %v980_v40 = vld [vmem:[#allocation0 + $0x50] sm:$0x3]   ;;  %s1940_s24 = smov 17  }
  0xc4   :  { %v381_v42 = vpop.permute.xlu0 %380   ;;  %v911_v19 = vld [vmem:[#allocation0 + $0x21] ss:$-1 sm:%s910_s26]   ;;  %v960_v41 = vld [vmem:[#allocation0 + $0x98] sm:$0x3]   ;;  %s1932_s26 = smov 22   ;;  %s1947_s25 = smov 7  }
  0xc5   :  { %1544 = vst.msk [vmem:[%s2817_s1 + $0x124] ss:$-168 sm:$0x3] %vm131_vm1, %v381_v42   ;;  %v388_v45 = vpop.permute.xlu1 %387   ;;  %v451_v46 = vpop.permute.xlu2 %450   ;;  %v916_v23 = vsel %vm187_vm0, %v914_v20, %v911_v19  ;;  %v1130_v20 = vld [vmem:[#allocation0 + $0xb8] sm:$0x3]  }
  0xc6   :  { %1545 = vst.msk [vmem:[%s2817_s1 + $0x25] ss:$168 sm:$0x3] %vm131_vm1, %v388_v45  }
  0xc7   :  { %1554 = vst.msk [vmem:[%s2817_s1 + $0x44] ss:$168 sm:$0x3] %vm131_vm1, %v451_v46  }
  0xca   :  { %784 = vrot.lane.b32.xlu0 %v783_v49, %s1899_s8  ;;  %v987_v49 = vld [vmem:[#allocation0 + $0x90] sm:$0x3]  }
  0xcb   :  { %792 = vrot.lane.b32.xlu1 %v791_v50, %s1900_s9  ;;  %775 = vrot.lane.b32.xlu2 %v774_v51, %s1901_s10  ;;  %s1914_s9 = smov 40   ;;  %s1915_s10 = smov 39   ;;  %v1021_v51 = vld [vmem:[#allocation0] sm:$0x3]  }
  0xcc   :  { %v402_v52 = vpop.permute.xlu0 %401  }
  0xcd   :  { %1547 = vst.msk [vmem:[%s2817_s1 + $0x77] ss:$168 sm:$0x3] %vm131_vm1, %v402_v52   ;;  %v413_v54 = vpop.permute.xlu1 %412   ;;  %v479_v55 = vpop.permute.xlu2 %478   ;;  %v1023_v52 = vld [vmem:[#allocation0 + $0xc6] sm:$0xc]  }
  0xce   :  { %1548 = vst.msk [vmem:[%s2817_s1 + $0x20] ss:$168 sm:$0x3] %vm131_vm1, %v413_v54  }
  0xcf   :  { %1549 = vst.msk [vmem:[%s2817_s1 - $0xb0] ss:$168 sm:$0xc] %vm131_vm1, %v413_v54  }
  0xd0   :  { %1558 = vst.msk [vmem:[%s2817_s1 + $0xe7] ss:$-168 sm:$0x3] %vm131_vm1, %v479_v55   ;;  %v1025_v55 = vsel %vm187_vm0, %v1023_v52, %v1021_v51  ;;  %v1246_v52 = vld [vmem:[#allocation0 + $0xa8] sm:$0x3]  }
  0xd2   :  { %811 = vrot.lane.b32.xlu0 %v810_v57, %s1902_s19  ;;  %s1145_s19 = smov 12 }
  0xd3   :  { %818 = vrot.lane.b32.xlu1 %v817_v58, %s1903_s20  ;;  %802 = vrot.lane.b32.xlu2 %v801_v59, %s1904_s21  ;;  %s1917_s21 = smov 37   ;;  %s1014_s20 = smov 3  ;;  %v1056_v59 = vld [vmem:[#allocation0 + $0x38] sm:$0x3]  }
  0xd4   :  { %v429_v60 = vpop.permute.xlu0 %428   ;;  %v1015_v57 = vld [vmem:[#allocation0 + $0x89] ss:$-1 sm:%s1014_s20]   ;;  %s1150_s20 = smov 3 }
  0xd5   :  { %1551 = vst.msk [vmem:[%s2817_s1 + $0x72] ss:$168 sm:$0x3] %vm131_vm1, %v429_v60   ;;  %v442_v61 = vpop.permute.xlu1 %441   ;;  %v507_v62 = vpop.permute.xlu2 %506  }
  0xd6   :  { %1552 = vst.msk [vmem:[%s2817_s1 + $0xc3] ss:$-168 sm:$0x3] %vm131_vm1, %v442_v61  }
  0xd7   :  { %1553 = vst.msk [vmem:[%s2817_s1 + $0x293] ss:$-168 sm:$0xc] %vm131_vm1, %v442_v61   ;;  %v1058_v61 = vld [vmem:[#allocation0 + $0x40] sm:$0x3]  }
  0xd8   :  { %1562 = vst.msk [vmem:[%s2817_s1 + $0xe2] ss:$-168 sm:$0x3] %vm131_vm1, %v507_v62  }
  0xda   :  { %833 = vrot.lane.b32.xlu0 %v832_v63, %s1905_s2  ;;  %s1284_s2 = smov 3 }
  0xdb   :  { %840 = vrot.lane.b32.xlu1 %v839_v0, %s1906_s3  ;;  %826 = vrot.lane.b32.xlu2 %v825_v1, %s1907_s4  ;;  %v1060_v0 = vsel %vm1059_vm2, %v1058_v61, %v1056_v59  ;;  %v1041_v1 = vld [vmem:[#allocation0 + $0x80] sm:$0x3]   ;;  %s1200_s4 = smov 3  ;;  %s1287_s3 = smov 3  ;;  %vm1325_vm2 = vcmask 973824  }
  0xdc   :  { %v458_v2 = vpop.permute.xlu0 %457  }
  0xdd   :  { %1555 = vst.msk [vmem:[%s2817_s1 + $0x6d] ss:$168 sm:$0x3] %vm131_vm1, %v458_v2   ;;  %v469_v5 = vpop.permute.xlu1 %468   ;;  %v534_v6 = vpop.permute.xlu2 %533  }
  0xde   :  { %1556 = vst.msk [vmem:[%s2817_s1 + $0x16] ss:$168 sm:$0x3] %vm131_vm1, %v469_v5  }
  0xdf   :  { %1557 = vst.msk [vmem:[%s2817_s1 - $0xba] ss:$168 sm:$0xc] %vm131_vm1, %v469_v5   ;;  %v1100_v5 = vld [vmem:[#allocation0 + $0x30] sm:$0x3]  }
  0xe0   :  { %1566 = vst.msk [vmem:[%s2817_s1 + $0x35] ss:$168 sm:$0x3] %vm131_vm1, %v534_v6   ;;  %v1102_v6 = vld [vmem:[#allocation0 + $0x38] sm:$0x3]  }
  0xe1   :  { %v1104_v12 = vsel %vm1103_vm4, %v1102_v6, %v1100_v5  ;;  %v1285_v5 = vld [vmem:[#allocation0 + $0x59] ss:$-1 sm:%s1284_s2]   ;;  %vm1359_vm4 = vcmask 990208  }
  0xe2   :  { %859 = vrot.lane.b32.xlu0 %v858_v7, %s1908_s15  ;;  %s1923_s15 = smov 31   ;;  %v1070_v7 = vld [vmem:[#allocation0 + $0x78] sm:$0x3]  }
  0xe3   :  { %868 = vrot.lane.b32.xlu1 %v867_v8, %s1909_s16  ;;  %848 = vrot.lane.b32.xlu2 %v847_v9, %s1910_s17  ;;  %s1924_s16 = smov 30   ;;  %s1925_s17 = smov 32  }
  0xe4   :  { %v486_v10 = vpop.permute.xlu0 %485  }
  0xe5   :  { %1559 = vst.msk [vmem:[%s2817_s1 + $0x68] ss:$168 sm:$0x3] %vm131_vm1, %v486_v10   ;;  %v497_v13 = vpop.permute.xlu1 %496   ;;  %v562_v14 = vpop.permute.xlu2 %561   ;;  %v1072_v10 = vld [vmem:[#allocation0 + $0x80] sm:$0x3]  }
  0xe6   :  { %1560 = vst.msk [vmem:[%s2817_s1 + $0x11] ss:$168 sm:$0x3] %vm131_vm1, %v497_v13  }
  0xe7   :  { %1561 = vst.msk [vmem:[%s2817_s1 - $0xbf] ss:$168 sm:$0xc] %vm131_vm1, %v497_v13   ;;  %v1074_v13 = vsel %vm1073_vm5, %v1072_v10, %v1070_v7  ;;  %v1288_v10 = vld [vmem:[#allocation0 + $0x61] ss:$-1 sm:%s1287_s3]   ;;  %vm1381_vm5 = vcmask 998400  }
  0xe8   :  { %1570 = vst.msk [vmem:[%s2817_s1 + $0x30] ss:$168 sm:$0x3] %vm131_vm1, %v562_v14   ;;  %v1143_v14 = vld [vmem:[#allocation0 + $0x29] ss:$-1 sm:%s1142_s18]  }
  0xea   :  { %888 = vrot.lane.b32.xlu0 %v887_v15, %s1911_s28  ;;  %s1927_s28 = smov 27   ;;  %v1146_v15 = vld [vmem:[#allocation0 + $0xf3] ss:$-1 sm:%s1145_s19]  }
  0xeb   :  { %897 = vrot.lane.b32.xlu1 %v896_v16, %s1912_s29  ;;  %875 = vrot.lane.b32.xlu2 %v874_v17, %s1913_s30  ;;  %s1928_s29 = smov 29   ;;  %s1048_s30 = smov 3  ;;  %v1151_v16 = vld [vmem:[#allocation0 + $0x31] ss:$-1 sm:%s1150_s20]  }
  0xec   :  { %v514_v18 = vpop.permute.xlu0 %513   ;;  %v1049_v63 = vld [vmem:[#allocation0 + $0xc1] ss:$-1 sm:%s1048_s30]  }
  0xed   :  { %1563 = vst.msk [vmem:[%s2817_s1 + $0x63] ss:$168 sm:$0x3] %vm131_vm1, %v514_v18   ;;  %v525_v21 = vpop.permute.xlu1 %524   ;;  %v589_v22 = vpop.permute.xlu2 %588   ;;  %v1128_v18 = vld [vmem:[#allocation0 + $0xb0] sm:$0x3]  }
  0xee   :  { %1564 = vst.msk [vmem:[%s2817_s1 + $0xc] ss:$168 sm:$0x3] %vm131_vm1, %v525_v21   ;;  %v1132_v27 = vsel %vm1131_vm6, %v1130_v20, %v1128_v18  ;;  %v1356_v18 = vld [vmem:[#allocation0 + $0x90] sm:$0x3]   ;;  %vm1345_vm6 = vcmask 982016  }
  0xef   :  { %1565 = vst.msk [vmem:[%s2817_s1 - $0xc4] ss:$168 sm:$0xc] %vm131_vm1, %v525_v21   ;;  %v1114_v21 = vld [vmem:[#allocation0 + $0x70] sm:$0x3]  }
  0xf0   :  { %1574 = vst.msk [vmem:[%s2817_s1 + $0x2b] ss:$168 sm:$0x3] %vm131_vm1, %v589_v22   ;;  %v1358_v20 = vld [vmem:[#allocation0 + $0x98] sm:$0x3]  }
  0xf2   :  { %917 = vrot.lane.b32.xlu0 %v916_v23, %s1914_s9  ;;  %v1148_v23 = vsel %vm187_vm0, %v1146_v15, %v1143_v14  ;;  %v1370_v14 = vld [vmem:[#allocation0 + $0x8] sm:$0x3]   ;;  %v1372_v15 = vld [vmem:[#allocation0 + $0xce] sm:$0xc]  }
  0xf3   :  { %926 = vrot.lane.b32.xlu1 %v925_v24, %s1915_s10  ;;  %904 = vrot.lane.b32.xlu2 %v903_v25, %s1916_s11  ;;  %s1929_s11 = smov 25  }
  0xf4   :  { %v542_v26 = vpop.permute.xlu0 %541  }
  0xf5   :  { %1567 = vst.msk [vmem:[%s2817_s1 + $0x106] ss:$-168 sm:$0x3] %vm131_vm1, %v542_v26   ;;  %v553_v29 = vpop.permute.xlu1 %552   ;;  %v611_v30 = vpop.permute.xlu2 %610   ;;  %v1116_v26 = vld [vmem:[#allocation0 + $0x78] sm:$0x3]  }
  0xf6   :  { %1568 = vst.msk [vmem:[%s2817_s1 + $0x7] ss:$168 sm:$0x3] %vm131_vm1, %v553_v29  }
  0xf7   :  { %1569 = vst.msk [vmem:[%s2817_s1 - $0xc9] ss:$168 sm:$0xc] %vm131_vm1, %v553_v29   ;;  %v1118_v29 = vsel %vm1117_vm8, %v1116_v26, %v1114_v21  ;;  %vm1436_vm8 = vcmask 1022976  }
  0xf8   :  { %1577 = vst.msk [vmem:[%s2817_s1 + $0x26] ss:$168 sm:$0x3] %vm131_vm1, %v611_v30   ;;  %v1201_v30 = vld [vmem:[#allocation0 + $0x21] ss:$-1 sm:%s1200_s4]   ;;  %s1941_s4 = smov 13  }
  0xfa   :  { %944 = vrot.lane.b32.xlu0 %v943_v31, %s1917_s21  ;;  %s1153_s21 = smov 12 }
  0xfb   :  { %954 = vrot.lane.b32.xlu1 %v953_v32, %s1918_s22  ;;  %933 = vrot.lane.b32.xlu2 %v932_v33, %s1919_s23  ;;  %v1154_v17 = vld [vmem:[#allocation0 + $0xfb] ss:$-1 sm:%s1153_s21]   ;;  %s1938_s22 = smov 16   ;;  %s1939_s23 = smov 15  }
  0xfc   :  { %v570_v34 = vpop.permute.xlu0 %569   ;;  %v1156_v24 = vsel %vm187_vm0, %v1154_v17, %v1151_v16  ;;  %v1376_v16 = vld [vmem:[#allocation0 + $0x10] sm:$0x3]   ;;  %v1378_v17 = vld [vmem:[#allocation0 + $0xd6] sm:$0xc]  }
  0xfd   :  { %1571 = vst.msk [vmem:[%s2817_s1 + $0x101] ss:$-168 sm:$0x3] %vm131_vm1, %v570_v34   ;;  %v580_v37 = vpop.permute.xlu1 %579   ;;  %v637_v38 = vpop.permute.xlu2 %636   ;;  %v1158_v28 = vsel %vm1157_vm7, %v1156_v24, %v1148_v23  ;;  %v1186_v34 = vld [vmem:[#allocation0 + $0xa8] sm:$0x3]   ;;  %v1374_v23 = vsel %vm187_vm0, %v1372_v15, %v1370_v14  ;;  %v1380_v24 = vsel %vm187_vm0, %v1378_v17, %v1376_v16  ;;  %vm1415_vm7 = vcmask 1014784  }
  0xfe   :  { %1572 = vst.msk [vmem:[%s2817_s1 + $0x2] ss:$168 sm:$0x3] %vm131_vm1, %v580_v37   ;;  %v1190_v43 = vsel %vm1189_vm9, %v1188_v36, %v1186_v34  ;;  %vm1468_vm9 = vcmask 1039360  }
  0xff   :  { %1573 = vst.msk [vmem:[%s2817_s1 - $0xce] ss:$168 sm:$0xc] %vm131_vm1, %v580_v37   ;;  %v1172_v37 = vld [vmem:[#allocation0 + $0x68] sm:$0x3]  }
 0x100   :  { %1580 = vst.msk [vmem:[%s2817_s1 + $0x21] ss:$168 sm:$0x3] %vm131_vm1, %v637_v38  }
 0x101   :  { %1581 = vst.msk [vmem:[%s2817_s1 - $0xaf] ss:$168 sm:$0xc] %vm131_vm1, %v637_v38  }
 0x102   :  { %972 = vrot.lane.b32.xlu0 %v971_v39, %s1920_s5  ;;  %s1203_s5 = smov 12 }
 0x103   :  { %981 = vrot.lane.b32.xlu1 %v980_v40, %s1921_s6  ;;  %961 = vrot.lane.b32.xlu2 %v960_v41, %s1922_s0  ;;  %s1084_s6 = smov 3  ;;  %s1087_s0 = smov 3  ;;  %v1204_v31 = vld [vmem:[#allocation0 + $0xeb] ss:$-1 sm:%s1203_s5]  }
 0x104   :  { %v596_v42 = vpop.permute.xlu0 %595   ;;  %v1085_v2 = vld [vmem:[#allocation0 + $0xb9] ss:$-1 sm:%s1084_s6]   ;;  %v1088_v3 = vld [vmem:[#allocation0 + $0xc1] ss:$-1 sm:%s1087_s0]   ;;  %s1208_s6 = smov 3  ;;  %s1211_s0 = smov 12  ;;  %v1206_v39 = vsel %vm187_vm0, %v1204_v31, %v1201_v30 }
 0x105   :  { %1575 = vst.msk [vmem:[%s2817_s1 + $0x54] ss:$168 sm:$0x3] %vm131_vm1, %v596_v42   ;;  %v604_v45 = vpop.permute.xlu1 %603   ;;  %v666_v46 = vpop.permute.xlu2 %665   ;;  %v1090_v11 = vsel %vm1089_vm3, %v1088_v3, %v1085_v2  ;;  %v1209_v32 = vld [vmem:[#allocation0 + $0x29] ss:$-1 sm:%s1208_s6]   ;;  %s1942_s5 = smov 12  }
 0x106   :  { %1576 = vst.msk [vmem:[%s2817_s1 + $0x125] ss:$-168 sm:$0x3] %vm131_vm1, %v604_v45   ;;  %v1212_v33 = vld [vmem:[#allocation0 + $0xf3] ss:$-1 sm:%s1211_s0]   ;;  %s1943_s6 = smov 14  }
 0x107   :  { %1584 = vst.msk [vmem:[%s2817_s1 + $0xc4] ss:$-168 sm:$0x3] %vm131_vm1, %v666_v46   ;;  %v1214_v40 = vsel %vm187_vm0, %v1212_v33, %v1209_v32  ;;  %v1174_v42 = vld [vmem:[#allocation0 + $0x70] sm:$0x3]   ;;  %vm1289_vm3 = vcmask 957440  }
 0x108   :  { %1585 = vst.msk [vmem:[%s2817_s1 + $0x294] ss:$-168 sm:$0xc] %vm131_vm1, %v666_v46   ;;  %v1216_v44 = vsel %vm1215_vm10, %v1214_v40, %v1206_v39  ;;  %v1176_v45 = vsel %vm1175_vm11, %v1174_v42, %v1172_v37  ;;  %v1258_v46 = vld [vmem:[#allocation0 + $0x18] sm:$0x3]   ;;  %s1952_s0 = smov 5  }
 0x109   :  { %v1300_v2 = vld [vmem:[#allocation0 + $0x98] sm:$0x3]   ;;  %v1425_v30 = vld [vmem:[#allocation0] sm:$0x3]   ;;  %v1427_v31 = vld [vmem:[#allocation0 + $0xc6] sm:$0xc]  }
 0x10a   :  { %999 = vrot.lane.b32.xlu0 %v998_v47, %s1923_s15  ;;  %v1260_v47 = vld [vmem:[#allocation0 + $0xde] sm:$0xc]   ;;  %s1945_s15 = smov 9   ;;  %v1431_v32 = vld [vmem:[#allocation0 + $0x8] sm:$0x3]   ;;  %v1429_v39 = vsel %vm187_vm0, %v1427_v31, %v1425_v30  ;;  %vm1454_vm10 = vcmask 1031168  }
 0x10b   :  { %1008 = vrot.lane.b32.xlu1 %v1007_v48, %s1924_s16  ;;  %988 = vrot.lane.b32.xlu2 %v987_v49, %s1925_s17  ;;  %v1264_v48 = vld [vmem:[#allocation0 + $0x20] sm:$0x3]   ;;  %v1266_v49 = vld [vmem:[#allocation0 + $0xe6] sm:$0xc]   ;;  %s1946_s16 = smov 11   ;;  %vm1077_vm11 = vcmask 187392  }
 0x10c   :  { %v618_v50 = vpop.permute.xlu0 %617   ;;  %v1433_v33 = vld [vmem:[#allocation0 + $0xce] sm:$0xc]   ;;  %v1396_v37 = vld [vmem:[#allocation0 + $0x48] sm:$0x3]  }
 0x10d   :  { %1578 = vst.msk [vmem:[%s2817_s1 + $0x4f] ss:$168 sm:$0x3] %vm131_vm1, %v618_v50   ;;  %v626_v53 = vpop.permute.xlu1 %625   ;;  %v693_v54 = vpop.permute.xlu2 %692   ;;  %v1244_v50 = vld [vmem:[#allocation0 + $0xa0] sm:$0x3]   ;;  %v1435_v40 = vsel %vm187_vm0, %v1433_v33, %v1431_v32 }
 0x10e   :  { %1579 = vst.msk [vmem:[%s2817_s1 + $0x120] ss:$-168 sm:$0x3] %vm131_vm1, %v626_v53   ;;  %v1230_v53 = vld [vmem:[#allocation0 + $0x60] sm:$0x3]   ;;  %v1248_v59 = vsel %vm1247_vm12, %v1246_v52, %v1244_v50  ;;  %vm1080_vm12 = vcmask 203960  }
 0x10f   :  { %1588 = vst.msk [vmem:[%s2817_s1 + $0x17] ss:$168 sm:$0x3] %vm131_vm1, %v693_v54   ;;  %v1398_v42 = vld [vmem:[#allocation0 + $0x50] sm:$0x3]  }
 0x110   :  { %1589 = vst.msk [vmem:[%s2817_s1 - $0xb9] ss:$168 sm:$0xc] %vm131_vm1, %v693_v54   ;;  %v1453_v52 = vld [vmem:[#allocation0 + $0x48] sm:$0x3]  }
 0x112   :  { %1026 = vrot.lane.b32.xlu0 %v1025_v55, %s1926_s27  ;;  %s1933_s27 = smov 21   ;;  %v1262_v55 = vsel %vm187_vm0, %v1260_v47, %v1258_v46  ;;  %v1465_v46 = vld [vmem:[#allocation0 + $0x80] sm:$0x3]  }
 0x113   :  { %1035 = vrot.lane.b32.xlu1 %v1034_v56, %s1927_s28  ;;  %1016 = vrot.lane.b32.xlu2 %v1015_v57, %s1928_s29  ;;  %s1934_s28 = smov 23   ;;  %v1268_v56 = vsel %vm187_vm0, %v1266_v49, %v1264_v48  ;;  %v1467_v48 = vld [vmem:[#allocation0 + $0x88] sm:$0x3]   ;;  %v1451_v49 = vld [vmem:[#allocation0 + $0x40] sm:$0x3]  }
 0x114   :  { %v646_v58 = vpop.permute.xlu0 %645  }
 0x115   :  { %1582 = vst.msk [vmem:[%s2817_s1 + $0x4a] ss:$168 sm:$0x3] %vm131_vm1, %v646_v58   ;;  %v653_v60 = vpop.permute.xlu1 %652   ;;  %v720_v62 = vpop.permute.xlu2 %719   ;;  %v1232_v58 = vld [vmem:[#allocation0 + $0x68] sm:$0x3]  }
 0x116   :  { %1583 = vst.msk [vmem:[%s2817_s1 + $0x73] ss:$168 sm:$0x3] %vm131_vm1, %v653_v60   ;;  %v1270_v60 = vsel %vm1269_vm13, %v1268_v56, %v1262_v55  ;;  %v1234_v61 = vsel %vm1233_vm14, %v1232_v58, %v1230_v53  ;;  %v1469_v53 = vsel %vm1468_vm9, %v1467_v48, %v1465_v46  ;;  %vm1121_vm13 = vcmask 162816  }
 0x117   :  { %1592 = vst.msk [vmem:[%s2817_s1 + $0x12] ss:$168 sm:$0x3] %vm131_vm1, %v720_v62   ;;  %vm1124_vm14 = vcmask 203936   ;;  %vm1135_vm9 = vcmask 154624  }
 0x118   :  { %1593 = vst.msk [vmem:[%s2817_s1 - $0xbe] ss:$168 sm:$0xc] %vm131_vm1, %v720_v62   ;;  %v1314_v62 = vld [vmem:[#allocation0 + $0x10] sm:$0x3]  }
 0x11a   :  { %1050 = vrot.lane.b32.xlu0 %v1049_v63, %s1929_s11  ;;  %s1935_s11 = smov 19   ;;  %v1316_v63 = vld [vmem:[#allocation0 + $0xd6] sm:$0xc]  }
 0x11b   :  { %1061 = vrot.lane.b32.xlu1 %v1060_v0, %s1930_s12  ;;  %1042 = vrot.lane.b32.xlu2 %v1041_v1, %s1931_s13  ;;  %s1936_s12 = smov 18   ;;  %s1937_s13 = smov 20   ;;  %v1320_v0 = vld [vmem:[#allocation0 + $0x18] sm:$0x3]   ;;  %v1322_v1 = vld [vmem:[#allocation0 + $0xde] sm:$0xc]   ;;  %v1318_v7 = vsel %vm187_vm0, %v1316_v63, %v1314_v62 }
 0x11c   :  { %v675_v4 = vpop.permute.xlu0 %674  }
 0x11d   :  { %1586 = vst.msk [vmem:[%s2817_s1 + $0x45] ss:$168 sm:$0x3] %vm131_vm1, %v675_v4   ;;  %v682_v8 = vpop.permute.xlu1 %681   ;;  %v748_v9 = vpop.permute.xlu2 %747   ;;  %v1302_v4 = vld [vmem:[#allocation0 + $0xa0] sm:$0x3]  }
 0x11e   :  { %1587 = vst.msk [vmem:[%s2817_s1 + $0x6e] ss:$168 sm:$0x3] %vm131_vm1, %v682_v8   ;;  %v1324_v8 = vsel %vm187_vm0, %v1322_v1, %v1320_v0  ;;  %vm1399_vm0 = vcmask 1006592  }
 0x11f   :  { %1596 = vst.msk [vmem:[%s2817_s1 + $0xd] ss:$168 sm:$0x3] %vm131_vm1, %v748_v9  }
 0x120   :  { %1597 = vst.msk [vmem:[%s2817_s1 - $0xc3] ss:$168 sm:$0xc] %vm131_vm1, %v748_v9  }
 0x122   :  { %1091 = vrot.lane.b32.xlu0 %v1090_v11, %s1932_s26  ;;  %v1304_v11 = vsel %vm1303_vm15, %v1302_v4, %v1300_v2  ;;  %s1948_s26 = smov 6   ;;  %vm1063_vm15 = vcmask 195584  }
 0x123   :  { %1105 = vrot.lane.b32.xlu1 %v1104_v12, %s1933_s27  ;;  %1075 = vrot.lane.b32.xlu2 %v1074_v13, %s1934_s28  ;;  %v1326_v12 = vsel %vm1325_vm2, %v1324_v8, %v1318_v7  ;;  %v1290_v13 = vsel %vm1289_vm3, %v1288_v10, %v1285_v5  ;;  %s1949_s27 = smov 8   ;;  %vm1066_vm2 = vcmask 203968   ;;  %vm1182_vm3 = vcmask 203912  }
 0x124   :  { %v702_v19 = vpop.permute.xlu0 %701  }
 0x125   :  { %1590 = vst.msk [vmem:[%s2817_s1 + $0x40] ss:$168 sm:$0x3] %vm131_vm1, %v702_v19   ;;  %v709_v22 = vpop.permute.xlu1 %708   ;;  %v776_v25 = vpop.permute.xlu2 %775  }
 0x126   :  { %1591 = vst.msk [vmem:[%s2817_s1 + $0x69] ss:$168 sm:$0x3] %vm131_vm1, %v709_v22  }
 0x127   :  { %1600 = vst.msk [vmem:[%s2817_s1 + $0x8] ss:$168 sm:$0x3] %vm131_vm1, %v776_v25  }
 0x128   :  { %1601 = vst.msk [vmem:[%s2817_s1 - $0xc8] ss:$168 sm:$0xc] %vm131_vm1, %v776_v25  }
 0x12a   :  { %1133 = vrot.lane.b32.xlu0 %v1132_v27, %s1935_s11  ;;  %v1360_v27 = vsel %vm1359_vm4, %v1358_v20, %v1356_v18  ;;  %vm1093_vm4 = vcmask 179200  }
 0x12b   :  { %1159 = vrot.lane.b32.xlu1 %v1158_v28, %s1936_s12  ;;  %1119 = vrot.lane.b32.xlu2 %v1118_v29, %s1937_s13  ;;  %s1340_s12 = smov 3  ;;  %s1343_s13 = smov 3  ;;  %v1382_v28 = vsel %vm1381_vm5, %v1380_v24, %v1374_v23  ;;  %vm1096_vm5 = vcmask 203952  }
 0x12c   :  { %v730_v35 = vpop.permute.xlu0 %729   ;;  %v1341_v21 = vld [vmem:[#allocation0 + $0x51] ss:$-1 sm:%s1340_s12]   ;;  %v1344_v26 = vld [vmem:[#allocation0 + $0x59] ss:$-1 sm:%s1343_s13]  }
 0x12d   :  { %1594 = vst.msk [vmem:[%s2817_s1 + $0xe3] ss:$-168 sm:$0x3] %vm131_vm1, %v730_v35   ;;  %v737_v38 = vpop.permute.xlu1 %736   ;;  %v803_v41 = vpop.permute.xlu2 %802   ;;  %v1346_v29 = vsel %vm1345_vm6, %v1344_v26, %v1341_v21  ;;  %vm1107_vm6 = vcmask 171008  }
 0x12e   :  { %1595 = vst.msk [vmem:[%s2817_s1 + $0x64] ss:$168 sm:$0x3] %vm131_vm1, %v737_v38  }
 0x12f   :  { %1604 = vst.msk [vmem:[%s2817_s1 + $0x3] ss:$168 sm:$0x3] %vm131_vm1, %v803_v41  }
 0x130   :  { %1605 = vst.msk [vmem:[%s2817_s1 - $0xcd] ss:$168 sm:$0xc] %vm131_vm1, %v803_v41  }
 0x132   :  { %1191 = vrot.lane.b32.xlu0 %v1190_v43, %s1938_s22 }
 0x133   :  { %1217 = vrot.lane.b32.xlu1 %v1216_v44, %s1939_s23  ;;  %1177 = vrot.lane.b32.xlu2 %v1176_v45, %s1940_s24  ;;  %s1410_s23 = smov 3  ;;  %s1413_s24 = smov 3  ;;  %v1437_v44 = vsel %vm1436_vm8, %v1435_v40, %v1429_v39  ;;  %v1400_v45 = vsel %vm1399_vm0, %v1398_v42, %v1396_v37  ;;  %vm1237_vm8 = vcmask 113664   ;;  %vm1240_vm0 = vcmask 203888  }
 0x134   :  { %v757_v51 = vpop.permute.xlu0 %756   ;;  %v1411_v34 = vld [vmem:[#allocation0 + $0x89] ss:$-1 sm:%s1410_s23]   ;;  %v1414_v36 = vld [vmem:[#allocation0 + $0x91] ss:$-1 sm:%s1413_s24]  }
 0x135   :  { %1598 = vst.msk [vmem:[%s2817_s1 + $0x36] ss:$168 sm:$0x3] %vm131_vm1, %v757_v51   ;;  %v765_v54 = vpop.permute.xlu1 %764   ;;  %v827_v57 = vpop.permute.xlu2 %826   ;;  %v1416_v43 = vsel %vm1415_vm7, %v1414_v36, %v1411_v34  ;;  %vm1110_vm7 = vcmask 203944  }
 0x136   :  { %1599 = vst.msk [vmem:[%s2817_s1 + $0x107] ss:$-168 sm:$0x3] %vm131_vm1, %v765_v54   ;;  %v1455_v54 = vsel %vm1454_vm10, %v1453_v52, %v1451_v49  ;;  %vm1138_vm10 = vcmask 203928  }
 0x137   :  { %1608 = vst.msk [vmem:[%s2817_s1 + $0x126] ss:$-168 sm:$0x3] %vm131_vm1, %v827_v57  }
 0x13a   :  { %1249 = vrot.lane.b32.xlu0 %v1248_v59, %s1941_s4 }
 0x13b   :  { %1271 = vrot.lane.b32.xlu1 %v1270_v60, %s1942_s5  ;;  %1235 = vrot.lane.b32.xlu2 %v1234_v61, %s1943_s6  ;;  %s1950_s5 = smov 4   ;;  %s1951_s6 = smov 3  }
 0x13c   :  { %v785_v3 = vpop.permute.xlu0 %784  }
 0x13d   :  { %1602 = vst.msk [vmem:[%s2817_s1 + $0x31] ss:$168 sm:$0x3] %vm131_vm1, %v785_v3   ;;  %v793_v6 = vpop.permute.xlu1 %792   ;;  %v849_v9 = vpop.permute.xlu2 %848  }
 0x13e   :  { %1603 = vst.msk [vmem:[%s2817_s1 + $0x102] ss:$-168 sm:$0x3] %vm131_vm1, %v793_v6  }
 0x13f   :  { %1611 = vst.msk [vmem:[%s2817_s1 + $0x121] ss:$-168 sm:$0x3] %vm131_vm1, %v849_v9  }
 0x142   :  { %1305 = vrot.lane.b32.xlu0 %v1304_v11, %s1944_s14 }
 0x143   :  { %1327 = vrot.lane.b32.xlu1 %v1326_v12, %s1945_s15  ;;  %1291 = vrot.lane.b32.xlu2 %v1290_v13, %s1946_s16  ;;  %s1953_s15 = smov 1   ;;  %s1954_s16 = smov 2  }
 0x144   :  { %v812_v19 = vpop.permute.xlu0 %811  }
 0x145   :  { %1606 = vst.msk [vmem:[%s2817_s1 + $0x2c] ss:$168 sm:$0x3] %vm131_vm1, %v812_v19   ;;  %v819_v22 = vpop.permute.xlu1 %818   ;;  %v876_v25 = vpop.permute.xlu2 %875  }
 0x146   :  { %1607 = vst.msk [vmem:[%s2817_s1 + $0x55] ss:$168 sm:$0x3] %vm131_vm1, %v819_v22  }
 0x147   :  { %1615 = vst.msk [vmem:[%s2817_s1 + $0x74] ss:$168 sm:$0x3] %vm131_vm1, %v876_v25  }
 0x14a   :  { %1361 = vrot.lane.b32.xlu0 %v1360_v27, %s1947_s25 }
 0x14b   :  { %1383 = vrot.lane.b32.xlu1 %v1382_v28, %s1948_s26  ;;  %1347 = vrot.lane.b32.xlu2 %v1346_v29, %s1949_s27 }
 0x14c   :  { %v834_v35 = vpop.permute.xlu0 %833  }
 0x14d   :  { %1609 = vst.msk [vmem:[%s2817_s1 + $0x27] ss:$168 sm:$0x3] %vm131_vm1, %v834_v35   ;;  %v841_v38 = vpop.permute.xlu1 %840   ;;  %v905_v41 = vpop.permute.xlu2 %904  }
 0x14e   :  { %1610 = vst.msk [vmem:[%s2817_s1 + $0x50] ss:$168 sm:$0x3] %vm131_vm1, %v841_v38  }
 0x14f   :  { %1619 = vst.msk [vmem:[%s2817_s1 + $0x6f] ss:$168 sm:$0x3] %vm131_vm1, %v905_v41  }
 0x152   :  { %1417 = vrot.lane.b32.xlu0 %v1416_v43, %s1950_s5 }
 0x153   :  { %1438 = vrot.lane.b32.xlu1 %v1437_v44, %s1951_s6  ;;  %1401 = vrot.lane.b32.xlu2 %v1400_v45, %s1952_s0 }
 0x154   :  { %v860_v47 = vpop.permute.xlu0 %859  }
 0x155   :  { %1612 = vst.msk [vmem:[%s2817_s1 + $0x22] ss:$168 sm:$0x3] %vm131_vm1, %v860_v47   ;;  %v869_v50 = vpop.permute.xlu1 %868   ;;  %v934_v51 = vpop.permute.xlu2 %933  }
 0x156   :  { %1613 = vst.msk [vmem:[%s2817_s1 - $0xae] ss:$168 sm:$0xc] %vm131_vm1, %v860_v47  }
 0x157   :  { %1614 = vst.msk [vmem:[%s2817_s1 + $0x4b] ss:$168 sm:$0x3] %vm131_vm1, %v869_v50  }
 0x158   :  { %1623 = vst.msk [vmem:[%s2817_s1 + $0x6a] ss:$168 sm:$0x3] %vm131_vm1, %v934_v51  }
 0x15a   :  { %1470 = vrot.lane.b32.xlu0 %v1469_v53, %s1953_s15 }
 0x15b   :  { %1456 = vrot.lane.b32.xlu2 %v1455_v54, %s1954_s16 }
 0x15c   :  { %v889_v55 = vpop.permute.xlu0 %888  }
 0x15d   :  { %1616 = vst.msk [vmem:[%s2817_s1 + $0xc5] ss:$-168 sm:$0x3] %vm131_vm1, %v889_v55   ;;  %v898_v56 = vpop.permute.xlu1 %897   ;;  %v962_v57 = vpop.permute.xlu2 %961  }
 0x15e   :  { %1617 = vst.msk [vmem:[%s2817_s1 + $0x295] ss:$-168 sm:$0xc] %vm131_vm1, %v889_v55  }
 0x15f   :  { %1618 = vst.msk [vmem:[%s2817_s1 + $0x46] ss:$168 sm:$0x3] %vm131_vm1, %v898_v56  }
 0x160   :  { %1627 = vst.msk [vmem:[%s2817_s1 + $0x65] ss:$168 sm:$0x3] %vm131_vm1, %v962_v57  }
 0x164   :  { %v918_v58 = vpop.permute.xlu0 %917  }
 0x165   :  { %1620 = vst.msk [vmem:[%s2817_s1 + $0xc0] ss:$-168 sm:$0x3] %vm131_vm1, %v918_v58   ;;  %v927_v59 = vpop.permute.xlu1 %926   ;;  %v989_v60 = vpop.permute.xlu2 %988  }
 0x166   :  { %1621 = vst.msk [vmem:[%s2817_s1 + $0x290] ss:$-168 sm:$0xc] %vm131_vm1, %v918_v58  }
 0x167   :  { %1622 = vst.msk [vmem:[%s2817_s1 + $0x41] ss:$168 sm:$0x3] %vm131_vm1, %v927_v59  }
 0x168   :  { %1631 = vst.msk [vmem:[%s2817_s1 + $0x60] ss:$168 sm:$0x3] %vm131_vm1, %v989_v60  }
 0x16c   :  { %v945_v61 = vpop.permute.xlu0 %944  }
 0x16d   :  { %1624 = vst.msk [vmem:[%s2817_s1 + $0x13] ss:$168 sm:$0x3] %vm131_vm1, %v945_v61   ;;  %v955_v62 = vpop.permute.xlu1 %954   ;;  %v1017_v63 = vpop.permute.xlu2 %1016  }
 0x16e   :  { %1625 = vst.msk [vmem:[%s2817_s1 - $0xbd] ss:$168 sm:$0xc] %vm131_vm1, %v945_v61  }
 0x16f   :  { %1626 = vst.msk [vmem:[%s2817_s1 + $0xe4] ss:$-168 sm:$0x3] %vm131_vm1, %v955_v62  }
 0x170   :  { %1635 = vst.msk [vmem:[%s2817_s1 + $0x103] ss:$-168 sm:$0x3] %vm131_vm1, %v1017_v63  }
 0x174   :  { %v973_v0 = vpop.permute.xlu0 %972  }
 0x175   :  { %1628 = vst.msk [vmem:[%s2817_s1 + $0xe] ss:$168 sm:$0x3] %vm131_vm1, %v973_v0   ;;  %v982_v1 = vpop.permute.xlu1 %981   ;;  %v1043_v2 = vpop.permute.xlu2 %1042  }
 0x176   :  { %1629 = vst.msk [vmem:[%s2817_s1 - $0xc2] ss:$168 sm:$0xc] %vm131_vm1, %v973_v0  }
 0x177   :  { %1630 = vst.msk [vmem:[%s2817_s1 + $0x37] ss:$168 sm:$0x3] %vm131_vm1, %v982_v1  }
 0x178   :  { %1639 = vst.msk [vmem:[%s2817_s1 + $0x56] ss:$168 sm:$0x3] %vm131_vm1, %v1043_v2  }
 0x17c   :  { %v1000_v3 = vpop.permute.xlu0 %999  }
 0x17d   :  { %1632 = vst.msk [vmem:[%s2817_s1 + $0x9] ss:$168 sm:$0x3] %vm131_vm1, %v1000_v3   ;;  %v1009_v4 = vpop.permute.xlu1 %1008   ;;  %v1076_v5 = vpop.permute.xlu2 %1075  }
 0x17e   :  { %1633 = vst.msk [vmem:[%s2817_s1 - $0xc7] ss:$168 sm:$0xc] %vm131_vm1, %v1000_v3  }
 0x17f   :  { %1634 = vst.msk [vmem:[%s2817_s1 + $0x32] ss:$168 sm:$0x3] %vm131_vm1, %v1009_v4  }
 0x180   :  { %1643 = vst.msk [vmem:[%s2817_s1 + $0x51] ss:$168 sm:$0x3] %vm1077_vm11, %v1076_v5   ;;  %vm1161_vm11 = vcmask 146432  }
 0x181   :  { %1644 = vst.msk [vmem:[%s2817_s1 + $0x51] ss:$168 sm:$0x3] %vm1080_vm12, %v1076_v5   ;;  %vm1166_vm12 = vcmask 203920  }
 0x184   :  { %v1027_v6 = vpop.permute.xlu0 %1026  }
 0x185   :  { %1636 = vst.msk [vmem:[%s2817_s1 + $0x4] ss:$168 sm:$0x3] %vm131_vm1, %v1027_v6   ;;  %v1036_v7 = vpop.permute.xlu1 %1035   ;;  %v1120_v8 = vpop.permute.xlu2 %1119  }
 0x186   :  { %1637 = vst.msk [vmem:[%s2817_s1 - $0xcc] ss:$168 sm:$0xc] %vm131_vm1, %v1027_v6  }
 0x187   :  { %1638 = vst.msk [vmem:[%s2817_s1 + $0x2d] ss:$168 sm:$0x3] %vm131_vm1, %v1036_v7  }
 0x188   :  { %1649 = vst.msk [vmem:[%s2817_s1 + $0x4c] ss:$168 sm:$0x3] %vm1121_vm13, %v1120_v8   ;;  %vm1293_vm13 = vcmask 89088  }
 0x189   :  { %1650 = vst.msk [vmem:[%s2817_s1 + $0x4c] ss:$168 sm:$0x3] %vm1124_vm14, %v1120_v8   ;;  %vm1296_vm14 = vcmask 203864  }
 0x18c   :  { %v1051_v9 = vpop.permute.xlu0 %1050  }
 0x18d   :  { %1640 = vst.msk [vmem:[%s2817_s1 + $0x127] ss:$-168 sm:$0x3] %vm131_vm1, %v1051_v9   ;;  %v1062_v10 = vpop.permute.xlu1 %1061   ;;  %vm1179_vm1 = vcmask 138240   ;;  %v1178_v11 = vpop.permute.xlu2 %1177  }
 0x18e   :  { %1641 = vst.msk [vmem:[%s2817_s1 + $0x28] ss:$168 sm:$0x3] %vm1063_vm15, %v1062_v10   ;;  %vm1193_vm15 = vcmask 130048  }
 0x18f   :  { %1642 = vst.msk [vmem:[%s2817_s1 + $0x28] ss:$168 sm:$0x3] %vm1066_vm2, %v1062_v10   ;;  %vm1196_vm2 = vcmask 203904  }
 0x190   :  { %1657 = vst.msk [vmem:[%s2817_s1 + $0x47] ss:$168 sm:$0x3] %vm1179_vm1, %v1178_v11   ;;  %vm1219_vm1 = vcmask 121856  }
 0x191   :  { %1658 = vst.msk [vmem:[%s2817_s1 + $0x47] ss:$168 sm:$0x3] %vm1182_vm3, %v1178_v11   ;;  %vm1224_vm3 = vcmask 203896  }
 0x194   :  { %v1092_v12 = vpop.permute.xlu0 %1091  }
 0x195   :  { %1645 = vst.msk [vmem:[%s2817_s1 + $0x122] ss:$-168 sm:$0x3] %vm1093_vm4, %v1092_v12   ;;  %v1106_v13 = vpop.permute.xlu1 %1105   ;;  %v1236_v14 = vpop.permute.xlu2 %1235   ;;  %vm1349_vm4 = vcmask 64512  }
 0x196   :  { %1646 = vst.msk [vmem:[%s2817_s1 + $0x122] ss:$-168 sm:$0x3] %vm1096_vm5, %v1092_v12   ;;  %vm1352_vm5 = vcmask 203840  }
 0x197   :  { %1647 = vst.msk [vmem:[%s2817_s1 + $0x23] ss:$168 sm:$0x3] %vm1107_vm6, %v1106_v13   ;;  %vm1251_vm6 = vcmask 105472  }
 0x198   :  { %1648 = vst.msk [vmem:[%s2817_s1 + $0x23] ss:$168 sm:$0x3] %vm1110_vm7, %v1106_v13   ;;  %vm1254_vm7 = vcmask 203880  }
 0x199   :  { %1665 = vst.msk [vmem:[%s2817_s1 + $0x42] ss:$168 sm:$0x3] %vm1237_vm8, %v1236_v14   ;;  %vm1273_vm8 = vcmask 97280  }
 0x19a   :  { %1666 = vst.msk [vmem:[%s2817_s1 + $0x42] ss:$168 sm:$0x3] %vm1240_vm0, %v1236_v14   ;;  %vm1278_vm0 = vcmask 203872  }
 0x19c   :  { %v1134_v15 = vpop.permute.xlu0 %1133  }
 0x19d   :  { %1651 = vst.msk [vmem:[%s2817_s1 + $0x75] ss:$168 sm:$0x3] %vm1135_vm9, %v1134_v15   ;;  %v1160_v16 = vpop.permute.xlu1 %1159   ;;  %v1292_v17 = vpop.permute.xlu2 %1291   ;;  %vm1403_vm9 = vcmask 39936  }
 0x19e   :  { %1652 = vst.msk [vmem:[%s2817_s1 + $0x75] ss:$168 sm:$0x3] %vm1138_vm10, %v1134_v15   ;;  %vm1406_vm10 = vcmask 203816  }
 0x19f   :  { %1653 = vst.msk [vmem:[%s2817_s1 + $0xc6] ss:$-168 sm:$0x3] %vm1161_vm11, %v1160_v16  }
 0x1a0   :  { %1654 = vst.msk [vmem:[%s2817_s1 + $0x296] ss:$-168 sm:$0xc] %vm1161_vm11, %v1160_v16   ;;  %vm1307_vm11 = vcmask 80896  }
 0x1a1   :  { %1655 = vst.msk [vmem:[%s2817_s1 + $0xc6] ss:$-168 sm:$0x3] %vm1166_vm12, %v1160_v16  }
 0x1a2   :  { %1656 = vst.msk [vmem:[%s2817_s1 + $0x296] ss:$-168 sm:$0xc] %vm1166_vm12, %v1160_v16   ;;  %vm1310_vm12 = vcmask 203856  }
 0x1a3   :  { %1673 = vst.msk [vmem:[%s2817_s1 + $0xe5] ss:$-168 sm:$0x3] %vm1293_vm13, %v1292_v17   ;;  %vm1329_vm13 = vcmask 72704  }
 0x1a4   :  { %v1192_v18 = vpop.permute.xlu0 %1191   ;;  %1674 = vst.msk [vmem:[%s2817_s1 + $0xe5] ss:$-168 sm:$0x3] %vm1296_vm14, %v1292_v17   ;;  %vm1334_vm14 = vcmask 203848  }
 0x1a5   :  { %1659 = vst.msk [vmem:[%s2817_s1 + $0x70] ss:$168 sm:$0x3] %vm1193_vm15, %v1192_v18   ;;  %v1218_v19 = vpop.permute.xlu1 %1217   ;;  %v1348_v20 = vpop.permute.xlu2 %1347   ;;  %vm1458_vm15 = vcmask 15360  }
 0x1a6   :  { %1660 = vst.msk [vmem:[%s2817_s1 + $0x70] ss:$168 sm:$0x3] %vm1196_vm2, %v1192_v18   ;;  %vm1461_vm2 = vcmask 203792  }
 0x1a7   :  { %1661 = vst.msk [vmem:[%s2817_s1 + $0xc1] ss:$-168 sm:$0x3] %vm1219_vm1, %v1218_v19  }
 0x1a8   :  { %1662 = vst.msk [vmem:[%s2817_s1 + $0x291] ss:$-168 sm:$0xc] %vm1219_vm1, %v1218_v19   ;;  %vm1363_vm1 = vcmask 56320  }
 0x1a9   :  { %1663 = vst.msk [vmem:[%s2817_s1 + $0xc1] ss:$-168 sm:$0x3] %vm1224_vm3, %v1218_v19  }
 0x1aa   :  { %1664 = vst.msk [vmem:[%s2817_s1 + $0x291] ss:$-168 sm:$0xc] %vm1224_vm3, %v1218_v19   ;;  %vm1366_vm3 = vcmask 203832  }
 0x1ab   :  { %1681 = vst.msk [vmem:[%s2817_s1 + $0xe0] ss:$-168 sm:$0x3] %vm1349_vm4, %v1348_v20   ;;  %vm1385_vm4 = vcmask 48128  }
 0x1ac   :  { %v1250_v21 = vpop.permute.xlu0 %1249   ;;  %1682 = vst.msk [vmem:[%s2817_s1 + $0xe0] ss:$-168 sm:$0x3] %vm1352_vm5, %v1348_v20   ;;  %vm1390_vm5 = vcmask 203824  }
 0x1ad   :  { %1667 = vst.msk [vmem:[%s2817_s1 + $0x6b] ss:$168 sm:$0x3] %vm1251_vm6, %v1250_v21   ;;  %v1272_v22 = vpop.permute.xlu1 %1271   ;;  %v1402_v23 = vpop.permute.xlu2 %1401   ;;  %vm1419_vm6 = vcmask 31744  }
 0x1ae   :  { %1668 = vst.msk [vmem:[%s2817_s1 + $0x6b] ss:$168 sm:$0x3] %vm1254_vm7, %v1250_v21   ;;  %vm1422_vm7 = vcmask 203808  }
 0x1af   :  { %1669 = vst.msk [vmem:[%s2817_s1 + $0x14] ss:$168 sm:$0x3] %vm1273_vm8, %v1272_v22  }
 0x1b0   :  { %1670 = vst.msk [vmem:[%s2817_s1 - $0xbc] ss:$168 sm:$0xc] %vm1273_vm8, %v1272_v22   ;;  %vm1440_vm8 = vcmask 23552  }
 0x1b1   :  { %1671 = vst.msk [vmem:[%s2817_s1 + $0x14] ss:$168 sm:$0x3] %vm1278_vm0, %v1272_v22  }
 0x1b2   :  { %1672 = vst.msk [vmem:[%s2817_s1 - $0xbc] ss:$168 sm:$0xc] %vm1278_vm0, %v1272_v22   ;;  %vm1445_vm0 = vcmask 203800  }
 0x1b3   :  { %1689 = vst.msk [vmem:[%s2817_s1 + $0x33] ss:$168 sm:$0x3] %vm1403_vm9, %v1402_v23   ;;  %vm1472_vm9 = vcmask 7168  }
 0x1b4   :  { %v1306_v24 = vpop.permute.xlu0 %1305   ;;  %1690 = vst.msk [vmem:[%s2817_s1 + $0x33] ss:$168 sm:$0x3] %vm1406_vm10, %v1402_v23   ;;  %vm1475_vm10 = vcmask 203784  }
 0x1b5   :  { %1675 = vst.msk [vmem:[%s2817_s1 + $0x66] ss:$168 sm:$0x3] %vm1307_vm11, %v1306_v24   ;;  %v1328_v25 = vpop.permute.xlu1 %1327   ;;  %v1457_v26 = vpop.permute.xlu2 %1456  }
 0x1b6   :  { %1676 = vst.msk [vmem:[%s2817_s1 + $0x66] ss:$168 sm:$0x3] %vm1310_vm12, %v1306_v24  }
 0x1b7   :  { %1677 = vst.msk [vmem:[%s2817_s1 + $0xf] ss:$168 sm:$0x3] %vm1329_vm13, %v1328_v25  }
 0x1b8   :  { %1678 = vst.msk [vmem:[%s2817_s1 - $0xc1] ss:$168 sm:$0xc] %vm1329_vm13, %v1328_v25  }
 0x1b9   :  { %1679 = vst.msk [vmem:[%s2817_s1 + $0xf] ss:$168 sm:$0x3] %vm1334_vm14, %v1328_v25  }
 0x1ba   :  { %1680 = vst.msk [vmem:[%s2817_s1 - $0xc1] ss:$168 sm:$0xc] %vm1334_vm14, %v1328_v25  }
 0x1bb   :  { %1697 = vst.msk [vmem:[%s2817_s1 + $0x2e] ss:$168 sm:$0x3] %vm1458_vm15, %v1457_v26  }
 0x1bc   :  { %v1362_v27 = vpop.permute.xlu0 %1361   ;;  %1698 = vst.msk [vmem:[%s2817_s1 + $0x2e] ss:$168 sm:$0x3] %vm1461_vm2, %v1457_v26  }
 0x1bd   :  { %1683 = vst.msk [vmem:[%s2817_s1 + $0x61] ss:$168 sm:$0x3] %vm1363_vm1, %v1362_v27   ;;  %v1384_v28 = vpop.permute.xlu1 %1383  }
 0x1be   :  { %1684 = vst.msk [vmem:[%s2817_s1 + $0x61] ss:$168 sm:$0x3] %vm1366_vm3, %v1362_v27  }
 0x1bf   :  { %1685 = vst.msk [vmem:[%s2817_s1 + $0xa] ss:$168 sm:$0x3] %vm1385_vm4, %v1384_v28  }
 0x1c0   :  { %1686 = vst.msk [vmem:[%s2817_s1 - $0xc6] ss:$168 sm:$0xc] %vm1385_vm4, %v1384_v28  }
 0x1c1   :  { %1687 = vst.msk [vmem:[%s2817_s1 + $0xa] ss:$168 sm:$0x3] %vm1390_vm5, %v1384_v28  }
 0x1c2   :  { %1688 = vst.msk [vmem:[%s2817_s1 - $0xc6] ss:$168 sm:$0xc] %vm1390_vm5, %v1384_v28  }
 0x1c4   :  { %v1418_v29 = vpop.permute.xlu0 %1417  }
 0x1c5   :  { %1691 = vst.msk [vmem:[%s2817_s1 + $0x104] ss:$-168 sm:$0x3] %vm1419_vm6, %v1418_v29   ;;  %v1439_v30 = vpop.permute.xlu1 %1438  }
 0x1c6   :  { %1692 = vst.msk [vmem:[%s2817_s1 + $0x104] ss:$-168 sm:$0x3] %vm1422_vm7, %v1418_v29  }
 0x1c7   :  { %1693 = vst.msk [vmem:[%s2817_s1 + $0x5] ss:$168 sm:$0x3] %vm1440_vm8, %v1439_v30  }
 0x1c8   :  { %1694 = vst.msk [vmem:[%s2817_s1 - $0xcb] ss:$168 sm:$0xc] %vm1440_vm8, %v1439_v30  }
 0x1c9   :  { %1695 = vst.msk [vmem:[%s2817_s1 + $0x5] ss:$168 sm:$0x3] %vm1445_vm0, %v1439_v30  }
 0x1ca   :  { %1696 = vst.msk [vmem:[%s2817_s1 - $0xcb] ss:$168 sm:$0xc] %vm1445_vm0, %v1439_v30  }
 0x1cc   :  { %v1471_v31 = vpop.permute.xlu0 %1470  }
 0x1cd   :  { %1699 = vst.msk [vmem:[%s2817_s1 + $0x57] ss:$168 sm:$0x3] %vm1472_vm9, %v1471_v31  }
 0x1ce   :  { %1700 = vst.msk [vmem:[%s2817_s1 + $0x57] ss:$168 sm:$0x3] %vm1475_vm10, %v1471_v31  }

// kernel: conv_net_1d_forward.1
= control target key start
LH: loop header
LB: loop body
LE: loop exit
PB: predicated region body
PF: predicated region fallthrough
CT: control target
= control target key end

     0   :  { %14 = vsyncpa [#allocation3], 0  ;;  %s11111_s0 = inlined_call_operand.vmem [shape: f32[2,32,163], index: 0, kind: input, shape index: {}]   ;;  %s11112_s1 = inlined_call_operand.vmem [shape: f32[256,160], index: 1, kind: input, shape index: {}]   ;;  %s11113_s2 = inlined_call_operand.vmem [shape: f32[8,1], index: 2, kind: input, shape index: {}]   ;;  %s11114_s3 = inlined_call_operand.vmem [shape: f32[8,80], index: 3, kind: input, shape index: {}]   ;;  %s11115_s4 = inlined_call_operand.vmem [shape: f32[8,1], index: 4, kind: input, shape index: {}]   ;;  %s11116_s5 = inlined_call_operand.vmem [shape: f32[36,128], index: 5, kind: input, shape index: {}]   ;;  %s11117_s6 = inlined_call_operand.vmem [shape: f32[1,128], index: 6, kind: input, shape index: {}]   ;;  %s11118_s7 = inlined_call_operand.vmem [shape: f32[128,128], index: 7, kind: input, shape index: {}]   ;;  %s11119_s8 = inlined_call_operand.vmem [shape: f32[1,128], index: 8, kind: input, shape index: {}]   ;;  %s11120_s9 = inlined_call_operand.hbm [shape: f32[2,1,128], index: 9, kind: output, shape index: {}]  }
   0x1   :  { %16 = vsyncpa [#allocation3 + $0x1], 0  ;;  %s7265_s30 = smov 0   ;;  %s7267_s10 = smov 0  }
   0x2   :  { %s7269_s11 = smov 0   ;;  %s7271_s12 = smov 0  }
   0x3 LB: > { %s7286_s13 = sadd.s32 4294967295, %s7198_s12   ;;  %s7062_s14 = sadd.s32 4294967294, %s7198_s12   ;;  %s7198_s12 = sphi %s7271_s12, %s12360_s12   ;;  %s7194_s11 = sphi %s7269_s11, %s12359_s11   ;;  %s7190_s10 = sphi %s7267_s10, %s12358_s10   ;;  %s7186_s30 = sphi %s7265_s30, %s12357_s30  }
   0x4   : > { %s7290_s15 = sadd.s32 1, %s7198_s12   ;;  %s223_s16 = sadd.s32 1, %s7194_s11 }
   0x5   : > { %s220_s17 = ssub.s32 %s7198_s12, %s7290_s15  ;;  %p233_p0 = scmp.ne.s32.totalorder %s7194_s11, %s7190_s10 }
   0x6   : > { %p221_p1 = scmp.eq.s32.totalorder %s220_s17, 0  ;;  %p234_p2 = scmp.eq.s32.totalorder %s7286_s13, 1 }
   0x7   : > { %p239_p3 = scmp.ne.s32.totalorder %s7190_s10, %s7186_s30  ;;  %p240_p4 = scmp.eq.s32.totalorder %s7062_s14, 1 }
   0x8   : > { %s7301_s18 = scalar_select %p221_p1, %s7194_s11, %s223_s16  }
   0x9   : > { %p7303_p5 = por %p234_p2, %p233_p0  ;;  %p7307_p6 = por %p240_p4, %p239_p3 }
   0xa   : > { %p7065_p7 = scmp.ge.s32.totalorder %s7198_s12, 1  ;;  %p290_p8 = scmp.lt.s32.totalorder %s7198_s12, 3 }
   0xc   : > { %p291_p9 = pnand %p7065_p7, %p290_p8 }
   0xe   : > { %294 = sbr.rel (%p291_p9) target bundleno = 2837 (0xb15), region = 56 }
  0x13   : > { %p325_p10 = scmp.lt.s32.totalorder %s7286_s13, 1  ;;  %s7200_s26 = smov 125   ;;  %vm420_vm0 = vcmask 1022976   ;;  %vm391_vm1 = vcmask 1031168   ;;  %vm362_vm2 = vcmask 1039360   ;;  %vm449_vm3 = vcmask 1014784  }
  0x14   : > { %s7201_s27 = smov 126   ;;  %s7202_s28 = smov 127   ;;  %vm526_vm4 = vcmask 261120   ;;  %vm5696_vm5 = vcmask 1040384   ;;  %vm5699_vm6 = vcmask 1041408   ;;  %vm5702_vm7 = vcmask 1042432  }
  0x15   : > { %s326_s21 = scalar_select %p325_p10, %s7286_s13, 1  ;;  %vm5705_vm8 = vcmask 1043456   ;;  %vm5708_vm9 = vcmask 1044480   ;;  %vm5711_vm10 = vcmask 1045504   ;;  %vm5714_vm11 = vcmask 1046528  }
  0x16   : > { %s7203_s29 = smov 124   ;;  %s7207_s23 = smov 119   ;;  %vm5528_vm12 = vcmask 252928   ;;  %vm5777_vm13 = vcmask 990208   ;;  %vm5793_vm14 = vcmask 973824   ;;  %vm5785_vm15 = vcmask 982016  }
  0x17   : > { %s7071_s22 = sshll.u32 %s326_s21, 6  ;;  %s7205_s21 = smov 121  }
  0x18   : > { %s7318_s25 = scalar_lea.vmem %s11111_s0, %s7071_s22  ;;  %s7206_s22 = smov 120  }
  0x19   : > { %v7321_v0 = vld [vmem:[%s7318_s25 + $0x30] sm:$0xff]  ;;  %v7324_v1 = vld [vmem:[%s7318_s25 + $0x20] sm:$0xff]  ;;  %v7336_v3 = vld [vmem:[%s7318_s25 + $0x38] sm:$0xff]  ;;  %s7208_s24 = smov 123   ;;  %s7210_s14 = smov 6  }
  0x1a   : > { %416 = vrot.lane.b32.xlu0 %v7321_v0, %s7200_s26  ;;  %412 = vrot.lane.b32.xlu1 %v7324_v1, %s7200_s26  ;;  %v7331_v2 = vld [vmem:[%s7318_s25 + $0x10] sm:$0xff]  ;;  %v7339_v4 = vld [vmem:[%s7318_s25 + $0x28] sm:$0xff]  ;;  %s7211_s16 = smov 18   ;;  %s7212_s17 = smov 12  }
  0x1b   : > { %408 = vrot.lane.b32.xlu2 %v7331_v2, %s7200_s26  ;;  %v7342_v5 = vld [vmem:[%s7318_s25 + $0x18] sm:$0xff]  ;;  %v7351_v6 = vld [vmem:[%s7318_s25 + $0x8] sm:$0xff]  ;;  %v7354_v7 = vld [vmem:[%s7318_s25] sm:$0xff] }
  0x22   : > { %418 = vrot.lane.b32.xlu0 %v7336_v3, %s7200_s26  ;;  %414 = vrot.lane.b32.xlu1 %v7339_v4, %s7200_s26 }
  0x23   : > { %410 = vrot.lane.b32.xlu2 %v7342_v5, %s7200_s26 }
  0x2a   : > { %406 = vrot.lane.b32.xlu1 %v7351_v6, %s7200_s26  ;;  %404 = vrot.lane.b32.xlu0 %v7354_v7, %s7200_s26 }
  0x2b   : > { %387 = vrot.lane.b32.xlu2 %v7321_v0, %s7201_s27 }
  0x32   : > { %383 = vrot.lane.b32.xlu1 %v7324_v1, %s7201_s27  ;;  %389 = vrot.lane.b32.xlu0 %v7336_v3, %s7201_s27 }
  0x33   : > { %385 = vrot.lane.b32.xlu2 %v7339_v4, %s7201_s27 }
  0x3a   : > { %381 = vrot.lane.b32.xlu1 %v7342_v5, %s7201_s27  ;;  %379 = vrot.lane.b32.xlu0 %v7331_v2, %s7201_s27 }
  0x3b   : > { %375 = vrot.lane.b32.xlu2 %v7354_v7, %s7201_s27 }
  0x42   : > { %358 = vrot.lane.b32.xlu1 %v7321_v0, %s7202_s28  ;;  %377 = vrot.lane.b32.xlu0 %v7351_v6, %s7201_s27 }
  0x43   : > { %360 = vrot.lane.b32.xlu2 %v7336_v3, %s7202_s28 }
  0x4a   : > { %356 = vrot.lane.b32.xlu1 %v7339_v4, %s7202_s28  ;;  %354 = vrot.lane.b32.xlu0 %v7324_v1, %s7202_s28 }
  0x4b   : > { %350 = vrot.lane.b32.xlu2 %v7331_v2, %s7202_s28 }
  0x52   : > { %346 = vrot.lane.b32.xlu1 %v7354_v7, %s7202_s28  ;;  %352 = vrot.lane.b32.xlu0 %v7342_v5, %s7202_s28 }
  0x53   : > { %348 = vrot.lane.b32.xlu2 %v7351_v6, %s7202_s28 }
  0x5a   : > { %447 = vrot.lane.b32.xlu1 %v7336_v3, %s7203_s29  ;;  %445 = vrot.lane.b32.xlu0 %v7321_v0, %s7203_s29 }
  0x5b   : > { %441 = vrot.lane.b32.xlu2 %v7324_v1, %s7203_s29 }
  0x62   : > { %437 = vrot.lane.b32.xlu1 %v7331_v2, %s7203_s29  ;;  %443 = vrot.lane.b32.xlu0 %v7339_v4, %s7203_s29 }
  0x63   : > { %439 = vrot.lane.b32.xlu2 %v7342_v5, %s7203_s29 }
  0x6a   : > { %435 = vrot.lane.b32.xlu1 %v7351_v6, %s7203_s29  ;;  %433 = vrot.lane.b32.xlu0 %v7354_v7, %s7203_s29 }
  0x75   : > { %v409_v8 = vpop.permute.xlu2 %408 }
  0x7d   : > { %v7392_v9 = vpop.permute.xlu2 %410 }
  0x7e   : > { %v422_v12 = vsel %vm420_vm0, %v409_v8, %v7392_v9 }
  0x7f   : > { %v7396_v14 = vand.u32 4294901760, %v422_v12 }
  0x81   : > { %v7411_v21 = vsub.f32 %v422_v12, %v7396_v14 }
  0x83   : > { %v11131_v26 = vand.u32 4294901760, %v7411_v21 }
  0x85   : > { %v388_v13 = vpop.permute.xlu2 %387  ;;  %v927_v35 = vsub.f32 %v7411_v21, %v11131_v26 }
  0x87   : > { %v928_v38 = vand.u32 4294901760, %v927_v35 }
  0x8c   : > { %v417_v10 = vpop.permute.xlu0 %416  ;;  %v413_v11 = vpop.permute.xlu1 %412 }
  0x8d   : > { %v7427_v27 = vpop.permute.xlu2 %385 }
  0x94   : > { %v7398_v15 = vpop.permute.xlu0 %418  ;;  %v7400_v16 = vpop.permute.xlu1 %414 }
  0x95   : > { %v424_v17 = vsel %vm420_vm0, %v417_v10, %v7398_v15  ;;  %v423_v18 = vsel %vm420_vm0, %v413_v11, %v7400_v16  ;;  %v376_v45 = vpop.permute.xlu2 %375 }
  0x96   : > { %v7406_v19 = vand.u32 4294901760, %v424_v17  ;;  %v7408_v20 = vand.u32 4294901760, %v423_v18 }
  0x98   : > { %624 = vmatpush.msra.mxu0 %v7406_v19  ;;  %1347 = vmatpush.msra.mxu3 %v7406_v19  ;;  %v7416_v22 = vsub.f32 %v424_v17, %v7406_v19  ;;  %v7419_v23 = vsub.f32 %v423_v18, %v7408_v20 }
  0x9a   : > { %626 = vmatpush.msra.mxu0 %v7408_v20  ;;  %1139 = vmatpush.msra.mxu2 %v7416_v22  ;;  %v914_v24 = vand.u32 4294901760, %v7416_v22  ;;  %v920_v25 = vand.u32 4294901760, %v7419_v23 }
  0x9b   : > { %1349 = vmatpush.msra.mxu3 %v7408_v20 }
  0x9c   : > { %628 = vmatpush.msra.mxu0 %v7396_v14  ;;  %1142 = vmatpush.msra.mxu2 %v7419_v23  ;;  %v7431_v28 = vpop.permute.xlu1 %406  ;;  %v405_v29 = vpop.permute.xlu0 %404  ;;  %v915_v30 = vsub.f32 %v7416_v22, %v914_v24  ;;  %v921_v31 = vsub.f32 %v7419_v23, %v920_v25 }
  0x9d   : > { %1351 = vmatpush.msra.mxu3 %v7396_v14  ;;  %v421_v32 = vsel %vm420_vm0, %v405_v29, %v7431_v28  ;;  %v7500_v60 = vpop.permute.xlu2 %360 }
  0x9e   : > { %v7442_v33 = vand.u32 4294901760, %v421_v32  ;;  %1145 = vmatpush.msra.mxu2 %v7411_v21  ;;  %v916_v34 = vand.u32 4294901760, %v915_v30  ;;  %v922_v37 = vand.u32 4294901760, %v921_v31 }
  0xa0   : > { %v7449_v36 = vsub.f32 %v421_v32, %v7442_v33  ;;  %630 = vmatpush.msra.mxu0 %v7442_v33  ;;  %917 = vmatpush.msra.mxu1 %v916_v34 }
  0xa1   : > { %1353 = vmatpush.msra.mxu3 %v7442_v33 }
  0xa2   : > { %923 = vmatpush.msra.mxu1 %v922_v37  ;;  %1148 = vmatpush.msra.mxu2 %v7449_v36  ;;  %v11130_v39 = vand.u32 4294901760, %v7449_v36  ;;  %v462_v37 = vld [vmem:[%s11112_s1] sm:$0xff] }
  0xa4   : > { %929 = vmatpush.msra.mxu1 %v928_v38  ;;  %v384_v40 = vpop.permute.xlu1 %383  ;;  %v7455_v41 = vpop.permute.xlu0 %389  ;;  %v933_v42 = vsub.f32 %v7449_v36, %v11130_v39 }
  0xa5   : > { %v394_v43 = vsel %vm391_vm1, %v384_v40, %v7427_v27  ;;  %v395_v44 = vsel %vm391_vm1, %v388_v13, %v7455_v41  ;;  %v351_v5 = vpop.permute.xlu2 %350 }
  0xa6   : > { %v7464_v46 = vand.u32 4294901760, %v394_v43  ;;  %v7466_v47 = vand.u32 4294901760, %v395_v44  ;;  %v934_v48 = vand.u32 4294901760, %v933_v42 }
  0xa8   : > { %v7469_v49 = vsub.f32 %v394_v43, %v7464_v46  ;;  %632 = vmatpush.msra.mxu0 %v7466_v47  ;;  %935 = vmatpush.msra.mxu1 %v934_v48  ;;  %v7473_v50 = vsub.f32 %v395_v44, %v7466_v47  ;;  %v7561_v43 = vand.u32 4294901760, %v462_v37  ;;  %v7569_v48 = vand.u32 4294901760, %v7321_v0 }
  0xa9   : > { %1355 = vmatpush.msra.mxu3 %v7466_v47 }
  0xaa   : > { %634 = vmatpush.msra.mxu0 %v7464_v46  ;;  %1151 = vmatpush.msra.mxu2 %v7473_v50  ;;  %v11128_v51 = vand.u32 4294901760, %v7473_v50  ;;  %v11126_v52 = vand.u32 4294901760, %v7469_v49  ;;  %11583 = vst [vmem:[#allocation5_spill] sm:$0xff] %v7561_v43 }
  0xab   : > { %1357 = vmatpush.msra.mxu3 %v7464_v46 }
  0xac   : > { %v7485_v53 = vpop.permute.xlu1 %381  ;;  %1154 = vmatpush.msra.mxu2 %v7469_v49  ;;  %v380_v54 = vpop.permute.xlu0 %379  ;;  %v939_v55 = vsub.f32 %v7473_v50, %v11128_v51  ;;  %v945_v56 = vsub.f32 %v7469_v49, %v11126_v52 }
  0xad   : > { %v393_v57 = vsel %vm391_vm1, %v380_v54, %v7485_v53 }
  0xae   : > { %v7498_v58 = vand.u32 4294901760, %v393_v57  ;;  %v940_v59 = vand.u32 4294901760, %v939_v55  ;;  %v946_v62 = vand.u32 4294901760, %v945_v56  ;;  %v7573_v55 = vpop.permute.xlu2 %348  ;;  %v7576_v56 = vsub.f32 %v462_v37, %v7561_v43 }
  0xaf   : > { %v7602_v37 = vand.u32 4294901760, %v7331_v2 }
  0xb0   : > { %v7503_v61 = vsub.f32 %v393_v57, %v7498_v58  ;;  %636 = vmatpush.msra.mxu0 %v7498_v58  ;;  %941 = vmatpush.msra.mxu1 %v940_v59  ;;  %11584 = vst [vmem:[#allocation6_spill] sm:$0xff] %v7576_v56 }
  0xb1   : > { %1359 = vmatpush.msra.mxu3 %v7498_v58 }
  0xb2   : > { %947 = vmatpush.msra.mxu1 %v946_v62  ;;  %1157 = vmatpush.msra.mxu2 %v7503_v61  ;;  %v11124_v63 = vand.u32 4294901760, %v7503_v61 }
  0xb4   : > { %v359_v3 = vpop.permute.xlu1 %358  ;;  %v7513_v8 = vpop.permute.xlu0 %377  ;;  %v951_v10 = vsub.f32 %v7503_v61, %v11124_v63 }
  0xb5   : > { %v366_v11 = vsel %vm362_vm2, %v359_v3, %v7500_v60  ;;  %v392_v12 = vsel %vm391_vm1, %v376_v45, %v7513_v8  ;;  %v7584_v3 = vand.u32 4294901760, %v7324_v1 }
  0xb6   : > { %v7524_v13 = vand.u32 4294901760, %v366_v11  ;;  %v7526_v17 = vand.u32 4294901760, %v392_v12  ;;  %v952_v4 = vand.u32 4294901760, %v951_v10 }
  0xb8   : > { %v7529_v18 = vsub.f32 %v366_v11, %v7524_v13  ;;  %638 = vmatpush.msra.mxu0 %v7526_v17  ;;  %953 = vmatpush.msra.mxu1 %v952_v4  ;;  %v7533_v29 = vsub.f32 %v392_v12, %v7526_v17  ;;  %v7592_v12 = vsub.f32 %v7321_v0, %v7569_v48  ;;  %v464_v4 = vld [vmem:[%s11112_s1 + $0x10] sm:$0xff] }
  0xb9   : > { %1361 = vmatpush.msra.mxu3 %v7526_v17 }
  0xba   : > { %640 = vmatpush.msra.mxu0 %v7524_v13  ;;  %1160 = vmatpush.msra.mxu2 %v7533_v29  ;;  %v11123_v30 = vand.u32 4294901760, %v7533_v29  ;;  %v11122_v31 = vand.u32 4294901760, %v7529_v18 }
  0xbb   : > { %1363 = vmatpush.msra.mxu3 %v7524_v13 }
  0xbc   : > { %v7545_v32 = vpop.permute.xlu1 %356  ;;  %1163 = vmatpush.msra.mxu2 %v7529_v18  ;;  %v355_v34 = vpop.permute.xlu0 %354  ;;  %v957_v6 = vsub.f32 %v7533_v29, %v11123_v30  ;;  %v963_v35 = vsub.f32 %v7529_v18, %v11122_v31 }
  0xbd   : > { %v365_v38 = vsel %vm362_vm2, %v355_v34, %v7545_v32 }
  0xbe   : > { %v7559_v40 = vand.u32 4294901760, %v365_v38  ;;  %v958_v42 = vand.u32 4294901760, %v957_v6  ;;  %v964_v45 = vand.u32 4294901760, %v963_v35 }
  0xc0   : > { %v7564_v44 = vsub.f32 %v365_v38, %v7559_v40  ;;  %642 = vmatpush.msra.mxu0 %v7559_v40  ;;  %959 = vmatpush.msra.mxu1 %v958_v42  ;;  %v7605_v38 = vand.u32 4294901760, %v7354_v7 }
  0xc1   : > { %1365 = vmatpush.msra.mxu3 %v7559_v40 }
  0xc2   : > { %965 = vmatpush.msra.mxu1 %v964_v45  ;;  %1166 = vmatpush.msra.mxu2 %v7564_v44  ;;  %v11121_v54 = vand.u32 4294901760, %v7564_v44  ;;  %v7619_v45 = vsub.f32 %v7324_v1, %v7584_v3 }
  0xc4   : > { %v347_v57 = vpop.permute.xlu1 %346  ;;  %v7578_v59 = vpop.permute.xlu0 %352  ;;  %v969_v62 = vsub.f32 %v7564_v44, %v11121_v54  ;;  %v7638_v54 = vsub.f32 %v7354_v7, %v7605_v38  ;;  %v11133_v30 = vand.u32 4294901760, %v7619_v45 }
  0xc5   : > { %v363_v10 = vsel %vm362_vm2, %v347_v57, %v7573_v55  ;;  %v364_v11 = vsel %vm362_vm2, %v351_v5, %v7578_v59  ;;  %v7608_v5 = vand.u32 4294901760, %v7576_v56  ;;  %v7621_v57 = vand.u32 4294901760, %v464_v4 }
  0xc6   : > { %v7597_v34 = vand.u32 4294901760, %v363_v10  ;;  %v7599_v6 = vand.u32 4294901760, %v364_v11  ;;  %v970_v35 = vand.u32 4294901760, %v969_v62  ;;  %v11129_v62 = vand.u32 4294901760, %v7592_v12 }
  0xc7   : > { %11585 = vst [vmem:[#allocation7_spill] sm:$0xff] %v7608_v5  ;;  %v658_v1 = vsub.f32 %v7576_v56, %v7608_v5  ;;  %v7650_v63 = vsub.f32 %v464_v4, %v7621_v57 }
  0xc8   : > { %v7611_v0 = vsub.f32 %v363_v10, %v7597_v34  ;;  %644 = vmatpush.msra.mxu0 %v7599_v6  ;;  %971 = vmatpush.msra.mxu1 %v970_v35  ;;  %v7615_v42 = vsub.f32 %v364_v11, %v7599_v6  ;;  %11586 = vst [vmem:[#allocation8_spill] sm:$0xff] %v7621_v57 }
  0xc9   : > { %1367 = vmatpush.msra.mxu3 %v7599_v6  ;;  %v7631_v11 = vsub.f32 %v7331_v2, %v7602_v37  ;;  %11587 = vst [vmem:[#allocation9_spill] sm:$0xff] %v7650_v63  ;;  %v987_v7 = vsub.f32 %v7592_v12, %v11129_v62  ;;  %v7663_v4 = vand.u32 4294901760, %v658_v1  ;;  %v993_v62 = vsub.f32 %v7619_v45, %v11133_v30 }
  0xca   : > { %646 = vmatpush.msra.mxu0 %v7597_v34  ;;  %1169 = vmatpush.msra.mxu2 %v7615_v42  ;;  %v11125_v10 = vand.u32 4294901760, %v7615_v42  ;;  %v11127_v35 = vand.u32 4294901760, %v7611_v0  ;;  %v7671_v39 = vand.u32 4294901760, %v7650_v63 }
  0xcb   : > { %1369 = vmatpush.msra.mxu3 %v7597_v34  ;;  %v11132_v52 = vand.u32 4294901760, %v7631_v11  ;;  %11588 = vst [vmem:[#allocation10_spill] sm:$0xff] %v7663_v4  ;;  %v988_v26 = vand.u32 4294901760, %v987_v7 }
  0xcc   : > { %648 = vmatpush.msra.mxu0 %v7569_v48  ;;  %1172 = vmatpush.msra.mxu2 %v7611_v0  ;;  %v975_v31 = vsub.f32 %v7615_v42, %v11125_v10  ;;  %v981_v2 = vsub.f32 %v7611_v0, %v11127_v35  ;;  %v466_v35 = vld [vmem:[%s11112_s1 + $0x20] sm:$0xff]  ;;  %11589 = vst [vmem:[#allocation11_spill] sm:$0xff] %v7671_v39 }
  0xcd   : > { %1371 = vmatpush.msra.mxu3 %v7569_v48  ;;  %v7675_v1 = vand.u32 4294901760, %v466_v35 }
  0xce   : > { %650 = vmatpush.msra.mxu0 %v7584_v3  ;;  %1175 = vmatpush.msra.mxu2 %v7592_v12  ;;  %v976_v10 = vand.u32 4294901760, %v975_v31  ;;  %v982_v51 = vand.u32 4294901760, %v981_v2  ;;  %v11134_v31 = vand.u32 4294901760, %v7638_v54  ;;  %v994_v2 = vand.u32 4294901760, %v993_v62  ;;  %v468_v62 = vld [vmem:[%s11112_s1 + $0x30] sm:$0xff] }
  0xcf   : > { %1373 = vmatpush.msra.mxu3 %v7584_v3  ;;  %11590 = vst [vmem:[#allocation12_spill] sm:$0xff] %v7675_v1 }
  0xd0   : > { %652 = vmatpush.msra.mxu0 %v7602_v37  ;;  %977 = vmatpush.msra.mxu1 %v976_v10  ;;  %v999_v10 = vsub.f32 %v7631_v11, %v11132_v52  ;;  %v1005_v7 = vsub.f32 %v7638_v54, %v11134_v31  ;;  %v7693_v52 = vsub.f32 %v466_v35, %v7675_v1  ;;  %v7709_v35 = vand.u32 4294901760, %v468_v62 }
  0xd1   : > { %1178 = vmatpush.msra.mxu2 %v7619_v45  ;;  %1375 = vmatpush.msra.mxu3 %v7602_v37 }
  0xd2   : > { %654 = vmatpush.msra.mxu0 %v7605_v38  ;;  %983 = vmatpush.msra.mxu1 %v982_v51  ;;  %v666_v51 = vsub.f32 %v7650_v63, %v7671_v39  ;;  %11591 = vst [vmem:[#allocation13_spill] sm:$0xff] %v7693_v52  ;;  %v1000_v30 = vand.u32 4294901760, %v999_v10  ;;  %v1006_v31 = vand.u32 4294901760, %v1005_v7  ;;  %v11596_v10 = vand.u32 4294901760, %v7449_v36  ;;  %v470_v36 = vld [vmem:[%s11112_s1 + $0x40] sm:$0xff] }
  0xd3   : > { %1181 = vmatpush.msra.mxu2 %v7631_v11  ;;  %1377 = vmatpush.msra.mxu3 %v7605_v38  ;;  %11595 = vst [vmem:[#allocation16_spill] sm:$0xff] %v7709_v35  ;;  %v7719_v23 = vsub.f32 %v468_v62, %v7709_v35  ;;  %v11604_v7 = vand.u32 4294901760, %v7533_v29  ;;  %v11611_v62 = vand.u32 4294901760, %v7615_v42 }
  0xd4   : > { %660 = vmatmul.f32.vlgmr.msra.gmra.mxu0 %v7663_v4  ;;  %1381 = vmatmul.f32.vlgmr.msra.gmra.mxu3 %v7608_v5  ;;  %v7702_v22 = vand.u32 4294901760, %v666_v51 }
  0xd5   : > { %1574 = vmatpush.msrb.mxu0 %v914_v24  ;;  %989 = vmatpush.msra.mxu1 %v988_v26  ;;  %v11593_v24 = vand.u32 4294901760, %v7411_v21  ;;  %v7707_v26 = vand.u32 4294901760, %v7693_v52  ;;  %11597 = vst [vmem:[#allocation17_spill] sm:$0xff] %v7719_v23 }
  0xd6   : > { %1184 = vmatpush.msra.mxu2 %v7638_v54  ;;  %11592 = vst [vmem:[#allocation14_spill] sm:$0xff] %v7702_v22 }
  0xd7   : > { %1187 = vmatmul.f32.vlgmr.msra.gmra.mxu2 %v7576_v56  ;;  %1578 = vmatpush.msrb.mxu0 %v920_v25  ;;  %11594 = vst [vmem:[#allocation15_spill] sm:$0xff] %v7707_v26  ;;  %v674_v21 = vsub.f32 %v7693_v52, %v7707_v26  ;;  %v11598_v25 = vand.u32 4294901760, %v7473_v50  ;;  %v7736_v50 = vand.u32 4294901760, %v470_v36 }
  0xd8   : > { %995 = vmatpush.msra.mxu1 %v994_v2  ;;  %v7734_v2 = vand.u32 4294901760, %v7719_v23 }
  0xd9   : > { %1582 = vmatpush.msrb.mxu0 %v11593_v24  ;;  %11602 = vst [vmem:[#allocation20_spill] sm:$0xff] %v7736_v50 }
  0xda   : > { %1001 = vmatpush.msra.mxu1 %v1000_v30  ;;  %v11599_v30 = vand.u32 4294901760, %v7469_v49  ;;  %11601 = vst [vmem:[#allocation19_spill] sm:$0xff] %v7734_v2  ;;  %v7749_v49 = vsub.f32 %v470_v36, %v7736_v50 }
  0xdb   : > { %1586 = vmatpush.msrb.mxu0 %v11596_v10  ;;  %v11618_v10 = vand.u32 4294901760, %v7619_v45 }
  0xdc   : > { %1007 = vmatpush.msra.mxu1 %v1006_v31  ;;  %668 = vmatmul.f32.gmra.mxu0 %v7702_v22  ;;  %v7731_v31 = vand.u32 4294901760, %v674_v21  ;;  %11605 = vst [vmem:[#allocation21_spill] sm:$0xff] %v7749_v49  ;;  %v7765_v51 = vand.u32 4294901760, %v7749_v49 }
  0xdd   : > { %1009 = vmatmul.f32.vlgmr.msra.gmra.mxu1 %v7561_v43  ;;  %1387 = vmatmul.f32.gmra.mxu3 %v7671_v39 }
  0xde   : > { %1590 = vmatpush.msrb.mxu0 %v11598_v25  ;;  %1765 = vmatpush.msrb.mxu1 %v7406_v19  ;;  %11600 = vst [vmem:[#allocation18_spill] sm:$0xff] %v7731_v31  ;;  %v11603_v19 = vand.u32 4294901760, %v7503_v61  ;;  %v11606_v61 = vand.u32 4294901760, %v7529_v18 }
  0xdf   : > { %1192 = vmatmul.f32.gmra.mxu2 %v7650_v63  ;;  %11609 = vst [vmem:[#allocation23_spill] sm:$0xff] %v7765_v51 }
  0xe0   : > { %1594 = vmatpush.msrb.mxu0 %v11599_v30  ;;  %1767 = vmatpush.msrb.mxu1 %v7408_v20  ;;  %v682_v20 = vsub.f32 %v7719_v23, %v7734_v2 }
  0xe2   : > { %1598 = vmatpush.msrb.mxu0 %v11603_v19  ;;  %1769 = vmatpush.msrb.mxu1 %v7396_v14  ;;  %v472_v14 = vld [vmem:[%s11112_s1 + $0x50] sm:$0xff]  ;;  %v7762_v29 = vand.u32 4294901760, %v682_v20 }
  0xe3   : > { %v7767_v18 = vand.u32 4294901760, %v472_v14  ;;  %v480_v19 = vld [vmem:[%s11112_s1 + $0x90] sm:$0xff] }
  0xe4   : > { %1602 = vmatpush.msrb.mxu0 %v11604_v7  ;;  %1771 = vmatpush.msrb.mxu1 %v7442_v33  ;;  %v11607_v33 = vand.u32 4294901760, %v7564_v44  ;;  %11608 = vst [vmem:[#allocation22_spill] sm:$0xff] %v7762_v29 }
  0xe5   : > { %676 = vmatmul.f32.gmra.mxu0 %v7731_v31  ;;  %1013 = vmatmul.f32.gmra.mxu1 %v7621_v57  ;;  %11610 = vst [vmem:[#allocation24_spill] sm:$0xff] %v7767_v18  ;;  %v7779_v44 = vsub.f32 %v472_v14, %v7767_v18 }
  0xe6   : > { %1393 = vmatmul.f32.gmra.mxu3 %v7707_v26  ;;  %1606 = vmatpush.msrb.mxu0 %v11606_v61  ;;  %v7865_v61 = vand.u32 4294901760, %v480_v19 }
  0xe7   : > { %1773 = vmatpush.msrb.mxu1 %v7466_v47  ;;  %1197 = vmatmul.f32.gmra.mxu2 %v7693_v52  ;;  %v11612_v47 = vand.u32 4294901760, %v7611_v0  ;;  %11613 = vst [vmem:[#allocation25_spill] sm:$0xff] %v7779_v44  ;;  %v7794_v42 = vand.u32 4294901760, %v7779_v44 }
  0xe8   : > { %1610 = vmatpush.msrb.mxu0 %v11607_v33  ;;  %11632 = vst [vmem:[#allocation40_spill] sm:$0xff] %v7865_v61  ;;  %v7871_v33 = vsub.f32 %v480_v19, %v7865_v61 }
  0xe9   : > { %1775 = vmatpush.msrb.mxu1 %v7464_v46  ;;  %v690_v46 = vsub.f32 %v7749_v49, %v7765_v51  ;;  %11616 = vst [vmem:[#allocation27_spill] sm:$0xff] %v7794_v42 }
  0xea   : > { %1614 = vmatpush.msrb.mxu0 %v11611_v62  ;;  %11633 = vst [vmem:[#allocation41_spill] sm:$0xff] %v7871_v33  ;;  %v482_v62 = vld [vmem:[%s11112_s1 + $0xa0] sm:$0xff] }
  0xeb   : > { %1777 = vmatpush.msrb.mxu1 %v7498_v58  ;;  %v474_v58 = vld [vmem:[%s11112_s1 + $0x60] sm:$0xff]  ;;  %v7791_v0 = vand.u32 4294901760, %v690_v46  ;;  %v7882_v46 = vand.u32 4294901760, %v7871_v33 }
  0xec   : > { %1618 = vmatpush.msrb.mxu0 %v11612_v47  ;;  %v7796_v24 = vand.u32 4294901760, %v474_v58 }
  0xed   : > { %1779 = vmatpush.msrb.mxu1 %v7526_v17  ;;  %684 = vmatmul.f32.gmra.mxu0 %v7762_v29  ;;  %v11614_v17 = vand.u32 4294901760, %v7592_v12  ;;  %11615 = vst [vmem:[#allocation26_spill] sm:$0xff] %v7791_v0 }
  0xee   : > { %1017 = vmatmul.f32.gmra.mxu1 %v7675_v1  ;;  %1399 = vmatmul.f32.gmra.mxu3 %v7734_v2  ;;  %11617 = vst [vmem:[#allocation28_spill] sm:$0xff] %v7796_v24  ;;  %v7808_v12 = vsub.f32 %v474_v58, %v7796_v24  ;;  %v7884_v58 = vand.u32 4294901760, %v482_v62 }
  0xef   : > { %1781 = vmatpush.msrb.mxu1 %v7524_v13  ;;  %1202 = vmatmul.f32.gmra.mxu2 %v7719_v23  ;;  %v11619_v13 = vand.u32 4294901760, %v7631_v11  ;;  %11635 = vst [vmem:[#allocation43_spill] sm:$0xff] %v7882_v46 }
  0xf0   : > { %1622 = vmatpush.msrb.mxu0 %v11614_v17  ;;  %11620 = vst [vmem:[#allocation29_spill] sm:$0xff] %v7808_v12  ;;  %v7822_v11 = vand.u32 4294901760, %v7808_v12  ;;  %v730_v17 = vsub.f32 %v7871_v33, %v7882_v46 }
  0xf1   : > { %1783 = vmatpush.msrb.mxu1 %v7559_v40  ;;  %v698_v40 = vsub.f32 %v7779_v44, %v7794_v42  ;;  %11636 = vst [vmem:[#allocation44_spill] sm:$0xff] %v7884_v58 }
  0xf2   : > { %1626 = vmatpush.msrb.mxu0 %v11618_v10  ;;  %11623 = vst [vmem:[#allocation31_spill] sm:$0xff] %v7822_v11  ;;  %v706_v25 = vsub.f32 %v7808_v12, %v7822_v11  ;;  %v7890_v10 = vsub.f32 %v482_v62, %v7884_v58 }
  0xf3   : > { %1785 = vmatpush.msrb.mxu1 %v7599_v6  ;;  %v476_v6 = vld [vmem:[%s11112_s1 + $0x70] sm:$0xff]  ;;  %v7819_v45 = vand.u32 4294901760, %v698_v40  ;;  %v7898_v40 = vand.u32 4294901760, %v730_v17 }
  0xf4   : > { %1630 = vmatpush.msrb.mxu0 %v11619_v13  ;;  %v7824_v21 = vand.u32 4294901760, %v476_v6  ;;  %11637 = vst [vmem:[#allocation45_spill] sm:$0xff] %v7890_v10  ;;  %v484_v13 = vld [vmem:[%s11112_s1 + $0xb0] sm:$0xff] }
  0xf5   : > { %1787 = vmatpush.msrb.mxu1 %v7597_v34  ;;  %692 = vmatmul.f32.gmra.mxu0 %v7791_v0  ;;  %v11621_v34 = vand.u32 4294901760, %v7638_v54  ;;  %11622 = vst [vmem:[#allocation30_spill] sm:$0xff] %v7819_v45  ;;  %v478_v54 = vld [vmem:[%s11112_s1 + $0x80] sm:$0xff] }
  0xf6   : > { %1021 = vmatmul.f32.gmra.mxu1 %v7709_v35  ;;  %1405 = vmatmul.f32.gmra.mxu3 %v7765_v51  ;;  %11624 = vst [vmem:[#allocation32_spill] sm:$0xff] %v7824_v21  ;;  %v7846_v36 = vand.u32 4294901760, %v478_v54 }
  0xf7   : > { %1207 = vmatmul.f32.gmra.mxu2 %v7749_v49  ;;  %1789 = vmatpush.msrb.mxu1 %v7569_v48  ;;  %v7832_v48 = vsub.f32 %v476_v6, %v7824_v21  ;;  %11638 = vst [vmem:[#allocation46_spill] sm:$0xff] %v7898_v40  ;;  %v7901_v6 = vand.u32 4294901760, %v7890_v10 }
  0xf8   : > { %1634 = vmatpush.msrb.mxu0 %v11621_v34  ;;  %11628 = vst [vmem:[#allocation36_spill] sm:$0xff] %v7846_v36  ;;  %v7852_v30 = vsub.f32 %v478_v54, %v7846_v36  ;;  %v7903_v34 = vand.u32 4294901760, %v484_v13 }
  0xf9   : > { %1791 = vmatpush.msrb.mxu1 %v7584_v3  ;;  %11625 = vst [vmem:[#allocation33_spill] sm:$0xff] %v7832_v48  ;;  %v7841_v3 = vand.u32 4294901760, %v706_v25  ;;  %v738_v25 = vsub.f32 %v7890_v10, %v7901_v6 }
  0xfa   : > { %11629 = vst [vmem:[#allocation37_spill] sm:$0xff] %v7852_v30  ;;  %v7863_v20 = vand.u32 4294901760, %v7852_v30  ;;  %v7909_v54 = vsub.f32 %v484_v13, %v7903_v34 }
  0xfb   : > { %1793 = vmatpush.msrb.mxu1 %v7602_v37  ;;  %11626 = vst [vmem:[#allocation34_spill] sm:$0xff] %v7841_v3  ;;  %v7844_v37 = vand.u32 4294901760, %v7832_v48  ;;  %v7917_v19 = vand.u32 4294901760, %v738_v25  ;;  %v488_v25 = vld [vmem:[%s11112_s1 + $0xd0] sm:$0xff] }
  0xfc   : > { %11631 = vst [vmem:[#allocation39_spill] sm:$0xff] %v7863_v20  ;;  %v722_v14 = vsub.f32 %v7852_v30, %v7863_v20 }
  0xfd   : > { %700 = vmatmul.f32.gmra.mxu0 %v7819_v45  ;;  %1795 = vmatpush.msrb.mxu1 %v7605_v38  ;;  %11627 = vst [vmem:[#allocation35_spill] sm:$0xff] %v7844_v37  ;;  %v714_v38 = vsub.f32 %v7832_v48, %v7844_v37 }
  0xfe   : > { %1025 = vmatmul.f32.gmra.mxu1 %v7736_v50  ;;  %1411 = vmatmul.f32.gmra.mxu3 %v7794_v42  ;;  %v7879_v47 = vand.u32 4294901760, %v722_v14  ;;  %11639 = vst [vmem:[#allocation47_spill] sm:$0xff] %v7901_v6  ;;  %v7920_v14 = vand.u32 4294901760, %v7909_v54 }
  0xff   : > { %1212 = vmatmul.f32.gmra.mxu2 %v7779_v44  ;;  %v7860_v7 = vand.u32 4294901760, %v714_v38  ;;  %11640 = vst [vmem:[#allocation48_spill] sm:$0xff] %v7903_v34  ;;  %v486_v38 = vld [vmem:[%s11112_s1 + $0xc0] sm:$0xff] }
 0x100   : > { %11634 = vst [vmem:[#allocation42_spill] sm:$0xff] %v7879_v47  ;;  %v7922_v62 = vand.u32 4294901760, %v486_v38  ;;  %v746_v17 = vsub.f32 %v7909_v54, %v7920_v14 }
 0x101   : > { %11630 = vst [vmem:[#allocation38_spill] sm:$0xff] %v7860_v7 }
 0x102   : > { %11641 = vst [vmem:[#allocation49_spill] sm:$0xff] %v7909_v54  ;;  %v7928_v13 = vsub.f32 %v486_v38, %v7922_v62 }
 0x103   : > { %11642 = vst [vmem:[#allocation50_spill] sm:$0xff] %v7917_v19 }
 0x104   : > { %11643 = vst [vmem:[#allocation51_spill] sm:$0xff] %v7920_v14 }
 0x105   : > { %708 = vmatmul.f32.gmra.mxu0 %v7841_v3  ;;  %11644 = vst [vmem:[#allocation52_spill] sm:$0xff] %v7922_v62 }
 0x106   : > { %1029 = vmatmul.f32.gmra.mxu1 %v7767_v18  ;;  %1417 = vmatmul.f32.gmra.mxu3 %v7822_v11  ;;  %11645 = vst [vmem:[#allocation53_spill] sm:$0xff] %v7928_v13 }
 0x107   : > { %1217 = vmatmul.f32.gmra.mxu2 %v7808_v12 }
 0x10d   : > { %716 = vmatmul.f32.gmra.mxu0 %v7860_v7 }
 0x10e   : > { %1033 = vmatmul.f32.gmra.mxu1 %v7796_v24  ;;  %1423 = vmatmul.f32.gmra.mxu3 %v7844_v37 }
 0x10f   : > { %1222 = vmatmul.f32.gmra.mxu2 %v7832_v48 }
 0x115   : > { %724 = vmatmul.f32.gmra.mxu0 %v7879_v47 }
 0x116   : > { %1037 = vmatmul.f32.gmra.mxu1 %v7824_v21  ;;  %1429 = vmatmul.f32.gmra.mxu3 %v7863_v20 }
 0x117   : > { %1227 = vmatmul.f32.gmra.mxu2 %v7852_v30 }
 0x11d   : > { %732 = vmatmul.f32.gmra.mxu0 %v7898_v40 }
 0x11e   : > { %1041 = vmatmul.f32.gmra.mxu1 %v7846_v36  ;;  %1435 = vmatmul.f32.gmra.mxu3 %v7882_v46  ;;  %v7936_v46 = vand.u32 4294901760, %v746_v17  ;;  %v490_v17 = vld [vmem:[%s11112_s1 + $0xe0] sm:$0xff] }
 0x11f   : > { %1232 = vmatmul.f32.gmra.mxu2 %v7871_v33  ;;  %v7941_v33 = vand.u32 4294901760, %v488_v25  ;;  %v7960_v40 = vand.u32 4294901760, %v490_v17 }
 0x120   : > { %11646 = vst [vmem:[#allocation54_spill] sm:$0xff] %v7936_v46 }
 0x121   : > { %11648 = vst [vmem:[#allocation56_spill] sm:$0xff] %v7941_v33 }
 0x122   : > { %11652 = vst [vmem:[#allocation60_spill] sm:$0xff] %v7960_v40 }
 0x125   : > { %740 = vmatmul.f32.gmra.mxu0 %v7917_v19  ;;  %v7939_v19 = vand.u32 4294901760, %v7928_v13 }
 0x126   : > { %1045 = vmatmul.f32.gmra.mxu1 %v7865_v61  ;;  %1441 = vmatmul.f32.gmra.mxu3 %v7901_v6  ;;  %v7947_v6 = vsub.f32 %v488_v25, %v7941_v33 }
 0x127   : > { %1237 = vmatmul.f32.gmra.mxu2 %v7890_v10  ;;  %11647 = vst [vmem:[#allocation55_spill] sm:$0xff] %v7939_v19  ;;  %v754_v38 = vsub.f32 %v7928_v13, %v7939_v19 }
 0x128   : > { %11649 = vst [vmem:[#allocation57_spill] sm:$0xff] %v7947_v6 }
 0x129   : > { %v7955_v10 = vand.u32 4294901760, %v754_v38  ;;  %v492_v38 = vld [vmem:[%s11112_s1 + $0xf0] sm:$0xff] }
 0x12a   : > { %v7979_v20 = vand.u32 4294901760, %v492_v38 }
 0x12b   : > { %11650 = vst [vmem:[#allocation58_spill] sm:$0xff] %v7955_v10 }
 0x12c   : > { %11656 = vst [vmem:[#allocation64_spill] sm:$0xff] %v7979_v20 }
 0x12d   : > { %748 = vmatmul.f32.gmra.mxu0 %v7936_v46  ;;  %v7958_v46 = vand.u32 4294901760, %v7947_v6 }
 0x12e   : > { %1049 = vmatmul.f32.gmra.mxu1 %v7884_v58  ;;  %1447 = vmatmul.f32.gmra.mxu3 %v7920_v14  ;;  %v7966_v14 = vsub.f32 %v490_v17, %v7960_v40 }
 0x12f   : > { %1242 = vmatmul.f32.gmra.mxu2 %v7909_v54  ;;  %11651 = vst [vmem:[#allocation59_spill] sm:$0xff] %v7958_v46  ;;  %v762_v25 = vsub.f32 %v7947_v6, %v7958_v46 }
 0x130   : > { %11653 = vst [vmem:[#allocation61_spill] sm:$0xff] %v7966_v14 }
 0x131   : > { %v7974_v54 = vand.u32 4294901760, %v762_v25  ;;  %v494_v25 = vld [vmem:[%s11112_s1 + $0x100] sm:$0xff] }
 0x132   : > { %v7998_v30 = vand.u32 4294901760, %v494_v25 }
 0x133   : > { %11654 = vst [vmem:[#allocation62_spill] sm:$0xff] %v7974_v54 }
 0x134   : > { %11660 = vst [vmem:[#allocation68_spill] sm:$0xff] %v7998_v30 }
 0x135   : > { %756 = vmatmul.f32.gmra.mxu0 %v7955_v10  ;;  %v7977_v10 = vand.u32 4294901760, %v7966_v14 }
 0x136   : > { %1053 = vmatmul.f32.gmra.mxu1 %v7903_v34  ;;  %1453 = vmatmul.f32.gmra.mxu3 %v7939_v19  ;;  %v7985_v19 = vsub.f32 %v492_v38, %v7979_v20 }
 0x137   : > { %1247 = vmatmul.f32.gmra.mxu2 %v7928_v13  ;;  %11655 = vst [vmem:[#allocation63_spill] sm:$0xff] %v7977_v10  ;;  %v770_v17 = vsub.f32 %v7966_v14, %v7977_v10 }
 0x138   : > { %11657 = vst [vmem:[#allocation65_spill] sm:$0xff] %v7985_v19 }
 0x139   : > { %v7993_v13 = vand.u32 4294901760, %v770_v17  ;;  %v496_v17 = vld [vmem:[%s11112_s1 + $0x110] sm:$0xff] }
 0x13a   : > { %v8017_v47 = vand.u32 4294901760, %v496_v17 }
 0x13b   : > { %11658 = vst [vmem:[#allocation66_spill] sm:$0xff] %v7993_v13 }
 0x13c   : > { %11664 = vst [vmem:[#allocation72_spill] sm:$0xff] %v8017_v47 }
 0x13d   : > { %764 = vmatmul.f32.gmra.mxu0 %v7974_v54  ;;  %v7996_v54 = vand.u32 4294901760, %v7985_v19 }
 0x13e   : > { %1057 = vmatmul.f32.gmra.mxu1 %v7922_v62  ;;  %1459 = vmatmul.f32.gmra.mxu3 %v7958_v46  ;;  %v8004_v46 = vsub.f32 %v494_v25, %v7998_v30 }
 0x13f   : > { %1252 = vmatmul.f32.gmra.mxu2 %v7947_v6  ;;  %11659 = vst [vmem:[#allocation67_spill] sm:$0xff] %v7996_v54  ;;  %v778_v38 = vsub.f32 %v7985_v19, %v7996_v54 }
 0x140   : > { %11661 = vst [vmem:[#allocation69_spill] sm:$0xff] %v8004_v46 }
 0x141   : > { %v8012_v6 = vand.u32 4294901760, %v778_v38  ;;  %v498_v38 = vld [vmem:[%s11112_s1 + $0x120] sm:$0xff] }
 0x142   : > { %v8036_v48 = vand.u32 4294901760, %v498_v38 }
 0x143   : > { %11662 = vst [vmem:[#allocation70_spill] sm:$0xff] %v8012_v6 }
 0x144   : > { %11668 = vst [vmem:[#allocation76_spill] sm:$0xff] %v8036_v48 }
 0x145   : > { %772 = vmatmul.f32.gmra.mxu0 %v7993_v13  ;;  %v8015_v13 = vand.u32 4294901760, %v8004_v46 }
 0x146   : > { %1061 = vmatmul.f32.gmra.mxu1 %v7941_v33  ;;  %1465 = vmatmul.f32.gmra.mxu3 %v7977_v10  ;;  %v8023_v10 = vsub.f32 %v496_v17, %v8017_v47 }
 0x147   : > { %1257 = vmatmul.f32.gmra.mxu2 %v7966_v14  ;;  %11663 = vst [vmem:[#allocation71_spill] sm:$0xff] %v8015_v13  ;;  %v786_v25 = vsub.f32 %v8004_v46, %v8015_v13 }
 0x148   : > { %11665 = vst [vmem:[#allocation73_spill] sm:$0xff] %v8023_v10 }
 0x149   : > { %v8031_v37 = vand.u32 4294901760, %v786_v25  ;;  %v500_v25 = vld [vmem:[%s11112_s1 + $0x130] sm:$0xff] }
 0x14a   : > { %v8055_v12 = vand.u32 4294901760, %v500_v25 }
 0x14b   : > { %11666 = vst [vmem:[#allocation74_spill] sm:$0xff] %v8031_v37 }
 0x14c   : > { %11672 = vst [vmem:[#allocation80_spill] sm:$0xff] %v8055_v12 }
 0x14d   : > { %780 = vmatmul.f32.gmra.mxu0 %v8012_v6  ;;  %v8034_v6 = vand.u32 4294901760, %v8023_v10 }
 0x14e   : > { %1065 = vmatmul.f32.gmra.mxu1 %v7960_v40  ;;  %1471 = vmatmul.f32.gmra.mxu3 %v7996_v54  ;;  %v8042_v54 = vsub.f32 %v498_v38, %v8036_v48 }
 0x14f   : > { %1262 = vmatmul.f32.gmra.mxu2 %v7985_v19  ;;  %11667 = vst [vmem:[#allocation75_spill] sm:$0xff] %v8034_v6  ;;  %v794_v17 = vsub.f32 %v8023_v10, %v8034_v6 }
 0x150   : > { %11669 = vst [vmem:[#allocation77_spill] sm:$0xff] %v8042_v54 }
 0x151   : > { %v661_v14 = vpop.f32.mrf.mxu0  ;;  %v8050_v11 = vand.u32 4294901760, %v794_v17  ;;  %v502_v17 = vld [vmem:[%s11112_s1 + $0x140] sm:$0xff] }
 0x153   : > { %11670 = vst [vmem:[#allocation78_spill] sm:$0xff] %v8050_v11 }
 0x155   : > { %788 = vmatmul.f32.gmra.mxu0 %v8031_v37  ;;  %v8053_v37 = vand.u32 4294901760, %v8042_v54 }
 0x156   : > { %1069 = vmatmul.f32.gmra.mxu1 %v7979_v20  ;;  %1477 = vmatmul.f32.gmra.mxu3 %v8015_v13 }
 0x157   : > { %1267 = vmatmul.f32.gmra.mxu2 %v8004_v46  ;;  %v1382_v19 = vpop.f32.mrf.mxu3  ;;  %11671 = vst [vmem:[#allocation79_spill] sm:$0xff] %v8053_v37  ;;  %v802_v13 = vsub.f32 %v8042_v54, %v8053_v37  ;;  %v8061_v46 = vsub.f32 %v500_v25, %v8055_v12  ;;  %v8076_v25 = vand.u32 4294901760, %v502_v17 }
 0x159   : > { %v669_v7 = vpop.f32.mrf.mxu0  ;;  %11673 = vst [vmem:[#allocation81_spill] sm:$0xff] %v8061_v46 }
 0x15a   : > { %v1010_v38 = vpop.f32.mrf.mxu1  ;;  %v1188_v3 = vpop.f32.mrf.mxu2  ;;  %11676 = vst [vmem:[#allocation84_spill] sm:$0xff] %v8076_v25 }
 0x15b   : > { %v1011_v42 = vadd.f32 %v1010_v38, %v661_v14  ;;  %v8074_v14 = vand.u32 4294901760, %v8061_v46 }
 0x15d   : > { %v1189_v44 = vadd.f32 %v1188_v3, %v1011_v42  ;;  %796 = vmatmul.f32.gmra.mxu0 %v8050_v11  ;;  %v8071_v3 = vand.u32 4294901760, %v802_v13  ;;  %11675 = vst [vmem:[#allocation83_spill] sm:$0xff] %v8074_v14  ;;  %v504_v13 = vld [vmem:[%s11112_s1 + $0x150] sm:$0xff] }
 0x15e   : > { %1073 = vmatmul.f32.gmra.mxu1 %v7998_v30  ;;  %1483 = vmatmul.f32.gmra.mxu3 %v8034_v6 }
 0x15f   : > { %v8068_v45 = vadd.f32 %v1382_v19, %v1189_v44  ;;  %1272 = vmatmul.f32.gmra.mxu2 %v8023_v10  ;;  %11674 = vst [vmem:[#allocation82_spill] sm:$0xff] %v8071_v3  ;;  %v810_v44 = vsub.f32 %v8061_v46, %v8074_v14  ;;  %v8082_v19 = vsub.f32 %v502_v17, %v8076_v25 }
 0x160   : > { %v1388_v42 = vpop.f32.mrf.mxu3 }
 0x161   : > { %11677 = vst [vmem:[#allocation85_spill] sm:$0xff] %v8082_v19 }
 0x162   : > { %v677_v38 = vpop.f32.mrf.mxu0  ;;  %v1014_v11 = vpop.f32.mrf.mxu1 }
 0x163   : > { %v1015_v51 = vadd.f32 %v1014_v11, %v669_v7  ;;  %v1193_v6 = vpop.f32.mrf.mxu2  ;;  %v8095_v7 = vand.u32 4294901760, %v8082_v19 }
 0x165   : > { %v1194_v49 = vadd.f32 %v1193_v6, %v1015_v51  ;;  %804 = vmatmul.f32.gmra.mxu0 %v8071_v3  ;;  %v8092_v51 = vand.u32 4294901760, %v810_v44  ;;  %11680 = vst [vmem:[#allocation88_spill] sm:$0xff] %v8095_v7  ;;  %v8097_v6 = vand.u32 4294901760, %v504_v13 }
 0x166   : > { %1077 = vmatmul.f32.gmra.mxu1 %v8017_v47  ;;  %1489 = vmatmul.f32.gmra.mxu3 %v8053_v37 }
 0x167   : > { %v8089_v10 = vadd.f32 %v1388_v42, %v1194_v49  ;;  %1277 = vmatmul.f32.gmra.mxu2 %v8042_v54  ;;  %11679 = vst [vmem:[#allocation87_spill] sm:$0xff] %v8092_v51  ;;  %v818_v49 = vsub.f32 %v8082_v19, %v8095_v7  ;;  %v8103_v42 = vsub.f32 %v504_v13, %v8097_v6  ;;  %v506_v54 = vld [vmem:[%s11112_s1 + $0x160] sm:$0xff] }
 0x168   : > { %11681 = vst [vmem:[#allocation89_spill] sm:$0xff] %v8097_v6  ;;  %v8118_v13 = vand.u32 4294901760, %v506_v54 }
 0x169   : > { %11678 = vst [vmem:[#allocation86_spill] sm:$0xff] %v8089_v10  ;;  %v1394_v11 = vpop.f32.mrf.mxu3  ;;  %v8116_v2 = vand.u32 4294901760, %v8103_v42 }
 0x16a   : > { %v685_v17 = vpop.f32.mrf.mxu0  ;;  %11682 = vst [vmem:[#allocation90_spill] sm:$0xff] %v8103_v42 }
 0x16b   : > { %v1018_v3 = vpop.f32.mrf.mxu1  ;;  %v1198_v0 = vpop.f32.mrf.mxu2  ;;  %11685 = vst [vmem:[#allocation93_spill] sm:$0xff] %v8116_v2  ;;  %v826_v29 = vsub.f32 %v8103_v42, %v8116_v2 }
 0x16c   : > { %v1019_v37 = vadd.f32 %v1018_v3, %v677_v38  ;;  %v8113_v38 = vand.u32 4294901760, %v818_v49  ;;  %11686 = vst [vmem:[#allocation94_spill] sm:$0xff] %v8118_v13 }
 0x16d   : > { %812 = vmatmul.f32.gmra.mxu0 %v8092_v51 }
 0x16e   : > { %v1199_v44 = vadd.f32 %v1198_v0, %v1019_v37  ;;  %1081 = vmatmul.f32.gmra.mxu1 %v8036_v48  ;;  %1495 = vmatmul.f32.gmra.mxu3 %v8074_v14  ;;  %11684 = vst [vmem:[#allocation92_spill] sm:$0xff] %v8113_v38 }
 0x16f   : > { %1282 = vmatmul.f32.gmra.mxu2 %v8061_v46  ;;  %v8136_v46 = vand.u32 4294901760, %v826_v29 }
 0x170   : > { %v8111_v3 = vadd.f32 %v1394_v11, %v1199_v44  ;;  %v8124_v11 = vsub.f32 %v506_v54, %v8118_v13  ;;  %v508_v44 = vld [vmem:[%s11112_s1 + $0x170] sm:$0xff] }
 0x171   : > { %v1400_v51 = vpop.f32.mrf.mxu3  ;;  %11690 = vst [vmem:[#allocation98_spill] sm:$0xff] %v8136_v46 }
 0x172   : > { %11683 = vst [vmem:[#allocation91_spill] sm:$0xff] %v8111_v3  ;;  %v693_v0 = vpop.f32.mrf.mxu0 }
 0x173   : > { %v1022_v37 = vpop.f32.mrf.mxu1  ;;  %v1203_v23 = vpop.f32.mrf.mxu2  ;;  %11687 = vst [vmem:[#allocation95_spill] sm:$0xff] %v8124_v11 }
 0x174   : > { %v1023_v14 = vadd.f32 %v1022_v37, %v685_v17  ;;  %v8134_v37 = vpop.permute.xlu1 %447 }
 0x175   : > { %820 = vmatmul.f32.gmra.mxu0 %v8113_v38  ;;  %11689 = vst [vmem:[#allocation97_spill] sm:$0xff] %v8134_v37  ;;  %v446_v38 = vpop.permute.xlu0 %445 }
 0x176   : > { %v1204_v49 = vadd.f32 %v1203_v23, %v1023_v14  ;;  %1085 = vmatmul.f32.gmra.mxu1 %v8055_v12  ;;  %1501 = vmatmul.f32.gmra.mxu3 %v8095_v7  ;;  %v8139_v23 = vand.u32 4294901760, %v8124_v11  ;;  %v8141_v14 = vand.u32 4294901760, %v508_v44  ;;  %v453_v7 = vsel %vm449_vm3, %v446_v38, %v8134_v37 }
 0x177   : > { %1287 = vmatmul.f32.gmra.mxu2 %v8082_v19  ;;  %v8145_v52 = vand.u32 4294901760, %v453_v7 }
 0x178   : > { %v8132_v17 = vadd.f32 %v1400_v51, %v1204_v49  ;;  %11691 = vst [vmem:[#allocation99_spill] sm:$0xff] %v8139_v23  ;;  %v834_v29 = vsub.f32 %v8124_v11, %v8139_v23  ;;  %v8153_v31 = vsub.f32 %v508_v44, %v8141_v14  ;;  %v442_v44 = vpop.permute.xlu2 %441 }
 0x179   : > { %v1406_v54 = vpop.f32.mrf.mxu3  ;;  %11692 = vst [vmem:[#allocation100_spill] sm:$0xff] %v8141_v14  ;;  %1938 = vmatpush.msrb.mxu2 %v8145_v52  ;;  %2565 = vmatpush.msra.mxu1 %v8145_v52  ;;  %v8156_v38 = vsub.f32 %v453_v7, %v8145_v52 }
 0x17a   : > { %11688 = vst [vmem:[#allocation96_spill] sm:$0xff] %v8132_v17  ;;  %v701_v26 = vpop.f32.mrf.mxu0  ;;  %v8167_v63 = vand.u32 4294901760, %v834_v29 }
 0x17b   : > { %v1026_v51 = vpop.f32.mrf.mxu1  ;;  %v1208_v49 = vpop.f32.mrf.mxu2  ;;  %11693 = vst [vmem:[#allocation101_spill] sm:$0xff] %v8153_v31  ;;  %2381 = vmatpush.msra.mxu0 %v8156_v38 }
 0x17c   : > { %v1027_v19 = vadd.f32 %v1026_v51, %v693_v0  ;;  %v510_v0 = vld [vmem:[%s11112_s1 + $0x180] sm:$0xff]  ;;  %11695 = vst [vmem:[#allocation103_spill] sm:$0xff] %v8167_v63 }
 0x17d   : > { %828 = vmatmul.f32.gmra.mxu0 %v8136_v46  ;;  %v438_v46 = vpop.permute.xlu1 %437 }
 0x17e   : > { %v1209_v39 = vadd.f32 %v1208_v49, %v1027_v19  ;;  %1089 = vmatmul.f32.gmra.mxu1 %v8076_v25  ;;  %1507 = vmatmul.f32.gmra.mxu3 %v8116_v2  ;;  %v8170_v19 = vand.u32 4294901760, %v8153_v31  ;;  %v8172_v49 = vand.u32 4294901760, %v510_v0  ;;  %v8174_v2 = vpop.permute.xlu0 %443 }
 0x17f   : > { %1292 = vmatmul.f32.gmra.mxu2 %v8103_v42  ;;  %11698 = vst [vmem:[#allocation106_spill] sm:$0xff] %v8174_v2  ;;  %v452_v42 = vsel %vm449_vm3, %v442_v44, %v8174_v2 }
 0x180   : > { %v8165_v51 = vadd.f32 %v1406_v54, %v1209_v39  ;;  %11696 = vst [vmem:[#allocation104_spill] sm:$0xff] %v8170_v19  ;;  %v8178_v39 = vand.u32 4294901760, %v452_v42  ;;  %v842_v29 = vsub.f32 %v8153_v31, %v8170_v19  ;;  %v8184_v4 = vsub.f32 %v510_v0, %v8172_v49  ;;  %v8199_v0 = vpop.permute.xlu2 %439 }
 0x181   : > { %v1412_v7 = vpop.f32.mrf.mxu3  ;;  %11697 = vst [vmem:[#allocation105_spill] sm:$0xff] %v8172_v49 }
 0x182   : > { %11694 = vst [vmem:[#allocation102_spill] sm:$0xff] %v8165_v51  ;;  %v709_v22 = vpop.f32.mrf.mxu0  ;;  %v8187_v37 = vsub.f32 %v452_v42, %v8178_v39  ;;  %1940 = vmatpush.msrb.mxu2 %v8178_v39  ;;  %2567 = vmatpush.msra.mxu1 %v8178_v39 }
 0x183   : > { %v1030_v56 = vpop.f32.mrf.mxu1  ;;  %v1213_v5 = vpop.f32.mrf.mxu2  ;;  %11699 = vst [vmem:[#allocation107_spill] sm:$0xff] %v8184_v4 }
 0x184   : > { %v1031_v54 = vadd.f32 %v1030_v56, %v701_v26  ;;  %v512_v56 = vld [vmem:[%s11112_s1 + $0x190] sm:$0xff]  ;;  %2384 = vmatpush.msra.mxu0 %v8187_v37  ;;  %11701 = vst [vmem:[#allocation109_spill] sm:$0xff] %v8199_v0 }
 0x185   : > { %836 = vmatmul.f32.gmra.mxu0 %v8167_v63  ;;  %v8201_v42 = vpop.permute.xlu1 %435 }
 0x186   : > { %v1214_v51 = vadd.f32 %v1213_v5, %v1031_v54  ;;  %1093 = vmatmul.f32.gmra.mxu1 %v8097_v6  ;;  %1513 = vmatmul.f32.gmra.mxu3 %v8139_v23  ;;  %11702 = vst [vmem:[#allocation110_spill] sm:$0xff] %v8201_v42  ;;  %v8204_v5 = vand.u32 4294901760, %v842_v29  ;;  %v8207_v54 = vand.u32 4294901760, %v8184_v4  ;;  %v8209_v23 = vand.u32 4294901760, %v512_v56  ;;  %v434_v63 = vpop.permute.xlu0 %433 }
 0x187   : > { %1297 = vmatmul.f32.gmra.mxu2 %v8124_v11  ;;  %v451_v11 = vsel %vm449_vm3, %v438_v46, %v8199_v0  ;;  %v450_v2 = vsel %vm449_vm3, %v434_v63, %v8201_v42 }
 0x188   : > { %v8197_v26 = vadd.f32 %v1412_v7, %v1214_v51  ;;  %11703 = vst [vmem:[#allocation111_spill] sm:$0xff] %v8204_v5  ;;  %v8213_v7 = vand.u32 4294901760, %v451_v11  ;;  %v8217_v29 = vand.u32 4294901760, %v450_v2  ;;  %v850_v46 = vsub.f32 %v8184_v4, %v8207_v54 }
 0x189   : > { %v1418_v44 = vpop.f32.mrf.mxu3  ;;  %11704 = vst [vmem:[#allocation112_spill] sm:$0xff] %v8207_v54  ;;  %v8225_v0 = vsub.f32 %v512_v56, %v8209_v23  ;;  %v2216_v56 = vand.u32 4294901760, %v8156_v38 }
 0x18a   : > { %11700 = vst [vmem:[#allocation108_spill] sm:$0xff] %v8197_v26  ;;  %v717_v51 = vpop.f32.mrf.mxu0  ;;  %1942 = vmatpush.msrb.mxu2 %v8213_v7  ;;  %2569 = vmatpush.msra.mxu1 %v8213_v7  ;;  %v2227_v17 = vsub.f32 %v451_v11, %v8213_v7 }
 0x18b   : > { %11705 = vst [vmem:[#allocation113_spill] sm:$0xff] %v8209_v23  ;;  %v1034_v26 = vpop.f32.mrf.mxu1  ;;  %v1218_v6 = vpop.f32.mrf.mxu2  ;;  %v8243_v11 = vand.u32 4294901760, %v8225_v0 }
 0x18c   : > { %v1035_v25 = vadd.f32 %v1034_v26, %v709_v22  ;;  %11706 = vst [vmem:[#allocation114_spill] sm:$0xff] %v8225_v0  ;;  %v514_v22 = vld [vmem:[%s11112_s1 + $0x1a0] sm:$0xff]  ;;  %v2233_v26 = vsub.f32 %v450_v2, %v8217_v29  ;;  %2387 = vmatpush.msra.mxu0 %v2227_v17  ;;  %1944 = vmatpush.msrb.mxu2 %v8217_v29 }
 0x18d   : > { %844 = vmatmul.f32.gmra.mxu0 %v8204_v5  ;;  %2571 = vmatpush.msra.mxu1 %v8217_v29  ;;  %11709 = vst [vmem:[#allocation117_spill] sm:$0xff] %v8243_v11  ;;  %v2217_v2 = vsub.f32 %v8156_v38, %v2216_v56  ;;  %v516_v38 = vld [vmem:[%s11112_s1 + $0x1b0] sm:$0xff] }
 0x18e   : > { %v1219_v63 = vadd.f32 %v1218_v6, %v1035_v25  ;;  %1097 = vmatmul.f32.gmra.mxu1 %v8118_v13  ;;  %1519 = vmatmul.f32.gmra.mxu3 %v8170_v19  ;;  %v8240_v25 = vand.u32 4294901760, %v850_v46  ;;  %v8245_v19 = vand.u32 4294901760, %v514_v22  ;;  %v2222_v13 = vand.u32 4294901760, %v8187_v37 }
 0x18f   : > { %1302 = vmatmul.f32.gmra.mxu2 %v8153_v31  ;;  %2390 = vmatpush.msra.mxu0 %v2233_v26  ;;  %v858_v46 = vsub.f32 %v8225_v0, %v8243_v11 }
 0x190   : > { %v8235_v5 = vadd.f32 %v1418_v44, %v1219_v63  ;;  %11708 = vst [vmem:[#allocation116_spill] sm:$0xff] %v8240_v25  ;;  %2780 = vmatpush.msra.mxu2 %v2216_v56  ;;  %v8253_v12 = vsub.f32 %v514_v22, %v8245_v19  ;;  %v2228_v56 = vand.u32 4294901760, %v2227_v17 }
 0x191   : > { %v1424_v6 = vpop.f32.mrf.mxu3  ;;  %11710 = vst [vmem:[#allocation118_spill] sm:$0xff] %v8245_v19 }
 0x192   : > { %11707 = vst [vmem:[#allocation115_spill] sm:$0xff] %v8235_v5  ;;  %v725_v31 = vpop.f32.mrf.mxu0  ;;  %v2218_v5 = vand.u32 4294901760, %v2217_v2  ;;  %v2229_v22 = vsub.f32 %v2227_v17, %v2228_v56  ;;  %2784 = vmatpush.msra.mxu2 %v2222_v13 }
 0x193   : > { %v1038_v44 = vpop.f32.mrf.mxu1  ;;  %v1223_v63 = vpop.f32.mrf.mxu2  ;;  %11711 = vst [vmem:[#allocation119_spill] sm:$0xff] %v8253_v12 }
 0x194   : > { %v1039_v42 = vadd.f32 %v1038_v44, %v717_v51  ;;  %v2223_v51 = vsub.f32 %v8187_v37, %v2222_v13  ;;  %2219 = vmatpush.msrb.mxu3 %v2218_v5  ;;  %v2230_v37 = vand.u32 4294901760, %v2229_v22  ;;  %2788 = vmatpush.msra.mxu2 %v2228_v56 }
 0x195   : > { %852 = vmatmul.f32.gmra.mxu0 %v8240_v25  ;;  %v2234_v25 = vand.u32 4294901760, %v2233_v26 }
 0x196   : > { %v1224_v3 = vadd.f32 %v1223_v63, %v1039_v42  ;;  %1101 = vmatmul.f32.gmra.mxu1 %v8141_v14  ;;  %1525 = vmatmul.f32.gmra.mxu3 %v8207_v54  ;;  %v2224_v44 = vand.u32 4294901760, %v2223_v51  ;;  %v8264_v42 = vand.u32 4294901760, %v858_v46  ;;  %v8267_v54 = vand.u32 4294901760, %v8253_v12 }
 0x197   : > { %1307 = vmatmul.f32.gmra.mxu2 %v8184_v4  ;;  %v8269_v14 = vand.u32 4294901760, %v516_v38  ;;  %v2235_v10 = vsub.f32 %v2233_v26, %v2234_v25 }
 0x198   : > { %v8262_v2 = vadd.f32 %v1424_v6, %v1224_v3  ;;  %11712 = vst [vmem:[#allocation120_spill] sm:$0xff] %v8264_v42  ;;  %2225 = vmatpush.msrb.mxu3 %v2224_v44  ;;  %2792 = vmatpush.msra.mxu2 %v2234_v25  ;;  %v866_v13 = vsub.f32 %v8253_v12, %v8267_v54 }
 0x199   : > { %v1430_v63 = vpop.f32.mrf.mxu3  ;;  %11713 = vst [vmem:[#allocation121_spill] sm:$0xff] %v8267_v54  ;;  %v2236_v17 = vand.u32 4294901760, %v2235_v10  ;;  %v8275_v46 = vsub.f32 %v516_v38, %v8269_v14 }
 0x19a   : > { %11714 = vst [vmem:[#allocation122_spill] sm:$0xff] %v8269_v14  ;;  %v733_v48 = vpop.f32.mrf.mxu0  ;;  %2231 = vmatpush.msrb.mxu3 %v2230_v37  ;;  %v8286_v26 = vand.u32 4294901760, %v866_v13 }
 0x19b   : > { %v1042_v5 = vpop.f32.mrf.mxu1  ;;  %v1228_v3 = vpop.f32.mrf.mxu2  ;;  %11715 = vst [vmem:[#allocation123_spill] sm:$0xff] %v8275_v46  ;;  %v8289_v38 = vand.u32 4294901760, %v8275_v46 }
 0x19c   : > { %v1043_v6 = vadd.f32 %v1042_v5, %v725_v31  ;;  %v518_v31 = vld [vmem:[%s11112_s1 + $0x1c0] sm:$0xff]  ;;  %2237 = vmatpush.msrb.mxu3 %v2236_v17  ;;  %11716 = vst [vmem:[#allocation124_spill] sm:$0xff] %v8286_v26 }
 0x19d   : > { %860 = vmatmul.f32.gmra.mxu0 %v8264_v42  ;;  %11717 = vst [vmem:[#allocation125_spill] sm:$0xff] %v8289_v38  ;;  %v8291_v56 = vand.u32 4294901760, %v518_v31 }
 0x19e   : > { %v1229_v51 = vadd.f32 %v1228_v3, %v1043_v6  ;;  %1105 = vmatmul.f32.gmra.mxu1 %v8172_v49  ;;  %1531 = vmatmul.f32.gmra.mxu3 %v8243_v11 }
 0x19f   : > { %1312 = vmatmul.f32.gmra.mxu2 %v8225_v0  ;;  %2935 = vmatpush.msra.mxu3 %v8145_v52  ;;  %11718 = vst [vmem:[#allocation126_spill] sm:$0xff] %v8291_v56  ;;  %v874_v52 = vsub.f32 %v8275_v46, %v8289_v38 }
 0x1a0   : > { %v8283_v10 = vadd.f32 %v1430_v63, %v1229_v51  ;;  %v8299_v63 = vsub.f32 %v518_v31, %v8291_v56 }
 0x1a1   : > { %v1436_v25 = vpop.f32.mrf.mxu3  ;;  %2937 = vmatpush.msra.mxu3 %v8178_v39  ;;  %v520_v39 = vld [vmem:[%s11112_s1 + $0x1d0] sm:$0xff] }
 0x1a2   : > { %v741_v44 = vpop.f32.mrf.mxu0  ;;  %11719 = vst [vmem:[#allocation127_spill] sm:$0xff] %v8299_v63  ;;  %v8313_v17 = vand.u32 4294901760, %v8299_v63  ;;  %v8315_v13 = vand.u32 4294901760, %v520_v39 }
 0x1a3   : > { %v1046_v22 = vpop.f32.mrf.mxu1  ;;  %v1233_v37 = vpop.f32.mrf.mxu2  ;;  %2939 = vmatpush.msra.mxu3 %v8213_v7  ;;  %v8310_v7 = vand.u32 4294901760, %v874_v52  ;;  %v522_v52 = vld [vmem:[%s11112_s1 + $0x1e0] sm:$0xff] }
 0x1a4   : > { %v1047_v5 = vadd.f32 %v1046_v22, %v733_v48  ;;  %11721 = vst [vmem:[#allocation129_spill] sm:$0xff] %v8313_v17 }
 0x1a5   : > { %868 = vmatmul.f32.gmra.mxu0 %v8286_v26  ;;  %2941 = vmatpush.msra.mxu3 %v8217_v29  ;;  %11720 = vst [vmem:[#allocation128_spill] sm:$0xff] %v8310_v7  ;;  %v8321_v29 = vsub.f32 %v520_v39, %v8315_v13  ;;  %v8336_v39 = vand.u32 4294901760, %v522_v52 }
 0x1a6   : > { %v1234_v3 = vadd.f32 %v1233_v37, %v1047_v5  ;;  %1109 = vmatmul.f32.gmra.mxu1 %v8209_v23  ;;  %1537 = vmatmul.f32.gmra.mxu3 %v8267_v54  ;;  %11722 = vst [vmem:[#allocation130_spill] sm:$0xff] %v8315_v13  ;;  %v882_v5 = vsub.f32 %v8299_v63, %v8313_v17 }
 0x1a7   : > { %1317 = vmatmul.f32.gmra.mxu2 %v8253_v12  ;;  %11723 = vst [vmem:[#allocation131_spill] sm:$0xff] %v8321_v29 }
 0x1a8   : > { %v8308_v48 = vadd.f32 %v1436_v25, %v1234_v3  ;;  %v8331_v3 = vand.u32 4294901760, %v882_v5  ;;  %11726 = vst [vmem:[#allocation134_spill] sm:$0xff] %v8336_v39 }
 0x1a9   : > { %v1442_v6 = vpop.f32.mrf.mxu3 }
 0x1aa   : > { %v749_v51 = vpop.f32.mrf.mxu0  ;;  %11724 = vst [vmem:[#allocation132_spill] sm:$0xff] %v8331_v3 }
 0x1ab   : > { %v1050_v31 = vpop.f32.mrf.mxu1  ;;  %v1238_v22 = vpop.f32.mrf.mxu2 }
 0x1ac   : > { %v1051_v37 = vadd.f32 %v1050_v31, %v741_v44 }
 0x1ad   : > { %876 = vmatmul.f32.gmra.mxu0 %v8310_v7  ;;  %v8334_v7 = vand.u32 4294901760, %v8321_v29 }
 0x1ae   : > { %v1239_v25 = vadd.f32 %v1238_v22, %v1051_v37  ;;  %1113 = vmatmul.f32.gmra.mxu1 %v8245_v19  ;;  %1543 = vmatmul.f32.gmra.mxu3 %v8289_v38 }
 0x1af   : > { %1322 = vmatmul.f32.gmra.mxu2 %v8275_v46  ;;  %11725 = vst [vmem:[#allocation133_spill] sm:$0xff] %v8334_v7  ;;  %v890_v12 = vsub.f32 %v8321_v29, %v8334_v7 }
 0x1b0   : > { %v8329_v44 = vadd.f32 %v1442_v6, %v1239_v25  ;;  %v8342_v6 = vsub.f32 %v522_v52, %v8336_v39  ;;  %v524_v25 = vld [vmem:[%s11112_s1 + $0x1f0] sm:$0xff] }
 0x1b1   : > { %v1448_v31 = vpop.f32.mrf.mxu3  ;;  %v8357_v52 = vand.u32 4294901760, %v524_v25 }
 0x1b2   : > { %v757_v22 = vpop.f32.mrf.mxu0  ;;  %11727 = vst [vmem:[#allocation135_spill] sm:$0xff] %v8342_v6  ;;  %v8355_v46 = vand.u32 4294901760, %v8342_v6 }
 0x1b3   : > { %v1054_v37 = vpop.f32.mrf.mxu1  ;;  %v1243_v54 = vpop.f32.mrf.mxu2  ;;  %11730 = vst [vmem:[#allocation138_spill] sm:$0xff] %v8357_v52 }
 0x1b4   : > { %v1055_v38 = vadd.f32 %v1054_v37, %v749_v51  ;;  %v8352_v37 = vand.u32 4294901760, %v890_v12  ;;  %11729 = vst [vmem:[#allocation137_spill] sm:$0xff] %v8355_v46  ;;  %v898_v11 = vsub.f32 %v8342_v6, %v8355_v46 }
 0x1b5   : > { %884 = vmatmul.f32.gmra.mxu0 %v8331_v3 }
 0x1b6   : > { %v1244_v5 = vadd.f32 %v1243_v54, %v1055_v38  ;;  %1117 = vmatmul.f32.gmra.mxu1 %v8269_v14  ;;  %1549 = vmatmul.f32.gmra.mxu3 %v8313_v17  ;;  %11728 = vst [vmem:[#allocation136_spill] sm:$0xff] %v8352_v37 }
 0x1b7   : > { %1327 = vmatmul.f32.gmra.mxu2 %v8299_v63 }
 0x1b8   : > { %v8350_v51 = vadd.f32 %v1448_v31, %v1244_v5  ;;  %v8363_v31 = vsub.f32 %v524_v25, %v8357_v52  ;;  %v463_v5 = vld [vmem:[%s11112_s1 + $0x8] sm:$0xff] }
 0x1b9   : > { %v1454_v3 = vpop.f32.mrf.mxu3 }
 0x1ba   : > { %v765_v54 = vpop.f32.mrf.mxu0  ;;  %11731 = vst [vmem:[#allocation139_spill] sm:$0xff] %v8363_v31  ;;  %v8376_v25 = vand.u32 4294901760, %v8363_v31 }
 0x1bb   : > { %v1058_v38 = vpop.f32.mrf.mxu1  ;;  %v1248_v26 = vpop.f32.mrf.mxu2 }
 0x1bc   : > { %v1059_v17 = vadd.f32 %v1058_v38, %v757_v22  ;;  %v8373_v38 = vand.u32 4294901760, %v898_v11  ;;  %11733 = vst [vmem:[#allocation141_spill] sm:$0xff] %v8376_v25 }
 0x1bd   : > { %892 = vmatmul.f32.gmra.mxu0 %v8352_v37 }
 0x1be   : > { %v1249_v12 = vadd.f32 %v1248_v26, %v1059_v17  ;;  %1121 = vmatmul.f32.gmra.mxu1 %v8291_v56  ;;  %1555 = vmatmul.f32.gmra.mxu3 %v8334_v7  ;;  %11732 = vst [vmem:[#allocation140_spill] sm:$0xff] %v8373_v38  ;;  %v528_v26 = vsel %vm526_vm4, %v463_v5, 0 }
 0x1bf   : > { %1332 = vmatmul.f32.gmra.mxu2 %v8321_v29  ;;  %v8379_v42 = vand.u32 4294901760, %v528_v26 }
 0x1c0   : > { %v8371_v22 = vadd.f32 %v1454_v3, %v1249_v12  ;;  %v906_v3 = vsub.f32 %v8363_v31, %v8376_v25 }
 0x1c1   : > { %v1460_v37 = vpop.f32.mrf.mxu3  ;;  %11734 = vst [vmem:[#allocation142_spill] sm:$0xff] %v8379_v42  ;;  %v8390_v5 = vsub.f32 %v528_v26, %v8379_v42 }
 0x1c2   : > { %v773_v17 = vpop.f32.mrf.mxu0 }
 0x1c3   : > { %v1062_v63 = vpop.f32.mrf.mxu1  ;;  %v1253_v7 = vpop.f32.mrf.mxu2  ;;  %11736 = vst [vmem:[#allocation144_spill] sm:$0xff] %v8390_v5 }
 0x1c4   : > { %v1063_v0 = vadd.f32 %v1062_v63, %v765_v54  ;;  %v465_v63 = vld [vmem:[%s11112_s1 + $0x18] sm:$0xff]  ;;  %v8395_v54 = vand.u32 4294901760, %v906_v3 }
 0x1c5   : > { %900 = vmatmul.f32.gmra.mxu0 %v8373_v38  ;;  %v531_v4 = vsel %vm526_vm4, %v465_v63, 0  ;;  %v8415_v63 = vand.u32 4294901760, %v7400_v16 }
 0x1c6   : > { %v1254_v12 = vadd.f32 %v1253_v7, %v1063_v0  ;;  %1125 = vmatmul.f32.gmra.mxu1 %v8315_v13  ;;  %1561 = vmatmul.f32.gmra.mxu3 %v8355_v46  ;;  %11737 = vst [vmem:[#allocation145_spill] sm:$0xff] %v8395_v54  ;;  %v8407_v3 = vand.u32 4294901760, %v531_v4  ;;  %v8510_v13 = vand.u32 4294901760, %v7513_v8 }
 0x1c7   : > { %1337 = vmatmul.f32.gmra.mxu2 %v8342_v6  ;;  %v8399_v6 = vand.u32 4294901760, %v8390_v5  ;;  %11742 = vst [vmem:[#allocation150_spill] sm:$0xff] %v8415_v63 }
 0x1c8   : > { %v8387_v11 = vadd.f32 %v1460_v37, %v1254_v12  ;;  %v8403_v37 = vand.u32 4294901760, %v7398_v15  ;;  %11740 = vst [vmem:[#allocation148_spill] sm:$0xff] %v8407_v3 }
 0x1c9   : > { %v1466_v38 = vpop.f32.mrf.mxu3  ;;  %11738 = vst [vmem:[#allocation146_spill] sm:$0xff] %v8399_v6 }
 0x1ca   : > { %11735 = vst [vmem:[#allocation143_spill] sm:$0xff] %v8387_v11  ;;  %v781_v29 = vpop.f32.mrf.mxu0 }
 0x1cb   : > { %v1066_v0 = vpop.f32.mrf.mxu1  ;;  %v1258_v7 = vpop.f32.mrf.mxu2  ;;  %11739 = vst [vmem:[#allocation147_spill] sm:$0xff] %v8403_v37 }
 0x1cc   : > { %v1067_v46 = vadd.f32 %v1066_v0, %v773_v17  ;;  %v1948_v17 = vsub.f32 %v8390_v5, %v8399_v6  ;;  %11760 = vst [vmem:[#allocation166_spill] sm:$0xff] %v8510_v13 }
 0x1cd   : > { %908 = vmatmul.f32.gmra.mxu0 %v8395_v54 }
 0x1ce   : > { %v1259_v26 = vadd.f32 %v1258_v7, %v1067_v46  ;;  %1129 = vmatmul.f32.gmra.mxu1 %v8336_v39  ;;  %1567 = vmatmul.f32.gmra.mxu3 %v8376_v25  ;;  %v8419_v46 = vsub.f32 %v7398_v15, %v8403_v37  ;;  %v8422_v25 = vsub.f32 %v531_v4, %v8407_v3  ;;  %v8430_v5 = vand.u32 4294901760, %v1948_v17 }
 0x1cf   : > { %1342 = vmatmul.f32.gmra.mxu2 %v8363_v31  ;;  %v8434_v15 = vsub.f32 %v7400_v16, %v8415_v63 }
 0x1d0   : > { %v8410_v12 = vadd.f32 %v1466_v38, %v1259_v26  ;;  %11743 = vst [vmem:[#allocation151_spill] sm:$0xff] %v8419_v46  ;;  %v467_v38 = vld [vmem:[%s11112_s1 + $0x28] sm:$0xff]  ;;  %v8428_v26 = vand.u32 4294901760, %v7392_v9 }
 0x1d1   : > { %v1472_v0 = vpop.f32.mrf.mxu3  ;;  %11744 = vst [vmem:[#allocation152_spill] sm:$0xff] %v8422_v25  ;;  %v534_v4 = vsel %vm526_vm4, %v467_v38, 0  ;;  %v11758_v38 = vand.u32 4294901760, %v8434_v15 }
 0x1d2   : > { %11741 = vst [vmem:[#allocation149_spill] sm:$0xff] %v8410_v12  ;;  %v789_v7 = vpop.f32.mrf.mxu0  ;;  %v8437_v12 = vand.u32 4294901760, %v7431_v28  ;;  %v8449_v16 = vsub.f32 %v7392_v9, %v8428_v26 }
 0x1d3   : > { %11745 = vst [vmem:[#allocation153_spill] sm:$0xff] %v8428_v26  ;;  %v1070_v31 = vpop.f32.mrf.mxu1  ;;  %v1263_v54 = vpop.f32.mrf.mxu2 }
 0x1d4   : > { %v1071_v6 = vadd.f32 %v1070_v31, %v781_v29  ;;  %11746 = vst [vmem:[#allocation154_spill] sm:$0xff] %v8430_v5  ;;  %v8445_v29 = vand.u32 4294901760, %v8422_v25  ;;  %v8454_v31 = vand.u32 4294901760, %v7455_v41 }
 0x1d5   : > { %11747 = vst [vmem:[#allocation155_spill] sm:$0xff] %v8437_v12  ;;  %1636 = vmatmul.f32.vlgmr.msrb.gmra.mxu0 %v7561_v43 }
 0x1d6   : > { %v1264_v11 = vadd.f32 %v1263_v54, %v1071_v6  ;;  %1133 = vmatmul.f32.gmra.mxu1 %v8357_v52  ;;  %2239 = vmatmul.f32.vlgmr.msrb.gmra.mxu3 %v8379_v42  ;;  %11748 = vst [vmem:[#allocation156_spill] sm:$0xff] %v8445_v29  ;;  %v8459_v6 = vand.u32 4294901760, %v534_v4  ;;  %v8463_v54 = vsub.f32 %v7431_v28, %v8437_v12  ;;  %v8475_v28 = vand.u32 4294901760, %v7427_v27 }
 0x1d7   : > { %11749 = vst [vmem:[#allocation157_spill] sm:$0xff] %v8449_v16  ;;  %3072 = vmatpush.msrb.mxu0 %v8403_v37  ;;  %3795 = vmatpush.msrb.mxu3 %v8403_v37 }
 0x1d8   : > { %11750 = vst [vmem:[#allocation158_spill] sm:$0xff] %v8454_v31  ;;  %v8456_v17 = vadd.f32 %v1472_v0, %v1264_v11  ;;  %1950 = vmatmul.f32.vlgmr.msrb.gmra.mxu2 %v8430_v5  ;;  %v11754_v11 = vand.u32 4294901760, %v8419_v46  ;;  %v1956_v5 = vsub.f32 %v8422_v25, %v8445_v29  ;;  %v8489_v25 = vsub.f32 %v534_v4, %v8459_v6 }
 0x1d9   : > { %11752 = vst [vmem:[#allocation160_spill] sm:$0xff] %v8459_v6  ;;  %3074 = vmatpush.msrb.mxu0 %v8415_v63  ;;  %3587 = vmatpush.msrb.mxu2 %v8419_v46  ;;  %v1478_v9 = vpop.f32.mrf.mxu3  ;;  %v8507_v52 = vsub.f32 %v7427_v27, %v8475_v28 }
 0x1da   : > { %11751 = vst [vmem:[#allocation159_spill] sm:$0xff] %v8456_v17  ;;  %3797 = vmatpush.msrb.mxu3 %v8415_v63  ;;  %v797_v39 = vpop.f32.mrf.mxu0  ;;  %v3363_v0 = vsub.f32 %v8419_v46, %v11754_v11  ;;  %v469_v63 = vld [vmem:[%s11112_s1 + $0x38] sm:$0xff]  ;;  %v8485_v11 = vsub.f32 %v7455_v41, %v8454_v31  ;;  %v8492_v46 = vand.u32 4294901760, %v7485_v53  ;;  %v3369_v17 = vsub.f32 %v8434_v15, %v11758_v38 }
 0x1db   : > { %11753 = vst [vmem:[#allocation161_spill] sm:$0xff] %v8463_v54  ;;  %3076 = vmatpush.msrb.mxu0 %v8428_v26  ;;  %3590 = vmatpush.msrb.mxu2 %v8434_v15  ;;  %v1074_v37 = vpop.f32.mrf.mxu1  ;;  %v1268_v42 = vpop.f32.mrf.mxu2  ;;  %v11272_v41 = vand.u32 4294901760, %v8463_v54  ;;  %v537_v4 = vsel %vm526_vm4, %v469_v63, 0  ;;  %v8522_v27 = vand.u32 4294901760, %v8489_v25  ;;  %v8542_v63 = vsub.f32 %v7513_v8, %v8510_v13 }
 0x1dc   : > { %11755 = vst [vmem:[#allocation162_spill] sm:$0xff] %v8475_v28  ;;  %3799 = vmatpush.msrb.mxu3 %v8428_v26  ;;  %v1075_v29 = vadd.f32 %v1074_v37, %v789_v7  ;;  %v3364_v37 = vand.u32 4294901760, %v3363_v0  ;;  %v8502_v7 = vand.u32 4294901760, %v1956_v5  ;;  %v8526_v38 = vsub.f32 %v7485_v53, %v8492_v46 }
 0x1dd   : > { %11756 = vst [vmem:[#allocation163_spill] sm:$0xff] %v8489_v25  ;;  %3078 = vmatpush.msrb.mxu0 %v8437_v12  ;;  %3593 = vmatpush.msrb.mxu2 %v8449_v16  ;;  %v3370_v0 = vand.u32 4294901760, %v3369_v17 }
 0x1de   : > { %11757 = vst [vmem:[#allocation164_spill] sm:$0xff] %v8492_v46  ;;  %3801 = vmatpush.msrb.mxu3 %v8437_v12  ;;  %v1269_v26 = vadd.f32 %v1268_v42, %v1075_v29  ;;  %1640 = vmatmul.f32.gmra.mxu0 %v7621_v57  ;;  %v11761_v42 = vand.u32 4294901760, %v8449_v16  ;;  %v471_v12 = vld [vmem:[%s11112_s1 + $0x48] sm:$0xff] }
 0x1df   : > { %11759 = vst [vmem:[#allocation165_spill] sm:$0xff] %v8502_v7  ;;  %1797 = vmatmul.f32.vlgmr.msrb.gmra.mxu1 %v7561_v43  ;;  %2243 = vmatmul.f32.gmra.mxu3 %v8407_v3  ;;  %v1964_v3 = vsub.f32 %v8489_v25, %v8522_v27 }
 0x1e0   : > { %v3375_v29 = vsub.f32 %v8449_v16, %v11761_v42  ;;  %3080 = vmatpush.msrb.mxu0 %v8454_v31  ;;  %3365 = vmatpush.msrb.mxu1 %v3364_v37  ;;  %v8518_v5 = vadd.f32 %v1478_v9, %v1269_v26  ;;  %11762 = vst [vmem:[#allocation167_spill] sm:$0xff] %v8522_v27  ;;  %v8533_v9 = vand.u32 4294901760, %v537_v4  ;;  %v8536_v42 = vand.u32 4294901760, %v7500_v60 }
 0x1e1   : > { %3596 = vmatpush.msrb.mxu2 %v8463_v54  ;;  %3803 = vmatpush.msrb.mxu3 %v8454_v31  ;;  %v3381_v37 = vsub.f32 %v8463_v54, %v11272_v41  ;;  %v1484_v26 = vpop.f32.mrf.mxu3 }
 0x1e2   : > { %11763 = vst [vmem:[#allocation168_spill] sm:$0xff] %v8533_v9  ;;  %1958 = vmatmul.f32.gmra.mxu2 %v8502_v7  ;;  %3082 = vmatpush.msrb.mxu0 %v8475_v28  ;;  %v805_v53 = vpop.f32.mrf.mxu0  ;;  %v3376_v17 = vand.u32 4294901760, %v3375_v29  ;;  %v8550_v7 = vand.u32 4294901760, %v7545_v32  ;;  %v8562_v16 = vsub.f32 %v537_v4, %v8533_v9  ;;  %v11770_v4 = vand.u32 4294901760, %v8507_v52 }
 0x1e3   : > { %11764 = vst [vmem:[#allocation169_spill] sm:$0xff] %v8536_v42  ;;  %3371 = vmatpush.msrb.mxu1 %v3370_v0  ;;  %3599 = vmatpush.msrb.mxu2 %v8485_v11  ;;  %v1078_v41 = vpop.f32.mrf.mxu1  ;;  %v1273_v43 = vpop.f32.mrf.mxu2  ;;  %v11766_v0 = vand.u32 4294901760, %v8485_v11  ;;  %v3382_v31 = vand.u32 4294901760, %v3381_v37  ;;  %v8575_v37 = vand.u32 4294901760, %v7573_v55 }
 0x1e4   : > { %11765 = vst [vmem:[#allocation170_spill] sm:$0xff] %v8550_v7  ;;  %3805 = vmatpush.msrb.mxu3 %v8475_v28  ;;  %3084 = vmatpush.msrb.mxu0 %v8492_v46  ;;  %v1079_v8 = vadd.f32 %v1078_v41, %v797_v39  ;;  %v8566_v28 = vsub.f32 %v7500_v60, %v8536_v42  ;;  %v8569_v39 = vand.u32 4294901760, %v7578_v59 }
 0x1e5   : > { %v3387_v29 = vsub.f32 %v8485_v11, %v11766_v0  ;;  %3377 = vmatpush.msrb.mxu1 %v3376_v17  ;;  %3602 = vmatpush.msrb.mxu2 %v8507_v52  ;;  %11767 = vst [vmem:[#allocation171_spill] sm:$0xff] %v8562_v16  ;;  %v540_v17 = vsel %vm526_vm4, %v471_v12, 0  ;;  %v3393_v60 = vsub.f32 %v8507_v52, %v11770_v4 }
 0x1e6   : > { %11768 = vst [vmem:[#allocation172_spill] sm:$0xff] %v8569_v39  ;;  %3807 = vmatpush.msrb.mxu3 %v8492_v46  ;;  %3086 = vmatpush.msrb.mxu0 %v8510_v13  ;;  %v1274_v41 = vadd.f32 %v1273_v43, %v1079_v8  ;;  %v8584_v54 = vsub.f32 %v7545_v32, %v8550_v7  ;;  %v11772_v8 = vand.u32 4294901760, %v8526_v38  ;;  %v8598_v32 = vand.u32 4294901760, %v8562_v16 }
 0x1e7   : > { %11769 = vst [vmem:[#allocation173_spill] sm:$0xff] %v8575_v37  ;;  %3383 = vmatpush.msrb.mxu1 %v3382_v31  ;;  %3605 = vmatpush.msrb.mxu2 %v8526_v38  ;;  %v3388_v43 = vand.u32 4294901760, %v3387_v29  ;;  %v8590_v31 = vand.u32 4294901760, %v1964_v3  ;;  %v8600_v27 = vand.u32 4294901760, %v540_v17 }
 0x1e8   : > { %3809 = vmatpush.msrb.mxu3 %v8510_v13  ;;  %1644 = vmatmul.f32.gmra.mxu0 %v7675_v1  ;;  %v8588_v12 = vadd.f32 %v1484_v26, %v1274_v41  ;;  %v3399_v4 = vsub.f32 %v8526_v38, %v11772_v8  ;;  %11773 = vst [vmem:[#allocation175_spill] sm:$0xff] %v8598_v32  ;;  %v3394_v41 = vand.u32 4294901760, %v3393_v60  ;;  %v11293_v60 = vand.u32 4294901760, %v8584_v54 }
 0x1e9   : > { %11771 = vst [vmem:[#allocation174_spill] sm:$0xff] %v8590_v31  ;;  %1801 = vmatmul.f32.gmra.mxu1 %v7621_v57  ;;  %2247 = vmatmul.f32.gmra.mxu3 %v8459_v6  ;;  %v1490_v0 = vpop.f32.mrf.mxu3  ;;  %v8604_v26 = vsub.f32 %v7578_v59, %v8569_v39  ;;  %v11774_v57 = vand.u32 4294901760, %v8542_v63  ;;  %v473_v59 = vld [vmem:[%s11112_s1 + $0x58] sm:$0xff]  ;;  %v8627_v6 = vsub.f32 %v540_v17, %v8600_v27 }
 0x1ea   : > { %3088 = vmatpush.msrb.mxu0 %v8536_v42  ;;  %3389 = vmatpush.msrb.mxu1 %v3388_v43  ;;  %v813_v3 = vpop.f32.mrf.mxu0  ;;  %v8618_v43 = vsub.f32 %v7573_v55, %v8575_v37 }
 0x1eb   : > { %3608 = vmatpush.msrb.mxu2 %v8542_v63  ;;  %3811 = vmatpush.msrb.mxu3 %v8536_v42  ;;  %v1082_v8 = vpop.f32.mrf.mxu1  ;;  %v3405_v13 = vsub.f32 %v8542_v63, %v11774_v57  ;;  %v1278_v46 = vpop.f32.mrf.mxu2  ;;  %v3400_v57 = vand.u32 4294901760, %v3399_v4  ;;  %v1972_v42 = vsub.f32 %v8562_v16, %v8598_v32  ;;  %11775 = vst [vmem:[#allocation176_spill] sm:$0xff] %v8627_v6 }
 0x1ec   : > { %1966 = vmatmul.f32.gmra.mxu2 %v8590_v31  ;;  %3090 = vmatpush.msrb.mxu0 %v8550_v7  ;;  %v1083_v29 = vadd.f32 %v1082_v8, %v805_v53  ;;  %v11776_v31 = vand.u32 4294901760, %v8566_v28  ;;  %v543_v8 = vsel %vm526_vm4, %v473_v59, 0 }
 0x1ed   : > { %3395 = vmatpush.msrb.mxu1 %v3394_v41  ;;  %3611 = vmatpush.msrb.mxu2 %v8566_v28  ;;  %v11297_v41 = vand.u32 4294901760, %v8604_v26  ;;  %v3406_v4 = vand.u32 4294901760, %v3405_v13  ;;  %v8649_v13 = vand.u32 4294901760, %v8627_v6 }
 0x1ee   : > { %3813 = vmatpush.msrb.mxu3 %v8550_v7  ;;  %3092 = vmatpush.msrb.mxu0 %v8569_v39  ;;  %v1279_v55 = vadd.f32 %v1278_v46, %v1083_v29  ;;  %v3411_v53 = vsub.f32 %v8566_v28, %v11776_v31  ;;  %v3417_v46 = vsub.f32 %v8584_v54, %v11293_v60  ;;  %v8646_v29 = vand.u32 4294901760, %v1972_v42  ;;  %v475_v31 = vld [vmem:[%s11112_s1 + $0x68] sm:$0xff] }
 0x1ef   : > { %3401 = vmatpush.msrb.mxu1 %v3400_v57  ;;  %3614 = vmatpush.msrb.mxu2 %v8584_v54  ;;  %11778 = vst [vmem:[#allocation178_spill] sm:$0xff] %v8649_v13  ;;  %v8651_v57 = vand.u32 4294901760, %v543_v8 }
 0x1f0   : > { %3815 = vmatpush.msrb.mxu3 %v8569_v39  ;;  %3094 = vmatpush.msrb.mxu0 %v8575_v37  ;;  %v8639_v17 = vadd.f32 %v1490_v0, %v1279_v55  ;;  %11777 = vst [vmem:[#allocation177_spill] sm:$0xff] %v8646_v29  ;;  %v3412_v0 = vand.u32 4294901760, %v3411_v53  ;;  %v3423_v55 = vsub.f32 %v8604_v26, %v11297_v41  ;;  %v3418_v32 = vand.u32 4294901760, %v3417_v46 }
 0x1f1   : > { %3407 = vmatpush.msrb.mxu1 %v3406_v4  ;;  %3617 = vmatpush.msrb.mxu2 %v8604_v26  ;;  %v1496_v59 = vpop.f32.mrf.mxu3  ;;  %11779 = vst [vmem:[#allocation179_spill] sm:$0xff] %v8651_v57  ;;  %v8671_v39 = vsub.f32 %v543_v8, %v8651_v57 }
 0x1f2   : > { %3817 = vmatpush.msrb.mxu3 %v8575_v37  ;;  %1648 = vmatmul.f32.gmra.mxu0 %v7709_v35  ;;  %v821_v4 = vpop.f32.mrf.mxu0  ;;  %v11780_v37 = vand.u32 4294901760, %v8618_v43  ;;  %v3424_v7 = vand.u32 4294901760, %v3423_v55 }
 0x1f3   : > { %1805 = vmatmul.f32.gmra.mxu1 %v7675_v1  ;;  %2251 = vmatmul.f32.gmra.mxu3 %v8533_v9  ;;  %v1086_v42 = vpop.f32.mrf.mxu1  ;;  %v1283_v60 = vpop.f32.mrf.mxu2  ;;  %v1980_v1 = vsub.f32 %v8627_v6, %v8649_v13  ;;  %11781 = vst [vmem:[#allocation180_spill] sm:$0xff] %v8671_v39 }
 0x1f4   : > { %3413 = vmatpush.msrb.mxu1 %v3412_v0  ;;  %3620 = vmatpush.msrb.mxu2 %v8618_v43  ;;  %v1087_v53 = vadd.f32 %v1086_v42, %v813_v3  ;;  %v3429_v41 = vsub.f32 %v8618_v43, %v11780_v37  ;;  %v546_v0 = vsel %vm526_vm4, %v475_v31, 0 }
 0x1f5   : > { %1974 = vmatmul.f32.gmra.mxu2 %v8646_v29  ;;  %v8676_v42 = vand.u32 4294901760, %v1980_v1  ;;  %v8679_v29 = vand.u32 4294901760, %v8671_v39  ;;  %v8681_v16 = vand.u32 4294901760, %v546_v0  ;;  %v477_v1 = vld [vmem:[%s11112_s1 + $0x78] sm:$0xff] }
 0x1f6   : > { %3419 = vmatpush.msrb.mxu1 %v3418_v32  ;;  %v1284_v9 = vadd.f32 %v1283_v60, %v1087_v53  ;;  %v3430_v46 = vand.u32 4294901760, %v3429_v41 }
 0x1f7   : > { %11782 = vst [vmem:[#allocation181_spill] sm:$0xff] %v8676_v42  ;;  %v1988_v41 = vsub.f32 %v8671_v39, %v8679_v29  ;;  %v8693_v8 = vsub.f32 %v546_v0, %v8681_v16 }
 0x1f8   : > { %3425 = vmatpush.msrb.mxu1 %v3424_v7  ;;  %v8674_v3 = vadd.f32 %v1496_v59, %v1284_v9  ;;  %11783 = vst [vmem:[#allocation182_spill] sm:$0xff] %v8679_v29  ;;  %v549_v59 = vsel %vm526_vm4, %v477_v1, 0 }
 0x1f9   : > { %v1502_v37 = vpop.f32.mrf.mxu3  ;;  %11784 = vst [vmem:[#allocation183_spill] sm:$0xff] %v8681_v16  ;;  %v8698_v53 = vand.u32 4294901760, %v1988_v41 }
 0x1fa   : > { %3431 = vmatpush.msrb.mxu1 %v3430_v46  ;;  %1652 = vmatmul.f32.gmra.mxu0 %v7736_v50  ;;  %v829_v32 = vpop.f32.mrf.mxu0  ;;  %11785 = vst [vmem:[#allocation184_spill] sm:$0xff] %v8693_v8 }
 0x1fb   : > { %1809 = vmatmul.f32.gmra.mxu1 %v7709_v35  ;;  %2255 = vmatmul.f32.gmra.mxu3 %v8600_v27  ;;  %v1090_v7 = vpop.f32.mrf.mxu1  ;;  %v1288_v60 = vpop.f32.mrf.mxu2  ;;  %11786 = vst [vmem:[#allocation185_spill] sm:$0xff] %v8698_v53  ;;  %v8701_v35 = vand.u32 4294901760, %v8693_v8 }
 0x1fc   : > { %v1091_v9 = vadd.f32 %v1090_v7, %v821_v4  ;;  %v8703_v4 = vand.u32 4294901760, %v549_v59 }
 0x1fd   : > { %1982 = vmatmul.f32.gmra.mxu2 %v8676_v42  ;;  %11787 = vst [vmem:[#allocation186_spill] sm:$0xff] %v8701_v35 }
 0x1fe   : > { %v1289_v31 = vadd.f32 %v1288_v60, %v1091_v9  ;;  %11788 = vst [vmem:[#allocation187_spill] sm:$0xff] %v8703_v4  ;;  %v1996_v9 = vsub.f32 %v8693_v8, %v8701_v35  ;;  %v8715_v41 = vsub.f32 %v549_v59, %v8703_v4 }
 0x200   : > { %v8696_v55 = vadd.f32 %v1502_v37, %v1289_v31  ;;  %v479_v37 = vld [vmem:[%s11112_s1 + $0x88] sm:$0xff]  ;;  %11789 = vst [vmem:[#allocation188_spill] sm:$0xff] %v8715_v41  ;;  %v8720_v29 = vand.u32 4294901760, %v1996_v9  ;;  %v8723_v13 = vand.u32 4294901760, %v8715_v41 }
 0x201   : > { %v1508_v46 = vpop.f32.mrf.mxu3  ;;  %v552_v42 = vsel %vm526_vm4, %v479_v37, 0 }
 0x202   : > { %1656 = vmatmul.f32.gmra.mxu0 %v7767_v18  ;;  %v837_v7 = vpop.f32.mrf.mxu0  ;;  %11790 = vst [vmem:[#allocation189_spill] sm:$0xff] %v8720_v29 }
 0x203   : > { %1813 = vmatmul.f32.gmra.mxu1 %v7736_v50  ;;  %2259 = vmatmul.f32.gmra.mxu3 %v8651_v57  ;;  %v1094_v0 = vpop.f32.mrf.mxu1  ;;  %v1293_v60 = vpop.f32.mrf.mxu2  ;;  %11791 = vst [vmem:[#allocation190_spill] sm:$0xff] %v8723_v13 }
 0x204   : > { %v1095_v1 = vadd.f32 %v1094_v0, %v829_v32  ;;  %v8725_v32 = vand.u32 4294901760, %v552_v42 }
 0x205   : > { %1990 = vmatmul.f32.gmra.mxu2 %v8698_v53 }
 0x206   : > { %v1294_v31 = vadd.f32 %v1293_v60, %v1095_v1  ;;  %11792 = vst [vmem:[#allocation191_spill] sm:$0xff] %v8725_v32  ;;  %v2004_v1 = vsub.f32 %v8715_v41, %v8723_v13  ;;  %v8737_v9 = vsub.f32 %v552_v42, %v8725_v32 }
 0x208   : > { %v8718_v50 = vadd.f32 %v1508_v46, %v1294_v31  ;;  %v481_v46 = vld [vmem:[%s11112_s1 + $0x98] sm:$0xff]  ;;  %11793 = vst [vmem:[#allocation192_spill] sm:$0xff] %v8737_v9  ;;  %v8742_v35 = vand.u32 4294901760, %v2004_v1  ;;  %v8745_v8 = vand.u32 4294901760, %v8737_v9 }
 0x209   : > { %v1514_v57 = vpop.f32.mrf.mxu3  ;;  %v555_v53 = vsel %vm526_vm4, %v481_v46, 0 }
 0x20a   : > { %1660 = vmatmul.f32.gmra.mxu0 %v7796_v24  ;;  %v845_v0 = vpop.f32.mrf.mxu0  ;;  %11794 = vst [vmem:[#allocation193_spill] sm:$0xff] %v8742_v35 }
 0x20b   : > { %1817 = vmatmul.f32.gmra.mxu1 %v7767_v18  ;;  %2263 = vmatmul.f32.gmra.mxu3 %v8681_v16  ;;  %v1098_v59 = vpop.f32.mrf.mxu1  ;;  %v1298_v60 = vpop.f32.mrf.mxu2  ;;  %11795 = vst [vmem:[#allocation194_spill] sm:$0xff] %v8745_v8 }
 0x20c   : > { %v1099_v37 = vadd.f32 %v1098_v59, %v837_v7  ;;  %v8747_v7 = vand.u32 4294901760, %v555_v53 }
 0x20d   : > { %1998 = vmatmul.f32.gmra.mxu2 %v8720_v29 }
 0x20e   : > { %v1299_v31 = vadd.f32 %v1298_v60, %v1099_v37  ;;  %11796 = vst [vmem:[#allocation195_spill] sm:$0xff] %v8747_v7  ;;  %v2012_v37 = vsub.f32 %v8737_v9, %v8745_v8  ;;  %v8759_v1 = vsub.f32 %v555_v53, %v8747_v7 }
 0x210   : > { %v8740_v18 = vadd.f32 %v1514_v57, %v1299_v31  ;;  %v483_v57 = vld [vmem:[%s11112_s1 + $0xa8] sm:$0xff]  ;;  %11797 = vst [vmem:[#allocation196_spill] sm:$0xff] %v8759_v1  ;;  %v8764_v13 = vand.u32 4294901760, %v2012_v37  ;;  %v8767_v41 = vand.u32 4294901760, %v8759_v1 }
 0x211   : > { %v1520_v16 = vpop.f32.mrf.mxu3  ;;  %v558_v29 = vsel %vm526_vm4, %v483_v57, 0 }
 0x212   : > { %1664 = vmatmul.f32.gmra.mxu0 %v7824_v21  ;;  %v853_v59 = vpop.f32.mrf.mxu0  ;;  %11798 = vst [vmem:[#allocation197_spill] sm:$0xff] %v8764_v13 }
 0x213   : > { %1821 = vmatmul.f32.gmra.mxu1 %v7796_v24  ;;  %2267 = vmatmul.f32.gmra.mxu3 %v8703_v4  ;;  %v1102_v42 = vpop.f32.mrf.mxu1  ;;  %v1303_v60 = vpop.f32.mrf.mxu2  ;;  %11799 = vst [vmem:[#allocation198_spill] sm:$0xff] %v8767_v41 }
 0x214   : > { %v1103_v46 = vadd.f32 %v1102_v42, %v845_v0  ;;  %v8769_v0 = vand.u32 4294901760, %v558_v29 }
 0x215   : > { %2006 = vmatmul.f32.gmra.mxu2 %v8742_v35 }
 0x216   : > { %v1304_v31 = vadd.f32 %v1303_v60, %v1103_v46  ;;  %11800 = vst [vmem:[#allocation199_spill] sm:$0xff] %v8769_v0  ;;  %v2020_v46 = vsub.f32 %v8759_v1, %v8767_v41  ;;  %v8781_v37 = vsub.f32 %v558_v29, %v8769_v0 }
 0x218   : > { %v8762_v24 = vadd.f32 %v1520_v16, %v1304_v31  ;;  %v485_v16 = vld [vmem:[%s11112_s1 + $0xb8] sm:$0xff]  ;;  %11801 = vst [vmem:[#allocation200_spill] sm:$0xff] %v8781_v37  ;;  %v8786_v8 = vand.u32 4294901760, %v2020_v46  ;;  %v8789_v9 = vand.u32 4294901760, %v8781_v37 }
 0x219   : > { %v1526_v4 = vpop.f32.mrf.mxu3  ;;  %v561_v35 = vsel %vm526_vm4, %v485_v16, 0 }
 0x21a   : > { %1668 = vmatmul.f32.gmra.mxu0 %v7846_v36  ;;  %v861_v42 = vpop.f32.mrf.mxu0  ;;  %11802 = vst [vmem:[#allocation201_spill] sm:$0xff] %v8786_v8 }
 0x21b   : > { %1825 = vmatmul.f32.gmra.mxu1 %v7824_v21  ;;  %2271 = vmatmul.f32.gmra.mxu3 %v8725_v32  ;;  %v1106_v53 = vpop.f32.mrf.mxu1  ;;  %v1308_v60 = vpop.f32.mrf.mxu2  ;;  %11803 = vst [vmem:[#allocation202_spill] sm:$0xff] %v8789_v9 }
 0x21c   : > { %v1107_v57 = vadd.f32 %v1106_v53, %v853_v59  ;;  %v8791_v59 = vand.u32 4294901760, %v561_v35 }
 0x21d   : > { %2014 = vmatmul.f32.gmra.mxu2 %v8764_v13 }
 0x21e   : > { %v1309_v31 = vadd.f32 %v1308_v60, %v1107_v57  ;;  %11804 = vst [vmem:[#allocation203_spill] sm:$0xff] %v8791_v59  ;;  %v2028_v57 = vsub.f32 %v8781_v37, %v8789_v9  ;;  %v8803_v46 = vsub.f32 %v561_v35, %v8791_v59 }
 0x220   : > { %v8784_v21 = vadd.f32 %v1526_v4, %v1309_v31  ;;  %v487_v4 = vld [vmem:[%s11112_s1 + $0xc8] sm:$0xff]  ;;  %11805 = vst [vmem:[#allocation204_spill] sm:$0xff] %v8803_v46  ;;  %v8808_v41 = vand.u32 4294901760, %v2028_v57  ;;  %v8811_v1 = vand.u32 4294901760, %v8803_v46 }
 0x221   : > { %v1532_v32 = vpop.f32.mrf.mxu3  ;;  %v564_v13 = vsel %vm526_vm4, %v487_v4, 0 }
 0x222   : > { %1672 = vmatmul.f32.gmra.mxu0 %v7865_v61  ;;  %v869_v53 = vpop.f32.mrf.mxu0  ;;  %11806 = vst [vmem:[#allocation205_spill] sm:$0xff] %v8808_v41 }
 0x223   : > { %1829 = vmatmul.f32.gmra.mxu1 %v7846_v36  ;;  %2275 = vmatmul.f32.gmra.mxu3 %v8747_v7  ;;  %v1110_v29 = vpop.f32.mrf.mxu1  ;;  %v1313_v60 = vpop.f32.mrf.mxu2  ;;  %11807 = vst [vmem:[#allocation206_spill] sm:$0xff] %v8811_v1 }
 0x224   : > { %v1111_v16 = vadd.f32 %v1110_v29, %v861_v42  ;;  %v8813_v42 = vand.u32 4294901760, %v564_v13 }
 0x225   : > { %2022 = vmatmul.f32.gmra.mxu2 %v8786_v8 }
 0x226   : > { %v1314_v31 = vadd.f32 %v1313_v60, %v1111_v16  ;;  %11808 = vst [vmem:[#allocation207_spill] sm:$0xff] %v8813_v42  ;;  %v2036_v16 = vsub.f32 %v8803_v46, %v8811_v1  ;;  %v8825_v57 = vsub.f32 %v564_v13, %v8813_v42 }
 0x228   : > { %v8806_v36 = vadd.f32 %v1532_v32, %v1314_v31  ;;  %v489_v32 = vld [vmem:[%s11112_s1 + $0xd8] sm:$0xff]  ;;  %11809 = vst [vmem:[#allocation208_spill] sm:$0xff] %v8825_v57  ;;  %v8830_v9 = vand.u32 4294901760, %v2036_v16  ;;  %v8833_v37 = vand.u32 4294901760, %v8825_v57 }
 0x229   : > { %v1538_v7 = vpop.f32.mrf.mxu3  ;;  %v567_v8 = vsel %vm526_vm4, %v489_v32, 0 }
 0x22a   : > { %1676 = vmatmul.f32.gmra.mxu0 %v7884_v58  ;;  %v877_v29 = vpop.f32.mrf.mxu0  ;;  %11810 = vst [vmem:[#allocation209_spill] sm:$0xff] %v8830_v9 }
 0x22b   : > { %1833 = vmatmul.f32.gmra.mxu1 %v7865_v61  ;;  %2279 = vmatmul.f32.gmra.mxu3 %v8769_v0  ;;  %v1114_v35 = vpop.f32.mrf.mxu1  ;;  %v1318_v60 = vpop.f32.mrf.mxu2  ;;  %11811 = vst [vmem:[#allocation210_spill] sm:$0xff] %v8833_v37 }
 0x22c   : > { %v1115_v4 = vadd.f32 %v1114_v35, %v869_v53  ;;  %v8835_v53 = vand.u32 4294901760, %v567_v8 }
 0x22d   : > { %2030 = vmatmul.f32.gmra.mxu2 %v8808_v41 }
 0x22e   : > { %v1319_v31 = vadd.f32 %v1318_v60, %v1115_v4  ;;  %11812 = vst [vmem:[#allocation211_spill] sm:$0xff] %v8835_v53  ;;  %v2044_v4 = vsub.f32 %v8825_v57, %v8833_v37  ;;  %v8847_v16 = vsub.f32 %v567_v8, %v8835_v53 }
 0x230   : > { %v8828_v61 = vadd.f32 %v1538_v7, %v1319_v31  ;;  %v491_v7 = vld [vmem:[%s11112_s1 + $0xe8] sm:$0xff]  ;;  %11813 = vst [vmem:[#allocation212_spill] sm:$0xff] %v8847_v16  ;;  %v8852_v1 = vand.u32 4294901760, %v2044_v4  ;;  %v8855_v46 = vand.u32 4294901760, %v8847_v16 }
 0x231   : > { %v1544_v0 = vpop.f32.mrf.mxu3  ;;  %v570_v41 = vsel %vm526_vm4, %v491_v7, 0 }
 0x232   : > { %1680 = vmatmul.f32.gmra.mxu0 %v7903_v34  ;;  %v885_v35 = vpop.f32.mrf.mxu0  ;;  %11814 = vst [vmem:[#allocation213_spill] sm:$0xff] %v8852_v1 }
 0x233   : > { %1837 = vmatmul.f32.gmra.mxu1 %v7884_v58  ;;  %2283 = vmatmul.f32.gmra.mxu3 %v8791_v59  ;;  %v1118_v13 = vpop.f32.mrf.mxu1  ;;  %v1323_v60 = vpop.f32.mrf.mxu2  ;;  %11815 = vst [vmem:[#allocation214_spill] sm:$0xff] %v8855_v46 }
 0x234   : > { %v1119_v32 = vadd.f32 %v1118_v13, %v877_v29  ;;  %v8857_v29 = vand.u32 4294901760, %v570_v41 }
 0x235   : > { %2038 = vmatmul.f32.gmra.mxu2 %v8830_v9 }
 0x236   : > { %v1324_v31 = vadd.f32 %v1323_v60, %v1119_v32  ;;  %11816 = vst [vmem:[#allocation215_spill] sm:$0xff] %v8857_v29  ;;  %v2052_v32 = vsub.f32 %v8847_v16, %v8855_v46  ;;  %v8869_v4 = vsub.f32 %v570_v41, %v8857_v29 }
 0x238   : > { %v8850_v58 = vadd.f32 %v1544_v0, %v1324_v31  ;;  %v493_v0 = vld [vmem:[%s11112_s1 + $0xf8] sm:$0xff]  ;;  %11817 = vst [vmem:[#allocation216_spill] sm:$0xff] %v8869_v4  ;;  %v8874_v37 = vand.u32 4294901760, %v2052_v32  ;;  %v8877_v57 = vand.u32 4294901760, %v8869_v4 }
 0x239   : > { %v1550_v59 = vpop.f32.mrf.mxu3  ;;  %v573_v9 = vsel %vm526_vm4, %v493_v0, 0 }
 0x23a   : > { %1684 = vmatmul.f32.gmra.mxu0 %v7922_v62  ;;  %v893_v13 = vpop.f32.mrf.mxu0  ;;  %11818 = vst [vmem:[#allocation217_spill] sm:$0xff] %v8874_v37 }
 0x23b   : > { %1841 = vmatmul.f32.gmra.mxu1 %v7903_v34  ;;  %2287 = vmatmul.f32.gmra.mxu3 %v8813_v42  ;;  %v1122_v8 = vpop.f32.mrf.mxu1  ;;  %v1328_v60 = vpop.f32.mrf.mxu2  ;;  %11819 = vst [vmem:[#allocation218_spill] sm:$0xff] %v8877_v57 }
 0x23c   : > { %v1123_v7 = vadd.f32 %v1122_v8, %v885_v35  ;;  %v8879_v35 = vand.u32 4294901760, %v573_v9 }
 0x23d   : > { %2046 = vmatmul.f32.gmra.mxu2 %v8852_v1 }
 0x23e   : > { %v1329_v31 = vadd.f32 %v1328_v60, %v1123_v7  ;;  %11820 = vst [vmem:[#allocation219_spill] sm:$0xff] %v8879_v35  ;;  %v2060_v7 = vsub.f32 %v8869_v4, %v8877_v57  ;;  %v8891_v32 = vsub.f32 %v573_v9, %v8879_v35 }
 0x240   : > { %v8872_v34 = vadd.f32 %v1550_v59, %v1329_v31  ;;  %v495_v59 = vld [vmem:[%s11112_s1 + $0x108] sm:$0xff]  ;;  %11821 = vst [vmem:[#allocation220_spill] sm:$0xff] %v8891_v32  ;;  %v8896_v46 = vand.u32 4294901760, %v2060_v7  ;;  %v8899_v16 = vand.u32 4294901760, %v8891_v32 }
 0x241   : > { %v1556_v42 = vpop.f32.mrf.mxu3  ;;  %v576_v1 = vsel %vm526_vm4, %v495_v59, 0 }
 0x242   : > { %1688 = vmatmul.f32.gmra.mxu0 %v7941_v33  ;;  %v901_v8 = vpop.f32.mrf.mxu0  ;;  %11822 = vst [vmem:[#allocation221_spill] sm:$0xff] %v8896_v46 }
 0x243   : > { %1845 = vmatmul.f32.gmra.mxu1 %v7922_v62  ;;  %2291 = vmatmul.f32.gmra.mxu3 %v8835_v53  ;;  %v1126_v41 = vpop.f32.mrf.mxu1  ;;  %v1333_v60 = vpop.f32.mrf.mxu2  ;;  %11823 = vst [vmem:[#allocation222_spill] sm:$0xff] %v8899_v16 }
 0x244   : > { %v1127_v0 = vadd.f32 %v1126_v41, %v893_v13  ;;  %v8901_v13 = vand.u32 4294901760, %v576_v1 }
 0x245   : > { %2054 = vmatmul.f32.gmra.mxu2 %v8874_v37 }
 0x246   : > { %v1334_v31 = vadd.f32 %v1333_v60, %v1127_v0  ;;  %11824 = vst [vmem:[#allocation223_spill] sm:$0xff] %v8901_v13  ;;  %v2068_v0 = vsub.f32 %v8891_v32, %v8899_v16  ;;  %v8913_v7 = vsub.f32 %v576_v1, %v8901_v13 }
 0x248   : > { %v8894_v62 = vadd.f32 %v1556_v42, %v1334_v31  ;;  %v497_v42 = vld [vmem:[%s11112_s1 + $0x118] sm:$0xff]  ;;  %11825 = vst [vmem:[#allocation224_spill] sm:$0xff] %v8913_v7  ;;  %v8918_v57 = vand.u32 4294901760, %v2068_v0  ;;  %v8921_v4 = vand.u32 4294901760, %v8913_v7 }
 0x249   : > { %v1562_v53 = vpop.f32.mrf.mxu3  ;;  %v579_v37 = vsel %vm526_vm4, %v497_v42, 0 }
 0x24a   : > { %1692 = vmatmul.f32.gmra.mxu0 %v7960_v40  ;;  %v909_v41 = vpop.f32.mrf.mxu0  ;;  %11826 = vst [vmem:[#allocation225_spill] sm:$0xff] %v8918_v57 }
 0x24b   : > { %1849 = vmatmul.f32.gmra.mxu1 %v7941_v33  ;;  %2295 = vmatmul.f32.gmra.mxu3 %v8857_v29  ;;  %v1130_v9 = vpop.f32.mrf.mxu1  ;;  %v1338_v60 = vpop.f32.mrf.mxu2  ;;  %11827 = vst [vmem:[#allocation226_spill] sm:$0xff] %v8921_v4 }
 0x24c   : > { %v1131_v59 = vadd.f32 %v1130_v9, %v901_v8  ;;  %v8923_v8 = vand.u32 4294901760, %v579_v37 }
 0x24d   : > { %2062 = vmatmul.f32.gmra.mxu2 %v8896_v46 }
 0x24e   : > { %v1339_v31 = vadd.f32 %v1338_v60, %v1131_v59  ;;  %11828 = vst [vmem:[#allocation227_spill] sm:$0xff] %v8923_v8  ;;  %v2076_v59 = vsub.f32 %v8913_v7, %v8921_v4  ;;  %v8935_v0 = vsub.f32 %v579_v37, %v8923_v8 }
 0x250   : > { %v8916_v33 = vadd.f32 %v1562_v53, %v1339_v31  ;;  %v499_v53 = vld [vmem:[%s11112_s1 + $0x128] sm:$0xff]  ;;  %11829 = vst [vmem:[#allocation228_spill] sm:$0xff] %v8935_v0  ;;  %v8940_v16 = vand.u32 4294901760, %v2076_v59  ;;  %v8943_v32 = vand.u32 4294901760, %v8935_v0 }
 0x251   : > { %v1568_v29 = vpop.f32.mrf.mxu3  ;;  %v582_v46 = vsel %vm526_vm4, %v499_v53, 0 }
 0x252   : > { %1696 = vmatmul.f32.gmra.mxu0 %v7979_v20  ;;  %v1637_v9 = vpop.f32.mrf.mxu0  ;;  %11830 = vst [vmem:[#allocation229_spill] sm:$0xff] %v8940_v16  ;;  %v2084_v59 = vsub.f32 %v8935_v0, %v8943_v32 }
 0x253   : > { %1853 = vmatmul.f32.gmra.mxu1 %v7960_v40  ;;  %2299 = vmatmul.f32.gmra.mxu3 %v8879_v35  ;;  %v1134_v1 = vpop.f32.mrf.mxu1  ;;  %v1343_v60 = vpop.f32.mrf.mxu2  ;;  %11831 = vst [vmem:[#allocation230_spill] sm:$0xff] %v8943_v32 }
 0x254   : > { %v1135_v42 = vadd.f32 %v1134_v1, %v909_v41  ;;  %v8945_v41 = vand.u32 4294901760, %v582_v46  ;;  %v1638_v1 = vadd.f32 %v1637_v9, %v8068_v45 }
 0x255   : > { %2070 = vmatmul.f32.gmra.mxu2 %v8918_v57 }
 0x256   : > { %v1344_v31 = vadd.f32 %v1343_v60, %v1135_v42  ;;  %11832 = vst [vmem:[#allocation231_spill] sm:$0xff] %v8945_v41 }
 0x258   : > { %v8938_v40 = vadd.f32 %v1568_v29, %v1344_v31  ;;  %v501_v29 = vld [vmem:[%s11112_s1 + $0x138] sm:$0xff]  ;;  %v8958_v31 = vsub.f32 %v582_v46, %v8945_v41  ;;  %v503_v46 = vld [vmem:[%s11112_s1 + $0x148] sm:$0xff] }
 0x259   : > { %v2240_v35 = vpop.f32.mrf.mxu3  ;;  %v585_v45 = vsel %vm526_vm4, %v501_v29, 0 }
 0x25a   : > { %1700 = vmatmul.f32.gmra.mxu0 %v7998_v30  ;;  %11833 = vst [vmem:[#allocation232_spill] sm:$0xff] %v8958_v31  ;;  %v8966_v4 = vand.u32 4294901760, %v8958_v31 }
 0x25b   : > { %1857 = vmatmul.f32.gmra.mxu1 %v7979_v20  ;;  %2303 = vmatmul.f32.gmra.mxu3 %v8901_v13  ;;  %v1641_v37 = vpop.f32.mrf.mxu0  ;;  %v1951_v60 = vpop.f32.mrf.mxu2  ;;  %v8963_v20 = vand.u32 4294901760, %v2084_v59  ;;  %v8968_v13 = vand.u32 4294901760, %v585_v45 }
 0x25c   : > { %v1798_v53 = vpop.f32.mrf.mxu1  ;;  %11836 = vst [vmem:[#allocation235_spill] sm:$0xff] %v8966_v4 }
 0x25d   : > { %2078 = vmatmul.f32.gmra.mxu2 %v8940_v16  ;;  %v1799_v42 = vadd.f32 %v1798_v53, %v1638_v1  ;;  %11835 = vst [vmem:[#allocation234_spill] sm:$0xff] %v8963_v20  ;;  %v8981_v59 = vsub.f32 %v585_v45, %v8968_v13  ;;  %v588_v16 = vsel %vm526_vm4, %v503_v46, 0  ;;  %v505_v46 = vld [vmem:[%s11112_s1 + $0x158] sm:$0xff] }
 0x25e   : > { %11837 = vst [vmem:[#allocation236_spill] sm:$0xff] %v8968_v13 }
 0x25f   : > { %v1952_v9 = vadd.f32 %v1951_v60, %v1799_v42  ;;  %v2092_v42 = vsub.f32 %v8958_v31, %v8966_v4  ;;  %v8987_v0 = vand.u32 4294901760, %v8981_v59 }
 0x261   : > { %v8961_v57 = vadd.f32 %v2240_v35, %v1952_v9  ;;  %v11838_v35 = vld [vmem:[#allocation86_spill] sm:$0xff]  ;;  %11841 = vst [vmem:[#allocation238_spill] sm:$0xff] %v8987_v0 }
 0x262   : > { %1704 = vmatmul.f32.gmra.mxu0 %v8017_v47  ;;  %v2244_v1 = vpop.f32.mrf.mxu3  ;;  %v1642_v60 = vadd.f32 %v1641_v37, %v11838_v35  ;;  %11839 = vst [vmem:[#allocation86_spill] sm:$0xff] %v8981_v59  ;;  %v8989_v37 = vand.u32 4294901760, %v588_v16  ;;  %v11843_v35 = vld [vmem:[#allocation76_spill] sm:$0xff] }
 0x263   : > { %11834 = vst [vmem:[#allocation233_spill] sm:$0xff] %v8961_v57  ;;  %1861 = vmatmul.f32.gmra.mxu1 %v7998_v30  ;;  %2307 = vmatmul.f32.gmra.mxu3 %v8923_v8  ;;  %v8984_v8 = vand.u32 4294901760, %v2092_v42  ;;  %v591_v42 = vsel %vm526_vm4, %v505_v46, 0 }
 0x264   : > { %11842 = vst [vmem:[#allocation239_spill] sm:$0xff] %v8989_v37 }
 0x265   : > { %2086 = vmatmul.f32.gmra.mxu2 %v8963_v20  ;;  %v1645_v29 = vpop.f32.mrf.mxu0  ;;  %v1959_v53 = vpop.f32.mrf.mxu2  ;;  %11840 = vst [vmem:[#allocation237_spill] sm:$0xff] %v8984_v8 }
 0x266   : > { %v1802_v9 = vpop.f32.mrf.mxu1 }
 0x267   : > { %v1803_v30 = vadd.f32 %v1802_v9, %v1642_v60  ;;  %v2100_v60 = vsub.f32 %v8981_v59, %v8987_v0  ;;  %v11846_v9 = vld [vmem:[#allocation91_spill] sm:$0xff] }
 0x268   : > { %v1646_v20 = vadd.f32 %v1645_v29, %v11846_v9  ;;  %v11853_v9 = vld [vmem:[#allocation96_spill] sm:$0xff] }
 0x269   : > { %v1960_v32 = vadd.f32 %v1959_v53, %v1803_v30  ;;  %v9003_v53 = vsub.f32 %v588_v16, %v8989_v37  ;;  %v507_v16 = vld [vmem:[%s11112_s1 + $0x168] sm:$0xff] }
 0x26a   : > { %1708 = vmatmul.f32.gmra.mxu0 %v11843_v35 }
 0x26b   : > { %1865 = vmatmul.f32.gmra.mxu1 %v8017_v47  ;;  %2311 = vmatmul.f32.gmra.mxu3 %v8945_v41  ;;  %v8994_v45 = vadd.f32 %v2244_v1, %v1960_v32  ;;  %11845 = vst [vmem:[#allocation241_spill] sm:$0xff] %v9003_v53  ;;  %v9007_v41 = vand.u32 4294901760, %v2100_v60  ;;  %v9010_v31 = vand.u32 4294901760, %v9003_v53 }
 0x26c   : > { %v2248_v30 = vpop.f32.mrf.mxu3 }
 0x26d   : > { %11844 = vst [vmem:[#allocation240_spill] sm:$0xff] %v8994_v45  ;;  %2094 = vmatmul.f32.gmra.mxu2 %v8984_v8  ;;  %v9012_v8 = vand.u32 4294901760, %v591_v42  ;;  %v11850_v45 = vld [vmem:[#allocation80_spill] sm:$0xff] }
 0x26e   : > { %11847 = vst [vmem:[#allocation91_spill] sm:$0xff] %v9007_v41 }
 0x26f   : > { %v1649_v47 = vpop.f32.mrf.mxu0  ;;  %v1967_v32 = vpop.f32.mrf.mxu2  ;;  %11848 = vst [vmem:[#allocation242_spill] sm:$0xff] %v9010_v31  ;;  %v9026_v46 = vsub.f32 %v591_v42, %v9012_v8 }
 0x270   : > { %v1806_v1 = vpop.f32.mrf.mxu1  ;;  %11849 = vst [vmem:[#allocation243_spill] sm:$0xff] %v9012_v8 }
 0x271   : > { %v1807_v4 = vadd.f32 %v1806_v1, %v1646_v20  ;;  %v2108_v20 = vsub.f32 %v9003_v53, %v9010_v31  ;;  %11852 = vst [vmem:[#allocation245_spill] sm:$0xff] %v9026_v46 }
 0x272   : > { %1712 = vmatmul.f32.gmra.mxu0 %v11850_v45 }
 0x273   : > { %v1968_v0 = vadd.f32 %v1967_v32, %v1807_v4  ;;  %1869 = vmatmul.f32.gmra.mxu1 %v11843_v35  ;;  %2315 = vmatmul.f32.gmra.mxu3 %v8968_v13  ;;  %v594_v4 = vsel %vm526_vm4, %v507_v16, 0  ;;  %v1650_v32 = vadd.f32 %v1649_v47, %v11853_v9  ;;  %v9030_v57 = vand.u32 4294901760, %v2108_v20  ;;  %v509_v47 = vld [vmem:[%s11112_s1 + $0x178] sm:$0xff] }
 0x275   : > { %v9020_v29 = vadd.f32 %v2248_v30, %v1968_v0  ;;  %2102 = vmatmul.f32.gmra.mxu2 %v9007_v41  ;;  %11854 = vst [vmem:[#allocation96_spill] sm:$0xff] %v9030_v57  ;;  %v9033_v0 = vand.u32 4294901760, %v9026_v46  ;;  %v9035_v30 = vand.u32 4294901760, %v594_v4  ;;  %v11857_v41 = vld [vmem:[#allocation84_spill] sm:$0xff] }
 0x276   : > { %v2252_v60 = vpop.f32.mrf.mxu3 }
 0x277   : > { %11851 = vst [vmem:[#allocation244_spill] sm:$0xff] %v9020_v29  ;;  %v1653_v1 = vpop.f32.mrf.mxu0  ;;  %v9049_v20 = vsub.f32 %v594_v4, %v9035_v30 }
 0x278   : > { %v1810_v35 = vpop.f32.mrf.mxu1  ;;  %v1975_v13 = vpop.f32.mrf.mxu2  ;;  %11855 = vst [vmem:[#allocation246_spill] sm:$0xff] %v9033_v0 }
 0x279   : > { %v1811_v59 = vadd.f32 %v1810_v35, %v1650_v32  ;;  %11856 = vst [vmem:[#allocation247_spill] sm:$0xff] %v9035_v30  ;;  %v2116_v35 = vsub.f32 %v9026_v46, %v9033_v0 }
 0x27a   : > { %1716 = vmatmul.f32.gmra.mxu0 %v11857_v41  ;;  %11859 = vst [vmem:[#allocation249_spill] sm:$0xff] %v9049_v20 }
 0x27b   : > { %v1976_v42 = vadd.f32 %v1975_v13, %v1811_v59  ;;  %1873 = vmatmul.f32.gmra.mxu1 %v11850_v45  ;;  %2319 = vmatmul.f32.gmra.mxu3 %v8989_v37  ;;  %v597_v13 = vsel %vm526_vm4, %v509_v47, 0  ;;  %v11860_v59 = vld [vmem:[#allocation102_spill] sm:$0xff]  ;;  %v9053_v29 = vand.u32 4294901760, %v2116_v35 }
 0x27c   : > { %v1654_v32 = vadd.f32 %v1653_v1, %v11860_v59  ;;  %v511_v1 = vld [vmem:[%s11112_s1 + $0x188] sm:$0xff] }
 0x27d   : > { %v9043_v16 = vadd.f32 %v2252_v60, %v1976_v42  ;;  %2110 = vmatmul.f32.gmra.mxu2 %v9030_v57  ;;  %11861 = vst [vmem:[#allocation102_spill] sm:$0xff] %v9053_v29  ;;  %v9056_v60 = vand.u32 4294901760, %v9049_v20  ;;  %v9058_v42 = vand.u32 4294901760, %v597_v13  ;;  %v11864_v57 = vld [vmem:[#allocation89_spill] sm:$0xff] }
 0x27e   : > { %v2256_v9 = vpop.f32.mrf.mxu3 }
 0x27f   : > { %11858 = vst [vmem:[#allocation248_spill] sm:$0xff] %v9043_v16  ;;  %v1657_v45 = vpop.f32.mrf.mxu0  ;;  %v9072_v35 = vsub.f32 %v597_v13, %v9058_v42 }
 0x280   : > { %v1814_v31 = vpop.f32.mrf.mxu1  ;;  %v1983_v37 = vpop.f32.mrf.mxu2  ;;  %11862 = vst [vmem:[#allocation250_spill] sm:$0xff] %v9056_v60 }
 0x281   : > { %v1815_v53 = vadd.f32 %v1814_v31, %v1654_v32  ;;  %11863 = vst [vmem:[#allocation251_spill] sm:$0xff] %v9058_v42  ;;  %v2124_v31 = vsub.f32 %v9049_v20, %v9056_v60 }
 0x282   : > { %1720 = vmatmul.f32.gmra.mxu0 %v11864_v57  ;;  %11866 = vst [vmem:[#allocation253_spill] sm:$0xff] %v9072_v35 }
 0x283   : > { %v1984_v4 = vadd.f32 %v1983_v37, %v1815_v53  ;;  %1877 = vmatmul.f32.gmra.mxu1 %v11857_v41  ;;  %2323 = vmatmul.f32.gmra.mxu3 %v9012_v8  ;;  %v600_v37 = vsel %vm526_vm4, %v511_v1, 0  ;;  %v11867_v53 = vld [vmem:[#allocation108_spill] sm:$0xff]  ;;  %v9076_v16 = vand.u32 4294901760, %v2124_v31 }
 0x284   : > { %v1658_v32 = vadd.f32 %v1657_v45, %v11867_v53  ;;  %v513_v45 = vld [vmem:[%s11112_s1 + $0x198] sm:$0xff] }
 0x285   : > { %v9066_v47 = vadd.f32 %v2256_v9, %v1984_v4  ;;  %2118 = vmatmul.f32.gmra.mxu2 %v9053_v29  ;;  %11868 = vst [vmem:[#allocation108_spill] sm:$0xff] %v9076_v16  ;;  %v9079_v9 = vand.u32 4294901760, %v9072_v35  ;;  %v9081_v4 = vand.u32 4294901760, %v600_v37  ;;  %v11871_v29 = vld [vmem:[#allocation94_spill] sm:$0xff] }
 0x286   : > { %v2260_v59 = vpop.f32.mrf.mxu3 }
 0x287   : > { %11865 = vst [vmem:[#allocation252_spill] sm:$0xff] %v9066_v47  ;;  %v1661_v41 = vpop.f32.mrf.mxu0  ;;  %v9095_v31 = vsub.f32 %v600_v37, %v9081_v4 }
 0x288   : > { %v1818_v0 = vpop.f32.mrf.mxu1  ;;  %v1991_v8 = vpop.f32.mrf.mxu2  ;;  %11869 = vst [vmem:[#allocation254_spill] sm:$0xff] %v9079_v9 }
 0x289   : > { %v1819_v46 = vadd.f32 %v1818_v0, %v1658_v32  ;;  %11870 = vst [vmem:[#allocation255_spill] sm:$0xff] %v9081_v4  ;;  %v2132_v0 = vsub.f32 %v9072_v35, %v9079_v9 }
 0x28a   : > { %1724 = vmatmul.f32.gmra.mxu0 %v11871_v29  ;;  %11873 = vst [vmem:[#allocation257_spill] sm:$0xff] %v9095_v31 }
 0x28b   : > { %v1992_v13 = vadd.f32 %v1991_v8, %v1819_v46  ;;  %1881 = vmatmul.f32.gmra.mxu1 %v11864_v57  ;;  %2327 = vmatmul.f32.gmra.mxu3 %v9035_v30  ;;  %v603_v8 = vsel %vm526_vm4, %v513_v45, 0  ;;  %v11874_v46 = vld [vmem:[#allocation115_spill] sm:$0xff]  ;;  %v9099_v47 = vand.u32 4294901760, %v2132_v0 }
 0x28c   : > { %v1662_v32 = vadd.f32 %v1661_v41, %v11874_v46  ;;  %v515_v41 = vld [vmem:[%s11112_s1 + $0x1a8] sm:$0xff] }
 0x28d   : > { %v9089_v1 = vadd.f32 %v2260_v59, %v1992_v13  ;;  %2126 = vmatmul.f32.gmra.mxu2 %v9076_v16  ;;  %11875 = vst [vmem:[#allocation115_spill] sm:$0xff] %v9099_v47  ;;  %v9102_v59 = vand.u32 4294901760, %v9095_v31  ;;  %v9104_v13 = vand.u32 4294901760, %v603_v8  ;;  %v11878_v16 = vld [vmem:[#allocation100_spill] sm:$0xff] }
 0x28e   : > { %v2264_v53 = vpop.f32.mrf.mxu3 }
 0x28f   : > { %11872 = vst [vmem:[#allocation256_spill] sm:$0xff] %v9089_v1  ;;  %v1665_v57 = vpop.f32.mrf.mxu0  ;;  %v9118_v0 = vsub.f32 %v603_v8, %v9104_v13 }
 0x290   : > { %v1822_v60 = vpop.f32.mrf.mxu1  ;;  %v1999_v30 = vpop.f32.mrf.mxu2  ;;  %11876 = vst [vmem:[#allocation258_spill] sm:$0xff] %v9102_v59 }
 0x291   : > { %v1823_v20 = vadd.f32 %v1822_v60, %v1662_v32  ;;  %11877 = vst [vmem:[#allocation259_spill] sm:$0xff] %v9104_v13  ;;  %v2140_v60 = vsub.f32 %v9095_v31, %v9102_v59  ;;  %v11910_v31 = vld [vmem:[#allocation130_spill] sm:$0xff] }
 0x292   : > { %1728 = vmatmul.f32.gmra.mxu0 %v11878_v16  ;;  %11880 = vst [vmem:[#allocation261_spill] sm:$0xff] %v9118_v0 }
 0x293   : > { %v2000_v37 = vadd.f32 %v1999_v30, %v1823_v20  ;;  %1885 = vmatmul.f32.gmra.mxu1 %v11871_v29  ;;  %2331 = vmatmul.f32.gmra.mxu3 %v9058_v42  ;;  %v606_v30 = vsel %vm526_vm4, %v515_v41, 0  ;;  %v1666_v20 = vadd.f32 %v1665_v57, %v8262_v2  ;;  %v9122_v35 = vand.u32 4294901760, %v2140_v60  ;;  %v517_v2 = vld [vmem:[%s11112_s1 + $0x1b8] sm:$0xff] }
 0x295   : > { %v9112_v45 = vadd.f32 %v2264_v53, %v2000_v37  ;;  %2134 = vmatmul.f32.gmra.mxu2 %v9099_v47  ;;  %11881 = vst [vmem:[#allocation262_spill] sm:$0xff] %v9122_v35  ;;  %v9125_v53 = vand.u32 4294901760, %v9118_v0  ;;  %v9127_v37 = vand.u32 4294901760, %v606_v30 }
 0x296   : > { %v2268_v46 = vpop.f32.mrf.mxu3 }
 0x297   : > { %11879 = vst [vmem:[#allocation260_spill] sm:$0xff] %v9112_v45  ;;  %v1669_v32 = vpop.f32.mrf.mxu0  ;;  %v9141_v41 = vsub.f32 %v606_v30, %v9127_v37  ;;  %v519_v30 = vld [vmem:[%s11112_s1 + $0x1c8] sm:$0xff] }
 0x298   : > { %v1826_v29 = vpop.f32.mrf.mxu1  ;;  %v2007_v9 = vpop.f32.mrf.mxu2  ;;  %11882 = vst [vmem:[#allocation263_spill] sm:$0xff] %v9125_v53 }
 0x299   : > { %v1827_v42 = vadd.f32 %v1826_v29, %v1666_v20  ;;  %11883 = vst [vmem:[#allocation264_spill] sm:$0xff] %v9127_v37  ;;  %v2148_v29 = vsub.f32 %v9118_v0, %v9125_v53 }
 0x29a   : > { %1732 = vmatmul.f32.gmra.mxu0 %v8172_v49  ;;  %11885 = vst [vmem:[#allocation266_spill] sm:$0xff] %v9141_v41 }
 0x29b   : > { %v2008_v8 = vadd.f32 %v2007_v9, %v1827_v42  ;;  %1889 = vmatmul.f32.gmra.mxu1 %v11878_v16  ;;  %2335 = vmatmul.f32.gmra.mxu3 %v9081_v4  ;;  %v609_v42 = vsel %vm526_vm4, %v517_v2, 0  ;;  %v1670_v9 = vadd.f32 %v1669_v32, %v8283_v10  ;;  %v9145_v4 = vand.u32 4294901760, %v2148_v29 }
 0x29c   : > { %v612_v29 = vsel %vm526_vm4, %v519_v30, 0 }
 0x29d   : > { %v9135_v57 = vadd.f32 %v2268_v46, %v2008_v8  ;;  %2142 = vmatmul.f32.gmra.mxu2 %v9122_v35  ;;  %11886 = vst [vmem:[#allocation267_spill] sm:$0xff] %v9145_v4  ;;  %v9148_v46 = vand.u32 4294901760, %v9141_v41  ;;  %v9150_v8 = vand.u32 4294901760, %v609_v42  ;;  %v9168_v53 = vand.u32 4294901760, %v612_v29 }
 0x29e   : > { %v2272_v60 = vpop.f32.mrf.mxu3 }
 0x29f   : > { %11884 = vst [vmem:[#allocation265_spill] sm:$0xff] %v9135_v57  ;;  %v1673_v20 = vpop.f32.mrf.mxu0  ;;  %v9164_v32 = vsub.f32 %v609_v42, %v9150_v8  ;;  %v521_v42 = vld [vmem:[%s11112_s1 + $0x1d8] sm:$0xff] }
 0x2a0   : > { %v1830_v47 = vpop.f32.mrf.mxu1  ;;  %v2015_v16 = vpop.f32.mrf.mxu2  ;;  %11887 = vst [vmem:[#allocation268_spill] sm:$0xff] %v9148_v46  ;;  %v1674_v35 = vadd.f32 %v1673_v20, %v8308_v48  ;;  %v9182_v48 = vsub.f32 %v612_v29, %v9168_v53 }
 0x2a1   : > { %v1831_v59 = vadd.f32 %v1830_v47, %v1670_v9  ;;  %11888 = vst [vmem:[#allocation269_spill] sm:$0xff] %v9150_v8  ;;  %v2156_v47 = vsub.f32 %v9141_v41, %v9148_v46 }
 0x2a2   : > { %1736 = vmatmul.f32.gmra.mxu0 %v8209_v23  ;;  %11890 = vst [vmem:[#allocation271_spill] sm:$0xff] %v9164_v32 }
 0x2a3   : > { %v2016_v2 = vadd.f32 %v2015_v16, %v1831_v59  ;;  %1893 = vmatmul.f32.gmra.mxu1 %v8172_v49  ;;  %2339 = vmatmul.f32.gmra.mxu3 %v9104_v13  ;;  %11891 = vst [vmem:[#allocation272_spill] sm:$0xff] %v9168_v53 }
 0x2a4   : > { %11894 = vst [vmem:[#allocation275_spill] sm:$0xff] %v9182_v48 }
 0x2a5   : > { %v9158_v10 = vadd.f32 %v2272_v60, %v2016_v2  ;;  %2150 = vmatmul.f32.gmra.mxu2 %v9145_v4  ;;  %v9170_v2 = vand.u32 4294901760, %v2156_v47  ;;  %v9173_v4 = vand.u32 4294901760, %v9164_v32  ;;  %v615_v47 = vsel %vm526_vm4, %v521_v42, 0  ;;  %v523_v42 = vld [vmem:[%s11112_s1 + $0x1e8] sm:$0xff] }
 0x2a6   : > { %v2276_v9 = vpop.f32.mrf.mxu3  ;;  %v9194_v29 = vand.u32 4294901760, %v615_v47 }
 0x2a7   : > { %11889 = vst [vmem:[#allocation270_spill] sm:$0xff] %v9158_v10  ;;  %v1677_v16 = vpop.f32.mrf.mxu0  ;;  %v2164_v20 = vsub.f32 %v9164_v32, %v9173_v4 }
 0x2a8   : > { %v1834_v59 = vpop.f32.mrf.mxu1  ;;  %v2023_v49 = vpop.f32.mrf.mxu2  ;;  %11892 = vst [vmem:[#allocation273_spill] sm:$0xff] %v9170_v2 }
 0x2a9   : > { %v1835_v60 = vadd.f32 %v1834_v59, %v1674_v35  ;;  %11893 = vst [vmem:[#allocation274_spill] sm:$0xff] %v9173_v4 }
 0x2aa   : > { %1740 = vmatmul.f32.gmra.mxu0 %v8245_v19  ;;  %11897 = vst [vmem:[#allocation278_spill] sm:$0xff] %v9194_v29 }
 0x2ab   : > { %v2024_v30 = vadd.f32 %v2023_v49, %v1835_v60  ;;  %1897 = vmatmul.f32.gmra.mxu1 %v8209_v23  ;;  %2343 = vmatmul.f32.gmra.mxu3 %v9127_v37  ;;  %v1678_v49 = vadd.f32 %v1677_v16, %v8329_v44  ;;  %v9192_v37 = vand.u32 4294901760, %v9182_v48  ;;  %v7132_v44 = vld [vmem:[%s7318_s25 + $0x38] sm:$0xff] }
 0x2ac   : > { %v9205_v16 = vand.u32 4294901760, %v7132_v44 }
 0x2ad   : > { %v9184_v35 = vadd.f32 %v2276_v9, %v2024_v30  ;;  %2158 = vmatmul.f32.gmra.mxu2 %v9170_v2  ;;  %11896 = vst [vmem:[#allocation277_spill] sm:$0xff] %v9192_v37  ;;  %v9196_v30 = vand.u32 4294901760, %v2164_v20  ;;  %v9210_v20 = vsub.f32 %v615_v47, %v9194_v29 }
 0x2ae   : > { %v2280_v59 = vpop.f32.mrf.mxu3  ;;  %3096 = vmatpush.msrb.mxu0 %v9205_v16  ;;  %v9221_v4 = vsub.f32 %v7132_v44, %v9205_v16  ;;  %3819 = vmatpush.msrb.mxu3 %v9205_v16 }
 0x2af   : > { %11895 = vst [vmem:[#allocation276_spill] sm:$0xff] %v9184_v35  ;;  %v1681_v60 = vpop.f32.mrf.mxu0 }
 0x2b0   : > { %v1838_v23 = vpop.f32.mrf.mxu1  ;;  %v2031_v46 = vpop.f32.mrf.mxu2  ;;  %11898 = vst [vmem:[#allocation279_spill] sm:$0xff] %v9196_v30  ;;  %v1682_v47 = vadd.f32 %v1681_v60, %v8350_v51  ;;  %3623 = vmatpush.msrb.mxu2 %v9221_v4  ;;  %v9237_v51 = vand.u32 4294901760, %v9210_v20 }
 0x2b1   : > { %v1839_v9 = vadd.f32 %v1838_v23, %v1678_v49  ;;  %v2172_v23 = vsub.f32 %v9182_v48, %v9192_v37  ;;  %11899 = vst [vmem:[#allocation280_spill] sm:$0xff] %v9210_v20 }
 0x2b2   : > { %1744 = vmatmul.f32.gmra.mxu0 %v8269_v14  ;;  %11902 = vst [vmem:[#allocation283_spill] sm:$0xff] %v9237_v51 }
 0x2b3   : > { %v2032_v2 = vadd.f32 %v2031_v46, %v1839_v9  ;;  %1901 = vmatmul.f32.gmra.mxu1 %v8245_v19  ;;  %2347 = vmatmul.f32.gmra.mxu3 %v9150_v8  ;;  %v618_v46 = vsel %vm526_vm4, %v523_v42, 0  ;;  %v7133_v9 = vld [vmem:[%s7318_s25 + $0x28] sm:$0xff]  ;;  %v9234_v32 = vand.u32 4294901760, %v2172_v23  ;;  %v11904_v23 = vand.u32 4294901760, %v9221_v4 }
 0x2b4   : > { %v9218_v19 = vand.u32 4294901760, %v7133_v9  ;;  %v9239_v60 = vand.u32 4294901760, %v618_v46 }
 0x2b5   : > { %v9212_v49 = vadd.f32 %v2280_v59, %v2032_v2  ;;  %2166 = vmatmul.f32.gmra.mxu2 %v9196_v30  ;;  %v7134_v2 = vld [vmem:[%s7318_s25 + $0x18] sm:$0xff]  ;;  %11901 = vst [vmem:[#allocation282_spill] sm:$0xff] %v9234_v32  ;;  %v3435_v35 = vsub.f32 %v9221_v4, %v11904_v23 }
 0x2b6   : > { %v2284_v8 = vpop.f32.mrf.mxu3  ;;  %3098 = vmatpush.msrb.mxu0 %v9218_v19  ;;  %v9228_v59 = vand.u32 4294901760, %v7134_v2  ;;  %v9231_v42 = vsub.f32 %v7133_v9, %v9218_v19  ;;  %11903 = vst [vmem:[#allocation284_spill] sm:$0xff] %v9239_v60  ;;  %3821 = vmatpush.msrb.mxu3 %v9218_v19  ;;  %v7135_v9 = vld [vmem:[%s7318_s25 + $0x8] sm:$0xff]  ;;  %s7209_s25 = smov 122  }
 0x2b7   : > { %11900 = vst [vmem:[#allocation281_spill] sm:$0xff] %v9212_v49  ;;  %v1685_v37 = vpop.f32.mrf.mxu0  ;;  %v9245_v41 = vand.u32 4294901760, %v7135_v9  ;;  %v3436_v13 = vand.u32 4294901760, %v3435_v35  ;;  %v2180_v35 = vsub.f32 %v9210_v20, %v9237_v51 }
 0x2b8   : > { %v1842_v30 = vpop.f32.mrf.mxu1  ;;  %v2039_v48 = vpop.f32.mrf.mxu2  ;;  %3100 = vmatpush.msrb.mxu0 %v9228_v59  ;;  %3626 = vmatpush.msrb.mxu2 %v9231_v42  ;;  %v9248_v44 = vsub.f32 %v7134_v2, %v9228_v59  ;;  %v525_v2 = vld [vmem:[%s11112_s1 + $0x1f8] sm:$0xff] }
 0x2b9   : > { %v1843_v49 = vadd.f32 %v1842_v30, %v1682_v47  ;;  %3823 = vmatpush.msrb.mxu3 %v9228_v59  ;;  %v11515_v30 = vand.u32 4294901760, %v9231_v42  ;;  %v9262_v0 = vsub.f32 %v7135_v9, %v9245_v41  ;;  %v9276_v9 = vsub.f32 %v618_v46, %v9239_v60  ;;  %3437 = vmatpush.msrb.mxu1 %v3436_v13 }
 0x2ba   : > { %1748 = vmatmul.f32.gmra.mxu0 %v8291_v56  ;;  %3629 = vmatpush.msrb.mxu2 %v9248_v44  ;;  %v9289_v10 = vand.u32 4294901760, %v2180_v35 }
 0x2bb   : > { %v2040_v47 = vadd.f32 %v2039_v48, %v1843_v49  ;;  %1905 = vmatmul.f32.gmra.mxu1 %v8269_v14  ;;  %2351 = vmatmul.f32.gmra.mxu3 %v9168_v53  ;;  %v3441_v48 = vsub.f32 %v9231_v42, %v11515_v30  ;;  %v11521_v49 = vand.u32 4294901760, %v9248_v44  ;;  %11906 = vst [vmem:[#allocation286_spill] sm:$0xff] %v9276_v9  ;;  %v621_v53 = vsel %vm526_vm4, %v525_v2, 0 }
 0x2bc   : > { %3102 = vmatpush.msrb.mxu0 %v9245_v41  ;;  %3825 = vmatpush.msrb.mxu3 %v9245_v41  ;;  %11907 = vst [vmem:[#allocation287_spill] sm:$0xff] %v9289_v10  ;;  %vm5761_vm4 = vcmask 1006592  }
 0x2bd   : > { %v9270_v23 = vadd.f32 %v2284_v8, %v2040_v47  ;;  %2174 = vmatmul.f32.gmra.mxu2 %v9234_v32  ;;  %v3442_v30 = vand.u32 4294901760, %v3441_v48  ;;  %v3447_v8 = vsub.f32 %v9248_v44, %v11521_v49  ;;  %v11524_v47 = vand.u32 4294901760, %v9262_v0 }
 0x2be   : > { %v2288_v14 = vpop.f32.mrf.mxu3  ;;  %3632 = vmatpush.msrb.mxu2 %v9262_v0  ;;  %v1686_v32 = vadd.f32 %v1685_v37, %v8371_v22  ;;  %v9292_v48 = vand.u32 4294901760, %v9276_v9  ;;  %v9294_v49 = vand.u32 4294901760, %v621_v53 }
 0x2bf   : > { %11905 = vst [vmem:[#allocation285_spill] sm:$0xff] %v9270_v23  ;;  %v1689_v51 = vpop.f32.mrf.mxu0  ;;  %3443 = vmatpush.msrb.mxu1 %v3442_v30  ;;  %v3448_v23 = vand.u32 4294901760, %v3447_v8  ;;  %v3453_v13 = vsub.f32 %v9262_v0, %v11524_v47 }
 0x2c0   : > { %v1846_v46 = vpop.f32.mrf.mxu1  ;;  %v2047_v20 = vpop.f32.mrf.mxu2  ;;  %11908 = vst [vmem:[#allocation288_spill] sm:$0xff] %v9292_v48  ;;  %v9305_v35 = vsub.f32 %v621_v53, %v9294_v49  ;;  %v11918_v53 = vld [vmem:[#allocation106_spill] sm:$0xff] }
 0x2c1   : > { %v1847_v2 = vadd.f32 %v1846_v46, %v1686_v32  ;;  %11909 = vst [vmem:[#allocation289_spill] sm:$0xff] %v9294_v49  ;;  %3449 = vmatpush.msrb.mxu1 %v3448_v23  ;;  %v3454_v22 = vand.u32 4294901760, %v3453_v13  ;;  %v2188_v32 = vsub.f32 %v9276_v9, %v9292_v48  ;;  %v11913_v46 = vld [vmem:[#allocation143_spill] sm:$0xff] }
 0x2c2   : > { %1752 = vmatmul.f32.gmra.mxu0 %v11910_v31  ;;  %11912 = vst [vmem:[#allocation291_spill] sm:$0xff] %v9305_v35  ;;  %v1690_v23 = vadd.f32 %v1689_v51, %v11913_v46  ;;  %v9320_v51 = vand.u32 4294901760, %v11918_v53 }
 0x2c3   : > { %v2048_v37 = vadd.f32 %v2047_v20, %v1847_v2  ;;  %1909 = vmatmul.f32.gmra.mxu1 %v8291_v56  ;;  %2355 = vmatmul.f32.gmra.mxu3 %v9194_v29  ;;  %v9308_v56 = vand.u32 4294901760, %v2188_v32 }
 0x2c4   : > { %3455 = vmatpush.msrb.mxu1 %v3454_v22  ;;  %v11916_v22 = vld [vmem:[#allocation97_spill] sm:$0xff] }
 0x2c5   : > { %v9299_v30 = vadd.f32 %v2288_v14, %v2048_v37  ;;  %2182 = vmatmul.f32.gmra.mxu2 %v9289_v10  ;;  %11914 = vst [vmem:[#allocation143_spill] sm:$0xff] %v9308_v56  ;;  %v9311_v14 = vand.u32 4294901760, %v9305_v35  ;;  %v9314_v37 = vand.u32 4294901760, %v11916_v22  ;;  %v11917_v10 = vld [vmem:[#allocation134_spill] sm:$0xff] }
 0x2c6   : > { %v2292_v8 = vpop.f32.mrf.mxu3 }
 0x2c7   : > { %11911 = vst [vmem:[#allocation290_spill] sm:$0xff] %v9299_v30  ;;  %v1693_v13 = vpop.f32.mrf.mxu0  ;;  %v2196_v32 = vsub.f32 %v9305_v35, %v9311_v14 }
 0x2c8   : > { %v1850_v20 = vpop.f32.mrf.mxu1  ;;  %v2055_v2 = vpop.f32.mrf.mxu2  ;;  %11915 = vst [vmem:[#allocation292_spill] sm:$0xff] %v9311_v14 }
 0x2c9   : > { %v1851_v47 = vadd.f32 %v1850_v20, %v1690_v23  ;;  %v9329_v23 = vsub.f32 %v11916_v22, %v9314_v37  ;;  %v9342_v35 = vand.u32 4294901760, %v2196_v32 }
 0x2ca   : > { %1756 = vmatmul.f32.gmra.mxu0 %v11917_v10 }
 0x2cb   : > { %v2056_v48 = vadd.f32 %v2055_v2, %v1851_v47  ;;  %1913 = vmatmul.f32.gmra.mxu1 %v11910_v31  ;;  %2359 = vmatmul.f32.gmra.mxu3 %v9239_v60  ;;  %v11920_v47 = vld [vmem:[#allocation109_spill] sm:$0xff]  ;;  %11923 = vst [vmem:[#allocation106_spill] sm:$0xff] %v9342_v35  ;;  %v11546_v22 = vand.u32 4294901760, %v9329_v23 }
 0x2cc   : > { %v9332_v2 = vand.u32 4294901760, %v11920_v47  ;;  %v11921_v31 = vld [vmem:[#allocation149_spill] sm:$0xff] }
 0x2cd   : > { %v9322_v46 = vadd.f32 %v2292_v8, %v2056_v48  ;;  %2190 = vmatmul.f32.gmra.mxu2 %v9308_v56  ;;  %v1694_v60 = vadd.f32 %v1693_v13, %v11921_v31  ;;  %v9337_v48 = vsub.f32 %v11918_v53, %v9320_v51  ;;  %v11922_v8 = vld [vmem:[#allocation110_spill] sm:$0xff]  ;;  %v4665_v32 = vsub.f32 %v9329_v23, %v11546_v22 }
 0x2ce   : > { %v2296_v20 = vpop.f32.mrf.mxu3  ;;  %v9340_v56 = vand.u32 4294901760, %v11922_v8  ;;  %v9348_v31 = vsub.f32 %v11920_v47, %v9332_v2  ;;  %v11928_v22 = vld [vmem:[#allocation142_spill] sm:$0xff] }
 0x2cf   : > { %11919 = vst [vmem:[#allocation97_spill] sm:$0xff] %v9322_v46  ;;  %v1697_v9 = vpop.f32.mrf.mxu0  ;;  %v11924_v46 = vld [vmem:[#allocation138_spill] sm:$0xff] }
 0x2d0   : > { %v1854_v29 = vpop.f32.mrf.mxu1  ;;  %v2063_v30 = vpop.f32.mrf.mxu2  ;;  %v9354_v53 = vsub.f32 %v11922_v8, %v9340_v56 }
 0x2d1   : > { %v1855_v14 = vadd.f32 %v1854_v29, %v1694_v60  ;;  %v11547_v60 = vand.u32 4294901760, %v9337_v48 }
 0x2d2   : > { %1760 = vmatmul.f32.gmra.mxu0 %v11924_v46 }
 0x2d3   : > { %v2064_v13 = vadd.f32 %v2063_v30, %v1855_v14  ;;  %1917 = vmatmul.f32.gmra.mxu1 %v11917_v10  ;;  %2363 = vmatmul.f32.gmra.mxu3 %v9294_v49  ;;  %v11926_v30 = vld [vmem:[#allocation159_spill] sm:$0xff]  ;;  %v11548_v49 = vand.u32 4294901760, %v9348_v31 }
 0x2d4   : > { %v1698_v14 = vadd.f32 %v1697_v9, %v11926_v30  ;;  %v11929_v30 = vld [vmem:[#allocation151_spill] sm:$0xff] }
 0x2d5   : > { %v9356_v29 = vadd.f32 %v2296_v20, %v2064_v13  ;;  %2198 = vmatmul.f32.gmra.mxu2 %v9342_v35  ;;  %v4671_v20 = vsub.f32 %v9337_v48, %v11547_v60  ;;  %v11549_v13 = vand.u32 4294901760, %v9354_v53  ;;  %v11927_v35 = vld [vmem:[#allocation144_spill] sm:$0xff]  ;;  %v4677_v9 = vsub.f32 %v9348_v31, %v11548_v49 }
 0x2d6   : > { %v2300_v47 = vpop.f32.mrf.mxu3 }
 0x2d7   : > { %11925 = vst [vmem:[#allocation109_spill] sm:$0xff] %v9356_v29  ;;  %v1701_v10 = vpop.f32.mrf.mxu0  ;;  %v4666_v29 = vand.u32 4294901760, %v4665_v32  ;;  %v4672_v60 = vand.u32 4294901760, %v4671_v20  ;;  %v11931_v32 = vand.u32 4294901760, %v8434_v15  ;;  %v11934_v15 = vld [vmem:[#allocation161_spill] sm:$0xff] }
 0x2d8   : > { %v1858_v57 = vpop.f32.mrf.mxu1  ;;  %v2071_v45 = vpop.f32.mrf.mxu2  ;;  %v1702_v49 = vadd.f32 %v1701_v10, %v8518_v5  ;;  %v11936_v10 = vld [vmem:[#allocation152_spill] sm:$0xff] }
 0x2d9   : > { %v1859_v8 = vadd.f32 %v1858_v57, %v1698_v14  ;;  %v11930_v57 = vand.u32 4294901760, %v11929_v30  ;;  %v4678_v30 = vand.u32 4294901760, %v4677_v9  ;;  %v11938_v9 = vld [vmem:[#allocation148_spill] sm:$0xff] }
 0x2da   : > { %2393 = vmatmul.f32.vlgmr.msra.gmra.mxu0 %v11927_v35 }
 0x2db   : > { %v2072_v1 = vadd.f32 %v2071_v45, %v1859_v8  ;;  %1921 = vmatmul.f32.gmra.mxu1 %v11924_v46  ;;  %2943 = vmatmul.f32.vlgmr.msra.gmra.mxu3 %v11928_v22  ;;  %v4683_v45 = vsub.f32 %v9354_v53, %v11549_v13 }
 0x2dc   : > { %4022 = vmatpush.msra.mxu0 %v11930_v57  ;;  %4667 = vmatpush.msra.mxu3 %v4666_v29 }
 0x2dd   : > { %v9377_v14 = vadd.f32 %v2300_v47, %v2072_v1  ;;  %2794 = vmatmul.f32.vlgmr.msra.gmra.mxu2 %v11928_v22  ;;  %v11932_v1 = vld [vmem:[#allocation157_spill] sm:$0xff]  ;;  %v4684_v35 = vand.u32 4294901760, %v4683_v45 }
 0x2de   : > { %4026 = vmatpush.msra.mxu0 %v11931_v32  ;;  %4386 = vmatpush.msra.mxu2 %v9314_v37  ;;  %v2304_v8 = vpop.f32.mrf.mxu3  ;;  %v11933_v47 = vand.u32 4294901760, %v11932_v1  ;;  %v11935_v32 = vand.u32 4294901760, %v11934_v15  ;;  %v11939_v1 = vand.u32 4294901760, %v8485_v11  ;;  %v11943_v15 = vand.u32 4294901760, %v8526_v38 }
 0x2df   : > { %4673 = vmatpush.msra.mxu3 %v4672_v60  ;;  %v1705_v29 = vpop.f32.mrf.mxu0  ;;  %v11937_v60 = vld [vmem:[#allocation146_spill] sm:$0xff]  ;;  %v11949_v38 = vand.u32 4294901760, %v8566_v28  ;;  %v11954_v28 = vld [vmem:[#allocation164_spill] sm:$0xff] }
 0x2e0   : > { %4030 = vmatpush.msra.mxu0 %v11933_v47  ;;  %4388 = vmatpush.msra.mxu2 %v9320_v51  ;;  %v1862_v20 = vpop.f32.mrf.mxu1  ;;  %v2079_v57 = vpop.f32.mrf.mxu2  ;;  %v11940_v47 = vld [vmem:[#allocation147_spill] sm:$0xff] }
 0x2e1   : > { %4679 = vmatpush.msra.mxu3 %v4678_v30  ;;  %v1863_v13 = vadd.f32 %v1862_v20, %v1702_v49  ;;  %v1706_v30 = vadd.f32 %v1705_v29, %v8588_v12  ;;  %v11942_v20 = vld [vmem:[#allocation150_spill] sm:$0xff]  ;;  %v11946_v29 = vld [vmem:[#allocation155_spill] sm:$0xff] }
 0x2e2   : > { %4034 = vmatpush.msra.mxu0 %v11935_v32  ;;  %4390 = vmatpush.msra.mxu2 %v9332_v2  ;;  %v11944_v32 = vld [vmem:[#allocation153_spill] sm:$0xff] }
 0x2e3   : > { %4685 = vmatpush.msra.mxu3 %v4684_v35  ;;  %v2080_v5 = vadd.f32 %v2079_v57, %v1863_v13  ;;  %2398 = vmatmul.f32.gmra.mxu0 %v11936_v10  ;;  %v11941_v35 = vand.u32 4294901760, %v8507_v52  ;;  %v11947_v52 = vld [vmem:[#allocation156_spill] sm:$0xff] }
 0x2e4   : > { %2575 = vmatmul.f32.vlgmr.msra.gmra.mxu1 %v11937_v60  ;;  %2947 = vmatmul.f32.gmra.mxu3 %v11938_v9  ;;  %v12008_v60 = vld [vmem:[#allocation232_spill] sm:$0xff] }
 0x2e5   : > { %4038 = vmatpush.msra.mxu0 %v11939_v1  ;;  %4213 = vmatpush.msra.mxu1 %v11940_v47  ;;  %v9399_v49 = vadd.f32 %v2304_v8, %v2080_v5  ;;  %v11945_v5 = vand.u32 4294901760, %v8542_v63  ;;  %v11948_v1 = vld [vmem:[#allocation160_spill] sm:$0xff] }
 0x2e6   : > { %4392 = vmatpush.msra.mxu2 %v9340_v56  ;;  %v2308_v45 = vpop.f32.mrf.mxu3 }
 0x2e7   : > { %2798 = vmatmul.f32.gmra.mxu2 %v11938_v9  ;;  %4042 = vmatpush.msra.mxu0 %v11941_v35  ;;  %v1709_v13 = vpop.f32.mrf.mxu0 }
 0x2e8   : > { %4215 = vmatpush.msra.mxu1 %v11942_v20  ;;  %v1866_v57 = vpop.f32.mrf.mxu1  ;;  %v2087_v11 = vpop.f32.mrf.mxu2  ;;  %v1710_v63 = vadd.f32 %v1709_v13, %v8639_v17  ;;  %v11956_v17 = vld [vmem:[#allocation166_spill] sm:$0xff]  ;;  %v11957_v13 = vld [vmem:[#allocation171_spill] sm:$0xff] }
 0x2e9   : > { %4046 = vmatpush.msra.mxu0 %v11943_v15  ;;  %v1867_v8 = vadd.f32 %v1866_v57, %v1706_v30  ;;  %v11950_v30 = vld [vmem:[#allocation158_spill] sm:$0xff]  ;;  %v11951_v57 = vand.u32 4294901760, %v8584_v54  ;;  %v11958_v54 = vld [vmem:[#allocation167_spill] sm:$0xff] }
 0x2ea   : > { %4217 = vmatpush.msra.mxu1 %v11944_v32  ;;  %v11953_v32 = vand.u32 4294901760, %v8604_v26 }
 0x2eb   : > { %4050 = vmatpush.msra.mxu0 %v11945_v5  ;;  %v2088_v12 = vadd.f32 %v2087_v11, %v1867_v8  ;;  %v11952_v11 = vld [vmem:[#allocation162_spill] sm:$0xff] }
 0x2ec   : > { %4219 = vmatpush.msra.mxu1 %v11946_v29  ;;  %2403 = vmatmul.f32.gmra.mxu0 %v8489_v25 }
 0x2ed   : > { %2581 = vmatmul.f32.gmra.mxu1 %v11947_v52  ;;  %2951 = vmatmul.f32.gmra.mxu3 %v11948_v1  ;;  %v9416_v47 = vadd.f32 %v2308_v45, %v2088_v12  ;;  %v11955_v12 = vand.u32 4294901760, %v8618_v43  ;;  %v11961_v43 = vand.u32 4294901760, %v9221_v4  ;;  %v11967_v4 = vld [vmem:[#allocation175_spill] sm:$0xff] }
 0x2ee   : > { %4054 = vmatpush.msra.mxu0 %v11949_v38  ;;  %4221 = vmatpush.msra.mxu1 %v11950_v30  ;;  %v2312_v35 = vpop.f32.mrf.mxu3  ;;  %v11959_v38 = vld [vmem:[#allocation168_spill] sm:$0xff]  ;;  %v11960_v30 = vld [vmem:[#allocation169_spill] sm:$0xff] }
 0x2ef   : > { %2802 = vmatmul.f32.gmra.mxu2 %v11948_v1  ;;  %v1713_v20 = vpop.f32.mrf.mxu0 }
 0x2f0   : > { %4058 = vmatpush.msra.mxu0 %v11951_v57  ;;  %4223 = vmatpush.msra.mxu1 %v11952_v11  ;;  %v1870_v15 = vpop.f32.mrf.mxu1  ;;  %v2095_v8 = vpop.f32.mrf.mxu2  ;;  %v11962_v11 = vld [vmem:[#allocation170_spill] sm:$0xff] }
 0x2f1   : > { %v1871_v45 = vadd.f32 %v1870_v15, %v1710_v63  ;;  %v1714_v63 = vadd.f32 %v1713_v20, %v8674_v3  ;;  %v11966_v3 = vld [vmem:[#allocation173_spill] sm:$0xff] }
 0x2f2   : > { %4062 = vmatpush.msra.mxu0 %v11953_v32  ;;  %4225 = vmatpush.msra.mxu1 %v11954_v28  ;;  %v11964_v32 = vld [vmem:[#allocation172_spill] sm:$0xff] }
 0x2f3   : > { %v2096_v5 = vadd.f32 %v2095_v8, %v1871_v45 }
 0x2f4   : > { %4066 = vmatpush.msra.mxu0 %v11955_v12  ;;  %4227 = vmatpush.msra.mxu1 %v11956_v17 }
 0x2f5   : > { %2408 = vmatmul.f32.gmra.mxu0 %v11957_v13  ;;  %2587 = vmatmul.f32.gmra.mxu1 %v11958_v54  ;;  %v9434_v29 = vadd.f32 %v2312_v35, %v2096_v5  ;;  %v11963_v35 = vand.u32 4294901760, %v9231_v42  ;;  %v11965_v5 = vand.u32 4294901760, %v9248_v44  ;;  %v11968_v42 = vand.u32 4294901760, %v9262_v0 }
 0x2f6   : > { %2955 = vmatmul.f32.gmra.mxu3 %v11959_v38  ;;  %4229 = vmatpush.msra.mxu1 %v11960_v30  ;;  %v2316_v26 = vpop.f32.mrf.mxu3 }
 0x2f7   : > { %2806 = vmatmul.f32.gmra.mxu2 %v11959_v38  ;;  %v1717_v57 = vpop.f32.mrf.mxu0  ;;  %4070 = vmatpush.msra.mxu0 %v11961_v43 }
 0x2f8   : > { %4231 = vmatpush.msra.mxu1 %v11962_v11  ;;  %v1874_v15 = vpop.f32.mrf.mxu1  ;;  %v2103_v8 = vpop.f32.mrf.mxu2  ;;  %v1718_v17 = vadd.f32 %v1717_v57, %v8696_v55  ;;  %v11969_v11 = vld [vmem:[#allocation178_spill] sm:$0xff]  ;;  %v11970_v55 = vld [vmem:[#allocation179_spill] sm:$0xff] }
 0x2f9   : > { %v1875_v45 = vadd.f32 %v1874_v15, %v1714_v63  ;;  %4074 = vmatpush.msra.mxu0 %v11963_v35  ;;  %v11971_v35 = vld [vmem:[#allocation184_spill] sm:$0xff] }
 0x2fa   : > { %4233 = vmatpush.msra.mxu1 %v11964_v32  ;;  %v11972_v32 = vld [vmem:[#allocation182_spill] sm:$0xff] }
 0x2fb   : > { %v2104_v28 = vadd.f32 %v2103_v8, %v1875_v45  ;;  %4078 = vmatpush.msra.mxu0 %v11965_v5  ;;  %v11973_v5 = vld [vmem:[#allocation183_spill] sm:$0xff] }
 0x2fc   : > { %4235 = vmatpush.msra.mxu1 %v11966_v3 }
 0x2fd   : > { %2413 = vmatmul.f32.gmra.mxu0 %v8627_v6  ;;  %2593 = vmatmul.f32.gmra.mxu1 %v11967_v4  ;;  %v9451_v20 = vadd.f32 %v2316_v26, %v2104_v28 }
 0x2fe   : > { %2959 = vmatmul.f32.gmra.mxu3 %v8600_v27  ;;  %v2320_v12 = vpop.f32.mrf.mxu3  ;;  %4082 = vmatpush.msra.mxu0 %v11968_v42 }
 0x2ff   : > { %2810 = vmatmul.f32.gmra.mxu2 %v8600_v27  ;;  %v1721_v44 = vpop.f32.mrf.mxu0  ;;  %4237 = vmatpush.msra.mxu1 %v9205_v16 }
 0x300   : > { %v1878_v30 = vpop.f32.mrf.mxu1  ;;  %v2111_v63 = vpop.f32.mrf.mxu2  ;;  %v1722_v16 = vadd.f32 %v1721_v44, %v8718_v50 }
 0x301   : > { %v1879_v43 = vadd.f32 %v1878_v30, %v1718_v17  ;;  %4239 = vmatpush.msra.mxu1 %v9218_v19  ;;  %v11974_v30 = vld [vmem:[#allocation188_spill] sm:$0xff] }
 0x303   : > { %v2112_v26 = vadd.f32 %v2111_v63, %v1879_v43  ;;  %4241 = vmatpush.msra.mxu1 %v9228_v59  ;;  %v11975_v63 = vld [vmem:[#allocation186_spill] sm:$0xff] }
 0x305   : > { %2418 = vmatmul.f32.gmra.mxu0 %v8671_v39  ;;  %2599 = vmatmul.f32.gmra.mxu1 %v11969_v11  ;;  %v9463_v0 = vadd.f32 %v2320_v12, %v2112_v26  ;;  %v11976_v26 = vld [vmem:[#allocation187_spill] sm:$0xff] }
 0x306   : > { %2963 = vmatmul.f32.gmra.mxu3 %v11970_v55  ;;  %v2324_v57 = vpop.f32.mrf.mxu3  ;;  %4243 = vmatpush.msra.mxu1 %v9245_v41 }
 0x307   : > { %2814 = vmatmul.f32.gmra.mxu2 %v11970_v55  ;;  %v1725_v15 = vpop.f32.mrf.mxu0 }
 0x308   : > { %v1882_v19 = vpop.f32.mrf.mxu1  ;;  %v2119_v8 = vpop.f32.mrf.mxu2  ;;  %v1726_v41 = vadd.f32 %v1725_v15, %v8740_v18 }
 0x309   : > { %v1883_v45 = vadd.f32 %v1882_v19, %v1722_v16 }
 0x30b   : > { %v2120_v59 = vadd.f32 %v2119_v8, %v1883_v45 }
 0x30d   : > { %2423 = vmatmul.f32.gmra.mxu0 %v11971_v35  ;;  %2605 = vmatmul.f32.gmra.mxu1 %v11972_v32  ;;  %v9471_v28 = vadd.f32 %v2324_v57, %v2120_v59  ;;  %v11977_v59 = vld [vmem:[#allocation192_spill] sm:$0xff] }
 0x30e   : > { %2967 = vmatmul.f32.gmra.mxu3 %v11973_v5  ;;  %v2328_v3 = vpop.f32.mrf.mxu3 }
 0x30f   : > { %2818 = vmatmul.f32.gmra.mxu2 %v11973_v5  ;;  %v1729_v50 = vpop.f32.mrf.mxu0 }
 0x310   : > { %v1886_v12 = vpop.f32.mrf.mxu1  ;;  %v2127_v42 = vpop.f32.mrf.mxu2  ;;  %v1730_v16 = vadd.f32 %v1729_v50, %v8762_v24 }
 0x311   : > { %v1887_v17 = vadd.f32 %v1886_v12, %v1726_v41  ;;  %v11978_v41 = vld [vmem:[#allocation190_spill] sm:$0xff] }
 0x313   : > { %v2128_v44 = vadd.f32 %v2127_v42, %v1887_v17 }
 0x315   : > { %2428 = vmatmul.f32.gmra.mxu0 %v11974_v30  ;;  %2611 = vmatmul.f32.gmra.mxu1 %v11975_v63  ;;  %v9478_v43 = vadd.f32 %v2328_v3, %v2128_v44  ;;  %v11979_v3 = vld [vmem:[#allocation191_spill] sm:$0xff] }
 0x316   : > { %2971 = vmatmul.f32.gmra.mxu3 %v11976_v26  ;;  %v2332_v57 = vpop.f32.mrf.mxu3 }
 0x317   : > { %2822 = vmatmul.f32.gmra.mxu2 %v11976_v26  ;;  %v1733_v18 = vpop.f32.mrf.mxu0 }
 0x318   : > { %v1890_v15 = vpop.f32.mrf.mxu1  ;;  %v2135_v19 = vpop.f32.mrf.mxu2  ;;  %v1734_v17 = vadd.f32 %v1733_v18, %v8784_v21 }
 0x319   : > { %v1891_v8 = vadd.f32 %v1890_v15, %v1730_v16  ;;  %v11980_v16 = vld [vmem:[#allocation196_spill] sm:$0xff]  ;;  %v11981_v15 = vld [vmem:[#allocation194_spill] sm:$0xff] }
 0x31b   : > { %v2136_v45 = vadd.f32 %v2135_v19, %v1891_v8 }
 0x31d   : > { %2433 = vmatmul.f32.gmra.mxu0 %v11977_v59  ;;  %2617 = vmatmul.f32.gmra.mxu1 %v11978_v41  ;;  %v9485_v12 = vadd.f32 %v2332_v57, %v2136_v45  ;;  %v11982_v57 = vld [vmem:[#allocation195_spill] sm:$0xff] }
 0x31e   : > { %2975 = vmatmul.f32.gmra.mxu3 %v11979_v3  ;;  %v2336_v42 = vpop.f32.mrf.mxu3 }
 0x31f   : > { %2826 = vmatmul.f32.gmra.mxu2 %v11979_v3  ;;  %v1737_v24 = vpop.f32.mrf.mxu0 }
 0x320   : > { %v1894_v50 = vpop.f32.mrf.mxu1  ;;  %v2143_v44 = vpop.f32.mrf.mxu2  ;;  %v1738_v45 = vadd.f32 %v1737_v24, %v8806_v36 }
 0x321   : > { %v1895_v63 = vadd.f32 %v1894_v50, %v1734_v17  ;;  %v11983_v17 = vld [vmem:[#allocation200_spill] sm:$0xff] }
 0x323   : > { %v2144_v30 = vadd.f32 %v2143_v44, %v1895_v63  ;;  %v11984_v63 = vld [vmem:[#allocation198_spill] sm:$0xff] }
 0x325   : > { %2438 = vmatmul.f32.gmra.mxu0 %v11980_v16  ;;  %2623 = vmatmul.f32.gmra.mxu1 %v11981_v15  ;;  %v9492_v19 = vadd.f32 %v2336_v42, %v2144_v30  ;;  %v11985_v30 = vld [vmem:[#allocation199_spill] sm:$0xff] }
 0x326   : > { %2979 = vmatmul.f32.gmra.mxu3 %v11982_v57  ;;  %v2340_v8 = vpop.f32.mrf.mxu3 }
 0x327   : > { %2830 = vmatmul.f32.gmra.mxu2 %v11982_v57  ;;  %v1741_v21 = vpop.f32.mrf.mxu0 }
 0x328   : > { %v1898_v18 = vpop.f32.mrf.mxu1  ;;  %v2151_v41 = vpop.f32.mrf.mxu2  ;;  %v1742_v44 = vadd.f32 %v1741_v21, %v8828_v61 }
 0x329   : > { %v1899_v59 = vadd.f32 %v1898_v18, %v1738_v45  ;;  %v11986_v45 = vld [vmem:[#allocation204_spill] sm:$0xff] }
 0x32b   : > { %v2152_v32 = vadd.f32 %v2151_v41, %v1899_v59  ;;  %v11987_v59 = vld [vmem:[#allocation202_spill] sm:$0xff] }
 0x32d   : > { %2443 = vmatmul.f32.gmra.mxu0 %v11983_v17  ;;  %2629 = vmatmul.f32.gmra.mxu1 %v11984_v63  ;;  %v9499_v50 = vadd.f32 %v2340_v8, %v2152_v32  ;;  %v11988_v32 = vld [vmem:[#allocation203_spill] sm:$0xff] }
 0x32e   : > { %2983 = vmatmul.f32.gmra.mxu3 %v11985_v30  ;;  %v2344_v42 = vpop.f32.mrf.mxu3 }
 0x32f   : > { %2834 = vmatmul.f32.gmra.mxu2 %v11985_v30  ;;  %v1745_v36 = vpop.f32.mrf.mxu0 }
 0x330   : > { %v1902_v24 = vpop.f32.mrf.mxu1  ;;  %v2159_v15 = vpop.f32.mrf.mxu2  ;;  %v1746_v18 = vadd.f32 %v1745_v36, %v8850_v58 }
 0x331   : > { %v1903_v16 = vadd.f32 %v1902_v24, %v1742_v44  ;;  %v11989_v44 = vld [vmem:[#allocation208_spill] sm:$0xff] }
 0x333   : > { %v2160_v35 = vadd.f32 %v2159_v15, %v1903_v16  ;;  %v11990_v16 = vld [vmem:[#allocation206_spill] sm:$0xff] }
 0x335   : > { %2448 = vmatmul.f32.gmra.mxu0 %v11986_v45  ;;  %2635 = vmatmul.f32.gmra.mxu1 %v11987_v59  ;;  %v9506_v41 = vadd.f32 %v2344_v42, %v2160_v35  ;;  %v11991_v35 = vld [vmem:[#allocation207_spill] sm:$0xff] }
 0x336   : > { %2987 = vmatmul.f32.gmra.mxu3 %v11988_v32  ;;  %v2348_v8 = vpop.f32.mrf.mxu3 }
 0x337   : > { %2838 = vmatmul.f32.gmra.mxu2 %v11988_v32  ;;  %v1749_v61 = vpop.f32.mrf.mxu0 }
 0x338   : > { %v1906_v21 = vpop.f32.mrf.mxu1  ;;  %v2167_v63 = vpop.f32.mrf.mxu2  ;;  %v1750_v24 = vadd.f32 %v1749_v61, %v8872_v34 }
 0x339   : > { %v1907_v17 = vadd.f32 %v1906_v21, %v1746_v18  ;;  %v11992_v18 = vld [vmem:[#allocation212_spill] sm:$0xff] }
 0x33b   : > { %v2168_v11 = vadd.f32 %v2167_v63, %v1907_v17  ;;  %v11993_v17 = vld [vmem:[#allocation210_spill] sm:$0xff] }
 0x33d   : > { %2453 = vmatmul.f32.gmra.mxu0 %v11989_v44  ;;  %2641 = vmatmul.f32.gmra.mxu1 %v11990_v16  ;;  %v9513_v15 = vadd.f32 %v2348_v8, %v2168_v11  ;;  %v11994_v11 = vld [vmem:[#allocation211_spill] sm:$0xff] }
 0x33e   : > { %2991 = vmatmul.f32.gmra.mxu3 %v11991_v35  ;;  %v2352_v42 = vpop.f32.mrf.mxu3 }
 0x33f   : > { %2842 = vmatmul.f32.gmra.mxu2 %v11991_v35  ;;  %v1753_v58 = vpop.f32.mrf.mxu0 }
 0x340   : > { %v1910_v36 = vpop.f32.mrf.mxu1  ;;  %v2175_v59 = vpop.f32.mrf.mxu2  ;;  %v1754_v21 = vadd.f32 %v1753_v58, %v8894_v62 }
 0x341   : > { %v1911_v45 = vadd.f32 %v1910_v36, %v1750_v24  ;;  %v11995_v24 = vld [vmem:[#allocation216_spill] sm:$0xff] }
 0x343   : > { %v2176_v39 = vadd.f32 %v2175_v59, %v1911_v45  ;;  %v11996_v45 = vld [vmem:[#allocation214_spill] sm:$0xff] }
 0x345   : > { %2458 = vmatmul.f32.gmra.mxu0 %v11992_v18  ;;  %2647 = vmatmul.f32.gmra.mxu1 %v11993_v17  ;;  %v9520_v63 = vadd.f32 %v2352_v42, %v2176_v39  ;;  %v11997_v39 = vld [vmem:[#allocation215_spill] sm:$0xff] }
 0x346   : > { %2995 = vmatmul.f32.gmra.mxu3 %v11994_v11  ;;  %v2356_v8 = vpop.f32.mrf.mxu3 }
 0x347   : > { %2846 = vmatmul.f32.gmra.mxu2 %v11994_v11  ;;  %v1757_v34 = vpop.f32.mrf.mxu0  ;;  %v12041_v11 = vld [vmem:[#allocation263_spill] sm:$0xff] }
 0x348   : > { %v1914_v61 = vpop.f32.mrf.mxu1  ;;  %v2183_v16 = vpop.f32.mrf.mxu2  ;;  %v1758_v36 = vadd.f32 %v1757_v34, %v8916_v33 }
 0x349   : > { %v1915_v44 = vadd.f32 %v1914_v61, %v1754_v21  ;;  %v11998_v21 = vld [vmem:[#allocation220_spill] sm:$0xff] }
 0x34b   : > { %v2184_v4 = vadd.f32 %v2183_v16, %v1915_v44  ;;  %v11999_v44 = vld [vmem:[#allocation218_spill] sm:$0xff] }
 0x34d   : > { %2463 = vmatmul.f32.gmra.mxu0 %v11995_v24  ;;  %2653 = vmatmul.f32.gmra.mxu1 %v11996_v45  ;;  %v9527_v59 = vadd.f32 %v2356_v8, %v2184_v4  ;;  %v12000_v4 = vld [vmem:[#allocation219_spill] sm:$0xff] }
 0x34e   : > { %2999 = vmatmul.f32.gmra.mxu3 %v11997_v39  ;;  %v2360_v42 = vpop.f32.mrf.mxu3 }
 0x34f   : > { %2850 = vmatmul.f32.gmra.mxu2 %v11997_v39  ;;  %v1761_v62 = vpop.f32.mrf.mxu0  ;;  %v12036_v39 = vld [vmem:[#allocation261_spill] sm:$0xff] }
 0x350   : > { %v1918_v58 = vpop.f32.mrf.mxu1  ;;  %v2191_v17 = vpop.f32.mrf.mxu2  ;;  %v1762_v61 = vadd.f32 %v1761_v62, %v8938_v40 }
 0x351   : > { %v1919_v18 = vadd.f32 %v1918_v58, %v1758_v36  ;;  %v12003_v36 = vld [vmem:[#allocation233_spill] sm:$0xff] }
 0x353   : > { %v2192_v6 = vadd.f32 %v2191_v17, %v1919_v18  ;;  %v12001_v18 = vld [vmem:[#allocation222_spill] sm:$0xff] }
 0x355   : > { %2468 = vmatmul.f32.gmra.mxu0 %v11998_v21  ;;  %2659 = vmatmul.f32.gmra.mxu1 %v11999_v44  ;;  %v9534_v16 = vadd.f32 %v2360_v42, %v2192_v6  ;;  %v12002_v6 = vld [vmem:[#allocation223_spill] sm:$0xff] }
 0x356   : > { %3003 = vmatmul.f32.gmra.mxu3 %v12000_v4  ;;  %v2364_v8 = vpop.f32.mrf.mxu3 }
 0x357   : > { %2854 = vmatmul.f32.gmra.mxu2 %v12000_v4  ;;  %v2394_v33 = vpop.f32.mrf.mxu0 }
 0x358   : > { %v1922_v34 = vpop.f32.mrf.mxu1  ;;  %v2199_v45 = vpop.f32.mrf.mxu2  ;;  %v2395_v40 = vadd.f32 %v2394_v33, %v12003_v36 }
 0x359   : > { %v1923_v24 = vadd.f32 %v1922_v34, %v1762_v61  ;;  %v12004_v61 = vld [vmem:[#allocation228_spill] sm:$0xff] }
 0x35a   : > { %v12007_v34 = vld [vmem:[#allocation240_spill] sm:$0xff] }
 0x35b   : > { %v2200_v54 = vadd.f32 %v2199_v45, %v1923_v24  ;;  %v12005_v24 = vld [vmem:[#allocation226_spill] sm:$0xff]  ;;  %v12006_v45 = vld [vmem:[#allocation227_spill] sm:$0xff] }
 0x35d   : > { %2473 = vmatmul.f32.gmra.mxu0 %v8913_v7  ;;  %2665 = vmatmul.f32.gmra.mxu1 %v12001_v18  ;;  %v9541_v17 = vadd.f32 %v2364_v8, %v2200_v54 }
 0x35e   : > { %3007 = vmatmul.f32.gmra.mxu3 %v12002_v6  ;;  %v2944_v42 = vpop.f32.mrf.mxu3 }
 0x35f   : > { %2858 = vmatmul.f32.gmra.mxu2 %v12002_v6 }
 0x360   : > { %v2399_v62 = vpop.f32.mrf.mxu0  ;;  %v2795_v58 = vpop.f32.mrf.mxu2 }
 0x361   : > { %v2576_v44 = vpop.f32.mrf.mxu1  ;;  %v2400_v18 = vadd.f32 %v2399_v62, %v12007_v34 }
 0x362   : > { %v2577_v21 = vadd.f32 %v2576_v44, %v2395_v40  ;;  %v12010_v44 = vld [vmem:[#allocation231_spill] sm:$0xff] }
 0x364   : > { %v2796_v13 = vadd.f32 %v2795_v58, %v2577_v21  ;;  %v12009_v21 = vld [vmem:[#allocation230_spill] sm:$0xff] }
 0x365   : > { %2478 = vmatmul.f32.gmra.mxu0 %v12004_v61  ;;  %2671 = vmatmul.f32.gmra.mxu1 %v12005_v24 }
 0x366   : > { %3011 = vmatmul.f32.gmra.mxu3 %v12006_v45  ;;  %v2945_v54 = vadd.f32 %v2944_v42, %v2796_v13  ;;  %v12011_v42 = vld [vmem:[#allocation244_spill] sm:$0xff] }
 0x367   : > { %2862 = vmatmul.f32.gmra.mxu2 %v12006_v45  ;;  %v2948_v8 = vpop.f32.mrf.mxu3  ;;  %v12012_v45 = vld [vmem:[#allocation86_spill] sm:$0xff] }
 0x369   : > { %v2404_v7 = vpop.f32.mrf.mxu0 }
 0x36a   : > { %v2582_v52 = vpop.f32.mrf.mxu1  ;;  %v2799_v33 = vpop.f32.mrf.mxu2  ;;  %v2405_v58 = vadd.f32 %v2404_v7, %v12011_v42 }
 0x36b   : > { %v2583_v36 = vadd.f32 %v2582_v52, %v2400_v18  ;;  %v12013_v52 = vld [vmem:[#allocation235_spill] sm:$0xff]  ;;  %v12014_v18 = vld [vmem:[#allocation236_spill] sm:$0xff] }
 0x36d   : > { %v2800_v25 = vadd.f32 %v2799_v33, %v2583_v36  ;;  %2483 = vmatmul.f32.gmra.mxu0 %v12008_v60  ;;  %2677 = vmatmul.f32.gmra.mxu1 %v12009_v21 }
 0x36e   : > { %3015 = vmatmul.f32.gmra.mxu3 %v12010_v44 }
 0x36f   : > { %v2949_v40 = vadd.f32 %v2948_v8, %v2800_v25  ;;  %2866 = vmatmul.f32.gmra.mxu2 %v12010_v44  ;;  %v12015_v25 = vld [vmem:[#allocation248_spill] sm:$0xff] }
 0x370   : > { %v2952_v13 = vpop.f32.mrf.mxu3 }
 0x372   : > { %v2409_v24 = vpop.f32.mrf.mxu0  ;;  %v2588_v61 = vpop.f32.mrf.mxu1 }
 0x373   : > { %v2589_v62 = vadd.f32 %v2588_v61, %v2405_v58  ;;  %v2803_v34 = vpop.f32.mrf.mxu2  ;;  %v2410_v8 = vadd.f32 %v2409_v24, %v12015_v25  ;;  %v12016_v58 = vld [vmem:[#allocation241_spill] sm:$0xff] }
 0x375   : > { %v2804_v10 = vadd.f32 %v2803_v34, %v2589_v62  ;;  %2488 = vmatmul.f32.gmra.mxu0 %v12012_v45  ;;  %2683 = vmatmul.f32.gmra.mxu1 %v12013_v52  ;;  %v12017_v62 = vld [vmem:[#allocation238_spill] sm:$0xff]  ;;  %v12018_v34 = vld [vmem:[#allocation239_spill] sm:$0xff] }
 0x376   : > { %3019 = vmatmul.f32.gmra.mxu3 %v12014_v18 }
 0x377   : > { %v2953_v33 = vadd.f32 %v2952_v13, %v2804_v10  ;;  %2870 = vmatmul.f32.gmra.mxu2 %v12014_v18  ;;  %v12019_v10 = vld [vmem:[#allocation252_spill] sm:$0xff] }
 0x379   : > { %v5519_v36 = vmax.f32 %v2945_v54, %v2953_v33  ;;  %v2956_v21 = vpop.f32.mrf.mxu3 }
 0x37a   : > { %v2414_v60 = vpop.f32.mrf.mxu0  ;;  %v2594_v7 = vpop.f32.mrf.mxu1 }
 0x37b   : > { %v2595_v42 = vadd.f32 %v2594_v7, %v2410_v8  ;;  %v2807_v44 = vpop.f32.mrf.mxu2  ;;  %v2415_v13 = vadd.f32 %v2414_v60, %v12019_v10 }
 0x37d   : > { %v2808_v61 = vadd.f32 %v2807_v44, %v2595_v42  ;;  %2493 = vmatmul.f32.gmra.mxu0 %v12016_v58  ;;  %2689 = vmatmul.f32.gmra.mxu1 %v12017_v62  ;;  %v12020_v44 = vld [vmem:[#allocation245_spill] sm:$0xff]  ;;  %v12021_v42 = vld [vmem:[#allocation242_spill] sm:$0xff]  ;;  %v12022_v62 = vld [vmem:[#allocation243_spill] sm:$0xff] }
 0x37e   : > { %3023 = vmatmul.f32.gmra.mxu3 %v12018_v34 }
 0x37f   : > { %v2957_v52 = vadd.f32 %v2956_v21, %v2808_v61  ;;  %2874 = vmatmul.f32.gmra.mxu2 %v12018_v34  ;;  %v12023_v21 = vld [vmem:[#allocation256_spill] sm:$0xff] }
 0x381   : > { %v5520_v45 = vmax.f32 %v2949_v40, %v2957_v52  ;;  %v2960_v24 = vpop.f32.mrf.mxu3 }
 0x382   : > { %v2419_v54 = vpop.f32.mrf.mxu0  ;;  %v2600_v33 = vpop.f32.mrf.mxu1 }
 0x383   : > { %v5521_v25 = vmax.f32 %v5519_v36, %v5520_v45  ;;  %v2601_v18 = vadd.f32 %v2600_v33, %v2415_v13  ;;  %v2811_v8 = vpop.f32.mrf.mxu2  ;;  %v2420_v61 = vadd.f32 %v2419_v54, %v12023_v21  ;;  %v12024_v36 = vld [vmem:[#allocation249_spill] sm:$0xff]  ;;  %v12026_v13 = vld [vmem:[#allocation247_spill] sm:$0xff] }
 0x385   : > { %v2812_v7 = vadd.f32 %v2811_v8, %v2601_v18  ;;  %2498 = vmatmul.f32.gmra.mxu0 %v12020_v44  ;;  %2695 = vmatmul.f32.gmra.mxu1 %v12021_v42  ;;  %v12025_v18 = vld [vmem:[#allocation246_spill] sm:$0xff] }
 0x386   : > { %3027 = vmatmul.f32.gmra.mxu3 %v12022_v62 }
 0x387   : > { %v2961_v58 = vadd.f32 %v2960_v24, %v2812_v7  ;;  %2878 = vmatmul.f32.gmra.mxu2 %v12022_v62  ;;  %v12027_v24 = vld [vmem:[#allocation260_spill] sm:$0xff] }
 0x389   : > { %v2964_v60 = vpop.f32.mrf.mxu3 }
 0x38a   : > { %v2424_v40 = vpop.f32.mrf.mxu0  ;;  %v2606_v52 = vpop.f32.mrf.mxu1 }
 0x38b   : > { %v2607_v10 = vadd.f32 %v2606_v52, %v2420_v61  ;;  %v2815_v34 = vpop.f32.mrf.mxu2  ;;  %v2425_v8 = vadd.f32 %v2424_v40, %v12027_v24  ;;  %v12028_v61 = vld [vmem:[#allocation253_spill] sm:$0xff]  ;;  %v12030_v52 = vld [vmem:[#allocation251_spill] sm:$0xff] }
 0x38d   : > { %v2816_v45 = vadd.f32 %v2815_v34, %v2607_v10  ;;  %2503 = vmatmul.f32.gmra.mxu0 %v12024_v36  ;;  %2701 = vmatmul.f32.gmra.mxu1 %v12025_v18  ;;  %v12029_v34 = vld [vmem:[#allocation250_spill] sm:$0xff] }
 0x38e   : > { %3031 = vmatmul.f32.gmra.mxu3 %v12026_v13 }
 0x38f   : > { %v2965_v33 = vadd.f32 %v2964_v60, %v2816_v45  ;;  %2882 = vmatmul.f32.gmra.mxu2 %v12026_v13  ;;  %v12031_v60 = vld [vmem:[#allocation265_spill] sm:$0xff]  ;;  %v5522_v13 = vrot.slane %v5521_v25, 4 }
 0x391   : > { %v2968_v7 = vpop.f32.mrf.mxu3 }
 0x392   : > { %v2429_v42 = vpop.f32.mrf.mxu0  ;;  %v2612_v54 = vpop.f32.mrf.mxu1 }
 0x393   : > { %v2613_v21 = vadd.f32 %v2612_v54, %v2425_v8  ;;  %v2819_v44 = vpop.f32.mrf.mxu2  ;;  %v2430_v45 = vadd.f32 %v2429_v42, %v12031_v60 }
 0x395   : > { %v2820_v62 = vadd.f32 %v2819_v44, %v2613_v21  ;;  %2508 = vmatmul.f32.gmra.mxu0 %v12028_v61  ;;  %2707 = vmatmul.f32.gmra.mxu1 %v12029_v34  ;;  %v12032_v44 = vld [vmem:[#allocation257_spill] sm:$0xff]  ;;  %v12033_v21 = vld [vmem:[#allocation254_spill] sm:$0xff]  ;;  %v12034_v34 = vld [vmem:[#allocation255_spill] sm:$0xff]  ;;  %v5523_v61 = vmax.f32 %v5521_v25, %v5522_v13 }
 0x396   : > { %3035 = vmatmul.f32.gmra.mxu3 %v12030_v52  ;;  %v12038_v25 = vld [vmem:[#allocation259_spill] sm:$0xff] }
 0x397   : > { %v2969_v10 = vadd.f32 %v2968_v7, %v2820_v62  ;;  %2886 = vmatmul.f32.gmra.mxu2 %v12030_v52  ;;  %v12035_v7 = vld [vmem:[#allocation270_spill] sm:$0xff]  ;;  %v5524_v4 = vrot.slane %v5523_v61, 2 }
 0x399   : > { %v5542_v18 = vmax.f32 %v2961_v58, %v2969_v10  ;;  %v2972_v36 = vpop.f32.mrf.mxu3 }
 0x39a   : > { %v2434_v40 = vpop.f32.mrf.mxu0  ;;  %v2618_v24 = vpop.f32.mrf.mxu1 }
 0x39b   : > { %v2619_v6 = vadd.f32 %v2618_v24, %v2430_v45  ;;  %v2823_v8 = vpop.f32.mrf.mxu2  ;;  %v2435_v42 = vadd.f32 %v2434_v40, %v12035_v7  ;;  %v12039_v40 = vld [vmem:[#allocation276_spill] sm:$0xff] }
 0x39d   : > { %v2824_v54 = vadd.f32 %v2823_v8, %v2619_v6  ;;  %2513 = vmatmul.f32.gmra.mxu0 %v12032_v44  ;;  %2713 = vmatmul.f32.gmra.mxu1 %v12033_v21  ;;  %v12037_v21 = vld [vmem:[#allocation258_spill] sm:$0xff] }
 0x39e   : > { %3039 = vmatmul.f32.gmra.mxu3 %v12034_v34 }
 0x39f   : > { %v2973_v62 = vadd.f32 %v2972_v36, %v2824_v54  ;;  %2890 = vmatmul.f32.gmra.mxu2 %v12034_v34  ;;  %v5525_v36 = vmax.f32 %v5523_v61, %v5524_v4  ;;  %v12042_v4 = vld [vmem:[#allocation264_spill] sm:$0xff] }
 0x3a1   : > { %v5543_v58 = vmax.f32 %v2965_v33, %v2973_v62  ;;  %v2976_v10 = vpop.f32.mrf.mxu3 }
 0x3a2   : > { %v2439_v60 = vpop.f32.mrf.mxu0  ;;  %v2624_v52 = vpop.f32.mrf.mxu1 }
 0x3a3   : > { %v5544_v45 = vmax.f32 %v5542_v18, %v5543_v58  ;;  %v2625_v24 = vadd.f32 %v2624_v52, %v2435_v42  ;;  %v2827_v6 = vpop.f32.mrf.mxu2  ;;  %v2440_v62 = vadd.f32 %v2439_v60, %v12039_v40  ;;  %v5526_v42 = vrot.slane %v5525_v36, 1  ;;  %v12043_v60 = vld [vmem:[#allocation281_spill] sm:$0xff] }
 0x3a5   : > { %v5545_v8 = vrot.slane %v5544_v45, 4  ;;  %v2828_v44 = vadd.f32 %v2827_v6, %v2625_v24  ;;  %2518 = vmatmul.f32.gmra.mxu0 %v12036_v39  ;;  %2719 = vmatmul.f32.gmra.mxu1 %v12037_v21  ;;  %v12040_v21 = vld [vmem:[#allocation266_spill] sm:$0xff]  ;;  %v5527_v61 = vmax.f32 %v5525_v36, %v5526_v42 }
 0x3a6   : > { %3043 = vmatmul.f32.gmra.mxu3 %v12038_v25 }
 0x3a7   : > { %v5546_v13 = vmax.f32 %v5544_v45, %v5545_v8  ;;  %v2977_v54 = vadd.f32 %v2976_v10, %v2828_v44  ;;  %2894 = vmatmul.f32.gmra.mxu2 %v12038_v25  ;;  %v12174_v25 = vld [vmem:[#allocation124_spill] sm:$0xff] }
 0x3a9   : > { %v5547_v33 = vrot.slane %v5546_v13, 2  ;;  %v2980_v7 = vpop.f32.mrf.mxu3 }
 0x3aa   : > { %v2444_v18 = vpop.f32.mrf.mxu0  ;;  %v2630_v52 = vpop.f32.mrf.mxu1 }
 0x3ab   : > { %v5548_v58 = vmax.f32 %v5546_v13, %v5547_v33  ;;  %v2631_v24 = vadd.f32 %v2630_v52, %v2440_v62  ;;  %v2831_v6 = vpop.f32.mrf.mxu2  ;;  %v2445_v45 = vadd.f32 %v2444_v18, %v12043_v60 }
 0x3ad   : > { %v5549_v39 = vrot.slane %v5548_v58, 1  ;;  %v2832_v34 = vadd.f32 %v2831_v6, %v2631_v24  ;;  %2523 = vmatmul.f32.gmra.mxu0 %v12040_v21  ;;  %2725 = vmatmul.f32.gmra.mxu1 %v12041_v11  ;;  %v12044_v6 = vld [vmem:[#allocation271_spill] sm:$0xff]  ;;  %v12045_v11 = vld [vmem:[#allocation268_spill] sm:$0xff]  ;;  %v12046_v21 = vld [vmem:[#allocation269_spill] sm:$0xff] }
 0x3ae   : > { %3047 = vmatmul.f32.gmra.mxu3 %v12042_v4 }
 0x3af   : > { %v5550_v44 = vmax.f32 %v5548_v58, %v5549_v39  ;;  %v2981_v10 = vadd.f32 %v2980_v7, %v2832_v34  ;;  %2898 = vmatmul.f32.gmra.mxu2 %v12042_v4  ;;  %v12047_v34 = vld [vmem:[#allocation285_spill] sm:$0xff] }
 0x3b1   : > { %v2984_v8 = vpop.f32.mrf.mxu3  ;;  %v5697_v13 = vsel %vm5696_vm5, %v5527_v61, %v5550_v44 }
 0x3b2   : > { %v2449_v33 = vpop.f32.mrf.mxu0  ;;  %v2636_v40 = vpop.f32.mrf.mxu1 }
 0x3b3   : > { %v2637_v62 = vadd.f32 %v2636_v40, %v2445_v45  ;;  %v2835_v52 = vpop.f32.mrf.mxu2  ;;  %v2450_v36 = vadd.f32 %v2449_v33, %v12047_v34  ;;  %v12048_v45 = vld [vmem:[#allocation275_spill] sm:$0xff]  ;;  %v12049_v40 = vld [vmem:[#allocation274_spill] sm:$0xff] }
 0x3b5   : > { %v2836_v24 = vadd.f32 %v2835_v52, %v2637_v62  ;;  %2528 = vmatmul.f32.gmra.mxu0 %v12044_v6  ;;  %2731 = vmatmul.f32.gmra.mxu1 %v12045_v11  ;;  %v12050_v62 = vld [vmem:[#allocation272_spill] sm:$0xff] }
 0x3b6   : > { %3051 = vmatmul.f32.gmra.mxu3 %v12046_v21 }
 0x3b7   : > { %v2985_v39 = vadd.f32 %v2984_v8, %v2836_v24  ;;  %2902 = vmatmul.f32.gmra.mxu2 %v12046_v21  ;;  %v12051_v8 = vld [vmem:[#allocation290_spill] sm:$0xff]  ;;  %v12058_v21 = vld [vmem:[#allocation284_spill] sm:$0xff] }
 0x3b9   : > { %v5564_v7 = vmax.f32 %v2977_v54, %v2985_v39  ;;  %v2988_v18 = vpop.f32.mrf.mxu3 }
 0x3ba   : > { %v2454_v42 = vpop.f32.mrf.mxu0  ;;  %v2642_v58 = vpop.f32.mrf.mxu1 }
 0x3bb   : > { %v2643_v61 = vadd.f32 %v2642_v58, %v2450_v36  ;;  %v2839_v44 = vpop.f32.mrf.mxu2  ;;  %v2455_v24 = vadd.f32 %v2454_v42, %v12051_v8 }
 0x3bd   : > { %v2840_v60 = vadd.f32 %v2839_v44, %v2643_v61  ;;  %2533 = vmatmul.f32.gmra.mxu0 %v12048_v45  ;;  %2737 = vmatmul.f32.gmra.mxu1 %v12049_v40  ;;  %v12052_v44 = vld [vmem:[#allocation280_spill] sm:$0xff]  ;;  %v12053_v45 = vld [vmem:[#allocation277_spill] sm:$0xff]  ;;  %v12054_v40 = vld [vmem:[#allocation278_spill] sm:$0xff] }
 0x3be   : > { %3055 = vmatmul.f32.gmra.mxu3 %v12050_v62 }
 0x3bf   : > { %v2989_v52 = vadd.f32 %v2988_v18, %v2840_v60  ;;  %2906 = vmatmul.f32.gmra.mxu2 %v12050_v62 }
 0x3c1   : > { %v5565_v11 = vmax.f32 %v2981_v10, %v2989_v52  ;;  %v2992_v33 = vpop.f32.mrf.mxu3  ;;  %v12055_v10 = vld [vmem:[#allocation97_spill] sm:$0xff] }
 0x3c2   : > { %v2459_v54 = vpop.f32.mrf.mxu0  ;;  %v2648_v39 = vpop.f32.mrf.mxu1 }
 0x3c3   : > { %v5566_v34 = vmax.f32 %v5564_v7, %v5565_v11  ;;  %v2649_v6 = vadd.f32 %v2648_v39, %v2455_v24  ;;  %v2843_v36 = vpop.f32.mrf.mxu2  ;;  %v2460_v52 = vadd.f32 %v2459_v54, %v12055_v10  ;;  %v12059_v54 = vld [vmem:[#allocation109_spill] sm:$0xff] }
 0x3c5   : > { %v5567_v58 = vrot.slane %v5566_v34, 4  ;;  %v2844_v61 = vadd.f32 %v2843_v36, %v2649_v6  ;;  %2538 = vmatmul.f32.gmra.mxu0 %v12052_v44  ;;  %2743 = vmatmul.f32.gmra.mxu1 %v12053_v45  ;;  %v12056_v44 = vld [vmem:[#allocation286_spill] sm:$0xff]  ;;  %v12057_v45 = vld [vmem:[#allocation283_spill] sm:$0xff] }
 0x3c6   : > { %3059 = vmatmul.f32.gmra.mxu3 %v12054_v40 }
 0x3c7   : > { %v5568_v18 = vmax.f32 %v5566_v34, %v5567_v58  ;;  %v2993_v60 = vadd.f32 %v2992_v33, %v2844_v61  ;;  %2910 = vmatmul.f32.gmra.mxu2 %v12054_v40  ;;  %v12169_v40 = vld [vmem:[#allocation120_spill] sm:$0xff] }
 0x3c9   : > { %v5569_v42 = vrot.slane %v5568_v18, 2  ;;  %v2996_v8 = vpop.f32.mrf.mxu3 }
 0x3ca   : > { %v2464_v62 = vpop.f32.mrf.mxu0  ;;  %v2654_v11 = vpop.f32.mrf.mxu1 }
 0x3cb   : > { %v5570_v7 = vmax.f32 %v5568_v18, %v5569_v42  ;;  %v2655_v24 = vadd.f32 %v2654_v11, %v2460_v52  ;;  %v2847_v39 = vpop.f32.mrf.mxu2  ;;  %v2465_v58 = vadd.f32 %v2464_v62, %v12059_v54 }
 0x3cd   : > { %v5571_v6 = vrot.slane %v5570_v7, 1  ;;  %v2848_v36 = vadd.f32 %v2847_v39, %v2655_v24  ;;  %2543 = vmatmul.f32.gmra.mxu0 %v12056_v44  ;;  %2749 = vmatmul.f32.gmra.mxu1 %v12057_v45  ;;  %v12060_v39 = vld [vmem:[#allocation291_spill] sm:$0xff]  ;;  %v12061_v45 = vld [vmem:[#allocation288_spill] sm:$0xff]  ;;  %v12062_v44 = vld [vmem:[#allocation289_spill] sm:$0xff] }
 0x3ce   : > { %3063 = vmatmul.f32.gmra.mxu3 %v12058_v21 }
 0x3cf   : > { %v5572_v33 = vmax.f32 %v5570_v7, %v5571_v6  ;;  %v2997_v34 = vadd.f32 %v2996_v8, %v2848_v36  ;;  %2914 = vmatmul.f32.gmra.mxu2 %v12058_v21 }
 0x3d1   : > { %v3000_v61 = vpop.f32.mrf.mxu3  ;;  %v9618_v18 = vsel %vm5699_vm6, %v5697_v13, %v5572_v33 }
 0x3d2   : > { %v2469_v42 = vpop.f32.mrf.mxu0  ;;  %v2660_v10 = vpop.f32.mrf.mxu1 }
 0x3d3   : > { %v2661_v52 = vadd.f32 %v2660_v10, %v2465_v58  ;;  %v2851_v11 = vpop.f32.mrf.mxu2  ;;  %v2470_v62 = vadd.f32 %v2469_v42, %v9377_v14  ;;  %v12063_v10 = vld [vmem:[#allocation292_spill] sm:$0xff]  ;;  %v12067_v14 = vand.u32 4294901760, %v9329_v23 }
 0x3d5   : > { %v2852_v24 = vadd.f32 %v2851_v11, %v2661_v52  ;;  %2548 = vmatmul.f32.gmra.mxu0 %v12060_v39  ;;  %2755 = vmatmul.f32.gmra.mxu1 %v12061_v45  ;;  %v12064_v52 = vld [vmem:[#allocation10_spill] sm:$0xff]  ;;  %v12065_v11 = vld [vmem:[#allocation7_spill] sm:$0xff] }
 0x3d6   : > { %3067 = vmatmul.f32.gmra.mxu3 %v12062_v44  ;;  %v12111_v45 = vld [vmem:[#allocation54_spill] sm:$0xff] }
 0x3d7   : > { %v3001_v8 = vadd.f32 %v3000_v61, %v2852_v24  ;;  %2918 = vmatmul.f32.gmra.mxu2 %v12062_v44  ;;  %v12066_v24 = vld [vmem:[#allocation6_spill] sm:$0xff]  ;;  %v12165_v44 = vld [vmem:[#allocation116_spill] sm:$0xff] }
 0x3d9   : > { %v5586_v7 = vmax.f32 %v2993_v60, %v3001_v8  ;;  %v3004_v6 = vpop.f32.mrf.mxu3 }
 0x3da   : > { %v2474_v13 = vpop.f32.mrf.mxu0  ;;  %v2666_v36 = vpop.f32.mrf.mxu1 }
 0x3db   : > { %v2667_v33 = vadd.f32 %v2666_v36, %v2470_v62  ;;  %v2855_v54 = vpop.f32.mrf.mxu2  ;;  %v2475_v60 = vadd.f32 %v2474_v13, %v9399_v49  ;;  %v12068_v62 = vand.u32 4294901760, %v9337_v48  ;;  %v12070_v13 = vld [vmem:[#allocation14_spill] sm:$0xff] }
 0x3dd   : > { %v2856_v58 = vadd.f32 %v2855_v54, %v2667_v33  ;;  %2761 = vmatmul.f32.gmra.mxu1 %v12063_v10  ;;  %3108 = vmatmul.f32.vlgmr.msrb.gmra.mxu0 %v12064_v52  ;;  %v12072_v52 = vand.u32 4294901760, %v9354_v53 }
 0x3de   : > { %3829 = vmatmul.f32.vlgmr.msrb.gmra.mxu3 %v12065_v11  ;;  %4829 = vmatpush.msrb.mxu0 %v9329_v23  ;;  %v12069_v23 = vand.u32 4294901760, %v9348_v31 }
 0x3df   : > { %5383 = vmatpush.msrb.mxu3 %v9314_v37  ;;  %v3005_v61 = vadd.f32 %v3004_v6, %v2856_v58  ;;  %3635 = vmatmul.f32.vlgmr.msrb.gmra.mxu2 %v12066_v24  ;;  %v12074_v24 = vld [vmem:[#allocation11_spill] sm:$0xff] }
 0x3e0   : > { %4832 = vmatpush.msrb.mxu0 %v9337_v48  ;;  %5228 = vmatpush.msrb.mxu2 %v12067_v14  ;;  %v12071_v48 = vld [vmem:[#allocation5_spill] sm:$0xff] }
 0x3e1   : > { %v5587_v42 = vmax.f32 %v2997_v34, %v3005_v61  ;;  %5385 = vmatpush.msrb.mxu3 %v9320_v51  ;;  %v3008_v8 = vpop.f32.mrf.mxu3  ;;  %v12073_v61 = vld [vmem:[#allocation9_spill] sm:$0xff] }
 0x3e2   : > { %4835 = vmatpush.msrb.mxu0 %v9348_v31  ;;  %5232 = vmatpush.msrb.mxu2 %v12068_v62  ;;  %v2479_v36 = vpop.f32.mrf.mxu0  ;;  %v2672_v6 = vpop.f32.mrf.mxu1 }
 0x3e3   : > { %v5588_v33 = vmax.f32 %v5586_v7, %v5587_v42  ;;  %5387 = vmatpush.msrb.mxu3 %v9332_v2  ;;  %v2673_v54 = vadd.f32 %v2672_v6, %v2475_v60  ;;  %v2859_v58 = vpop.f32.mrf.mxu2  ;;  %v2480_v14 = vadd.f32 %v2479_v36, %v9416_v47 }
 0x3e4   : > { %4838 = vmatpush.msrb.mxu0 %v9354_v53  ;;  %5236 = vmatpush.msrb.mxu2 %v12069_v23  ;;  %v12078_v23 = vld [vmem:[#allocation15_spill] sm:$0xff] }
 0x3e5   : > { %v5589_v49 = vrot.slane %v5588_v33, 4  ;;  %5389 = vmatpush.msrb.mxu3 %v9340_v56  ;;  %v2860_v34 = vadd.f32 %v2859_v58, %v2673_v54  ;;  %3116 = vmatmul.f32.gmra.mxu0 %v12070_v13  ;;  %v12076_v58 = vld [vmem:[#allocation8_spill] sm:$0xff] }
 0x3e6   : > { %3457 = vmatmul.f32.vlgmr.msrb.gmra.mxu1 %v12071_v48  ;;  %5240 = vmatpush.msrb.mxu2 %v12072_v52 }
 0x3e7   : > { %v5590_v7 = vmax.f32 %v5588_v33, %v5589_v49  ;;  %5013 = vmatpush.msrb.mxu1 %v9314_v37  ;;  %v3009_v11 = vadd.f32 %v3008_v8, %v2860_v34  ;;  %3640 = vmatmul.f32.gmra.mxu2 %v12073_v61  ;;  %v12075_v8 = vld [vmem:[#allocation18_spill] sm:$0xff] }
 0x3e8   : > { %3835 = vmatmul.f32.gmra.mxu3 %v12074_v24  ;;  %v12079_v24 = vld [vmem:[#allocation22_spill] sm:$0xff] }
 0x3e9   : > { %v5591_v31 = vrot.slane %v5590_v7, 2  ;;  %5015 = vmatpush.msrb.mxu1 %v9320_v51  ;;  %v3012_v60 = vpop.f32.mrf.mxu3  ;;  %v12077_v51 = vld [vmem:[#allocation13_spill] sm:$0xff] }
 0x3ea   : > { %v2484_v42 = vpop.f32.mrf.mxu0  ;;  %v2678_v62 = vpop.f32.mrf.mxu1 }
 0x3eb   : > { %v5592_v6 = vmax.f32 %v5590_v7, %v5591_v31  ;;  %5017 = vmatpush.msrb.mxu1 %v9332_v2  ;;  %v2679_v53 = vadd.f32 %v2678_v62, %v2480_v14  ;;  %v2863_v33 = vpop.f32.mrf.mxu2  ;;  %v2485_v49 = vadd.f32 %v2484_v42, %v9434_v29  ;;  %v12080_v31 = vld [vmem:[#allocation12_spill] sm:$0xff]  ;;  %v7204_v62 = vmov 0   ;;  %v12082_v29 = vld [vmem:[#allocation19_spill] sm:$0xff] }
 0x3ec   : > { %7126 = vset.pattern.permute.xlu2 %v7204_v62  ;;  %7127 = vset.pattern.permute.xlu0 %v7204_v62 }
 0x3ed   : > { %v5593_v54 = vrot.slane %v5592_v6, 1  ;;  %5019 = vmatpush.msrb.mxu1 %v9340_v56  ;;  %v2864_v37 = vadd.f32 %v2863_v33, %v2679_v53  ;;  %3124 = vmatmul.f32.gmra.mxu0 %v12075_v8 }
 0x3ee   : > { %3461 = vmatmul.f32.gmra.mxu1 %v12076_v58 }
 0x3ef   : > { %v5594_v47 = vmax.f32 %v5592_v6, %v5593_v54  ;;  %v3013_v36 = vadd.f32 %v3012_v60, %v2864_v37  ;;  %3645 = vmatmul.f32.gmra.mxu2 %v12077_v51  ;;  %v12081_v60 = vld [vmem:[#allocation17_spill] sm:$0xff]  ;;  %v12083_v51 = vld [vmem:[#allocation26_spill] sm:$0xff] }
 0x3f0   : > { %3841 = vmatmul.f32.gmra.mxu3 %v12078_v23  ;;  %v12084_v23 = vld [vmem:[#allocation16_spill] sm:$0xff] }
 0x3f1   : > { %v3016_v2 = vpop.f32.mrf.mxu3  ;;  %v9662_v34 = vsel %vm5702_vm7, %v9618_v18, %v5594_v47  ;;  %v5717_v18 = vld [vmem:[%s11113_s2] sm:$0xff] }
 0x3f2   : > { %v2489_v56 = vpop.f32.mrf.mxu0  ;;  %v2684_v13 = vpop.f32.mrf.mxu1  ;;  %5720 = vperm.xlu2 %7126, %v5717_v18   ;;  %v12088_v18 = vld [vmem:[#allocation20_spill] sm:$0xff] }
 0x3f3   : > { %v2685_v52 = vadd.f32 %v2684_v13, %v2485_v49  ;;  %v2867_v7 = vpop.f32.mrf.mxu2  ;;  %v2490_v42 = vadd.f32 %v2489_v56, %v9451_v20  ;;  %v12086_v13 = vld [vmem:[#allocation23_spill] sm:$0xff] }
 0x3f5   : > { %v2868_v61 = vadd.f32 %v2867_v7, %v2685_v52  ;;  %3132 = vmatmul.f32.gmra.mxu0 %v12079_v24 }
 0x3f6   : > { %3465 = vmatmul.f32.gmra.mxu1 %v12080_v31 }
 0x3f7   : > { %v3017_v14 = vadd.f32 %v3016_v2, %v2868_v61  ;;  %3650 = vmatmul.f32.gmra.mxu2 %v12081_v60  ;;  %v12085_v2 = vld [vmem:[#allocation21_spill] sm:$0xff] }
 0x3f8   : > { %3847 = vmatmul.f32.gmra.mxu3 %v12082_v29  ;;  %v12087_v29 = vld [vmem:[#allocation30_spill] sm:$0xff] }
 0x3f9   : > { %v5608_v6 = vmax.f32 %v3009_v11, %v3017_v14  ;;  %v3020_v53 = vpop.f32.mrf.mxu3 }
 0x3fa   : > { %v2494_v33 = vpop.f32.mrf.mxu0  ;;  %v2690_v54 = vpop.f32.mrf.mxu1 }
 0x3fb   : > { %v2691_v37 = vadd.f32 %v2690_v54, %v2490_v42  ;;  %v2871_v8 = vpop.f32.mrf.mxu2  ;;  %v2495_v52 = vadd.f32 %v2494_v33, %v9463_v0  ;;  %v12089_v54 = vld [vmem:[#allocation25_spill] sm:$0xff] }
 0x3fd   : > { %v2872_v47 = vadd.f32 %v2871_v8, %v2691_v37  ;;  %3140 = vmatmul.f32.gmra.mxu0 %v12083_v51  ;;  %v12090_v37 = vld [vmem:[#allocation27_spill] sm:$0xff] }
 0x3fe   : > { %3469 = vmatmul.f32.gmra.mxu1 %v12084_v23 }
 0x3ff   : > { %v3021_v49 = vadd.f32 %v3020_v53, %v2872_v47  ;;  %3655 = vmatmul.f32.gmra.mxu2 %v12085_v2 }
 0x400   : > { %3853 = vmatmul.f32.gmra.mxu3 %v12086_v13 }
 0x401   : > { %v5609_v20 = vmax.f32 %v3013_v36, %v3021_v49  ;;  %v3024_v11 = vpop.f32.mrf.mxu3 }
 0x402   : > { %v2499_v56 = vpop.f32.mrf.mxu0  ;;  %v2696_v7 = vpop.f32.mrf.mxu1 }
 0x403   : > { %v5610_v61 = vmax.f32 %v5608_v6, %v5609_v20  ;;  %v2697_v24 = vadd.f32 %v2696_v7, %v2495_v52  ;;  %v2875_v14 = vpop.f32.mrf.mxu2  ;;  %v2500_v36 = vadd.f32 %v2499_v56, %v9471_v28  ;;  %v12091_v20 = vld [vmem:[#allocation34_spill] sm:$0xff]  ;;  %v12094_v28 = vld [vmem:[#allocation31_spill] sm:$0xff] }
 0x405   : > { %v5611_v60 = vrot.slane %v5610_v61, 4  ;;  %v2876_v62 = vadd.f32 %v2875_v14, %v2697_v24  ;;  %3148 = vmatmul.f32.gmra.mxu0 %v12087_v29  ;;  %v12093_v24 = vld [vmem:[#allocation29_spill] sm:$0xff] }
 0x406   : > { %3473 = vmatmul.f32.gmra.mxu1 %v12088_v18 }
 0x407   : > { %v5612_v42 = vmax.f32 %v5610_v61, %v5611_v60  ;;  %v3025_v53 = vadd.f32 %v3024_v11, %v2876_v62  ;;  %3660 = vmatmul.f32.gmra.mxu2 %v12089_v54  ;;  %v12092_v11 = vld [vmem:[#allocation24_spill] sm:$0xff]  ;;  %v12095_v54 = vld [vmem:[#allocation38_spill] sm:$0xff] }
 0x408   : > { %3859 = vmatmul.f32.gmra.mxu3 %v12090_v37  ;;  %v12096_v37 = vld [vmem:[#allocation28_spill] sm:$0xff] }
 0x409   : > { %v5613_v0 = vrot.slane %v5612_v42, 2  ;;  %v3028_v33 = vpop.f32.mrf.mxu3 }
 0x40a   : > { %v2504_v8 = vpop.f32.mrf.mxu0  ;;  %v2702_v6 = vpop.f32.mrf.mxu1 }
 0x40b   : > { %v5614_v47 = vmax.f32 %v5612_v42, %v5613_v0  ;;  %v2505_v51 = vadd.f32 %v2504_v8, %v9478_v43  ;;  %v2703_v49 = vadd.f32 %v2702_v6, %v2500_v36  ;;  %v2879_v2 = vpop.f32.mrf.mxu2  ;;  %v12097_v36 = vld [vmem:[#allocation33_spill] sm:$0xff] }
 0x40d   : > { %v5615_v13 = vrot.slane %v5614_v47, 1  ;;  %v2880_v52 = vadd.f32 %v2879_v2, %v2703_v49  ;;  %3156 = vmatmul.f32.gmra.mxu0 %v12091_v20  ;;  %v12100_v20 = vld [vmem:[#allocation32_spill] sm:$0xff] }
 0x40e   : > { %3477 = vmatmul.f32.gmra.mxu1 %v12092_v11 }
 0x40f   : > { %v5616_v7 = vmax.f32 %v5614_v47, %v5615_v13  ;;  %v3029_v61 = vadd.f32 %v3028_v33, %v2880_v52  ;;  %3665 = vmatmul.f32.gmra.mxu2 %v12093_v24  ;;  %v12098_v33 = vld [vmem:[#allocation35_spill] sm:$0xff]  ;;  %v12099_v52 = vld [vmem:[#allocation42_spill] sm:$0xff]  ;;  %v12101_v24 = vld [vmem:[#allocation37_spill] sm:$0xff] }
 0x410   : > { %3865 = vmatmul.f32.gmra.mxu3 %v12094_v28  ;;  %v12102_v28 = vld [vmem:[#allocation39_spill] sm:$0xff] }
 0x411   : > { %v3032_v56 = vpop.f32.mrf.mxu3  ;;  %v5706_v14 = vsel %vm5705_vm8, %v9662_v34, %v5616_v7 }
 0x412   : > { %v2509_v43 = vpop.f32.mrf.mxu0  ;;  %v2708_v60 = vpop.f32.mrf.mxu1 }
 0x413   : > { %v2709_v62 = vadd.f32 %v2708_v60, %v2505_v51  ;;  %v2883_v29 = vpop.f32.mrf.mxu2  ;;  %v2510_v8 = vadd.f32 %v2509_v43, %v9485_v12 }
 0x415   : > { %v2884_v42 = vadd.f32 %v2883_v29, %v2709_v62  ;;  %3164 = vmatmul.f32.gmra.mxu0 %v12095_v54  ;;  %v12104_v54 = vld [vmem:[#allocation36_spill] sm:$0xff] }
 0x416   : > { %3481 = vmatmul.f32.gmra.mxu1 %v12096_v37 }
 0x417   : > { %v3033_v0 = vadd.f32 %v3032_v56, %v2884_v42  ;;  %3670 = vmatmul.f32.gmra.mxu2 %v12097_v36  ;;  %v12103_v42 = vld [vmem:[#allocation46_spill] sm:$0xff]  ;;  %v12105_v36 = vld [vmem:[#allocation41_spill] sm:$0xff] }
 0x418   : > { %3871 = vmatmul.f32.gmra.mxu3 %v12098_v33  ;;  %v12106_v33 = vld [vmem:[#allocation43_spill] sm:$0xff] }
 0x419   : > { %v5630_v6 = vmax.f32 %v3025_v53, %v3033_v0  ;;  %v3036_v47 = vpop.f32.mrf.mxu3 }
 0x41a   : > { %v2514_v49 = vpop.f32.mrf.mxu0  ;;  %v2714_v34 = vpop.f32.mrf.mxu1 }
 0x41b   : > { %v2715_v2 = vadd.f32 %v2714_v34, %v2510_v8  ;;  %v2887_v13 = vpop.f32.mrf.mxu2 }
 0x41d   : > { %v2888_v51 = vadd.f32 %v2887_v13, %v2715_v2  ;;  %3172 = vmatmul.f32.gmra.mxu0 %v12099_v52  ;;  %v12107_v52 = vld [vmem:[#allocation50_spill] sm:$0xff] }
 0x41e   : > { %3485 = vmatmul.f32.gmra.mxu1 %v12100_v20 }
 0x41f   : > { %v3037_v7 = vadd.f32 %v3036_v47, %v2888_v51  ;;  %3675 = vmatmul.f32.gmra.mxu2 %v12101_v24  ;;  %v2515_v51 = vadd.f32 %v2514_v49, %v9492_v19 }
 0x420   : > { %3877 = vmatmul.f32.gmra.mxu3 %v12102_v28  ;;  %v12109_v28 = vld [vmem:[#allocation45_spill] sm:$0xff] }
 0x421   : > { %v5631_v56 = vmax.f32 %v3029_v61, %v3037_v7  ;;  %v3040_v60 = vpop.f32.mrf.mxu3  ;;  %v12108_v7 = vld [vmem:[#allocation40_spill] sm:$0xff] }
 0x422   : > { %v2519_v62 = vpop.f32.mrf.mxu0  ;;  %v2720_v12 = vpop.f32.mrf.mxu1 }
 0x423   : > { %v5632_v53 = vmax.f32 %v5630_v6, %v5631_v56  ;;  %v2891_v43 = vpop.f32.mrf.mxu2  ;;  %v2721_v24 = vadd.f32 %v2720_v12, %v2515_v51  ;;  %v12112_v12 = vld [vmem:[#allocation44_spill] sm:$0xff] }
 0x425   : > { %v5633_v29 = vrot.slane %v5632_v53, 4  ;;  %3180 = vmatmul.f32.gmra.mxu0 %v12103_v42  ;;  %v2892_v19 = vadd.f32 %v2891_v43, %v2721_v24 }
 0x426   : > { %3489 = vmatmul.f32.gmra.mxu1 %v12104_v54 }
 0x427   : > { %v5634_v0 = vmax.f32 %v5632_v53, %v5633_v29  ;;  %3680 = vmatmul.f32.gmra.mxu2 %v12105_v36  ;;  %v12110_v53 = vld [vmem:[#allocation47_spill] sm:$0xff] }
 0x428   : > { %3883 = vmatmul.f32.gmra.mxu3 %v12106_v33 }
 0x429   : > { %v5635_v8 = vrot.slane %v5634_v0, 2  ;;  %v3044_v47 = vpop.f32.mrf.mxu3 }
 0x42a   : > { %v2524_v34 = vpop.f32.mrf.mxu0  ;;  %v2726_v2 = vpop.f32.mrf.mxu1 }
 0x42b   : > { %v5636_v61 = vmax.f32 %v5634_v0, %v5635_v8  ;;  %v2895_v13 = vpop.f32.mrf.mxu2  ;;  %v2525_v29 = vadd.f32 %v2524_v34, %v9506_v41  ;;  %v12114_v41 = vld [vmem:[#allocation51_spill] sm:$0xff] }
 0x42d   : > { %v5637_v6 = vrot.slane %v5636_v61, 1  ;;  %3188 = vmatmul.f32.gmra.mxu0 %v12107_v52  ;;  %v2520_v52 = vadd.f32 %v2519_v62, %v9499_v50 }
 0x42e   : > { %3493 = vmatmul.f32.gmra.mxu1 %v12108_v7 }
 0x42f   : > { %3685 = vmatmul.f32.gmra.mxu2 %v12109_v28  ;;  %v5638_v56 = vmax.f32 %v5636_v61, %v5637_v6  ;;  %v3041_v61 = vadd.f32 %v3040_v60, %v2892_v19  ;;  %v2727_v51 = vadd.f32 %v2726_v2, %v2520_v52  ;;  %v12113_v28 = vld [vmem:[#allocation49_spill] sm:$0xff] }
 0x430   : > { %3889 = vmatmul.f32.gmra.mxu3 %v12110_v53  ;;  %v12117_v2 = vld [vmem:[#allocation53_spill] sm:$0xff] }
 0x431   : > { %v3048_v42 = vpop.f32.mrf.mxu3  ;;  %v5709_v0 = vsel %vm5708_vm9, %v5706_v14, %v5638_v56  ;;  %v2896_v53 = vadd.f32 %v2895_v13, %v2727_v51  ;;  %v12120_v51 = vld [vmem:[#allocation52_spill] sm:$0xff] }
 0x432   : > { %v2529_v36 = vpop.f32.mrf.mxu0  ;;  %v2732_v33 = vpop.f32.mrf.mxu1 }
 0x433   : > { %v2733_v49 = vadd.f32 %v2732_v33, %v2525_v29  ;;  %v2899_v8 = vpop.f32.mrf.mxu2  ;;  %v2530_v14 = vadd.f32 %v2529_v36, %v9513_v15  ;;  %v12116_v33 = vld [vmem:[#allocation48_spill] sm:$0xff]  ;;  %v3045_v60 = vadd.f32 %v3044_v47, %v2896_v53  ;;  %v12122_v47 = vld [vmem:[#allocation59_spill] sm:$0xff] }
 0x435   : > { %v2900_v10 = vadd.f32 %v2899_v8, %v2733_v49  ;;  %3196 = vmatmul.f32.gmra.mxu0 %v12111_v45  ;;  %v12115_v45 = vld [vmem:[#allocation58_spill] sm:$0xff] }
 0x436   : > { %3497 = vmatmul.f32.gmra.mxu1 %v12112_v12 }
 0x437   : > { %v3049_v6 = vadd.f32 %v3048_v42, %v2900_v10  ;;  %3690 = vmatmul.f32.gmra.mxu2 %v12113_v28  ;;  %v12118_v42 = vld [vmem:[#allocation55_spill] sm:$0xff]  ;;  %v12121_v28 = vld [vmem:[#allocation57_spill] sm:$0xff] }
 0x438   : > { %3895 = vmatmul.f32.gmra.mxu3 %v12114_v41 }
 0x439   : > { %v5652_v34 = vmax.f32 %v3041_v61, %v3049_v6  ;;  %v3052_v43 = vpop.f32.mrf.mxu3  ;;  %v12119_v61 = vld [vmem:[#allocation62_spill] sm:$0xff] }
 0x43a   : > { %v2534_v24 = vpop.f32.mrf.mxu0  ;;  %v2738_v56 = vpop.f32.mrf.mxu1 }
 0x43b   : > { %v2739_v50 = vadd.f32 %v2738_v56, %v2530_v14  ;;  %v2903_v62 = vpop.f32.mrf.mxu2 }
 0x43d   : > { %v2904_v29 = vadd.f32 %v2903_v62, %v2739_v50  ;;  %3204 = vmatmul.f32.gmra.mxu0 %v12115_v45  ;;  %v2535_v62 = vadd.f32 %v2534_v24, %v9520_v63  ;;  %v12124_v45 = vld [vmem:[#allocation56_spill] sm:$0xff] }
 0x43e   : > { %3501 = vmatmul.f32.gmra.mxu1 %v12116_v33 }
 0x43f   : > { %v3053_v10 = vadd.f32 %v3052_v43, %v2904_v29  ;;  %3695 = vmatmul.f32.gmra.mxu2 %v12117_v2 }
 0x440   : > { %3901 = vmatmul.f32.gmra.mxu3 %v12118_v42  ;;  %v12126_v42 = vld [vmem:[#allocation63_spill] sm:$0xff] }
 0x441   : > { %v5653_v19 = vmax.f32 %v3045_v60, %v3053_v10  ;;  %v3056_v15 = vpop.f32.mrf.mxu3  ;;  %v12125_v10 = vld [vmem:[#allocation61_spill] sm:$0xff] }
 0x442   : > { %v2539_v36 = vpop.f32.mrf.mxu0  ;;  %v2744_v49 = vpop.f32.mrf.mxu1 }
 0x443   : > { %v5654_v8 = vmax.f32 %v5652_v34, %v5653_v19  ;;  %v2907_v52 = vpop.f32.mrf.mxu2  ;;  %v12123_v34 = vld [vmem:[#allocation66_spill] sm:$0xff]  ;;  %v2745_v60 = vadd.f32 %v2744_v49, %v2535_v62  ;;  %v12128_v62 = vld [vmem:[#allocation60_spill] sm:$0xff] }
 0x444   : > { %v12127_v49 = vld [vmem:[#allocation70_spill] sm:$0xff] }
 0x445   : > { %v5655_v13 = vrot.slane %v5654_v8, 4  ;;  %3212 = vmatmul.f32.gmra.mxu0 %v12119_v61  ;;  %v2908_v24 = vadd.f32 %v2907_v52, %v2745_v60 }
 0x446   : > { %3505 = vmatmul.f32.gmra.mxu1 %v12120_v51 }
 0x447   : > { %v5656_v6 = vmax.f32 %v5654_v8, %v5655_v13  ;;  %3700 = vmatmul.f32.gmra.mxu2 %v12121_v28 }
 0x448   : > { %3907 = vmatmul.f32.gmra.mxu3 %v12122_v47  ;;  %v2540_v47 = vadd.f32 %v2539_v36, %v9527_v59 }
 0x449   : > { %v5657_v41 = vrot.slane %v5656_v6, 2  ;;  %v3060_v14 = vpop.f32.mrf.mxu3 }
 0x44a   : > { %v2544_v43 = vpop.f32.mrf.mxu0  ;;  %v2750_v56 = vpop.f32.mrf.mxu1 }
 0x44b   : > { %v5658_v53 = vmax.f32 %v5656_v6, %v5657_v41  ;;  %v2911_v50 = vpop.f32.mrf.mxu2  ;;  %v2545_v19 = vadd.f32 %v2544_v43, %v9534_v16  ;;  %v12129_v16 = vld [vmem:[#allocation65_spill] sm:$0xff]  ;;  %v12130_v43 = vld [vmem:[#allocation67_spill] sm:$0xff] }
 0x44d   : > { %3220 = vmatmul.f32.gmra.mxu0 %v12123_v34  ;;  %v5659_v29 = vrot.slane %v5658_v53, 1  ;;  %v2751_v34 = vadd.f32 %v2750_v56, %v2540_v47 }
 0x44e   : > { %3509 = vmatmul.f32.gmra.mxu1 %v12124_v45 }
 0x44f   : > { %3705 = vmatmul.f32.gmra.mxu2 %v12125_v10  ;;  %v5660_v2 = vmax.f32 %v5658_v53, %v5659_v29  ;;  %v3057_v53 = vadd.f32 %v3056_v15, %v2908_v24  ;;  %v12134_v24 = vld [vmem:[#allocation71_spill] sm:$0xff] }
 0x450   : > { %3913 = vmatmul.f32.gmra.mxu3 %v12126_v42  ;;  %v2912_v42 = vadd.f32 %v2911_v50, %v2751_v34  ;;  %v12135_v34 = vld [vmem:[#allocation78_spill] sm:$0xff] }
 0x451   : > { %v3064_v8 = vpop.f32.mrf.mxu3  ;;  %v9730_v13 = vsel %vm5711_vm10, %v5709_v0, %v5660_v2 }
 0x452   : > { %v2549_v61 = vpop.f32.mrf.mxu0  ;;  %v2756_v63 = vpop.f32.mrf.mxu1  ;;  %v3061_v15 = vadd.f32 %v3060_v14, %v2912_v42  ;;  %v12137_v14 = vld [vmem:[#allocation73_spill] sm:$0xff] }
 0x453   : > { %v2757_v6 = vadd.f32 %v2756_v63, %v2545_v19  ;;  %v2915_v28 = vpop.f32.mrf.mxu2  ;;  %v2550_v0 = vadd.f32 %v2549_v61, %v9541_v17  ;;  %v12131_v63 = vld [vmem:[#allocation74_spill] sm:$0xff] }
 0x455   : > { %v2916_v41 = vadd.f32 %v2915_v28, %v2757_v6  ;;  %3228 = vmatmul.f32.gmra.mxu0 %v12127_v49  ;;  %v12132_v6 = vld [vmem:[#allocation64_spill] sm:$0xff] }
 0x456   : > { %3513 = vmatmul.f32.gmra.mxu1 %v12128_v62 }
 0x457   : > { %v3065_v29 = vadd.f32 %v3064_v8, %v2916_v41  ;;  %3710 = vmatmul.f32.gmra.mxu2 %v12129_v16  ;;  %v12133_v8 = vld [vmem:[#allocation69_spill] sm:$0xff]  ;;  %v12136_v16 = vld [vmem:[#allocation68_spill] sm:$0xff] }
 0x458   : > { %3919 = vmatmul.f32.gmra.mxu3 %v12130_v43 }
 0x459   : > { %v5674_v10 = vmax.f32 %v3057_v53, %v3065_v29  ;;  %v3068_v52 = vpop.f32.mrf.mxu3 }
 0x45a   : > { %v2762_v60 = vpop.f32.mrf.mxu1  ;;  %v3109_v2 = vpop.f32.mrf.mxu0 }
 0x45b   : > { %v2763_v59 = vadd.f32 %v2762_v60, %v2550_v0  ;;  %v2919_v36 = vpop.f32.mrf.mxu2 }
 0x45d   : > { %v2920_v19 = vadd.f32 %v2919_v36, %v2763_v59  ;;  %3236 = vmatmul.f32.gmra.mxu0 %v12131_v63  ;;  %v12139_v63 = vld [vmem:[#allocation82_spill] sm:$0xff] }
 0x45e   : > { %3517 = vmatmul.f32.gmra.mxu1 %v12132_v6 }
 0x45f   : > { %v3069_v56 = vadd.f32 %v3068_v52, %v2920_v19  ;;  %3715 = vmatmul.f32.gmra.mxu2 %v12133_v8  ;;  %v12138_v52 = vld [vmem:[#allocation75_spill] sm:$0xff]  ;;  %v12140_v8 = vld [vmem:[#allocation72_spill] sm:$0xff] }
 0x460   : > { %3925 = vmatmul.f32.gmra.mxu3 %v12134_v24  ;;  %v9750_v24 = vpop.permute.xlu2 %5720 }
 0x461   : > { %v5675_v28 = vmax.f32 %v3061_v15, %v3069_v56  ;;  %v3830_v61 = vpop.f32.mrf.mxu3  ;;  %12141 = vst [vmem:[#allocation149_spill] sm:$0xff] %v9750_v24 }
 0x462   : > { %v3117_v17 = vpop.f32.mrf.mxu0 }
 0x463   : > { %v5676_v47 = vmax.f32 %v5674_v10, %v5675_v28  ;;  %v3458_v41 = vpop.f32.mrf.mxu1  ;;  %v3636_v49 = vpop.f32.mrf.mxu2 }
 0x464   : > { %v3459_v50 = vadd.f32 %v3458_v41, %v3109_v2  ;;  %v12143_v41 = vld [vmem:[#allocation79_spill] sm:$0xff] }
 0x465   : > { %v5677_v53 = vrot.slane %v5676_v47, 4  ;;  %3244 = vmatmul.f32.gmra.mxu0 %v12135_v34 }
 0x466   : > { %v3637_v29 = vadd.f32 %v3636_v49, %v3459_v50  ;;  %3521 = vmatmul.f32.gmra.mxu1 %v12136_v16 }
 0x467   : > { %v5678_v43 = vmax.f32 %v5676_v47, %v5677_v53  ;;  %3720 = vmatmul.f32.gmra.mxu2 %v12137_v14 }
 0x468   : > { %v9745_v0 = vadd.f32 %v3830_v61, %v3637_v29  ;;  %3931 = vmatmul.f32.gmra.mxu3 %v12138_v52  ;;  %v12142_v61 = vld [vmem:[#allocation77_spill] sm:$0xff]  ;;  %v12145_v52 = vld [vmem:[#allocation87_spill] sm:$0xff] }
 0x469   : > { %v5679_v60 = vrot.slane %v5678_v43, 2 }
 0x46a   : > { %v3125_v42 = vpop.f32.mrf.mxu0 }
 0x46b   : > { %v3462_v59 = vpop.f32.mrf.mxu1  ;;  %v3641_v10 = vpop.f32.mrf.mxu2  ;;  %v5680_v36 = vmax.f32 %v5678_v43, %v5679_v60 }
 0x46c   : > { %v3463_v19 = vadd.f32 %v3462_v59, %v3117_v17  ;;  %v3836_v2 = vpop.f32.mrf.mxu3  ;;  %v12146_v59 = vld [vmem:[#allocation76_spill] sm:$0xff] }
 0x46d   : > { %3252 = vmatmul.f32.gmra.mxu0 %v12139_v63  ;;  %v5681_v15 = vrot.slane %v5680_v36, 1 }
 0x46e   : > { %v3642_v56 = vadd.f32 %v3641_v10, %v3463_v19  ;;  %3525 = vmatmul.f32.gmra.mxu1 %v12140_v8  ;;  %v12148_v10 = vld [vmem:[#allocation83_spill] sm:$0xff] }
 0x46f   : > { %v5682_v28 = vmax.f32 %v5680_v36, %v5681_v15  ;;  %3725 = vmatmul.f32.gmra.mxu2 %v12142_v61  ;;  %v12150_v61 = vld [vmem:[#allocation80_spill] sm:$0xff] }
 0x470   : > { %v9753_v47 = vadd.f32 %v3836_v2, %v3642_v56  ;;  %3937 = vmatmul.f32.gmra.mxu3 %v12143_v41  ;;  %v12149_v56 = vld [vmem:[#allocation92_spill] sm:$0xff] }
 0x471   : > { %v5715_v17 = vsel %vm5714_vm11, %v9730_v13, %v5682_v28 }
 0x472   : > { %v5723_v49 = vadd.f32 %v9750_v24, %v5715_v17  ;;  %v3133_v50 = vpop.f32.mrf.mxu0  ;;  %v12151_v17 = vld [vmem:[#allocation85_spill] sm:$0xff]  ;;  %v12161_v24 = vld [vmem:[#allocation111_spill] sm:$0xff] }
 0x473   : > { %v3466_v53 = vpop.f32.mrf.mxu1  ;;  %v3646_v34 = vpop.f32.mrf.mxu2 }
 0x474   : > { %v9759_v29 = vmax.f32 %v5723_v49, 0.0  ;;  %v3467_v43 = vadd.f32 %v3466_v53, %v3125_v42  ;;  %v3842_v14 = vpop.f32.mrf.mxu3  ;;  %v12147_v42 = vld [vmem:[#allocation81_spill] sm:$0xff]  ;;  %v12152_v49 = vld [vmem:[#allocation88_spill] sm:$0xff] }
 0x475   : > { %3260 = vmatmul.f32.gmra.mxu0 %v12145_v52  ;;  %v12153_v52 = vld [vmem:[#allocation98_spill] sm:$0xff] }
 0x476   : > { %12144 = vst [vmem:[#allocation110_spill] sm:$0xff] %v9759_v29  ;;  %v3647_v60 = vadd.f32 %v3646_v34, %v3467_v43  ;;  %3529 = vmatmul.f32.gmra.mxu1 %v12146_v59  ;;  %5773 = vrot.lane.b32.xlu1 %v9759_v29, %s7205_s21 }
 0x477   : > { %5781 = vrot.lane.b32.xlu2 %v9759_v29, %s7206_s22  ;;  %5789 = vrot.lane.b32.xlu0 %v9759_v29, %s7207_s23 }
 0x478   : > { %v9769_v13 = vadd.f32 %v3842_v14, %v3647_v60  ;;  %3730 = vmatmul.f32.gmra.mxu2 %v12147_v42  ;;  %3943 = vmatmul.f32.gmra.mxu3 %v12148_v10  ;;  %v12154_v42 = vld [vmem:[#allocation84_spill] sm:$0xff] }
 0x47a   : > { %v3141_v36 = vpop.f32.mrf.mxu0 }
 0x47b   : > { %v3470_v19 = vpop.f32.mrf.mxu1  ;;  %v3651_v2 = vpop.f32.mrf.mxu2 }
 0x47c   : > { %v3471_v63 = vadd.f32 %v3470_v19, %v3133_v50  ;;  %v3848_v15 = vpop.f32.mrf.mxu3  ;;  %v12155_v19 = vld [vmem:[#allocation90_spill] sm:$0xff] }
 0x47d   : > { %3268 = vmatmul.f32.gmra.mxu0 %v12149_v56 }
 0x47e   : > { %v3652_v28 = vadd.f32 %v3651_v2, %v3471_v63  ;;  %3533 = vmatmul.f32.gmra.mxu1 %v12150_v61  ;;  %5750 = vrot.lane.b32.xlu1 %v9759_v29, %s7203_s29  ;;  %v12156_v2 = vld [vmem:[#allocation93_spill] sm:$0xff] }
 0x47f   : > { %5757 = vrot.lane.b32.xlu2 %v9759_v29, %s7208_s24  ;;  %5765 = vrot.lane.b32.xlu0 %v9759_v29, %s7209_s25 }
 0x480   : > { %v9781_v41 = vadd.f32 %v3848_v15, %v3652_v28  ;;  %3735 = vmatmul.f32.gmra.mxu2 %v12151_v17  ;;  %3949 = vmatmul.f32.gmra.mxu3 %v12152_v49  ;;  %v12157_v17 = vld [vmem:[#allocation103_spill] sm:$0xff] }
 0x482   : > { %v3149_v50 = vpop.f32.mrf.mxu0 }
 0x483   : > { %v3474_v53 = vpop.f32.mrf.mxu1  ;;  %v3656_v34 = vpop.f32.mrf.mxu2 }
 0x484   : > { %v3475_v43 = vadd.f32 %v3474_v53, %v3141_v36  ;;  %v3854_v14 = vpop.f32.mrf.mxu3  ;;  %v12158_v53 = vld [vmem:[#allocation89_spill] sm:$0xff] }
 0x485   : > { %3276 = vmatmul.f32.gmra.mxu0 %v12153_v52 }
 0x486   : > { %v3657_v60 = vadd.f32 %v3656_v34, %v3475_v43  ;;  %3537 = vmatmul.f32.gmra.mxu1 %v12154_v42  ;;  %v12159_v43 = vld [vmem:[#allocation95_spill] sm:$0xff] }
 0x487   : > { %5736 = vrot.lane.b32.xlu2 %v9759_v29, %s7201_s27  ;;  %5743 = vrot.lane.b32.xlu0 %v9759_v29, %s7200_s26 }
 0x488   : > { %v9791_v10 = vadd.f32 %v3854_v14, %v3657_v60  ;;  %3740 = vmatmul.f32.gmra.mxu2 %v12155_v19  ;;  %3955 = vmatmul.f32.gmra.mxu3 %v12156_v2  ;;  %v12160_v14 = vld [vmem:[#allocation99_spill] sm:$0xff] }
 0x48a   : > { %v3157_v63 = vpop.f32.mrf.mxu0 }
 0x48b   : > { %v3478_v36 = vpop.f32.mrf.mxu1  ;;  %v3661_v15 = vpop.f32.mrf.mxu2 }
 0x48c   : > { %v3479_v56 = vadd.f32 %v3478_v36, %v3149_v50  ;;  %v3860_v28 = vpop.f32.mrf.mxu3  ;;  %v12162_v36 = vld [vmem:[#allocation94_spill] sm:$0xff] }
 0x48d   : > { %3284 = vmatmul.f32.gmra.mxu0 %v12157_v17 }
 0x48e   : > { %v3662_v49 = vadd.f32 %v3661_v15, %v3479_v56  ;;  %3541 = vmatmul.f32.gmra.mxu1 %v12158_v53  ;;  %v12163_v15 = vld [vmem:[#allocation101_spill] sm:$0xff]  ;;  %v12164_v56 = vld [vmem:[#allocation104_spill] sm:$0xff] }
 0x490   : > { %v9797_v34 = vadd.f32 %v3860_v28, %v3662_v49  ;;  %3745 = vmatmul.f32.gmra.mxu2 %v12159_v43  ;;  %3961 = vmatmul.f32.gmra.mxu3 %v12160_v14 }
 0x492   : > { %v3165_v52 = vpop.f32.mrf.mxu0 }
 0x493   : > { %v3482_v60 = vpop.f32.mrf.mxu1  ;;  %v3666_v19 = vpop.f32.mrf.mxu2 }
 0x494   : > { %v3483_v2 = vadd.f32 %v3482_v60, %v3157_v63  ;;  %v3866_v29 = vpop.f32.mrf.mxu3  ;;  %v12166_v60 = vld [vmem:[#allocation100_spill] sm:$0xff] }
 0x495   : > { %3292 = vmatmul.f32.gmra.mxu0 %v12161_v24 }
 0x496   : > { %v3667_v50 = vadd.f32 %v3666_v19, %v3483_v2  ;;  %3545 = vmatmul.f32.gmra.mxu1 %v12162_v36  ;;  %v12167_v19 = vld [vmem:[#allocation107_spill] sm:$0xff] }
 0x498   : > { %v9803_v17 = vadd.f32 %v3866_v29, %v3667_v50  ;;  %3750 = vmatmul.f32.gmra.mxu2 %v12163_v15  ;;  %3967 = vmatmul.f32.gmra.mxu3 %v12164_v56  ;;  %v12168_v29 = vld [vmem:[#allocation112_spill] sm:$0xff] }
 0x49a   : > { %v3173_v28 = vpop.f32.mrf.mxu0 }
 0x49b   : > { %v3486_v49 = vpop.f32.mrf.mxu1  ;;  %v3671_v43 = vpop.f32.mrf.mxu2 }
 0x49c   : > { %v3487_v14 = vadd.f32 %v3486_v49, %v3165_v52  ;;  %v3872_v39 = vpop.f32.mrf.mxu3  ;;  %v12170_v49 = vld [vmem:[#allocation105_spill] sm:$0xff] }
 0x49d   : > { %3300 = vmatmul.f32.gmra.mxu0 %v12165_v44 }
 0x49e   : > { %v3672_v63 = vadd.f32 %v3671_v43, %v3487_v14  ;;  %3549 = vmatmul.f32.gmra.mxu1 %v12166_v60  ;;  %v12172_v43 = vld [vmem:[#allocation114_spill] sm:$0xff] }
 0x4a0   : > { %v9809_v24 = vadd.f32 %v3872_v39, %v3672_v63  ;;  %3755 = vmatmul.f32.gmra.mxu2 %v12167_v19  ;;  %3973 = vmatmul.f32.gmra.mxu3 %v12168_v29  ;;  %v12173_v39 = vld [vmem:[#allocation117_spill] sm:$0xff] }
 0x4a2   : > { %v3181_v2 = vpop.f32.mrf.mxu0 }
 0x4a3   : > { %v3490_v50 = vpop.f32.mrf.mxu1  ;;  %v3676_v15 = vpop.f32.mrf.mxu2 }
 0x4a4   : > { %v3491_v56 = vadd.f32 %v3490_v50, %v3173_v28  ;;  %v3878_v21 = vpop.f32.mrf.mxu3  ;;  %v12175_v50 = vld [vmem:[#allocation113_spill] sm:$0xff] }
 0x4a5   : > { %3308 = vmatmul.f32.gmra.mxu0 %v12169_v40 }
 0x4a6   : > { %v3677_v52 = vadd.f32 %v3676_v15, %v3491_v56  ;;  %3553 = vmatmul.f32.gmra.mxu1 %v12170_v49  ;;  %v12177_v15 = vld [vmem:[#allocation119_spill] sm:$0xff]  ;;  %v12179_v49 = vld [vmem:[#allocation128_spill] sm:$0xff] }
 0x4a8   : > { %v9815_v44 = vadd.f32 %v3878_v21, %v3677_v52  ;;  %3760 = vmatmul.f32.gmra.mxu2 %v12172_v43  ;;  %3979 = vmatmul.f32.gmra.mxu3 %v12173_v39  ;;  %v12178_v21 = vld [vmem:[#allocation121_spill] sm:$0xff] }
 0x4aa   : > { %12171 = vst [vmem:[#allocation138_spill] sm:$0xff] %v9815_v44  ;;  %v3189_v14 = vpop.f32.mrf.mxu0 }
 0x4ab   : > { %v3494_v63 = vpop.f32.mrf.mxu1  ;;  %v3681_v19 = vpop.f32.mrf.mxu2 }
 0x4ac   : > { %v3495_v29 = vadd.f32 %v3494_v63, %v3181_v2  ;;  %v3884_v4 = vpop.f32.mrf.mxu3  ;;  %v12180_v63 = vld [vmem:[#allocation118_spill] sm:$0xff] }
 0x4ad   : > { %3316 = vmatmul.f32.gmra.mxu0 %v12174_v25 }
 0x4ae   : > { %v3682_v28 = vadd.f32 %v3681_v19, %v3495_v29  ;;  %3557 = vmatmul.f32.gmra.mxu1 %v12175_v50  ;;  %v12182_v19 = vld [vmem:[#allocation123_spill] sm:$0xff]  ;;  %v12184_v50 = vld [vmem:[#allocation132_spill] sm:$0xff] }
 0x4b0   : > { %v9821_v40 = vadd.f32 %v3884_v4, %v3682_v28  ;;  %3765 = vmatmul.f32.gmra.mxu2 %v12177_v15  ;;  %3985 = vmatmul.f32.gmra.mxu3 %v12178_v21  ;;  %v12183_v4 = vld [vmem:[#allocation125_spill] sm:$0xff] }
 0x4b2   : > { %12176 = vst [vmem:[#allocation159_spill] sm:$0xff] %v9821_v40  ;;  %v3197_v56 = vpop.f32.mrf.mxu0 }
 0x4b3   : > { %v3498_v52 = vpop.f32.mrf.mxu1  ;;  %v3686_v43 = vpop.f32.mrf.mxu2 }
 0x4b4   : > { %v3499_v39 = vadd.f32 %v3498_v52, %v3189_v14  ;;  %v3890_v44 = vpop.f32.mrf.mxu3  ;;  %v12185_v52 = vld [vmem:[#allocation122_spill] sm:$0xff] }
 0x4b5   : > { %3324 = vmatmul.f32.gmra.mxu0 %v12179_v49 }
 0x4b6   : > { %v3687_v2 = vadd.f32 %v3686_v43, %v3499_v39  ;;  %3561 = vmatmul.f32.gmra.mxu1 %v12180_v63  ;;  %v12187_v43 = vld [vmem:[#allocation127_spill] sm:$0xff]  ;;  %v12189_v63 = vld [vmem:[#allocation136_spill] sm:$0xff] }
 0x4b8   : > { %v9827_v25 = vadd.f32 %v3890_v44, %v3687_v2  ;;  %3770 = vmatmul.f32.gmra.mxu2 %v12182_v19  ;;  %3991 = vmatmul.f32.gmra.mxu3 %v12183_v4  ;;  %v12188_v44 = vld [vmem:[#allocation129_spill] sm:$0xff] }
 0x4ba   : > { %12181 = vst [vmem:[#allocation142_spill] sm:$0xff] %v9827_v25  ;;  %v3205_v29 = vpop.f32.mrf.mxu0 }
 0x4bb   : > { %v3502_v28 = vpop.f32.mrf.mxu1  ;;  %v3691_v15 = vpop.f32.mrf.mxu2 }
 0x4bc   : > { %v3503_v21 = vadd.f32 %v3502_v28, %v3197_v56  ;;  %v3896_v40 = vpop.f32.mrf.mxu3  ;;  %v12190_v28 = vld [vmem:[#allocation126_spill] sm:$0xff] }
 0x4bd   : > { %3332 = vmatmul.f32.gmra.mxu0 %v12184_v50 }
 0x4be   : > { %v3692_v14 = vadd.f32 %v3691_v15, %v3503_v21  ;;  %3565 = vmatmul.f32.gmra.mxu1 %v12185_v52  ;;  %v12192_v15 = vld [vmem:[#allocation131_spill] sm:$0xff]  ;;  %v12194_v52 = vld [vmem:[#allocation140_spill] sm:$0xff] }
 0x4c0   : > { %v9833_v49 = vadd.f32 %v3896_v40, %v3692_v14  ;;  %3775 = vmatmul.f32.gmra.mxu2 %v12187_v43  ;;  %3997 = vmatmul.f32.gmra.mxu3 %v12188_v44  ;;  %v12193_v40 = vld [vmem:[#allocation133_spill] sm:$0xff] }
 0x4c2   : > { %12186 = vst [vmem:[#allocation151_spill] sm:$0xff] %v9833_v49  ;;  %v3213_v39 = vpop.f32.mrf.mxu0 }
 0x4c3   : > { %v3506_v2 = vpop.f32.mrf.mxu1  ;;  %v3696_v19 = vpop.f32.mrf.mxu2 }
 0x4c4   : > { %v3507_v4 = vadd.f32 %v3506_v2, %v3205_v29  ;;  %v3902_v25 = vpop.f32.mrf.mxu3  ;;  %v12195_v2 = vld [vmem:[#allocation130_spill] sm:$0xff] }
 0x4c5   : > { %3340 = vmatmul.f32.gmra.mxu0 %v12189_v63 }
 0x4c6   : > { %v3697_v56 = vadd.f32 %v3696_v19, %v3507_v4  ;;  %3569 = vmatmul.f32.gmra.mxu1 %v12190_v28  ;;  %v12197_v19 = vld [vmem:[#allocation135_spill] sm:$0xff]  ;;  %v12199_v28 = vld [vmem:[#allocation145_spill] sm:$0xff] }
 0x4c8   : > { %v9839_v50 = vadd.f32 %v3902_v25, %v3697_v56  ;;  %3780 = vmatmul.f32.gmra.mxu2 %v12192_v15  ;;  %4003 = vmatmul.f32.gmra.mxu3 %v12193_v40  ;;  %v12198_v25 = vld [vmem:[#allocation137_spill] sm:$0xff] }
 0x4ca   : > { %12191 = vst [vmem:[#allocation157_spill] sm:$0xff] %v9839_v50  ;;  %v3221_v21 = vpop.f32.mrf.mxu0 }
 0x4cb   : > { %v3510_v14 = vpop.f32.mrf.mxu1  ;;  %v3701_v43 = vpop.f32.mrf.mxu2 }
 0x4cc   : > { %v3511_v44 = vadd.f32 %v3510_v14, %v3213_v39  ;;  %v3908_v49 = vpop.f32.mrf.mxu3  ;;  %v12200_v14 = vld [vmem:[#allocation134_spill] sm:$0xff] }
 0x4cd   : > { %3348 = vmatmul.f32.gmra.mxu0 %v12194_v52 }
 0x4ce   : > { %v3702_v29 = vadd.f32 %v3701_v43, %v3511_v44  ;;  %3573 = vmatmul.f32.gmra.mxu1 %v12195_v2  ;;  %v12201_v43 = vld [vmem:[#allocation139_spill] sm:$0xff] }
 0x4d0   : > { %v9845_v63 = vadd.f32 %v3908_v49, %v3702_v29  ;;  %3785 = vmatmul.f32.gmra.mxu2 %v12197_v19  ;;  %4009 = vmatmul.f32.gmra.mxu3 %v12198_v25  ;;  %v12202_v49 = vld [vmem:[#allocation141_spill] sm:$0xff] }
 0x4d2   : > { %12196 = vst [vmem:[#allocation161_spill] sm:$0xff] %v9845_v63  ;;  %v3229_v4 = vpop.f32.mrf.mxu0 }
 0x4d3   : > { %v3514_v56 = vpop.f32.mrf.mxu1  ;;  %v3706_v15 = vpop.f32.mrf.mxu2 }
 0x4d4   : > { %v3515_v40 = vadd.f32 %v3514_v56, %v3221_v21  ;;  %v3914_v50 = vpop.f32.mrf.mxu3  ;;  %v12203_v56 = vld [vmem:[#allocation154_spill] sm:$0xff] }
 0x4d5   : > { %3356 = vmatmul.f32.gmra.mxu0 %v12199_v28 }
 0x4d6   : > { %v3707_v39 = vadd.f32 %v3706_v15, %v3515_v40  ;;  %3577 = vmatmul.f32.gmra.mxu1 %v12200_v14 }
 0x4d8   : > { %v9851_v52 = vadd.f32 %v3914_v50, %v3707_v39  ;;  %3790 = vmatmul.f32.gmra.mxu2 %v12201_v43  ;;  %4015 = vmatmul.f32.gmra.mxu3 %v12202_v49 }
 0x4da   : > { %v3237_v44 = vpop.f32.mrf.mxu0 }
 0x4db   : > { %v3518_v29 = vpop.f32.mrf.mxu1  ;;  %v3711_v19 = vpop.f32.mrf.mxu2 }
 0x4dc   : > { %v3519_v25 = vadd.f32 %v3518_v29, %v3229_v4  ;;  %v3920_v63 = vpop.f32.mrf.mxu3  ;;  %v12204_v29 = vld [vmem:[#allocation165_spill] sm:$0xff] }
 0x4dd   : > { %4084 = vmatmul.f32.vlgmr.msra.gmra.mxu0 %v12071_v48 }
 0x4de   : > { %v3712_v21 = vadd.f32 %v3711_v19, %v3519_v25  ;;  %3581 = vmatmul.f32.gmra.mxu1 %v11924_v46 }
 0x4e0   : > { %v9857_v28 = vadd.f32 %v3920_v63, %v3712_v21  ;;  %4398 = vmatmul.f32.vlgmr.msra.gmra.mxu2 %v12203_v56  ;;  %4687 = vmatmul.f32.vlgmr.msra.gmra.mxu3 %v11928_v22 }
 0x4e2   : > { %v3245_v50 = vpop.f32.mrf.mxu0 }
 0x4e3   : > { %v3522_v15 = vpop.f32.mrf.mxu1  ;;  %v3716_v40 = vpop.f32.mrf.mxu2 }
 0x4e4   : > { %v3523_v39 = vadd.f32 %v3522_v15, %v3237_v44  ;;  %v3926_v43 = vpop.f32.mrf.mxu3 }
 0x4e5   : > { %4088 = vmatmul.f32.gmra.mxu0 %v12076_v58 }
 0x4e6   : > { %v3717_v4 = vadd.f32 %v3716_v40, %v3523_v39  ;;  %4245 = vmatmul.f32.vlgmr.msra.gmra.mxu1 %v12071_v48  ;;  %v12205_v40 = vld [vmem:[#allocation174_spill] sm:$0xff] }
 0x4e8   : > { %v9863_v49 = vadd.f32 %v3926_v43, %v3717_v4  ;;  %4406 = vmatmul.f32.gmra.mxu2 %v12204_v29  ;;  %4691 = vmatmul.f32.gmra.mxu3 %v11938_v9 }
 0x4ea   : > { %v3253_v63 = vpop.f32.mrf.mxu0 }
 0x4eb   : > { %v3526_v19 = vpop.f32.mrf.mxu1  ;;  %v3721_v25 = vpop.f32.mrf.mxu2 }
 0x4ec   : > { %v3527_v21 = vadd.f32 %v3526_v19, %v3245_v50  ;;  %v3932_v56 = vpop.f32.mrf.mxu3 }
 0x4ed   : > { %4092 = vmatmul.f32.gmra.mxu0 %v12080_v31 }
 0x4ee   : > { %v3722_v44 = vadd.f32 %v3721_v25, %v3527_v21  ;;  %4249 = vmatmul.f32.gmra.mxu1 %v12076_v58  ;;  %v12206_v25 = vld [vmem:[#allocation177_spill] sm:$0xff] }
 0x4f0   : > { %v9869_v15 = vadd.f32 %v3932_v56, %v3722_v44  ;;  %4414 = vmatmul.f32.gmra.mxu2 %v12205_v40  ;;  %4695 = vmatmul.f32.gmra.mxu3 %v11948_v1 }
 0x4f2   : > { %v3261_v48 = vpop.f32.mrf.mxu0 }
 0x4f3   : > { %v3530_v39 = vpop.f32.mrf.mxu1  ;;  %v3726_v43 = vpop.f32.mrf.mxu2 }
 0x4f4   : > { %v3531_v4 = vadd.f32 %v3530_v39, %v3253_v63  ;;  %v3938_v29 = vpop.f32.mrf.mxu3 }
 0x4f5   : > { %4096 = vmatmul.f32.gmra.mxu0 %v12084_v23 }
 0x4f6   : > { %v3727_v50 = vadd.f32 %v3726_v43, %v3531_v4  ;;  %4253 = vmatmul.f32.gmra.mxu1 %v12080_v31  ;;  %v12207_v43 = vld [vmem:[#allocation181_spill] sm:$0xff] }
 0x4f8   : > { %v9875_v19 = vadd.f32 %v3938_v29, %v3727_v50  ;;  %4422 = vmatmul.f32.gmra.mxu2 %v12206_v25  ;;  %4699 = vmatmul.f32.gmra.mxu3 %v11959_v38 }
 0x4fa   : > { %v3269_v58 = vpop.f32.mrf.mxu0 }
 0x4fb   : > { %v3534_v21 = vpop.f32.mrf.mxu1  ;;  %v3731_v56 = vpop.f32.mrf.mxu2 }
 0x4fc   : > { %v3535_v44 = vadd.f32 %v3534_v21, %v3261_v48  ;;  %v3944_v40 = vpop.f32.mrf.mxu3 }
 0x4fd   : > { %4100 = vmatmul.f32.gmra.mxu0 %v12088_v18 }
 0x4fe   : > { %v3732_v63 = vadd.f32 %v3731_v56, %v3535_v44  ;;  %4257 = vmatmul.f32.gmra.mxu1 %v12084_v23  ;;  %v12208_v56 = vld [vmem:[#allocation185_spill] sm:$0xff] }
 0x500   : > { %v9881_v39 = vadd.f32 %v3944_v40, %v3732_v63  ;;  %4430 = vmatmul.f32.gmra.mxu2 %v12207_v43  ;;  %4703 = vmatmul.f32.gmra.mxu3 %v8600_v27 }
 0x502   : > { %v3277_v31 = vpop.f32.mrf.mxu0 }
 0x503   : > { %v3538_v4 = vpop.f32.mrf.mxu1  ;;  %v3736_v29 = vpop.f32.mrf.mxu2 }
 0x504   : > { %v3539_v50 = vadd.f32 %v3538_v4, %v3269_v58  ;;  %v3950_v25 = vpop.f32.mrf.mxu3 }
 0x505   : > { %4104 = vmatmul.f32.gmra.mxu0 %v12092_v11 }
 0x506   : > { %v3737_v48 = vadd.f32 %v3736_v29, %v3539_v50  ;;  %4261 = vmatmul.f32.gmra.mxu1 %v12088_v18  ;;  %v12209_v29 = vld [vmem:[#allocation189_spill] sm:$0xff] }
 0x508   : > { %v9887_v21 = vadd.f32 %v3950_v25, %v3737_v48  ;;  %4438 = vmatmul.f32.gmra.mxu2 %v12208_v56  ;;  %4707 = vmatmul.f32.gmra.mxu3 %v11970_v55 }
 0x50a   : > { %v3285_v23 = vpop.f32.mrf.mxu0 }
 0x50b   : > { %v3542_v44 = vpop.f32.mrf.mxu1  ;;  %v3741_v40 = vpop.f32.mrf.mxu2 }
 0x50c   : > { %v3543_v63 = vadd.f32 %v3542_v44, %v3277_v31  ;;  %v3956_v43 = vpop.f32.mrf.mxu3 }
 0x50d   : > { %4108 = vmatmul.f32.gmra.mxu0 %v12096_v37 }
 0x50e   : > { %v3742_v58 = vadd.f32 %v3741_v40, %v3543_v63  ;;  %4265 = vmatmul.f32.gmra.mxu1 %v12092_v11  ;;  %v12210_v40 = vld [vmem:[#allocation193_spill] sm:$0xff] }
 0x510   : > { %v9893_v4 = vadd.f32 %v3956_v43, %v3742_v58  ;;  %4446 = vmatmul.f32.gmra.mxu2 %v12209_v29  ;;  %4711 = vmatmul.f32.gmra.mxu3 %v11973_v5 }
 0x512   : > { %v3293_v18 = vpop.f32.mrf.mxu0 }
 0x513   : > { %v3546_v50 = vpop.f32.mrf.mxu1  ;;  %v3746_v25 = vpop.f32.mrf.mxu2 }
 0x514   : > { %v3547_v48 = vadd.f32 %v3546_v50, %v3285_v23  ;;  %v3962_v56 = vpop.f32.mrf.mxu3 }
 0x515   : > { %4112 = vmatmul.f32.gmra.mxu0 %v12100_v20 }
 0x516   : > { %v3747_v31 = vadd.f32 %v3746_v25, %v3547_v48  ;;  %4269 = vmatmul.f32.gmra.mxu1 %v12096_v37  ;;  %v12211_v25 = vld [vmem:[#allocation197_spill] sm:$0xff] }
 0x518   : > { %v9899_v44 = vadd.f32 %v3962_v56, %v3747_v31  ;;  %4454 = vmatmul.f32.gmra.mxu2 %v12210_v40  ;;  %4715 = vmatmul.f32.gmra.mxu3 %v11976_v26 }
 0x51a   : > { %v3301_v11 = vpop.f32.mrf.mxu0 }
 0x51b   : > { %v3550_v63 = vpop.f32.mrf.mxu1  ;;  %v3751_v43 = vpop.f32.mrf.mxu2 }
 0x51c   : > { %v3551_v58 = vadd.f32 %v3550_v63, %v3293_v18  ;;  %v3968_v29 = vpop.f32.mrf.mxu3 }
 0x51d   : > { %4116 = vmatmul.f32.gmra.mxu0 %v12104_v54 }
 0x51e   : > { %v3752_v23 = vadd.f32 %v3751_v43, %v3551_v58  ;;  %4273 = vmatmul.f32.gmra.mxu1 %v12100_v20  ;;  %v12212_v43 = vld [vmem:[#allocation201_spill] sm:$0xff] }
 0x520   : > { %v9905_v50 = vadd.f32 %v3968_v29, %v3752_v23  ;;  %4462 = vmatmul.f32.gmra.mxu2 %v12211_v25  ;;  %4719 = vmatmul.f32.gmra.mxu3 %v11979_v3 }
 0x522   : > { %v3309_v37 = vpop.f32.mrf.mxu0 }
 0x523   : > { %v3554_v48 = vpop.f32.mrf.mxu1  ;;  %v3756_v56 = vpop.f32.mrf.mxu2 }
 0x524   : > { %v3555_v31 = vadd.f32 %v3554_v48, %v3301_v11  ;;  %v3974_v40 = vpop.f32.mrf.mxu3 }
 0x525   : > { %4120 = vmatmul.f32.gmra.mxu0 %v12108_v7 }
 0x526   : > { %v3757_v18 = vadd.f32 %v3756_v56, %v3555_v31  ;;  %4277 = vmatmul.f32.gmra.mxu1 %v12104_v54  ;;  %v12213_v56 = vld [vmem:[#allocation205_spill] sm:$0xff] }
 0x528   : > { %v9911_v63 = vadd.f32 %v3974_v40, %v3757_v18  ;;  %4470 = vmatmul.f32.gmra.mxu2 %v12212_v43  ;;  %4723 = vmatmul.f32.gmra.mxu3 %v11982_v57 }
 0x52a   : > { %v3317_v20 = vpop.f32.mrf.mxu0 }
 0x52b   : > { %v3558_v58 = vpop.f32.mrf.mxu1  ;;  %v3761_v29 = vpop.f32.mrf.mxu2 }
 0x52c   : > { %v3559_v23 = vadd.f32 %v3558_v58, %v3309_v37  ;;  %v3980_v25 = vpop.f32.mrf.mxu3 }
 0x52d   : > { %4124 = vmatmul.f32.gmra.mxu0 %v12112_v12 }
 0x52e   : > { %v3762_v11 = vadd.f32 %v3761_v29, %v3559_v23  ;;  %4281 = vmatmul.f32.gmra.mxu1 %v12108_v7  ;;  %v12214_v29 = vld [vmem:[#allocation209_spill] sm:$0xff] }
 0x530   : > { %v9917_v48 = vadd.f32 %v3980_v25, %v3762_v11  ;;  %4478 = vmatmul.f32.gmra.mxu2 %v12213_v56  ;;  %4727 = vmatmul.f32.gmra.mxu3 %v11985_v30 }
 0x532   : > { %v3325_v54 = vpop.f32.mrf.mxu0 }
 0x533   : > { %v3562_v31 = vpop.f32.mrf.mxu1  ;;  %v3766_v40 = vpop.f32.mrf.mxu2 }
 0x534   : > { %v3563_v18 = vadd.f32 %v3562_v31, %v3317_v20  ;;  %v3986_v43 = vpop.f32.mrf.mxu3 }
 0x535   : > { %4128 = vmatmul.f32.gmra.mxu0 %v12116_v33 }
 0x536   : > { %v3767_v37 = vadd.f32 %v3766_v40, %v3563_v18  ;;  %4285 = vmatmul.f32.gmra.mxu1 %v12112_v12  ;;  %v12215_v40 = vld [vmem:[#allocation213_spill] sm:$0xff] }
 0x538   : > { %v9923_v58 = vadd.f32 %v3986_v43, %v3767_v37  ;;  %4486 = vmatmul.f32.gmra.mxu2 %v12214_v29  ;;  %4731 = vmatmul.f32.gmra.mxu3 %v11988_v32 }
 0x53a   : > { %v3333_v7 = vpop.f32.mrf.mxu0 }
 0x53b   : > { %v3566_v23 = vpop.f32.mrf.mxu1  ;;  %v3771_v25 = vpop.f32.mrf.mxu2 }
 0x53c   : > { %v3567_v11 = vadd.f32 %v3566_v23, %v3325_v54  ;;  %v3992_v56 = vpop.f32.mrf.mxu3 }
 0x53d   : > { %4132 = vmatmul.f32.gmra.mxu0 %v12120_v51 }
 0x53e   : > { %v3772_v20 = vadd.f32 %v3771_v25, %v3567_v11  ;;  %4289 = vmatmul.f32.gmra.mxu1 %v12116_v33  ;;  %v12216_v25 = vld [vmem:[#allocation217_spill] sm:$0xff]  ;;  %v12217_v33 = vld [vmem:[#allocation211_spill] sm:$0xff] }
 0x540   : > { %v9929_v31 = vadd.f32 %v3992_v56, %v3772_v20  ;;  %4494 = vmatmul.f32.gmra.mxu2 %v12215_v40  ;;  %4735 = vmatmul.f32.gmra.mxu3 %v11991_v35 }
 0x542   : > { %v3341_v12 = vpop.f32.mrf.mxu0 }
 0x543   : > { %v3570_v18 = vpop.f32.mrf.mxu1  ;;  %v3776_v43 = vpop.f32.mrf.mxu2 }
 0x544   : > { %v3571_v37 = vadd.f32 %v3570_v18, %v3333_v7  ;;  %v3998_v29 = vpop.f32.mrf.mxu3 }
 0x545   : > { %4136 = vmatmul.f32.gmra.mxu0 %v12124_v45 }
 0x546   : > { %v3777_v54 = vadd.f32 %v3776_v43, %v3571_v37  ;;  %4293 = vmatmul.f32.gmra.mxu1 %v12120_v51  ;;  %v12218_v43 = vld [vmem:[#allocation221_spill] sm:$0xff]  ;;  %v12219_v51 = vld [vmem:[#allocation215_spill] sm:$0xff] }
 0x548   : > { %v9935_v23 = vadd.f32 %v3998_v29, %v3777_v54  ;;  %4502 = vmatmul.f32.gmra.mxu2 %v12216_v25  ;;  %4739 = vmatmul.f32.gmra.mxu3 %v12217_v33 }
 0x54a   : > { %v3349_v11 = vpop.f32.mrf.mxu0 }
 0x54b   : > { %v3574_v56 = vpop.f32.mrf.mxu1  ;;  %v3781_v20 = vpop.f32.mrf.mxu2 }
 0x54c   : > { %v3575_v40 = vadd.f32 %v3574_v56, %v3341_v12  ;;  %v4004_v35 = vpop.f32.mrf.mxu3 }
 0x54d   : > { %4140 = vmatmul.f32.gmra.mxu0 %v12128_v62 }
 0x54e   : > { %v3782_v7 = vadd.f32 %v3781_v20, %v3575_v40  ;;  %4297 = vmatmul.f32.gmra.mxu1 %v12124_v45  ;;  %v12221_v20 = vld [vmem:[#allocation225_spill] sm:$0xff] }
 0x550   : > { %v9941_v18 = vadd.f32 %v4004_v35, %v3782_v7  ;;  %4510 = vmatmul.f32.gmra.mxu2 %v12218_v43  ;;  %4743 = vmatmul.f32.gmra.mxu3 %v12219_v51  ;;  %v12222_v35 = vld [vmem:[#allocation219_spill] sm:$0xff] }
 0x552   : > { %v3357_v37 = vpop.f32.mrf.mxu0 }
 0x553   : > { %v3578_v29 = vpop.f32.mrf.mxu1  ;;  %v3786_v54 = vpop.f32.mrf.mxu2 }
 0x554   : > { %v3579_v25 = vadd.f32 %v3578_v29, %v3349_v11  ;;  %v4010_v33 = vpop.f32.mrf.mxu3 }
 0x555   : > { %4144 = vmatmul.f32.gmra.mxu0 %v12132_v6 }
 0x556   : > { %v3787_v12 = vadd.f32 %v3786_v54, %v3579_v25  ;;  %4301 = vmatmul.f32.gmra.mxu1 %v12128_v62  ;;  %v12223_v54 = vld [vmem:[#allocation229_spill] sm:$0xff]  ;;  %v12224_v62 = vld [vmem:[#allocation223_spill] sm:$0xff] }
 0x558   : > { %v9947_v56 = vadd.f32 %v4010_v33, %v3787_v12  ;;  %4518 = vmatmul.f32.gmra.mxu2 %v12221_v20  ;;  %4747 = vmatmul.f32.gmra.mxu3 %v12222_v35 }
 0x55a   : > { %12220 = vst [vmem:[#allocation148_spill] sm:$0xff] %v9947_v56  ;;  %v4085_v45 = vpop.f32.mrf.mxu0 }
 0x55b   : > { %v3582_v40 = vpop.f32.mrf.mxu1  ;;  %v3791_v7 = vpop.f32.mrf.mxu2  ;;  %v4086_v33 = vadd.f32 %v4085_v45, %v9745_v0 }
 0x55c   : > { %v3583_v43 = vadd.f32 %v3582_v40, %v3357_v37  ;;  %v4016_v51 = vpop.f32.mrf.mxu3 }
 0x55d   : > { %4148 = vmatmul.f32.gmra.mxu0 %v12136_v16 }
 0x55e   : > { %v3792_v11 = vadd.f32 %v3791_v7, %v3583_v43  ;;  %4305 = vmatmul.f32.gmra.mxu1 %v12132_v6  ;;  %v12225_v6 = vld [vmem:[#allocation234_spill] sm:$0xff] }
 0x560   : > { %v9953_v29 = vadd.f32 %v4016_v51, %v3792_v11  ;;  %4526 = vmatmul.f32.gmra.mxu2 %v12223_v54  ;;  %4751 = vmatmul.f32.gmra.mxu3 %v12224_v62  ;;  %v12226_v51 = vld [vmem:[#allocation227_spill] sm:$0xff] }
 0x562   : > { %v4089_v25 = vpop.f32.mrf.mxu0 }
 0x563   : > { %v4246_v12 = vpop.f32.mrf.mxu1  ;;  %v4399_v20 = vpop.f32.mrf.mxu2  ;;  %v4090_v7 = vadd.f32 %v4089_v25, %v9753_v47 }
 0x564   : > { %v4247_v35 = vadd.f32 %v4246_v12, %v4086_v33  ;;  %v4688_v56 = vpop.f32.mrf.mxu3 }
 0x565   : > { %4152 = vmatmul.f32.gmra.mxu0 %v12140_v8 }
 0x566   : > { %v4400_v37 = vadd.f32 %v4399_v20, %v4247_v35  ;;  %4309 = vmatmul.f32.gmra.mxu1 %v12136_v16  ;;  %v12227_v16 = vld [vmem:[#allocation237_spill] sm:$0xff] }
 0x568   : > { %v9960_v40 = vadd.f32 %v4688_v56, %v4400_v37  ;;  %4534 = vmatmul.f32.gmra.mxu2 %v12225_v6  ;;  %4755 = vmatmul.f32.gmra.mxu3 %v12226_v51  ;;  %v12228_v56 = vld [vmem:[#allocation231_spill] sm:$0xff] }
 0x56a   : > { %v4093_v43 = vpop.f32.mrf.mxu0 }
 0x56b   : > { %v4250_v0 = vpop.f32.mrf.mxu1  ;;  %v4407_v45 = vpop.f32.mrf.mxu2  ;;  %v4094_v12 = vadd.f32 %v4093_v43, %v9769_v13 }
 0x56c   : > { %v4251_v11 = vadd.f32 %v4250_v0, %v4090_v7  ;;  %v4692_v54 = vpop.f32.mrf.mxu3 }
 0x56d   : > { %4156 = vmatmul.f32.gmra.mxu0 %v12146_v59 }
 0x56e   : > { %v4408_v33 = vadd.f32 %v4407_v45, %v4251_v11  ;;  %4313 = vmatmul.f32.gmra.mxu1 %v12140_v8  ;;  %v12229_v8 = vld [vmem:[#allocation91_spill] sm:$0xff]  ;;  %v12230_v45 = vld [vmem:[#allocation236_spill] sm:$0xff] }
 0x570   : > { %v9967_v35 = vadd.f32 %v4692_v54, %v4408_v33  ;;  %4542 = vmatmul.f32.gmra.mxu2 %v12227_v16  ;;  %4759 = vmatmul.f32.gmra.mxu3 %v12228_v56 }
 0x572   : > { %v4097_v20 = vpop.f32.mrf.mxu0 }
 0x573   : > { %v4254_v47 = vpop.f32.mrf.mxu1  ;;  %v4415_v25 = vpop.f32.mrf.mxu2  ;;  %v4098_v11 = vadd.f32 %v4097_v20, %v9781_v41 }
 0x574   : > { %v4255_v37 = vadd.f32 %v4254_v47, %v4094_v12  ;;  %v4696_v6 = vpop.f32.mrf.mxu3 }
 0x575   : > { %4160 = vmatmul.f32.gmra.mxu0 %v12150_v61 }
 0x576   : > { %v4416_v7 = vadd.f32 %v4415_v25, %v4255_v37  ;;  %4317 = vmatmul.f32.gmra.mxu1 %v12146_v59  ;;  %v12231_v59 = vld [vmem:[#allocation96_spill] sm:$0xff]  ;;  %v12232_v25 = vld [vmem:[#allocation239_spill] sm:$0xff] }
 0x578   : > { %v9974_v0 = vadd.f32 %v4696_v6, %v4416_v7  ;;  %4550 = vmatmul.f32.gmra.mxu2 %v12229_v8  ;;  %4763 = vmatmul.f32.gmra.mxu3 %v12230_v45 }
 0x57a   : > { %v4101_v54 = vpop.f32.mrf.mxu0 }
 0x57b   : > { %v4258_v13 = vpop.f32.mrf.mxu1  ;;  %v4423_v43 = vpop.f32.mrf.mxu2  ;;  %v4102_v37 = vadd.f32 %v4101_v54, %v9791_v10 }
 0x57c   : > { %v4259_v33 = vadd.f32 %v4258_v13, %v4098_v11  ;;  %v4700_v16 = vpop.f32.mrf.mxu3 }
 0x57d   : > { %4164 = vmatmul.f32.gmra.mxu0 %v12154_v42 }
 0x57e   : > { %v4424_v12 = vadd.f32 %v4423_v43, %v4259_v33  ;;  %4321 = vmatmul.f32.gmra.mxu1 %v12150_v61  ;;  %v12233_v61 = vld [vmem:[#allocation102_spill] sm:$0xff]  ;;  %v12234_v43 = vld [vmem:[#allocation243_spill] sm:$0xff] }
 0x580   : > { %v9981_v47 = vadd.f32 %v4700_v16, %v4424_v12  ;;  %4558 = vmatmul.f32.gmra.mxu2 %v12231_v59  ;;  %4767 = vmatmul.f32.gmra.mxu3 %v12232_v25 }
 0x582   : > { %v4105_v6 = vpop.f32.mrf.mxu0 }
 0x583   : > { %v4262_v41 = vpop.f32.mrf.mxu1  ;;  %v4431_v20 = vpop.f32.mrf.mxu2  ;;  %v4106_v33 = vadd.f32 %v4105_v6, %v9797_v34 }
 0x584   : > { %v4263_v7 = vadd.f32 %v4262_v41, %v4102_v37  ;;  %v4704_v8 = vpop.f32.mrf.mxu3 }
 0x585   : > { %4168 = vmatmul.f32.gmra.mxu0 %v12158_v53 }
 0x586   : > { %v4432_v11 = vadd.f32 %v4431_v20, %v4263_v7  ;;  %4325 = vmatmul.f32.gmra.mxu1 %v12154_v42  ;;  %v12235_v42 = vld [vmem:[#allocation108_spill] sm:$0xff]  ;;  %v12236_v20 = vld [vmem:[#allocation247_spill] sm:$0xff] }
 0x588   : > { %v9988_v13 = vadd.f32 %v4704_v8, %v4432_v11  ;;  %4566 = vmatmul.f32.gmra.mxu2 %v12233_v61  ;;  %4771 = vmatmul.f32.gmra.mxu3 %v12234_v43 }
 0x58a   : > { %v4109_v16 = vpop.f32.mrf.mxu0 }
 0x58b   : > { %v4266_v10 = vpop.f32.mrf.mxu1  ;;  %v4439_v54 = vpop.f32.mrf.mxu2  ;;  %v4110_v7 = vadd.f32 %v4109_v16, %v9803_v17 }
 0x58c   : > { %v4267_v12 = vadd.f32 %v4266_v10, %v4106_v33  ;;  %v4708_v59 = vpop.f32.mrf.mxu3 }
 0x58d   : > { %4172 = vmatmul.f32.gmra.mxu0 %v12162_v36 }
 0x58e   : > { %v4440_v37 = vadd.f32 %v4439_v54, %v4267_v12  ;;  %4329 = vmatmul.f32.gmra.mxu1 %v12158_v53  ;;  %v12238_v53 = vld [vmem:[#allocation115_spill] sm:$0xff] }
 0x58f   : > { %v12239_v54 = vld [vmem:[#allocation251_spill] sm:$0xff] }
 0x590   : > { %v9995_v41 = vadd.f32 %v4708_v59, %v4440_v37  ;;  %4574 = vmatmul.f32.gmra.mxu2 %v12235_v42  ;;  %4775 = vmatmul.f32.gmra.mxu3 %v12236_v20 }
 0x592   : > { %v4113_v8 = vpop.f32.mrf.mxu0 }
 0x593   : > { %v4270_v34 = vpop.f32.mrf.mxu1  ;;  %v4447_v6 = vpop.f32.mrf.mxu2  ;;  %v4114_v12 = vadd.f32 %v4113_v8, %v9809_v24 }
 0x594   : > { %v4271_v11 = vadd.f32 %v4270_v34, %v4110_v7  ;;  %v4712_v61 = vpop.f32.mrf.mxu3  ;;  %v12240_v7 = vld [vmem:[#allocation105_spill] sm:$0xff] }
 0x595   : > { %4176 = vmatmul.f32.gmra.mxu0 %v12166_v60 }
 0x596   : > { %v4448_v33 = vadd.f32 %v4447_v6, %v4271_v11  ;;  %4333 = vmatmul.f32.gmra.mxu1 %v12162_v36  ;;  %v12242_v36 = vld [vmem:[#allocation262_spill] sm:$0xff]  ;;  %v12243_v11 = vld [vmem:[#allocation255_spill] sm:$0xff] }
 0x598   : > { %v10002_v10 = vadd.f32 %v4712_v61, %v4448_v33  ;;  %4582 = vmatmul.f32.gmra.mxu2 %v12238_v53  ;;  %4779 = vmatmul.f32.gmra.mxu3 %v12239_v54  ;;  %v12244_v61 = vld [vmem:[#allocation138_spill] sm:$0xff] }
 0x59a   : > { %12237 = vst [vmem:[#allocation147_spill] sm:$0xff] %v10002_v10  ;;  %v4117_v59 = vpop.f32.mrf.mxu0 }
 0x59b   : > { %v4274_v17 = vpop.f32.mrf.mxu1  ;;  %v4455_v16 = vpop.f32.mrf.mxu2  ;;  %v4118_v33 = vadd.f32 %v4117_v59, %v12244_v61 }
 0x59c   : > { %v4275_v37 = vadd.f32 %v4274_v17, %v4114_v12  ;;  %v4716_v42 = vpop.f32.mrf.mxu3  ;;  %v12245_v12 = vld [vmem:[#allocation113_spill] sm:$0xff] }
 0x59d   : > { %4180 = vmatmul.f32.gmra.mxu0 %v12240_v7 }
 0x59e   : > { %v4456_v34 = vadd.f32 %v4455_v16, %v4275_v37  ;;  %4337 = vmatmul.f32.gmra.mxu1 %v12166_v60  ;;  %v12247_v60 = vld [vmem:[#allocation267_spill] sm:$0xff] }
 0x59f   : > { %v12248_v37 = vld [vmem:[#allocation259_spill] sm:$0xff] }
 0x5a0   : > { %v10009_v6 = vadd.f32 %v4716_v42, %v4456_v34  ;;  %4590 = vmatmul.f32.gmra.mxu2 %v12242_v36  ;;  %4783 = vmatmul.f32.gmra.mxu3 %v12243_v11  ;;  %v12249_v42 = vld [vmem:[#allocation159_spill] sm:$0xff] }
 0x5a2   : > { %12241 = vst [vmem:[#allocation150_spill] sm:$0xff] %v10009_v6  ;;  %v4121_v53 = vpop.f32.mrf.mxu0 }
 0x5a3   : > { %v4278_v24 = vpop.f32.mrf.mxu1  ;;  %v4463_v8 = vpop.f32.mrf.mxu2  ;;  %v4122_v34 = vadd.f32 %v4121_v53, %v12249_v42 }
 0x5a4   : > { %v4279_v54 = vadd.f32 %v4278_v24, %v4118_v33  ;;  %v4720_v10 = vpop.f32.mrf.mxu3  ;;  %v12250_v33 = vld [vmem:[#allocation118_spill] sm:$0xff] }
 0x5a5   : > { %4184 = vmatmul.f32.gmra.mxu0 %v12245_v12 }
 0x5a6   : > { %v4464_v17 = vadd.f32 %v4463_v8, %v4279_v54  ;;  %4341 = vmatmul.f32.gmra.mxu1 %v12240_v7  ;;  %v12253_v7 = vld [vmem:[#allocation264_spill] sm:$0xff]  ;;  %v12254_v8 = vld [vmem:[#allocation142_spill] sm:$0xff] }
 0x5a8   : > { %v10016_v16 = vadd.f32 %v4720_v10, %v4464_v17  ;;  %4598 = vmatmul.f32.gmra.mxu2 %v12247_v60  ;;  %4787 = vmatmul.f32.gmra.mxu3 %v12248_v37  ;;  %v12252_v10 = vld [vmem:[#allocation273_spill] sm:$0xff] }
 0x5aa   : > { %12246 = vst [vmem:[#allocation153_spill] sm:$0xff] %v10016_v16  ;;  %v4125_v36 = vpop.f32.mrf.mxu0 }
 0x5ab   : > { %v4282_v59 = vpop.f32.mrf.mxu1  ;;  %v4471_v61 = vpop.f32.mrf.mxu2  ;;  %v4126_v17 = vadd.f32 %v4125_v36, %v12254_v8 }
 0x5ac   : > { %v4283_v11 = vadd.f32 %v4282_v59, %v4122_v34  ;;  %v4724_v6 = vpop.f32.mrf.mxu3  ;;  %v12255_v34 = vld [vmem:[#allocation122_spill] sm:$0xff] }
 0x5ad   : > { %4188 = vmatmul.f32.gmra.mxu0 %v12250_v33 }
 0x5ae   : > { %v4472_v24 = vadd.f32 %v4471_v61, %v4283_v11  ;;  %4345 = vmatmul.f32.gmra.mxu1 %v12245_v12  ;;  %v12258_v12 = vld [vmem:[#allocation269_spill] sm:$0xff]  ;;  %v12259_v61 = vld [vmem:[#allocation151_spill] sm:$0xff] }
 0x5b0   : > { %v10023_v54 = vadd.f32 %v4724_v6, %v4472_v24  ;;  %4606 = vmatmul.f32.gmra.mxu2 %v12252_v10  ;;  %4791 = vmatmul.f32.gmra.mxu3 %v12253_v7  ;;  %v12257_v6 = vld [vmem:[#allocation279_spill] sm:$0xff] }
 0x5b2   : > { %12251 = vst [vmem:[#allocation155_spill] sm:$0xff] %v10023_v54  ;;  %v4129_v60 = vpop.f32.mrf.mxu0 }
 0x5b3   : > { %v4286_v53 = vpop.f32.mrf.mxu1  ;;  %v4479_v42 = vpop.f32.mrf.mxu2  ;;  %v4130_v24 = vadd.f32 %v4129_v60, %v12259_v61 }
 0x5b4   : > { %v4287_v16 = vadd.f32 %v4286_v53, %v4126_v17  ;;  %v4728_v37 = vpop.f32.mrf.mxu3  ;;  %v12260_v17 = vld [vmem:[#allocation126_spill] sm:$0xff] }
 0x5b5   : > { %4192 = vmatmul.f32.gmra.mxu0 %v12255_v34 }
 0x5b6   : > { %v4480_v59 = vadd.f32 %v4479_v42, %v4287_v16  ;;  %4349 = vmatmul.f32.gmra.mxu1 %v12250_v33  ;;  %v12262_v33 = vld [vmem:[#allocation272_spill] sm:$0xff]  ;;  %v12263_v42 = vld [vmem:[#allocation157_spill] sm:$0xff] }
 0x5b8   : > { %v10030_v11 = vadd.f32 %v4728_v37, %v4480_v59  ;;  %4614 = vmatmul.f32.gmra.mxu2 %v12257_v6  ;;  %4795 = vmatmul.f32.gmra.mxu3 %v12258_v12  ;;  %v12261_v37 = vld [vmem:[#allocation282_spill] sm:$0xff] }
 0x5ba   : > { %12256 = vst [vmem:[#allocation160_spill] sm:$0xff] %v10030_v11  ;;  %v4133_v10 = vpop.f32.mrf.mxu0 }
 0x5bb   : > { %v4290_v36 = vpop.f32.mrf.mxu1  ;;  %v4487_v8 = vpop.f32.mrf.mxu2  ;;  %v4134_v59 = vadd.f32 %v4133_v10, %v12263_v42 }
 0x5bc   : > { %v4291_v54 = vadd.f32 %v4290_v36, %v4130_v24  ;;  %v4732_v7 = vpop.f32.mrf.mxu3  ;;  %v12266_v36 = vld [vmem:[#allocation161_spill] sm:$0xff] }
 0x5bd   : > { %4196 = vmatmul.f32.gmra.mxu0 %v12260_v17 }
 0x5be   : > { %v4488_v53 = vadd.f32 %v4487_v8, %v4291_v54  ;;  %4353 = vmatmul.f32.gmra.mxu1 %v12255_v34  ;;  %v12265_v34 = vld [vmem:[#allocation278_spill] sm:$0xff] }
 0x5c0   : > { %v10037_v16 = vadd.f32 %v4732_v7, %v4488_v53  ;;  %4622 = vmatmul.f32.gmra.mxu2 %v12261_v37  ;;  %4799 = vmatmul.f32.gmra.mxu3 %v12262_v33  ;;  %v12264_v7 = vld [vmem:[#allocation287_spill] sm:$0xff] }
 0x5c2   : > { %v4137_v6 = vpop.f32.mrf.mxu0 }
 0x5c3   : > { %v4294_v60 = vpop.f32.mrf.mxu1  ;;  %v4495_v61 = vpop.f32.mrf.mxu2  ;;  %v4138_v8 = vadd.f32 %v4137_v6, %v12266_v36 }
 0x5c4   : > { %v4295_v12 = vadd.f32 %v4294_v60, %v4134_v59  ;;  %v4736_v11 = vpop.f32.mrf.mxu3 }
 0x5c5   : > { %4200 = vmatmul.f32.gmra.mxu0 %v12195_v2 }
 0x5c6   : > { %v4496_v24 = vadd.f32 %v4495_v61, %v4295_v12  ;;  %4357 = vmatmul.f32.gmra.mxu1 %v12260_v17  ;;  %v12268_v17 = vld [vmem:[#allocation284_spill] sm:$0xff] }
 0x5c8   : > { %v10044_v54 = vadd.f32 %v4736_v11, %v4496_v24  ;;  %4630 = vmatmul.f32.gmra.mxu2 %v12264_v7  ;;  %4803 = vmatmul.f32.gmra.mxu3 %v12265_v34  ;;  %v12267_v11 = vld [vmem:[#allocation143_spill] sm:$0xff] }
 0x5ca   : > { %v4141_v53 = vpop.f32.mrf.mxu0 }
 0x5cb   : > { %v4298_v10 = vpop.f32.mrf.mxu1  ;;  %v4503_v37 = vpop.f32.mrf.mxu2  ;;  %v4142_v60 = vadd.f32 %v4141_v53, %v9851_v52 }
 0x5cc   : > { %v4299_v42 = vadd.f32 %v4298_v10, %v4138_v8  ;;  %v4740_v33 = vpop.f32.mrf.mxu3 }
 0x5cd   : > { %4204 = vmatmul.f32.gmra.mxu0 %v12200_v14 }
 0x5ce   : > { %v4504_v59 = vadd.f32 %v4503_v37, %v4299_v42  ;;  %4361 = vmatmul.f32.gmra.mxu1 %v12195_v2  ;;  %v12269_v2 = vld [vmem:[#allocation106_spill] sm:$0xff] }
 0x5d0   : > { %v10051_v12 = vadd.f32 %v4740_v33, %v4504_v59  ;;  %4638 = vmatmul.f32.gmra.mxu2 %v12267_v11  ;;  %4807 = vmatmul.f32.gmra.mxu3 %v12268_v17  ;;  %v12270_v33 = vld [vmem:[#allocation289_spill] sm:$0xff] }
 0x5d2   : > { %v4145_v61 = vpop.f32.mrf.mxu0 }
 0x5d3   : > { %v4302_v6 = vpop.f32.mrf.mxu1  ;;  %v4511_v24 = vpop.f32.mrf.mxu2  ;;  %v4146_v37 = vadd.f32 %v4145_v61, %v9857_v28 }
 0x5d4   : > { %v4303_v7 = vadd.f32 %v4302_v6, %v4142_v60  ;;  %v4744_v36 = vpop.f32.mrf.mxu3  ;;  %v12271_v60 = vld [vmem:[#allocation144_spill] sm:$0xff] }
 0x5d5   : > { %4208 = vmatmul.f32.gmra.mxu0 %v11924_v46 }
 0x5d6   : > { %v4512_v8 = vadd.f32 %v4511_v24, %v4303_v7  ;;  %4365 = vmatmul.f32.gmra.mxu1 %v12200_v14 }
 0x5d8   : > { %v10058_v10 = vadd.f32 %v4744_v36, %v4512_v8  ;;  %4646 = vmatmul.f32.gmra.mxu2 %v12269_v2  ;;  %4811 = vmatmul.f32.gmra.mxu3 %v12270_v33  ;;  %v12272_v2 = vld [vmem:[#allocation152_spill] sm:$0xff] }
 0x5da   : > { %v4149_v42 = vpop.f32.mrf.mxu0 }
 0x5db   : > { %v4306_v52 = vpop.f32.mrf.mxu1  ;;  %v4519_v53 = vpop.f32.mrf.mxu2  ;;  %v4150_v14 = vadd.f32 %v4149_v42, %v9863_v49 }
 0x5dc   : > { %v4307_v59 = vadd.f32 %v4306_v52, %v4146_v37  ;;  %v4748_v11 = vpop.f32.mrf.mxu3  ;;  %v12273_v52 = vld [vmem:[#allocation146_spill] sm:$0xff] }
 0x5dd   : > { %4841 = vmatmul.f32.vlgmr.msrb.gmra.mxu0 %v12271_v60  ;;  %v12274_v60 = vld [vmem:[#allocation163_spill] sm:$0xff] }
 0x5de   : > { %v4520_v6 = vadd.f32 %v4519_v53, %v4307_v59  ;;  %4369 = vmatmul.f32.gmra.mxu1 %v11924_v46 }
 0x5e0   : > { %v10065_v24 = vadd.f32 %v4748_v11, %v4520_v6  ;;  %5242 = vmatmul.f32.vlgmr.msrb.gmra.mxu2 %v11928_v22  ;;  %5391 = vmatmul.f32.vlgmr.msrb.gmra.mxu3 %v11928_v22 }
 0x5e2   : > { %v4153_v7 = vpop.f32.mrf.mxu0 }
 0x5e3   : > { %v4310_v28 = vpop.f32.mrf.mxu1  ;;  %v4527_v61 = vpop.f32.mrf.mxu2  ;;  %v4154_v46 = vadd.f32 %v4153_v7, %v9869_v15 }
 0x5e4   : > { %v4311_v36 = vadd.f32 %v4310_v28, %v4150_v14  ;;  %v4752_v8 = vpop.f32.mrf.mxu3  ;;  %v12275_v14 = vld [vmem:[#allocation156_spill] sm:$0xff] }
 0x5e5   : > { %4846 = vmatmul.f32.gmra.mxu0 %v12272_v2  ;;  %v12276_v2 = vld [vmem:[#allocation171_spill] sm:$0xff] }
 0x5e6   : > { %v4528_v37 = vadd.f32 %v4527_v61, %v4311_v36  ;;  %5023 = vmatmul.f32.vlgmr.msrb.gmra.mxu1 %v12273_v52  ;;  %v12277_v52 = vld [vmem:[#allocation167_spill] sm:$0xff] }
 0x5e8   : > { %v10072_v53 = vadd.f32 %v4752_v8, %v4528_v37  ;;  %5246 = vmatmul.f32.gmra.mxu2 %v11938_v9  ;;  %5395 = vmatmul.f32.gmra.mxu3 %v11938_v9 }
 0x5ea   : > { %v4157_v22 = vpop.f32.mrf.mxu0 }
 0x5eb   : > { %v4314_v49 = vpop.f32.mrf.mxu1  ;;  %v4535_v42 = vpop.f32.mrf.mxu2  ;;  %v4158_v9 = vadd.f32 %v4157_v22, %v9875_v19 }
 0x5ec   : > { %v4315_v59 = vadd.f32 %v4314_v49, %v4154_v46  ;;  %v4756_v11 = vpop.f32.mrf.mxu3 }
 0x5ed   : > { %4851 = vmatmul.f32.gmra.mxu0 %v12274_v60 }
 0x5ee   : > { %v4536_v6 = vadd.f32 %v4535_v42, %v4315_v59  ;;  %5029 = vmatmul.f32.gmra.mxu1 %v12275_v14 }
 0x5f0   : > { %v10079_v28 = vadd.f32 %v4756_v11, %v4536_v6  ;;  %5250 = vmatmul.f32.gmra.mxu2 %v11948_v1  ;;  %5399 = vmatmul.f32.gmra.mxu3 %v11948_v1  ;;  %v12278_v11 = vld [vmem:[#allocation176_spill] sm:$0xff]  ;;  %v12279_v6 = vld [vmem:[#allocation175_spill] sm:$0xff] }
 0x5f2   : > { %v4161_v61 = vpop.f32.mrf.mxu0 }
 0x5f3   : > { %v4318_v15 = vpop.f32.mrf.mxu1  ;;  %v4543_v7 = vpop.f32.mrf.mxu2  ;;  %v4162_v1 = vadd.f32 %v4161_v61, %v9881_v39 }
 0x5f4   : > { %v4319_v36 = vadd.f32 %v4318_v15, %v4158_v9  ;;  %v4760_v8 = vpop.f32.mrf.mxu3 }
 0x5f5   : > { %4856 = vmatmul.f32.gmra.mxu0 %v12276_v2  ;;  %v12281_v2 = vld [vmem:[#allocation178_spill] sm:$0xff] }
 0x5f6   : > { %v4544_v37 = vadd.f32 %v4543_v7, %v4319_v36  ;;  %5035 = vmatmul.f32.gmra.mxu1 %v12277_v52  ;;  %v12280_v36 = vld [vmem:[#allocation180_spill] sm:$0xff] }
 0x5f8   : > { %v10086_v46 = vadd.f32 %v4760_v8, %v4544_v37  ;;  %5254 = vmatmul.f32.gmra.mxu2 %v11959_v38  ;;  %5403 = vmatmul.f32.gmra.mxu3 %v11959_v38 }
 0x5fa   : > { %v4165_v49 = vpop.f32.mrf.mxu0 }
 0x5fb   : > { %v4322_v19 = vpop.f32.mrf.mxu1  ;;  %v4551_v22 = vpop.f32.mrf.mxu2  ;;  %v4166_v38 = vadd.f32 %v4165_v49, %v9887_v21 }
 0x5fc   : > { %v4323_v42 = vadd.f32 %v4322_v19, %v4162_v1  ;;  %v4764_v59 = vpop.f32.mrf.mxu3 }
 0x5fd   : > { %4861 = vmatmul.f32.gmra.mxu0 %v12278_v11 }
 0x5fe   : > { %v4552_v60 = vadd.f32 %v4551_v22, %v4323_v42  ;;  %5041 = vmatmul.f32.gmra.mxu1 %v12279_v6  ;;  %v12282_v22 = vld [vmem:[#allocation184_spill] sm:$0xff] }
 0x600   : > { %v10093_v14 = vadd.f32 %v4764_v59, %v4552_v60  ;;  %5258 = vmatmul.f32.gmra.mxu2 %v8600_v27  ;;  %5407 = vmatmul.f32.gmra.mxu3 %v8600_v27  ;;  %v12283_v59 = vld [vmem:[#allocation182_spill] sm:$0xff] }
 0x602   : > { %v4169_v9 = vpop.f32.mrf.mxu0 }
 0x603   : > { %v4326_v39 = vpop.f32.mrf.mxu1  ;;  %v4559_v61 = vpop.f32.mrf.mxu2  ;;  %v4170_v27 = vadd.f32 %v4169_v9, %v9893_v4 }
 0x604   : > { %v4327_v15 = vadd.f32 %v4326_v39, %v4166_v38  ;;  %v4768_v7 = vpop.f32.mrf.mxu3  ;;  %v12284_v39 = vld [vmem:[#allocation188_spill] sm:$0xff] }
 0x605   : > { %4866 = vmatmul.f32.gmra.mxu0 %v12280_v36 }
 0x606   : > { %v4560_v8 = vadd.f32 %v4559_v61, %v4327_v15  ;;  %5047 = vmatmul.f32.gmra.mxu1 %v12281_v2  ;;  %v12285_v15 = vld [vmem:[#allocation186_spill] sm:$0xff] }
 0x608   : > { %v10100_v37 = vadd.f32 %v4768_v7, %v4560_v8  ;;  %5262 = vmatmul.f32.gmra.mxu2 %v11970_v55  ;;  %5411 = vmatmul.f32.gmra.mxu3 %v11970_v55 }
 0x60a   : > { %v4173_v52 = vpop.f32.mrf.mxu0 }
 0x60b   : > { %v4330_v21 = vpop.f32.mrf.mxu1  ;;  %v4567_v1 = vpop.f32.mrf.mxu2  ;;  %v4174_v55 = vadd.f32 %v4173_v52, %v9899_v44  ;;  %v12286_v52 = vld [vmem:[#allocation192_spill] sm:$0xff] }
 0x60c   : > { %v4331_v49 = vadd.f32 %v4330_v21, %v4170_v27  ;;  %v4772_v19 = vpop.f32.mrf.mxu3 }
 0x60d   : > { %4871 = vmatmul.f32.gmra.mxu0 %v12282_v22 }
 0x60e   : > { %v4568_v42 = vadd.f32 %v4567_v1, %v4331_v49  ;;  %5053 = vmatmul.f32.gmra.mxu1 %v12283_v59  ;;  %v12287_v1 = vld [vmem:[#allocation190_spill] sm:$0xff] }
 0x610   : > { %v10107_v11 = vadd.f32 %v4772_v19, %v4568_v42  ;;  %5266 = vmatmul.f32.gmra.mxu2 %v11973_v5  ;;  %5415 = vmatmul.f32.gmra.mxu3 %v11973_v5 }
 0x612   : > { %v4177_v60 = vpop.f32.mrf.mxu0 }
 0x613   : > { %v4334_v4 = vpop.f32.mrf.mxu1  ;;  %v4575_v6 = vpop.f32.mrf.mxu2  ;;  %v4178_v5 = vadd.f32 %v4177_v60, %v9905_v50 }
 0x614   : > { %v4335_v38 = vadd.f32 %v4334_v4, %v4174_v55  ;;  %v4776_v9 = vpop.f32.mrf.mxu3  ;;  %v12288_v55 = vld [vmem:[#allocation196_spill] sm:$0xff]  ;;  %v12289_v4 = vld [vmem:[#allocation194_spill] sm:$0xff] }
 0x615   : > { %4876 = vmatmul.f32.gmra.mxu0 %v12284_v39 }
 0x616   : > { %v4576_v61 = vadd.f32 %v4575_v6, %v4335_v38  ;;  %5059 = vmatmul.f32.gmra.mxu1 %v12285_v15  ;;  %v12290_v15 = vld [vmem:[#allocation200_spill] sm:$0xff] }
 0x618   : > { %v10114_v7 = vadd.f32 %v4776_v9, %v4576_v61  ;;  %5270 = vmatmul.f32.gmra.mxu2 %v11976_v26  ;;  %5419 = vmatmul.f32.gmra.mxu3 %v11976_v26 }
 0x61a   : > { %v4181_v36 = vpop.f32.mrf.mxu0 }
 0x61b   : > { %v4338_v44 = vpop.f32.mrf.mxu1  ;;  %v4583_v8 = vpop.f32.mrf.mxu2  ;;  %v4182_v26 = vadd.f32 %v4181_v36, %v9911_v63  ;;  %v12291_v36 = vld [vmem:[#allocation198_spill] sm:$0xff] }
 0x61c   : > { %v4339_v2 = vadd.f32 %v4338_v44, %v4178_v5  ;;  %v4780_v27 = vpop.f32.mrf.mxu3 }
 0x61d   : > { %4881 = vmatmul.f32.gmra.mxu0 %v12286_v52 }
 0x61e   : > { %v4584_v21 = vadd.f32 %v4583_v8, %v4339_v2  ;;  %5065 = vmatmul.f32.gmra.mxu1 %v12287_v1 }
 0x620   : > { %v10121_v49 = vadd.f32 %v4780_v27, %v4584_v21  ;;  %5274 = vmatmul.f32.gmra.mxu2 %v11979_v3  ;;  %5423 = vmatmul.f32.gmra.mxu3 %v11979_v3  ;;  %v12292_v21 = vld [vmem:[#allocation204_spill] sm:$0xff] }
 0x622   : > { %v4185_v19 = vpop.f32.mrf.mxu0 }
 0x623   : > { %v4342_v50 = vpop.f32.mrf.mxu1  ;;  %v4591_v22 = vpop.f32.mrf.mxu2  ;;  %v4186_v3 = vadd.f32 %v4185_v19, %v9917_v48 }
 0x624   : > { %v4343_v42 = vadd.f32 %v4342_v50, %v4182_v26  ;;  %v4784_v59 = vpop.f32.mrf.mxu3  ;;  %v12293_v26 = vld [vmem:[#allocation202_spill] sm:$0xff] }
 0x625   : > { %4886 = vmatmul.f32.gmra.mxu0 %v12288_v55  ;;  %v12294_v55 = vld [vmem:[#allocation208_spill] sm:$0xff] }
 0x626   : > { %v4592_v60 = vadd.f32 %v4591_v22, %v4343_v42  ;;  %5071 = vmatmul.f32.gmra.mxu1 %v12289_v4  ;;  %v12295_v4 = vld [vmem:[#allocation206_spill] sm:$0xff] }
 0x628   : > { %v10128_v6 = vadd.f32 %v4784_v59, %v4592_v60  ;;  %5278 = vmatmul.f32.gmra.mxu2 %v11982_v57  ;;  %5427 = vmatmul.f32.gmra.mxu3 %v11982_v57 }
 0x62a   : > { %v4189_v38 = vpop.f32.mrf.mxu0 }
 0x62b   : > { %v4346_v63 = vpop.f32.mrf.mxu1  ;;  %v4599_v9 = vpop.f32.mrf.mxu2  ;;  %v4190_v57 = vadd.f32 %v4189_v38, %v9923_v58  ;;  %v12296_v38 = vld [vmem:[#allocation207_spill] sm:$0xff] }
 0x62c   : > { %v4347_v39 = vadd.f32 %v4346_v63, %v4186_v3  ;;  %v4788_v61 = vpop.f32.mrf.mxu3 }
 0x62d   : > { %4891 = vmatmul.f32.gmra.mxu0 %v12290_v15  ;;  %v12297_v15 = vld [vmem:[#allocation212_spill] sm:$0xff] }
 0x62e   : > { %v4600_v5 = vadd.f32 %v4599_v9, %v4347_v39  ;;  %5077 = vmatmul.f32.gmra.mxu1 %v12291_v36  ;;  %v12298_v36 = vld [vmem:[#allocation210_spill] sm:$0xff] }
 0x630   : > { %v10135_v44 = vadd.f32 %v4788_v61, %v4600_v5  ;;  %5282 = vmatmul.f32.gmra.mxu2 %v11985_v30  ;;  %5431 = vmatmul.f32.gmra.mxu3 %v11985_v30 }
 0x632   : > { %v4193_v8 = vpop.f32.mrf.mxu0 }
 0x633   : > { %v4350_v48 = vpop.f32.mrf.mxu1  ;;  %v4607_v2 = vpop.f32.mrf.mxu2  ;;  %v4194_v30 = vadd.f32 %v4193_v8, %v9929_v31  ;;  %v12299_v8 = vld [vmem:[#allocation211_spill] sm:$0xff] }
 0x634   : > { %v4351_v27 = vadd.f32 %v4350_v48, %v4190_v57  ;;  %v4792_v52 = vpop.f32.mrf.mxu3 }
 0x635   : > { %4896 = vmatmul.f32.gmra.mxu0 %v12292_v21 }
 0x636   : > { %v4608_v1 = vadd.f32 %v4607_v2, %v4351_v27  ;;  %5083 = vmatmul.f32.gmra.mxu1 %v12293_v26 }
 0x638   : > { %v10142_v19 = vadd.f32 %v4792_v52, %v4608_v1  ;;  %5286 = vmatmul.f32.gmra.mxu2 %v11988_v32  ;;  %5435 = vmatmul.f32.gmra.mxu3 %v11988_v32  ;;  %v12300_v1 = vld [vmem:[#allocation216_spill] sm:$0xff] }
 0x63a   : > { %v4197_v50 = vpop.f32.mrf.mxu0 }
 0x63b   : > { %v4354_v58 = vpop.f32.mrf.mxu1  ;;  %v4615_v22 = vpop.f32.mrf.mxu2  ;;  %v4198_v32 = vadd.f32 %v4197_v50, %v9935_v23 }
 0x63c   : > { %v4355_v42 = vadd.f32 %v4354_v58, %v4194_v30  ;;  %v4796_v59 = vpop.f32.mrf.mxu3  ;;  %v12301_v30 = vld [vmem:[#allocation214_spill] sm:$0xff]  ;;  %v12302_v58 = vld [vmem:[#allocation215_spill] sm:$0xff] }
 0x63d   : > { %4901 = vmatmul.f32.gmra.mxu0 %v12294_v55 }
 0x63e   : > { %v4616_v60 = vadd.f32 %v4615_v22, %v4355_v42  ;;  %5089 = vmatmul.f32.gmra.mxu1 %v12295_v4  ;;  %v12303_v22 = vld [vmem:[#allocation148_spill] sm:$0xff] }
 0x640   : > { %v10149_v3 = vadd.f32 %v4796_v59, %v4616_v60  ;;  %5290 = vmatmul.f32.gmra.mxu2 %v12296_v38  ;;  %5439 = vmatmul.f32.gmra.mxu3 %v12296_v38  ;;  %v12304_v38 = vld [vmem:[#allocation220_spill] sm:$0xff] }
 0x642   : > { %v4201_v63 = vpop.f32.mrf.mxu0 }
 0x643   : > { %v4358_v31 = vpop.f32.mrf.mxu1  ;;  %v4623_v9 = vpop.f32.mrf.mxu2  ;;  %v4202_v48 = vadd.f32 %v4201_v63, %v9941_v18  ;;  %v12305_v63 = vld [vmem:[#allocation218_spill] sm:$0xff] }
 0x644   : > { %v4359_v39 = vadd.f32 %v4358_v31, %v4198_v32  ;;  %v4800_v61 = vpop.f32.mrf.mxu3 }
 0x645   : > { %4906 = vmatmul.f32.gmra.mxu0 %v12297_v15 }
 0x646   : > { %v4624_v5 = vadd.f32 %v4623_v9, %v4359_v39  ;;  %5095 = vmatmul.f32.gmra.mxu1 %v12298_v36  ;;  %v12306_v9 = vld [vmem:[#allocation219_spill] sm:$0xff] }
 0x648   : > { %v10156_v57 = vadd.f32 %v4800_v61, %v4624_v5  ;;  %5294 = vmatmul.f32.gmra.mxu2 %v12299_v8  ;;  %5443 = vmatmul.f32.gmra.mxu3 %v12299_v8 }
 0x64a   : > { %v4205_v2 = vpop.f32.mrf.mxu0 }
 0x64b   : > { %v4362_v23 = vpop.f32.mrf.mxu1  ;;  %v4631_v27 = vpop.f32.mrf.mxu2  ;;  %v4206_v42 = vadd.f32 %v4205_v2, %v12303_v22 }
 0x64c   : > { %v4363_v52 = vadd.f32 %v4362_v23, %v4202_v48  ;;  %v4804_v21 = vpop.f32.mrf.mxu3  ;;  %v12307_v48 = vld [vmem:[#allocation224_spill] sm:$0xff]  ;;  %v12308_v23 = vld [vmem:[#allocation222_spill] sm:$0xff] }
 0x64d   : > { %4911 = vmatmul.f32.gmra.mxu0 %v12300_v1 }
 0x64e   : > { %v4632_v26 = vadd.f32 %v4631_v27, %v4363_v52  ;;  %5101 = vmatmul.f32.gmra.mxu1 %v12301_v30 }
 0x650   : > { %v10163_v50 = vadd.f32 %v4804_v21, %v4632_v26  ;;  %5298 = vmatmul.f32.gmra.mxu2 %v12302_v58  ;;  %5447 = vmatmul.f32.gmra.mxu3 %v12302_v58  ;;  %v12309_v58 = vld [vmem:[#allocation228_spill] sm:$0xff] }
 0x652   : > { %v4209_v59 = vpop.f32.mrf.mxu0 }
 0x653   : > { %v4366_v18 = vpop.f32.mrf.mxu1  ;;  %v4639_v55 = vpop.f32.mrf.mxu2  ;;  %v4210_v39 = vadd.f32 %v4209_v59, %v9953_v29 }
 0x654   : > { %v4367_v60 = vadd.f32 %v4366_v18, %v4206_v42  ;;  %v4808_v4 = vpop.f32.mrf.mxu3  ;;  %v12310_v42 = vld [vmem:[#allocation226_spill] sm:$0xff] }
 0x655   : > { %4916 = vmatmul.f32.gmra.mxu0 %v12304_v38  ;;  %v12311_v38 = vld [vmem:[#allocation232_spill] sm:$0xff] }
 0x656   : > { %v4640_v32 = vadd.f32 %v4639_v55, %v4367_v60  ;;  %5107 = vmatmul.f32.gmra.mxu1 %v12305_v63  ;;  %v12312_v63 = vld [vmem:[#allocation230_spill] sm:$0xff] }
 0x658   : > { %v10170_v31 = vadd.f32 %v4808_v4, %v4640_v32  ;;  %5302 = vmatmul.f32.gmra.mxu2 %v12306_v9  ;;  %5451 = vmatmul.f32.gmra.mxu3 %v12306_v9 }
 0x65a   : > { %v4842_v61 = vpop.f32.mrf.mxu0 }
 0x65b   : > { %v4370_v15 = vpop.f32.mrf.mxu1  ;;  %v4647_v5 = vpop.f32.mrf.mxu2  ;;  %v4843_v52 = vadd.f32 %v4842_v61, %v9960_v40 }
 0x65c   : > { %v4371_v36 = vadd.f32 %v4370_v15, %v4210_v39  ;;  %v4812_v8 = vpop.f32.mrf.mxu3 }
 0x65d   : > { %4921 = vmatmul.f32.gmra.mxu0 %v12307_v48  ;;  %v12314_v48 = vld [vmem:[#allocation235_spill] sm:$0xff] }
 0x65e   : > { %v4648_v2 = vadd.f32 %v4647_v5, %v4371_v36  ;;  %5113 = vmatmul.f32.gmra.mxu1 %v12308_v23  ;;  %v12313_v36 = vld [vmem:[#allocation86_spill] sm:$0xff] }
 0x660   : > { %v10177_v27 = vadd.f32 %v4812_v8, %v4648_v2  ;;  %5306 = vmatmul.f32.gmra.mxu2 %v12224_v62  ;;  %5455 = vmatmul.f32.gmra.mxu3 %v12224_v62 }
 0x662   : > { %v4847_v21 = vpop.f32.mrf.mxu0 }
 0x663   : > { %v5024_v29 = vpop.f32.mrf.mxu1  ;;  %v5243_v1 = vpop.f32.mrf.mxu2  ;;  %v4848_v18 = vadd.f32 %v4847_v21, %v9967_v35 }
 0x664   : > { %v5025_v26 = vadd.f32 %v5024_v29, %v4843_v52  ;;  %v5392_v30 = vpop.f32.mrf.mxu3 }
 0x665   : > { %4926 = vmatmul.f32.gmra.mxu0 %v12309_v58  ;;  %v12315_v58 = vld [vmem:[#allocation241_spill] sm:$0xff] }
 0x666   : > { %v5244_v22 = vadd.f32 %v5243_v1, %v5025_v26  ;;  %5119 = vmatmul.f32.gmra.mxu1 %v12310_v42  ;;  %v12316_v42 = vld [vmem:[#allocation238_spill] sm:$0xff] }
 0x668   : > { %v5393_v59 = vadd.f32 %v5392_v30, %v5244_v22  ;;  %5310 = vmatmul.f32.gmra.mxu2 %v12226_v51  ;;  %5459 = vmatmul.f32.gmra.mxu3 %v12226_v51 }
 0x66a   : > { %v4852_v62 = vpop.f32.mrf.mxu0 }
 0x66b   : > { %v5030_v55 = vpop.f32.mrf.mxu1  ;;  %v5247_v40 = vpop.f32.mrf.mxu2  ;;  %v4853_v39 = vadd.f32 %v4852_v62, %v9974_v0 }
 0x66c   : > { %v5031_v60 = vadd.f32 %v5030_v55, %v4848_v18  ;;  %v5396_v4 = vpop.f32.mrf.mxu3 }
 0x66d   : > { %4931 = vmatmul.f32.gmra.mxu0 %v12311_v38 }
 0x66e   : > { %v5248_v32 = vadd.f32 %v5247_v40, %v5031_v60  ;;  %5125 = vmatmul.f32.gmra.mxu1 %v12312_v63  ;;  %v12317_v63 = vld [vmem:[#allocation245_spill] sm:$0xff] }
 0x670   : > { %v5397_v9 = vadd.f32 %v5396_v4, %v5248_v32  ;;  %5314 = vmatmul.f32.gmra.mxu2 %v12228_v56  ;;  %5463 = vmatmul.f32.gmra.mxu3 %v12228_v56  ;;  %v5529_v56 = vsel %vm5528_vm12, %v5393_v59, -inf }
 0x672   : > { %v4857_v51 = vpop.f32.mrf.mxu0 }
 0x673   : > { %v5036_v61 = vpop.f32.mrf.mxu1  ;;  %v5251_v35 = vpop.f32.mrf.mxu2  ;;  %v4858_v0 = vadd.f32 %v4857_v51, %v9981_v47  ;;  %v12318_v51 = vld [vmem:[#allocation242_spill] sm:$0xff] }
 0x674   : > { %v5037_v15 = vadd.f32 %v5036_v61, %v4853_v39  ;;  %v5400_v5 = vpop.f32.mrf.mxu3 }
 0x675   : > { %4936 = vmatmul.f32.gmra.mxu0 %v12313_v36  ;;  %v12319_v36 = vld [vmem:[#allocation249_spill] sm:$0xff] }
 0x676   : > { %v5252_v8 = vadd.f32 %v5251_v35, %v5037_v15  ;;  %5131 = vmatmul.f32.gmra.mxu1 %v12314_v48  ;;  %v12320_v48 = vld [vmem:[#allocation246_spill] sm:$0xff] }
 0x678   : > { %v5401_v2 = vadd.f32 %v5400_v5, %v5252_v8  ;;  %5318 = vmatmul.f32.gmra.mxu2 %v12230_v45  ;;  %5467 = vmatmul.f32.gmra.mxu3 %v12230_v45  ;;  %v5530_v45 = vsel %vm5528_vm12, %v5397_v9, -inf }
 0x67a   : > { %v5531_v23 = vsel %vm5528_vm12, %v5401_v2, -inf  ;;  %v4862_v52 = vpop.f32.mrf.mxu0 }
 0x67b   : > { %v5532_v21 = vmax.f32 %v5529_v56, %v5531_v23  ;;  %v5042_v29 = vpop.f32.mrf.mxu1  ;;  %v5255_v1 = vpop.f32.mrf.mxu2  ;;  %v4863_v47 = vadd.f32 %v4862_v52, %v9988_v13  ;;  %v12321_v56 = vld [vmem:[#allocation147_spill] sm:$0xff] }
 0x67c   : > { %v5043_v26 = vadd.f32 %v5042_v29, %v4858_v0  ;;  %v5404_v30 = vpop.f32.mrf.mxu3  ;;  %v12322_v29 = vld [vmem:[#allocation253_spill] sm:$0xff] }
 0x67d   : > { %4941 = vmatmul.f32.gmra.mxu0 %v12315_v58  ;;  %v12324_v58 = vld [vmem:[#allocation251_spill] sm:$0xff] }
 0x67e   : > { %v5256_v22 = vadd.f32 %v5255_v1, %v5043_v26  ;;  %5137 = vmatmul.f32.gmra.mxu1 %v12316_v42  ;;  %v12323_v26 = vld [vmem:[#allocation250_spill] sm:$0xff] }
 0x680   : > { %v5405_v18 = vadd.f32 %v5404_v30, %v5256_v22  ;;  %5322 = vmatmul.f32.gmra.mxu2 %v12232_v25  ;;  %5471 = vmatmul.f32.gmra.mxu3 %v12232_v25 }
 0x682   : > { %v5533_v59 = vsel %vm5528_vm12, %v5405_v18, -inf  ;;  %v4867_v62 = vpop.f32.mrf.mxu0 }
 0x683   : > { %v5534_v55 = vmax.f32 %v5530_v45, %v5533_v59  ;;  %v5048_v40 = vpop.f32.mrf.mxu1  ;;  %v5259_v60 = vpop.f32.mrf.mxu2  ;;  %v4868_v25 = vadd.f32 %v4867_v62, %v9995_v41 }
 0x684   : > { %v5049_v4 = vadd.f32 %v5048_v40, %v4863_v47  ;;  %v5408_v38 = vpop.f32.mrf.mxu3 }
 0x685   : > { %v5535_v32 = vmax.f32 %v5532_v21, %v5534_v55  ;;  %4946 = vmatmul.f32.gmra.mxu0 %v12317_v63  ;;  %v12327_v63 = vld [vmem:[#allocation254_spill] sm:$0xff] }
 0x686   : > { %v5260_v39 = vadd.f32 %v5259_v60, %v5049_v4  ;;  %5143 = vmatmul.f32.gmra.mxu1 %v12318_v51  ;;  %v12326_v4 = vld [vmem:[#allocation257_spill] sm:$0xff]  ;;  %v12328_v51 = vld [vmem:[#allocation255_spill] sm:$0xff] }
 0x687   : > { %v5536_v60 = vrot.slane %v5535_v32, 4 }
 0x688   : > { %v5409_v61 = vadd.f32 %v5408_v38, %v5260_v39  ;;  %5326 = vmatmul.f32.gmra.mxu2 %v12234_v43  ;;  %5475 = vmatmul.f32.gmra.mxu3 %v12234_v43 }
 0x68a   : > { %v4872_v13 = vpop.f32.mrf.mxu0  ;;  %v5551_v22 = vsel %vm5528_vm12, %v5409_v61, -inf  ;;  %v5537_v61 = vmax.f32 %v5535_v32, %v5536_v60  ;;  %v12336_v60 = vld [vmem:[#allocation160_spill] sm:$0xff] }
 0x68b   : > { %v5054_v9 = vpop.f32.mrf.mxu1  ;;  %v5263_v35 = vpop.f32.mrf.mxu2  ;;  %v4873_v0 = vadd.f32 %v4872_v13, %v12321_v56  ;;  %v12329_v56 = vld [vmem:[#allocation261_spill] sm:$0xff] }
 0x68c   : > { %v5055_v15 = vadd.f32 %v5054_v9, %v4868_v25  ;;  %v5412_v5 = vpop.f32.mrf.mxu3 }
 0x68d   : > { %4951 = vmatmul.f32.gmra.mxu0 %v12319_v36 }
 0x68e   : > { %v5264_v8 = vadd.f32 %v5263_v35, %v5055_v15  ;;  %5149 = vmatmul.f32.gmra.mxu1 %v12320_v48 }
 0x690   : > { %v5413_v2 = vadd.f32 %v5412_v5, %v5264_v8  ;;  %5330 = vmatmul.f32.gmra.mxu2 %v12236_v20  ;;  %5479 = vmatmul.f32.gmra.mxu3 %v12236_v20  ;;  %v12325_v20 = vld [vmem:[#allocation150_spill] sm:$0xff]  ;;  %v5538_v8 = vrot.slane %v5537_v61, 2 }
 0x692   : > { %v4877_v43 = vpop.f32.mrf.mxu0  ;;  %v5552_v25 = vsel %vm5528_vm12, %v5413_v2, -inf  ;;  %v5539_v32 = vmax.f32 %v5537_v61, %v5538_v8 }
 0x693   : > { %v5060_v23 = vpop.f32.mrf.mxu1  ;;  %v5267_v41 = vpop.f32.mrf.mxu2  ;;  %v4878_v42 = vadd.f32 %v4877_v43, %v12325_v20  ;;  %v12333_v20 = vld [vmem:[#allocation266_spill] sm:$0xff] }
 0x694   : > { %v5061_v52 = vadd.f32 %v5060_v23, %v4873_v0  ;;  %v5416_v21 = vpop.f32.mrf.mxu3  ;;  %v12330_v0 = vld [vmem:[#allocation258_spill] sm:$0xff]  ;;  %v12331_v23 = vld [vmem:[#allocation259_spill] sm:$0xff] }
 0x695   : > { %4956 = vmatmul.f32.gmra.mxu0 %v12322_v29 }
 0x696   : > { %v5268_v1 = vadd.f32 %v5267_v41, %v5061_v52  ;;  %5155 = vmatmul.f32.gmra.mxu1 %v12323_v26 }
 0x698   : > { %v5417_v30 = vadd.f32 %v5416_v21, %v5268_v1  ;;  %5334 = vmatmul.f32.gmra.mxu2 %v12324_v58  ;;  %5483 = vmatmul.f32.gmra.mxu3 %v12324_v58  ;;  %v12332_v1 = vld [vmem:[#allocation153_spill] sm:$0xff]  ;;  %v5540_v58 = vrot.slane %v5539_v32, 1 }
 0x69a   : > { %v5553_v18 = vsel %vm5528_vm12, %v5417_v30, -inf  ;;  %v4882_v45 = vpop.f32.mrf.mxu0 }
 0x69b   : > { %v5554_v47 = vmax.f32 %v5551_v22, %v5553_v18  ;;  %v5066_v59 = vpop.f32.mrf.mxu1  ;;  %v5271_v62 = vpop.f32.mrf.mxu2  ;;  %v4883_v26 = vadd.f32 %v4882_v45, %v12332_v1  ;;  %v12334_v18 = vld [vmem:[#allocation263_spill] sm:$0xff] }
 0x69c   : > { %v5067_v55 = vadd.f32 %v5066_v59, %v4878_v42  ;;  %v5420_v40 = vpop.f32.mrf.mxu3  ;;  %v12335_v59 = vld [vmem:[#allocation264_spill] sm:$0xff] }
 0x69d   : > { %4961 = vmatmul.f32.gmra.mxu0 %v12326_v4 }
 0x69e   : > { %v5272_v38 = vadd.f32 %v5271_v62, %v5067_v55  ;;  %5161 = vmatmul.f32.gmra.mxu1 %v12327_v63  ;;  %v5541_v62 = vmax.f32 %v5539_v32, %v5540_v58 }
 0x6a0   : > { %v5421_v39 = vadd.f32 %v5420_v40, %v5272_v38  ;;  %5338 = vmatmul.f32.gmra.mxu2 %v12328_v51  ;;  %5487 = vmatmul.f32.gmra.mxu3 %v12328_v51  ;;  %v12337_v51 = vld [vmem:[#allocation155_spill] sm:$0xff] }
 0x6a2   : > { %v5555_v13 = vsel %vm5528_vm12, %v5421_v39, -inf  ;;  %v4887_v9 = vpop.f32.mrf.mxu0 }
 0x6a3   : > { %v5556_v35 = vmax.f32 %v5552_v25, %v5555_v13  ;;  %v5072_v15 = vpop.f32.mrf.mxu1  ;;  %v5275_v5 = vpop.f32.mrf.mxu2  ;;  %v4888_v61 = vadd.f32 %v4887_v9, %v12337_v51 }
 0x6a4   : > { %v5424_v36 = vpop.f32.mrf.mxu3  ;;  %v5073_v42 = vadd.f32 %v5072_v15, %v4883_v26  ;;  %v12341_v26 = vld [vmem:[#allocation275_spill] sm:$0xff] }
 0x6a5   : > { %v5557_v48 = vmax.f32 %v5554_v47, %v5556_v35  ;;  %4966 = vmatmul.f32.gmra.mxu0 %v12329_v56  ;;  %v12338_v35 = vld [vmem:[#allocation271_spill] sm:$0xff]  ;;  %v12339_v56 = vld [vmem:[#allocation268_spill] sm:$0xff] }
 0x6a6   : > { %5167 = vmatmul.f32.gmra.mxu1 %v12330_v0  ;;  %v5276_v40 = vadd.f32 %v5275_v5, %v5073_v42  ;;  %v12340_v0 = vld [vmem:[#allocation269_spill] sm:$0xff] }
 0x6a7   : > { %v5558_v43 = vrot.slane %v5557_v48, 4 }
 0x6a8   : > { %5342 = vmatmul.f32.gmra.mxu2 %v12331_v23  ;;  %5491 = vmatmul.f32.gmra.mxu3 %v12331_v23  ;;  %v5425_v15 = vadd.f32 %v5424_v36, %v5276_v40 }
 0x6a9   : > { %v5559_v2 = vmax.f32 %v5557_v48, %v5558_v43 }
 0x6aa   : > { %v4892_v41 = vpop.f32.mrf.mxu0  ;;  %v5573_v43 = vsel %vm5528_vm12, %v5425_v15, -inf }
 0x6ab   : > { %v5560_v52 = vrot.slane %v5559_v2, 2  ;;  %v5078_v21 = vpop.f32.mrf.mxu1  ;;  %v5279_v29 = vpop.f32.mrf.mxu2  ;;  %v4893_v4 = vadd.f32 %v4892_v41, %v12336_v60 }
 0x6ac   : > { %v5428_v30 = vpop.f32.mrf.mxu3  ;;  %v5079_v8 = vadd.f32 %v5078_v21, %v4888_v61 }
 0x6ad   : > { %v5561_v22 = vmax.f32 %v5559_v2, %v5560_v52  ;;  %4971 = vmatmul.f32.gmra.mxu0 %v12333_v20  ;;  %v12342_v20 = vld [vmem:[#allocation274_spill] sm:$0xff] }
 0x6ae   : > { %5173 = vmatmul.f32.gmra.mxu1 %v12334_v18  ;;  %v5280_v23 = vadd.f32 %v5279_v29, %v5079_v8  ;;  %v12343_v18 = vld [vmem:[#allocation272_spill] sm:$0xff] }
 0x6af   : > { %v5562_v47 = vrot.slane %v5561_v22, 1 }
 0x6b0   : > { %5346 = vmatmul.f32.gmra.mxu2 %v12335_v59  ;;  %5495 = vmatmul.f32.gmra.mxu3 %v12335_v59  ;;  %v5429_v58 = vadd.f32 %v5428_v30, %v5280_v23  ;;  %v12345_v30 = vld [vmem:[#allocation277_spill] sm:$0xff] }
 0x6b1   : > { %v5563_v55 = vmax.f32 %v5561_v22, %v5562_v47 }
 0x6b2   : > { %v4897_v38 = vpop.f32.mrf.mxu0 }
 0x6b3   : > { %v10240_v45 = vsel %vm5696_vm5, %v5541_v62, %v5563_v55  ;;  %v5084_v63 = vpop.f32.mrf.mxu1  ;;  %v5283_v39 = vpop.f32.mrf.mxu2  ;;  %v4898_v32 = vadd.f32 %v4897_v38, %v10037_v16  ;;  %v5574_v16 = vsel %vm5528_vm12, %v5429_v58, -inf  ;;  %vm5804_vm5 = vcmask 654336  }
 0x6b4   : > { %v5085_v25 = vadd.f32 %v5084_v63, %v4893_v4  ;;  %v5432_v13 = vpop.f32.mrf.mxu3  ;;  %v12344_v4 = vld [vmem:[#allocation280_spill] sm:$0xff] }
 0x6b5   : > { %4976 = vmatmul.f32.gmra.mxu0 %v12338_v35 }
 0x6b6   : > { %v5284_v48 = vadd.f32 %v5283_v39, %v5085_v25  ;;  %5179 = vmatmul.f32.gmra.mxu1 %v12339_v56  ;;  %v12346_v56 = vld [vmem:[#allocation286_spill] sm:$0xff] }
 0x6b8   : > { %v5433_v5 = vadd.f32 %v5432_v13, %v5284_v48  ;;  %5350 = vmatmul.f32.gmra.mxu2 %v12340_v0  ;;  %5499 = vmatmul.f32.gmra.mxu3 %v12340_v0 }
 0x6ba   : > { %v5575_v9 = vsel %vm5528_vm12, %v5433_v5, -inf  ;;  %v4902_v2 = vpop.f32.mrf.mxu0 }
 0x6bb   : > { %v5576_v41 = vmax.f32 %v5573_v43, %v5575_v9  ;;  %v5090_v52 = vpop.f32.mrf.mxu1  ;;  %v5287_v36 = vpop.f32.mrf.mxu2  ;;  %v4903_v35 = vadd.f32 %v4902_v2, %v10044_v54  ;;  %v12347_v43 = vld [vmem:[#allocation283_spill] sm:$0xff] }
 0x6bc   : > { %v5091_v21 = vadd.f32 %v5090_v52, %v4898_v32  ;;  %v5436_v1 = vpop.f32.mrf.mxu3 }
 0x6bd   : > { %4981 = vmatmul.f32.gmra.mxu0 %v12341_v26  ;;  %v12348_v26 = vld [vmem:[#allocation291_spill] sm:$0xff] }
 0x6be   : > { %v5288_v22 = vadd.f32 %v5287_v36, %v5091_v21  ;;  %5185 = vmatmul.f32.gmra.mxu1 %v12342_v20  ;;  %v12349_v20 = vld [vmem:[#allocation288_spill] sm:$0xff] }
 0x6c0   : > { %v5437_v42 = vadd.f32 %v5436_v1, %v5288_v22  ;;  %5354 = vmatmul.f32.gmra.mxu2 %v12343_v18  ;;  %5503 = vmatmul.f32.gmra.mxu3 %v12343_v18 }
 0x6c2   : > { %v5577_v29 = vsel %vm5528_vm12, %v5437_v42, -inf  ;;  %v4907_v47 = vpop.f32.mrf.mxu0 }
 0x6c3   : > { %v5578_v59 = vmax.f32 %v5574_v16, %v5577_v29  ;;  %v5096_v62 = vpop.f32.mrf.mxu1  ;;  %v5291_v55 = vpop.f32.mrf.mxu2  ;;  %v4908_v39 = vadd.f32 %v4907_v47, %v10051_v12 }
 0x6c4   : > { %v5440_v40 = vpop.f32.mrf.mxu3  ;;  %v5097_v5 = vadd.f32 %v5096_v62, %v4903_v35 }
 0x6c5   : > { %v5579_v60 = vmax.f32 %v5576_v41, %v5578_v59  ;;  %4986 = vmatmul.f32.gmra.mxu0 %v12344_v4 }
 0x6c6   : > { %5191 = vmatmul.f32.gmra.mxu1 %v12345_v30  ;;  %v5292_v32 = vadd.f32 %v5291_v55, %v5097_v5  ;;  %v12350_v55 = vld [vmem:[#allocation292_spill] sm:$0xff] }
 0x6c7   : > { %v5580_v38 = vrot.slane %v5579_v60, 4 }
 0x6c8   : > { %5358 = vmatmul.f32.gmra.mxu2 %v12265_v34  ;;  %5507 = vmatmul.f32.gmra.mxu3 %v12265_v34  ;;  %v5441_v58 = vadd.f32 %v5440_v40, %v5292_v32 }
 0x6c9   : > { %v5581_v63 = vmax.f32 %v5579_v60, %v5580_v38 }
 0x6ca   : > { %v4912_v51 = vpop.f32.mrf.mxu0 }
 0x6cb   : > { %v5582_v61 = vrot.slane %v5581_v63, 2  ;;  %v5102_v25 = vpop.f32.mrf.mxu1  ;;  %v5295_v13 = vpop.f32.mrf.mxu2  ;;  %v4913_v9 = vadd.f32 %v4912_v51, %v10058_v10  ;;  %v5595_v10 = vsel %vm5528_vm12, %v5441_v58, -inf }
 0x6cc   : > { %v5103_v15 = vadd.f32 %v5102_v25, %v4908_v39  ;;  %v5444_v8 = vpop.f32.mrf.mxu3 }
 0x6cd   : > { %v5583_v48 = vmax.f32 %v5581_v63, %v5582_v61  ;;  %4991 = vmatmul.f32.gmra.mxu0 %v12346_v56 }
 0x6ce   : > { %v5296_v0 = vadd.f32 %v5295_v13, %v5103_v15  ;;  %5197 = vmatmul.f32.gmra.mxu1 %v12347_v43 }
 0x6cf   : > { %v5584_v23 = vrot.slane %v5583_v48, 1 }
 0x6d0   : > { %v5445_v34 = vadd.f32 %v5444_v8, %v5296_v0  ;;  %5362 = vmatmul.f32.gmra.mxu2 %v12268_v17  ;;  %5511 = vmatmul.f32.gmra.mxu3 %v12268_v17 }
 0x6d1   : > { %v5585_v12 = vmax.f32 %v5583_v48, %v5584_v23 }
 0x6d2   : > { %v4917_v54 = vpop.f32.mrf.mxu0  ;;  %v5596_v60 = vsel %vm5528_vm12, %v5445_v34, -inf }
 0x6d3   : > { %v5701_v2 = vsel %vm5699_vm6, %v10240_v45, %v5585_v12  ;;  %v4918_v41 = vadd.f32 %v4917_v54, %v10065_v24  ;;  %v5108_v52 = vpop.f32.mrf.mxu1  ;;  %v5299_v36 = vpop.f32.mrf.mxu2  ;;  %vm6348_vm6 = vcmask 818776  }
 0x6d4   : > { %v5109_v21 = vadd.f32 %v5108_v52, %v4913_v9  ;;  %v5448_v1 = vpop.f32.mrf.mxu3 }
 0x6d5   : > { %4996 = vmatmul.f32.gmra.mxu0 %v12348_v26 }
 0x6d6   : > { %v5300_v22 = vadd.f32 %v5299_v36, %v5109_v21  ;;  %5203 = vmatmul.f32.gmra.mxu1 %v12349_v20 }
 0x6d8   : > { %v5449_v17 = vadd.f32 %v5448_v1, %v5300_v22  ;;  %5366 = vmatmul.f32.gmra.mxu2 %v12270_v33  ;;  %5515 = vmatmul.f32.gmra.mxu3 %v12270_v33 }
 0x6da   : > { %v5597_v45 = vsel %vm5528_vm12, %v5449_v17, -inf  ;;  %v4922_v24 = vpop.f32.mrf.mxu0 }
 0x6db   : > { %v5598_v42 = vmax.f32 %v5595_v10, %v5597_v45  ;;  %v4923_v18 = vadd.f32 %v4922_v24, %v10072_v53  ;;  %v5114_v16 = vpop.f32.mrf.mxu1  ;;  %v5303_v29 = vpop.f32.mrf.mxu2 }
 0x6dc   : > { %v5115_v47 = vadd.f32 %v5114_v16, %v4918_v41  ;;  %v5452_v59 = vpop.f32.mrf.mxu3 }
 0x6de   : > { %v5304_v62 = vadd.f32 %v5303_v29, %v5115_v47  ;;  %5209 = vmatmul.f32.gmra.mxu1 %v12350_v55 }
 0x6e0   : > { %v5453_v40 = vadd.f32 %v5452_v59, %v5304_v62 }
 0x6e2   : > { %v5599_v33 = vsel %vm5528_vm12, %v5453_v40, -inf  ;;  %v4927_v4 = vpop.f32.mrf.mxu0 }
 0x6e3   : > { %v5600_v30 = vmax.f32 %v5596_v60, %v5599_v33  ;;  %v4928_v38 = vadd.f32 %v4927_v4, %v10079_v28  ;;  %v5120_v63 = vpop.f32.mrf.mxu1  ;;  %v5307_v39 = vpop.f32.mrf.mxu2 }
 0x6e4   : > { %v5121_v51 = vadd.f32 %v5120_v63, %v4923_v18  ;;  %v5456_v53 = vpop.f32.mrf.mxu3 }
 0x6e5   : > { %v5601_v61 = vmax.f32 %v5598_v42, %v5600_v30 }
 0x6e6   : > { %v5308_v25 = vadd.f32 %v5307_v39, %v5121_v51 }
 0x6e7   : > { %v5602_v13 = vrot.slane %v5601_v61, 4 }
 0x6e8   : > { %v5457_v35 = vadd.f32 %v5456_v53, %v5308_v25 }
 0x6e9   : > { %v5603_v15 = vmax.f32 %v5601_v61, %v5602_v13 }
 0x6ea   : > { %v4932_v8 = vpop.f32.mrf.mxu0  ;;  %v5617_v22 = vsel %vm5528_vm12, %v5457_v35, -inf }
 0x6eb   : > { %v5604_v48 = vrot.slane %v5603_v15, 2  ;;  %v4933_v56 = vadd.f32 %v4932_v8, %v10086_v46  ;;  %v5126_v5 = vpop.f32.mrf.mxu1  ;;  %v5311_v0 = vpop.f32.mrf.mxu2 }
 0x6ec   : > { %v5127_v43 = vadd.f32 %v5126_v5, %v4928_v38  ;;  %v5460_v23 = vpop.f32.mrf.mxu3 }
 0x6ed   : > { %v5605_v34 = vmax.f32 %v5603_v15, %v5604_v48 }
 0x6ee   : > { %v5312_v12 = vadd.f32 %v5311_v0, %v5127_v43 }
 0x6ef   : > { %v5606_v28 = vrot.slane %v5605_v34, 1 }
 0x6f0   : > { %v5461_v32 = vadd.f32 %v5460_v23, %v5312_v12 }
 0x6f1   : > { %v5607_v9 = vmax.f32 %v5605_v34, %v5606_v28 }
 0x6f2   : > { %v4937_v54 = vpop.f32.mrf.mxu0  ;;  %v5618_v29 = vsel %vm5528_vm12, %v5461_v32, -inf }
 0x6f3   : > { %v5704_v41 = vsel %vm5702_vm7, %v5701_v2, %v5607_v9  ;;  %v4938_v52 = vadd.f32 %v4937_v54, %v10093_v14  ;;  %v5132_v36 = vpop.f32.mrf.mxu1  ;;  %v5315_v21 = vpop.f32.mrf.mxu2  ;;  %vm6352_vm7 = vcmask 1023776  }
 0x6f4   : > { %v5133_v1 = vadd.f32 %v5132_v36, %v4933_v56  ;;  %v5464_v26 = vpop.f32.mrf.mxu3 }
 0x6f6   : > { %v5316_v58 = vadd.f32 %v5315_v21, %v5133_v1 }
 0x6f8   : > { %v5465_v46 = vadd.f32 %v5464_v26, %v5316_v58 }
 0x6fa   : > { %v5619_v20 = vsel %vm5528_vm12, %v5465_v46, -inf  ;;  %v4942_v17 = vpop.f32.mrf.mxu0 }
 0x6fb   : > { %v5620_v10 = vmax.f32 %v5617_v22, %v5619_v20  ;;  %v4943_v45 = vadd.f32 %v4942_v17, %v10100_v37  ;;  %v5138_v24 = vpop.f32.mrf.mxu1  ;;  %v5319_v42 = vpop.f32.mrf.mxu2 }
 0x6fc   : > { %v5139_v18 = vadd.f32 %v5138_v24, %v4938_v52  ;;  %v5468_v2 = vpop.f32.mrf.mxu3 }
 0x6fe   : > { %v5320_v16 = vadd.f32 %v5319_v42, %v5139_v18 }
 0x700   : > { %v5469_v14 = vadd.f32 %v5468_v2, %v5320_v16 }
 0x702   : > { %v5621_v47 = vsel %vm5528_vm12, %v5469_v14, -inf  ;;  %v4947_v59 = vpop.f32.mrf.mxu0 }
 0x703   : > { %v5622_v62 = vmax.f32 %v5618_v29, %v5621_v47  ;;  %v4948_v55 = vadd.f32 %v4947_v59, %v10107_v11  ;;  %v5144_v40 = vpop.f32.mrf.mxu1  ;;  %v5323_v60 = vpop.f32.mrf.mxu2 }
 0x704   : > { %v5145_v33 = vadd.f32 %v5144_v40, %v4943_v45  ;;  %v5472_v4 = vpop.f32.mrf.mxu3 }
 0x705   : > { %v5623_v30 = vmax.f32 %v5620_v10, %v5622_v62 }
 0x706   : > { %v5324_v37 = vadd.f32 %v5323_v60, %v5145_v33 }
 0x707   : > { %v5624_v38 = vrot.slane %v5623_v30, 4 }
 0x708   : > { %v5473_v63 = vadd.f32 %v5472_v4, %v5324_v37 }
 0x709   : > { %v5625_v39 = vmax.f32 %v5623_v30, %v5624_v38 }
 0x70a   : > { %v4952_v51 = vpop.f32.mrf.mxu0 }
 0x70b   : > { %v5626_v53 = vrot.slane %v5625_v39, 2  ;;  %v4953_v61 = vadd.f32 %v4952_v51, %v10114_v7  ;;  %v5150_v25 = vpop.f32.mrf.mxu1  ;;  %v5327_v13 = vpop.f32.mrf.mxu2  ;;  %v5639_v7 = vsel %vm5528_vm12, %v5473_v63, -inf }
 0x70c   : > { %v5151_v35 = vadd.f32 %v5150_v25, %v4948_v55  ;;  %v5476_v15 = vpop.f32.mrf.mxu3 }
 0x70d   : > { %v5627_v8 = vmax.f32 %v5625_v39, %v5626_v53 }
 0x70e   : > { %v5328_v48 = vadd.f32 %v5327_v13, %v5151_v35 }
 0x70f   : > { %v5628_v11 = vrot.slane %v5627_v8, 1 }
 0x710   : > { %v5477_v56 = vadd.f32 %v5476_v15, %v5328_v48 }
 0x711   : > { %v5629_v5 = vmax.f32 %v5627_v8, %v5628_v11 }
 0x712   : > { %v4957_v0 = vpop.f32.mrf.mxu0  ;;  %v5640_v20 = vsel %vm5528_vm12, %v5477_v56, -inf }
 0x713   : > { %v5707_v43 = vsel %vm5705_vm8, %v5704_v41, %v5629_v5  ;;  %v5156_v23 = vpop.f32.mrf.mxu1  ;;  %v5331_v34 = vpop.f32.mrf.mxu2  ;;  %v4958_v54 = vadd.f32 %v4957_v0, %v10121_v49 }
 0x714   : > { %v5157_v12 = vadd.f32 %v5156_v23, %v4953_v61  ;;  %v5480_v28 = vpop.f32.mrf.mxu3 }
 0x716   : > { %v5332_v32 = vadd.f32 %v5331_v34, %v5157_v12 }
 0x718   : > { %v5481_v9 = vadd.f32 %v5480_v28, %v5332_v32 }
 0x71a   : > { %v5641_v52 = vsel %vm5528_vm12, %v5481_v9, -inf  ;;  %v4962_v36 = vpop.f32.mrf.mxu0 }
 0x71b   : > { %v5642_v21 = vmax.f32 %v5639_v7, %v5641_v52  ;;  %v5162_v1 = vpop.f32.mrf.mxu1  ;;  %v5335_v26 = vpop.f32.mrf.mxu2  ;;  %v4963_v62 = vadd.f32 %v4962_v36, %v10128_v6 }
 0x71c   : > { %v5163_v58 = vadd.f32 %v5162_v1, %v4958_v54  ;;  %v5484_v46 = vpop.f32.mrf.mxu3 }
 0x71e   : > { %v5336_v22 = vadd.f32 %v5335_v26, %v5163_v58 }
 0x720   : > { %v5485_v41 = vadd.f32 %v5484_v46, %v5336_v22 }
 0x722   : > { %v5643_v17 = vsel %vm5528_vm12, %v5485_v41, -inf  ;;  %v4967_v10 = vpop.f32.mrf.mxu0 }
 0x723   : > { %v5644_v45 = vmax.f32 %v5640_v20, %v5643_v17  ;;  %v5168_v24 = vpop.f32.mrf.mxu1  ;;  %v5339_v42 = vpop.f32.mrf.mxu2  ;;  %v4968_v53 = vadd.f32 %v4967_v10, %v10135_v44 }
 0x724   : > { %v5488_v18 = vpop.f32.mrf.mxu3  ;;  %v5169_v60 = vadd.f32 %v5168_v24, %v4963_v62 }
 0x725   : > { %v5645_v49 = vmax.f32 %v5642_v21, %v5644_v45 }
 0x726   : > { %v5340_v30 = vadd.f32 %v5339_v42, %v5169_v60 }
 0x727   : > { %v5646_v2 = vrot.slane %v5645_v49, 4 }
 0x728   : > { %v5489_v13 = vadd.f32 %v5488_v18, %v5340_v30 }
 0x729   : > { %v5647_v16 = vmax.f32 %v5645_v49, %v5646_v2 }
 0x72a   : > { %v4972_v14 = vpop.f32.mrf.mxu0  ;;  %v5661_v8 = vsel %vm5528_vm12, %v5489_v13, -inf }
 0x72b   : > { %v5648_v29 = vrot.slane %v5647_v16, 2  ;;  %v5174_v47 = vpop.f32.mrf.mxu1  ;;  %v5343_v59 = vpop.f32.mrf.mxu2  ;;  %v4973_v37 = vadd.f32 %v4972_v14, %v10142_v19 }
 0x72c   : > { %v5492_v55 = vpop.f32.mrf.mxu3  ;;  %v5175_v35 = vadd.f32 %v5174_v47, %v4968_v53 }
 0x72d   : > { %v5649_v40 = vmax.f32 %v5647_v16, %v5648_v29 }
 0x72e   : > { %v5344_v48 = vadd.f32 %v5343_v59, %v5175_v35 }
 0x72f   : > { %v5650_v33 = vrot.slane %v5649_v40, 1 }
 0x730   : > { %v5493_v44 = vadd.f32 %v5492_v55, %v5344_v48 }
 0x731   : > { %v5651_v4 = vmax.f32 %v5649_v40, %v5650_v33 }
 0x732   : > { %v4977_v38 = vpop.f32.mrf.mxu0  ;;  %v5662_v32 = vsel %vm5528_vm12, %v5493_v44, -inf }
 0x733   : > { %v5710_v63 = vsel %vm5708_vm9, %v5707_v43, %v5651_v4  ;;  %v5180_v39 = vpop.f32.mrf.mxu1  ;;  %v5347_v51 = vpop.f32.mrf.mxu2  ;;  %v4978_v11 = vadd.f32 %v4977_v38, %v10149_v3  ;;  %vm6356_vm9 = vcmask 1048552  }
 0x734   : > { %v5181_v61 = vadd.f32 %v5180_v39, %v4973_v37  ;;  %v5496_v25 = vpop.f32.mrf.mxu3 }
 0x736   : > { %v5348_v6 = vadd.f32 %v5347_v51, %v5181_v61 }
 0x738   : > { %v5497_v15 = vadd.f32 %v5496_v25, %v5348_v6 }
 0x73a   : > { %v5663_v19 = vsel %vm5528_vm12, %v5497_v15, -inf  ;;  %v4982_v56 = vpop.f32.mrf.mxu0 }
 0x73b   : > { %v5664_v5 = vmax.f32 %v5661_v8, %v5663_v19  ;;  %v5186_v0 = vpop.f32.mrf.mxu1  ;;  %v5351_v43 = vpop.f32.mrf.mxu2  ;;  %v4983_v41 = vadd.f32 %v4982_v56, %v10156_v57 }
 0x73c   : > { %v5187_v23 = vadd.f32 %v5186_v0, %v4978_v11  ;;  %v5500_v34 = vpop.f32.mrf.mxu3 }
 0x73e   : > { %v5352_v12 = vadd.f32 %v5351_v43, %v5187_v23  ;;  %v12352_v23 = vld [vmem:[#allocation110_spill] sm:$0xff] }
 0x740   : > { %v5501_v28 = vadd.f32 %v5500_v34, %v5352_v12  ;;  %v5782_v34 = vpop.permute.xlu2 %5781  ;;  %v5790_v12 = vpop.permute.xlu0 %5789 }
 0x742   : > { %v5665_v9 = vsel %vm5528_vm12, %v5501_v28, -inf  ;;  %v4987_v7 = vpop.f32.mrf.mxu0 }
 0x743   : > { %v5666_v54 = vmax.f32 %v5662_v32, %v5665_v9  ;;  %v5192_v52 = vpop.f32.mrf.mxu1  ;;  %v5355_v36 = vpop.f32.mrf.mxu2  ;;  %v4988_v29 = vadd.f32 %v4987_v7, %v10163_v50 }
 0x744   : > { %v5504_v3 = vpop.f32.mrf.mxu3  ;;  %v5193_v45 = vadd.f32 %v5192_v52, %v4983_v41  ;;  %v5774_v32 = vpop.permute.xlu1 %5773 }
 0x745   : > { %v5667_v21 = vmax.f32 %v5664_v5, %v5666_v54  ;;  %v12351_v5 = vld [vmem:[#allocation149_spill] sm:$0xff] }
 0x746   : > { %v5356_v18 = vadd.f32 %v5355_v36, %v5193_v45 }
 0x747   : > { %v5668_v1 = vrot.slane %v5667_v21, 4 }
 0x748   : > { %v5505_v62 = vadd.f32 %v5504_v3, %v5356_v18  ;;  %v5758_v44 = vpop.permute.xlu2 %5757  ;;  %v5766_v9 = vpop.permute.xlu0 %5765 }
 0x749   : > { %v5669_v26 = vmax.f32 %v5667_v21, %v5668_v1 }
 0x74a   : > { %v4992_v10 = vpop.f32.mrf.mxu0  ;;  %v5683_v33 = vsel %vm5528_vm12, %v5505_v62, -inf }
 0x74b   : > { %v5670_v58 = vrot.slane %v5669_v26, 2  ;;  %v5198_v46 = vpop.f32.mrf.mxu1  ;;  %v5359_v22 = vpop.f32.mrf.mxu2  ;;  %v4993_v49 = vadd.f32 %v4992_v10, %v10170_v31 }
 0x74c   : > { %v5508_v20 = vpop.f32.mrf.mxu3  ;;  %v5199_v55 = vadd.f32 %v5198_v46, %v4988_v29  ;;  %v5751_v54 = vpop.permute.xlu1 %5750 }
 0x74d   : > { %v5671_v17 = vmax.f32 %v5669_v26, %v5670_v58 }
 0x74e   : > { %v5360_v4 = vadd.f32 %v5359_v22, %v5199_v55 }
 0x74f   : > { %v5672_v24 = vrot.slane %v5671_v17, 1 }
 0x750   : > { %v5509_v50 = vadd.f32 %v5508_v20, %v5360_v4  ;;  %v10339_v28 = vpop.permute.xlu2 %5736  ;;  %v10343_v52 = vpop.permute.xlu0 %5743 }
 0x751   : > { %v5673_v42 = vmax.f32 %v5671_v17, %v5672_v24 }
 0x752   : > { %v4997_v40 = vpop.f32.mrf.mxu0  ;;  %v5684_v25 = vsel %vm5528_vm12, %v5509_v50, -inf }
 0x753   : > { %v5713_v2 = vsel %vm5711_vm10, %v5710_v63, %v5673_v42  ;;  %v5204_v16 = vpop.f32.mrf.mxu1  ;;  %v5363_v14 = vpop.f32.mrf.mxu2  ;;  %v4998_v30 = vadd.f32 %v4997_v40, %v10177_v27  ;;  %vm6358_vm10 = vcmask 179200  }
 0x754   : > { %v5205_v47 = vadd.f32 %v5204_v16, %v4993_v49  ;;  %v5512_v59 = vpop.f32.mrf.mxu3 }
 0x756   : > { %v5364_v57 = vadd.f32 %v5363_v14, %v5205_v47 }
 0x758   : > { %v5513_v60 = vadd.f32 %v5512_v59, %v5364_v57 }
 0x75a   : > { %v5685_v31 = vsel %vm5528_vm12, %v5513_v60, -inf }
 0x75b   : > { %v5686_v37 = vmax.f32 %v5683_v33, %v5685_v31  ;;  %v5210_v38 = vpop.f32.mrf.mxu1  ;;  %v5367_v63 = vpop.f32.mrf.mxu2 }
 0x75c   : > { %v5211_v39 = vadd.f32 %v5210_v38, %v4998_v30  ;;  %v5516_v51 = vpop.f32.mrf.mxu3 }
 0x75e   : > { %v5368_v53 = vadd.f32 %v5367_v63, %v5211_v39 }
 0x760   : > { %v5517_v61 = vadd.f32 %v5516_v51, %v5368_v53 }
 0x762   : > { %v5687_v13 = vsel %vm5528_vm12, %v5517_v61, -inf  ;;  %vm6365_vm12 = vcmask 15360  }
 0x763   : > { %v5688_v35 = vmax.f32 %v5684_v25, %v5687_v13 }
 0x765   : > { %v5689_v6 = vmax.f32 %v5686_v37, %v5688_v35 }
 0x767   : > { %v5690_v15 = vrot.slane %v5689_v6, 4 }
 0x769   : > { %v5691_v8 = vmax.f32 %v5689_v6, %v5690_v15 }
 0x76b   : > { %v5692_v48 = vrot.slane %v5691_v8, 2 }
 0x76d   : > { %v5693_v27 = vmax.f32 %v5691_v8, %v5692_v48 }
 0x76f   : > { %v5694_v11 = vrot.slane %v5693_v27, 1 }
 0x771   : > { %v5695_v19 = vmax.f32 %v5693_v27, %v5694_v11 }
 0x773   : > { %v5716_v56 = vsel %vm5714_vm11, %v5713_v2, %v5695_v19  ;;  %v5797_v2 = vld [vmem:[%s11114_s3] sm:$0xff]  ;;  %vm6363_vm11 = vcmask 7168  }
 0x774   : > { %v5724_v0 = vadd.f32 %v12351_v5, %v5716_v56  ;;  %v5806_v33 = vsel %vm5804_vm5, %v5797_v2, 0  ;;  %vm6400_vm5 = vcmask 195584  }
 0x775   : > { %v10419_v63 = vand.u32 4294901760, %v5806_v33 }
 0x776   : > { %v10317_v43 = vmax.f32 %v5724_v0, 0.0 }
 0x777   : > { %v10452_v48 = vsub.f32 %v5806_v33, %v10419_v63 }
 0x778   : > { %5791 = vrot.lane.b32.xlu1 %v10317_v43, %s7207_s23  ;;  %5775 = vrot.lane.b32.xlu2 %v10317_v43, %s7205_s21  ;;  %s7213_s21 = smov 24  }
 0x779   : > { %5783 = vrot.lane.b32.xlu0 %v10317_v43, %s7206_s22  ;;  %s7214_s22 = smov 30  }
 0x780   : > { %5767 = vrot.lane.b32.xlu1 %v10317_v43, %s7209_s25  ;;  %5752 = vrot.lane.b32.xlu2 %v10317_v43, %s7203_s29 }
 0x781   : > { %5759 = vrot.lane.b32.xlu0 %v10317_v43, %s7208_s24  ;;  %s7003_s24 = scalar_lea.hbm %s11120_s9, %s7286_s13 }
 0x788   : > { %5745 = vrot.lane.b32.xlu1 %v10317_v43, %s7200_s26  ;;  %5731 = vrot.lane.b32.xlu2 %v10317_v43, %s7202_s28 }
 0x789   : > { %5738 = vrot.lane.b32.xlu0 %v10317_v43, %s7201_s27  ;;  %s7007_s27 = sshll.u32 %s7003_s24, 4  ;;  %s7008_s27 = int_to_ptr.hbm [resolvable:$true] %s7007_s27 }
 0x78a   : > { %s7150_s13 = sshra.s32 %s7008_s27, 4  ;;  %s7151_s13 = int_to_ptr.hbm [resolvable:$true] %s7150_s13 }
 0x78b   : > { %s7152_s29 = scalar_lea.hbm %s7151_s13, 1  ;;  %p7157_p0 = scmp.lt.s32.totalorder %s7151_s13, %s11120_s9 }
 0x78c   : > { %p7153_p11 = scmp.ne.s32.totalorder %s7151_s13, %s7152_s29 }
 0x78e   : > { %p7154_p12 = pnand %p7153_p11, %p7303_p5 }
 0x790   : > { %5729 = vrot.lane.b32.xlu1 %v12352_v23, %s7202_s28  ;;  %p7155_p13 = pneg %p7154_p12 }
 0x7d2   : > { %v10341_v7 = vpop.permute.xlu2 %5775 }
 0x7d3   : > { %v5778_v36 = vsel %vm5777_vm13, %v5774_v32, %v10341_v7  ;;  %v10464_v5 = vand.u32 4294901760, %v10341_v7  ;;  %vm6367_vm13 = vcmask 23552  }
 0x7d4   : > { %v10346_v3 = vand.u32 4294901760, %v5778_v36 }
 0x7d6   : > { %v10358_v22 = vsub.f32 %v5778_v36, %v10346_v3 }
 0x7d8   : > { %v5863_v42 = vand.u32 4294901760, %v10358_v22 }
 0x7da   : > { %v10348_v21 = vpop.permute.xlu2 %5752  ;;  %v5864_v55 = vsub.f32 %v10358_v22, %v5863_v42 }
 0x7db   : > { %v5754_v26 = vsel %vm449_vm3, %v5751_v54, %v10348_v21  ;;  %vm5769_vm3 = vcmask 998400   ;;  %v10488_v54 = vand.u32 4294901760, %v10452_v48 }
 0x7dc   : > { %v10365_v10 = vand.u32 4294901760, %v5754_v26  ;;  %v5865_v51 = vand.u32 4294901760, %v5864_v55 }
 0x7dd   : > { %v5837_v33 = vsub.f32 %v10452_v48, %v10488_v54 }
 0x7de   : > { %v10392_v29 = vsub.f32 %v5754_v26, %v10365_v10  ;;  %v10495_v26 = vsub.f32 %v10341_v7, %v10464_v5 }
 0x7e0   : > { %v5881_v37 = vand.u32 4294901760, %v10392_v29 }
 0x7e2   : > { %v5882_v35 = vsub.f32 %v10392_v29, %v5881_v37  ;;  %v5732_v2 = vpop.permute.xlu2 %5731 }
 0x7e4   : > { %v5883_v36 = vand.u32 4294901760, %v5882_v35  ;;  %v11577_v35 = vand.u32 4294901760, %v10495_v26 }
 0x7ea   : > { %v10350_v1 = vpop.permute.xlu1 %5791 }
 0x7eb   : > { %v5794_v58 = vsel %vm5793_vm14, %v5790_v12, %v10350_v1  ;;  %v10355_v46 = vpop.permute.xlu0 %5783  ;;  %v10422_v39 = vand.u32 4294901760, %v10350_v1  ;;  %vm6369_vm14 = vcmask 31744  }
 0x7ec   : > { %v10360_v41 = vand.u32 4294901760, %v5794_v58  ;;  %v5786_v20 = vsel %vm5785_vm15, %v5782_v34, %v10355_v46  ;;  %v10430_v61 = vand.u32 4294901760, %v10355_v46  ;;  %vm6371_vm15 = vcmask 39936  }
 0x7ed   : > { %v10363_v17 = vand.u32 4294901760, %v5786_v20  ;;  %v10456_v27 = vsub.f32 %v10350_v1, %v10422_v39 }
 0x7ee   : > { %v10368_v45 = vsub.f32 %v5794_v58, %v10360_v41  ;;  %5815 = vmatpush.msra.mxu0 %v10360_v41  ;;  %5963 = vmatpush.msra.mxu3 %v10360_v41  ;;  %v10471_v34 = vsub.f32 %v10355_v46, %v10430_v61 }
 0x7ef   : > { %v10373_v24 = vsub.f32 %v5786_v20, %v10363_v17  ;;  %v10504_v20 = vand.u32 4294901760, %v10348_v21 }
 0x7f0   : > { %v5851_v18 = vand.u32 4294901760, %v10368_v45  ;;  %5817 = vmatpush.msra.mxu0 %v10363_v17  ;;  %5922 = vmatpush.msra.mxu2 %v10368_v45 }
 0x7f1   : > { %5965 = vmatpush.msra.mxu3 %v10363_v17  ;;  %v5857_v49 = vand.u32 4294901760, %v10373_v24 }
 0x7f2   : > { %v10384_v16 = vpop.permute.xlu1 %5767  ;;  %5819 = vmatpush.msra.mxu0 %v10346_v3  ;;  %5925 = vmatpush.msra.mxu2 %v10373_v24  ;;  %v5852_v14 = vsub.f32 %v10368_v45, %v5851_v18 }
 0x7f3   : > { %v5770_v47 = vsel %vm5769_vm3, %v5766_v9, %v10384_v16  ;;  %5967 = vmatpush.msra.mxu3 %v10346_v3  ;;  %v10396_v59 = vpop.permute.xlu0 %5759  ;;  %v5858_v62 = vsub.f32 %v10373_v24, %v5857_v49  ;;  %v10481_v32 = vand.u32 4294901760, %v10384_v16  ;;  %vm6396_vm3 = vcmask 97280  }
 0x7f4   : > { %v10404_v57 = vand.u32 4294901760, %v5770_v47  ;;  %v5762_v40 = vsel %vm5761_vm4, %v5758_v44, %v10396_v59  ;;  %5928 = vmatpush.msra.mxu2 %v10358_v22  ;;  %v5853_v60 = vand.u32 4294901760, %v5852_v14  ;;  %v10498_v58 = vand.u32 4294901760, %v10396_v59 }
 0x7f5   : > { %v10408_v4 = vand.u32 4294901760, %v5762_v40  ;;  %v5859_v30 = vand.u32 4294901760, %v5858_v62  ;;  %v11578_v62 = vand.u32 4294901760, %v10471_v34  ;;  %v10516_v55 = vsub.f32 %v10384_v16, %v10481_v32 }
 0x7f6   : > { %5821 = vmatpush.msra.mxu0 %v10404_v57  ;;  %5854 = vmatpush.msra.mxu1 %v5853_v60  ;;  %v10412_v31 = vsub.f32 %v5770_v47, %v10404_v57  ;;  %v10532_v16 = vsub.f32 %v10396_v59, %v10498_v58  ;;  %vm6398_vm4 = vcmask 146432  }
 0x7f7   : > { %5969 = vmatpush.msra.mxu3 %v10404_v57  ;;  %v10417_v38 = vsub.f32 %v5762_v40, %v10408_v4 }
 0x7f8   : > { %5823 = vmatpush.msra.mxu0 %v10408_v4  ;;  %5860 = vmatpush.msra.mxu1 %v5859_v30  ;;  %v5869_v50 = vand.u32 4294901760, %v10412_v31 }
 0x7f9   : > { %5931 = vmatpush.msra.mxu2 %v10412_v31  ;;  %5971 = vmatpush.msra.mxu3 %v10408_v4  ;;  %v5875_v53 = vand.u32 4294901760, %v10417_v38 }
 0x7fa   : > { %v10432_v25 = vpop.permute.xlu1 %5745  ;;  %5825 = vmatpush.msra.mxu0 %v10365_v10  ;;  %5866 = vmatpush.msra.mxu1 %v5865_v51  ;;  %v5870_v13 = vsub.f32 %v10412_v31, %v5869_v50 }
 0x7fb   : > { %v5747_v6 = vsel %vm420_vm0, %v10343_v52, %v10432_v25  ;;  %5934 = vmatpush.msra.mxu2 %v10417_v38  ;;  %5973 = vmatpush.msra.mxu3 %v10365_v10  ;;  %v10446_v15 = vpop.permute.xlu0 %5738  ;;  %v5876_v8 = vsub.f32 %v10417_v38, %v5875_v53  ;;  %v11579_v52 = vand.u32 4294901760, %v10456_v27  ;;  %vm6340_vm0 = vcmask 408776  }
 0x7fc   : > { %v10458_v11 = vand.u32 4294901760, %v5747_v6  ;;  %v5740_v19 = vsel %vm391_vm1, %v10339_v28, %v10446_v15  ;;  %v5871_v56 = vand.u32 4294901760, %v5870_v13  ;;  %v10478_v28 = vand.u32 4294901760, %v12352_v23 }
 0x7fd   : > { %v10466_v0 = vand.u32 4294901760, %v5740_v19  ;;  %5937 = vmatpush.msra.mxu2 %v10392_v29  ;;  %v5877_v44 = vand.u32 4294901760, %v5876_v8  ;;  %v6115_v51 = vsub.f32 %v10456_v27, %v11579_v52  ;;  %v10535_v13 = vand.u32 4294901760, %v10432_v25 }
 0x7fe   : > { %5827 = vmatpush.msra.mxu0 %v10458_v11  ;;  %5872 = vmatpush.msra.mxu1 %v5871_v56  ;;  %v10475_v12 = vsub.f32 %v5747_v6, %v10458_v11  ;;  %v10511_v47 = vsub.f32 %v12352_v23, %v10478_v28  ;;  %v10540_v6 = vsub.f32 %v10348_v21, %v10504_v20  ;;  %v10548_v59 = vand.u32 4294901760, %v10446_v15 }
 0x7ff   : > { %5975 = vmatpush.msra.mxu3 %v10458_v11  ;;  %v10485_v9 = vsub.f32 %v5740_v19, %v10466_v0  ;;  %v11580_v21 = vand.u32 4294901760, %v10516_v55  ;;  %vm6336_vm1 = vcmask 203776  }
 0x800   : > { %5829 = vmatpush.msra.mxu0 %v10466_v0  ;;  %5878 = vmatpush.msra.mxu1 %v5877_v44  ;;  %v5887_v1 = vand.u32 4294901760, %v10475_v12  ;;  %v5905_v56 = vand.u32 4294901760, %v10511_v47  ;;  %v6121_v44 = vsub.f32 %v10471_v34, %v11578_v62 }
 0x801   : > { %5940 = vmatpush.msra.mxu2 %v10475_v12  ;;  %5977 = vmatpush.msra.mxu3 %v10466_v0  ;;  %v5893_v46 = vand.u32 4294901760, %v10485_v9 }
 0x802   : > { %v5730_v14 = vpop.permute.xlu1 %5729  ;;  %5884 = vmatpush.msra.mxu1 %v5883_v36  ;;  %v5888_v7 = vsub.f32 %v10475_v12, %v5887_v1  ;;  %v10555_v36 = vand.u32 4294901760, %v5837_v33  ;;  %v6127_v33 = vsub.f32 %v10495_v26, %v11577_v35  ;;  %v10584_v35 = vsub.f32 %v10446_v15, %v10548_v59 }
 0x803   : > { %v5733_v40 = vsel %vm362_vm2, %v5730_v14, %v5732_v2  ;;  %5943 = vmatpush.msra.mxu2 %v10485_v9  ;;  %v5894_v60 = vsub.f32 %v10485_v9, %v5893_v46  ;;  %v6116_v14 = vand.u32 4294901760, %v6115_v51  ;;  %v6122_v45 = vand.u32 4294901760, %v6121_v44 }
 0x804   : > { %v10525_v30 = vand.u32 4294901760, %v5733_v40  ;;  %v5889_v23 = vand.u32 4294901760, %v5888_v7  ;;  %v6128_v52 = vand.u32 4294901760, %v6127_v33  ;;  %v6156_v33 = vand.u32 4294901760, %v10584_v35 }
 0x805   : > { %v5895_v19 = vand.u32 4294901760, %v5894_v60  ;;  %v10563_v60 = vsub.f32 %v10432_v25, %v10535_v13  ;;  %v5906_v25 = vsub.f32 %v10511_v47, %v5905_v56  ;;  %vm6344_vm2 = vcmask 613776  }
 0x806   : > { %v10543_v8 = vsub.f32 %v5733_v40, %v10525_v30  ;;  %5831 = vmatpush.msra.mxu0 %v10525_v30  ;;  %5890 = vmatpush.msra.mxu1 %v5889_v23  ;;  %v10559_v40 = vand.u32 4294901760, %v5732_v2  ;;  %v6138_v23 = vand.u32 4294901760, %v10532_v16  ;;  %v6157_v31 = vsub.f32 %v10584_v35, %v6156_v33 }
 0x807   : > { %5979 = vmatpush.msra.mxu3 %v10525_v30  ;;  %v5907_v24 = vand.u32 4294901760, %v5906_v25 }
 0x808   : > { %5833 = vmatpush.msra.mxu0 %v10478_v28  ;;  %5896 = vmatpush.msra.mxu1 %v5895_v19  ;;  %v5899_v7 = vand.u32 4294901760, %v10543_v8  ;;  %v10580_v19 = vand.u32 4294901760, %v10317_v43  ;;  %v10596_v15 = vsub.f32 %v5732_v2, %v10559_v40  ;;  %v6139_v44 = vsub.f32 %v10532_v16, %v6138_v23 }
 0x809   : > { %5946 = vmatpush.msra.mxu2 %v10543_v8  ;;  %5981 = vmatpush.msra.mxu3 %v10478_v28  ;;  %v6158_v29 = vand.u32 4294901760, %v6157_v31  ;;  %v6408_v31 = vld [vmem:[%s11116_s5 + $0x20] sm:$0xf] }
 0x80a   : > { %5998 = vmatpush.msrb.mxu0 %v5851_v18  ;;  %v5900_v51 = vsub.f32 %v10543_v8, %v5899_v7  ;;  %v6133_v18 = vsub.f32 %v10516_v55, %v11580_v21  ;;  %v6150_v21 = vand.u32 4294901760, %v10563_v60  ;;  %v6140_v22 = vand.u32 4294901760, %v6139_v44  ;;  %5985 = vmatmul.f32.vlgmr.msra.gmra.mxu3 %v10488_v54 }
 0x80b   : > { %6117 = vmatpush.msrb.mxu3 %v6116_v14  ;;  %5949 = vmatpush.msra.mxu2 %v10511_v47  ;;  %v6144_v14 = vand.u32 4294901760, %v10540_v6 }
 0x80c   : > { %5839 = vmatmul.f32.vlgmr.msra.gmra.mxu0 %v10555_v36  ;;  %v5901_v62 = vand.u32 4294901760, %v5900_v51  ;;  %5952 = vmatmul.f32.vlgmr.msra.gmra.mxu2 %v10452_v48  ;;  %v10612_v51 = vsub.f32 %v10317_v43, %v10580_v19 }
 0x80d   : > { %6002 = vmatpush.msrb.mxu0 %v5857_v49  ;;  %6078 = vmatpush.msrb.mxu2 %v10422_v39  ;;  %v6134_v49 = vand.u32 4294901760, %v6133_v18  ;;  %v6145_v2 = vsub.f32 %v10540_v6, %v6144_v14 }
 0x80e   : > { %6123 = vmatpush.msrb.mxu3 %v6122_v45  ;;  %5902 = vmatpush.msra.mxu1 %v5901_v62 }
 0x80f   : > { %6006 = vmatpush.msrb.mxu0 %v5863_v42  ;;  %6080 = vmatpush.msrb.mxu2 %v10430_v61  ;;  %v6151_v42 = vsub.f32 %v10563_v60, %v6150_v21  ;;  %v6146_v43 = vand.u32 4294901760, %v6145_v2 }
 0x810   : > { %6129 = vmatpush.msrb.mxu3 %v6128_v52  ;;  %5908 = vmatpush.msra.mxu1 %v5907_v24  ;;  %v6162_v52 = vand.u32 4294901760, %v10596_v15 }
 0x811   : > { %6010 = vmatpush.msrb.mxu0 %v5869_v50  ;;  %6082 = vmatpush.msrb.mxu2 %v10464_v5  ;;  %v6168_v50 = vand.u32 4294901760, %v10612_v51  ;;  %v6152_v38 = vand.u32 4294901760, %v6151_v42 }
 0x812   : > { %6135 = vmatpush.msrb.mxu3 %v6134_v49  ;;  %6047 = vmatpush.msrb.mxu1 %v10360_v41  ;;  %v6163_v41 = vsub.f32 %v10596_v15, %v6162_v52 }
 0x813   : > { %6014 = vmatpush.msrb.mxu0 %v5875_v53  ;;  %6084 = vmatpush.msrb.mxu2 %v10481_v32  ;;  %v12356_v53 = vand.u32 4294901760, %v10516_v55 }
 0x814   : > { %6141 = vmatpush.msrb.mxu3 %v6140_v22  ;;  %6049 = vmatpush.msrb.mxu1 %v10363_v17  ;;  %v6169_v17 = vsub.f32 %v10612_v51, %v6168_v50 }
 0x815   : > { %6018 = vmatpush.msrb.mxu0 %v5881_v37  ;;  %6086 = vmatpush.msrb.mxu2 %v10498_v58  ;;  %v6164_v37 = vand.u32 4294901760, %v6163_v41  ;;  %v6407_v41 = vld [vmem:[%s11116_s5 + $0x18] sm:$0xff] }
 0x816   : > { %6147 = vmatpush.msrb.mxu3 %v6146_v43  ;;  %6051 = vmatpush.msrb.mxu1 %v10346_v3  ;;  %v6170_v3 = vand.u32 4294901760, %v6169_v17  ;;  %v10743_v17 = vand.u32 4294901760, %v6407_v41 }
 0x817   : > { %6022 = vmatpush.msrb.mxu0 %v5887_v1  ;;  %6088 = vmatpush.msrb.mxu2 %v10504_v20 }
 0x818   : > { %6153 = vmatpush.msrb.mxu3 %v6152_v38  ;;  %6053 = vmatpush.msrb.mxu1 %v10404_v57  ;;  %v12353_v57 = vand.u32 4294901760, %v10456_v27 }
 0x819   : > { %6026 = vmatpush.msrb.mxu0 %v5893_v46  ;;  %6090 = vmatpush.msrb.mxu2 %v10535_v13 }
 0x81a   : > { %6159 = vmatpush.msrb.mxu3 %v6158_v29  ;;  %6055 = vmatpush.msrb.mxu1 %v10408_v4  ;;  %v12355_v4 = vand.u32 4294901760, %v10495_v26 }
 0x81b   : > { %6030 = vmatpush.msrb.mxu0 %v5899_v7  ;;  %6092 = vmatpush.msrb.mxu2 %v10548_v59 }
 0x81c   : > { %6165 = vmatpush.msrb.mxu3 %v6164_v37  ;;  %6057 = vmatpush.msrb.mxu1 %v10365_v10  ;;  %v12354_v10 = vand.u32 4294901760, %v10471_v34  ;;  %v6406_v37 = vld [vmem:[%s11116_s5 + $0x10] sm:$0xff] }
 0x81d   : > { %6034 = vmatpush.msrb.mxu0 %v5905_v56  ;;  %6094 = vmatpush.msrb.mxu2 %v10559_v40 }
 0x81e   : > { %6171 = vmatpush.msrb.mxu3 %v6170_v3  ;;  %6059 = vmatpush.msrb.mxu1 %v10458_v11 }
 0x81f   : > { %6185 = vmatpush.msra.mxu0 %v10456_v27  ;;  %6096 = vmatpush.msrb.mxu2 %v10580_v19 }
 0x820   : > { %6310 = vmatpush.msra.mxu3 %v10422_v39  ;;  %6061 = vmatpush.msrb.mxu1 %v10466_v0 }
 0x821   : > { %6188 = vmatpush.msra.mxu0 %v10471_v34  ;;  %6261 = vmatpush.msra.mxu2 %v12353_v57  ;;  %v10750_v57 = vand.u32 4294901760, %v6406_v37 }
 0x822   : > { %6312 = vmatpush.msra.mxu3 %v10430_v61  ;;  %6063 = vmatpush.msrb.mxu1 %v10525_v30 }
 0x823   : > { %6191 = vmatpush.msra.mxu0 %v10495_v26  ;;  %6265 = vmatpush.msra.mxu2 %v12354_v10  ;;  %v10753_v10 = vsub.f32 %v6407_v41, %v10743_v17 }
 0x824   : > { %6314 = vmatpush.msra.mxu3 %v10464_v5  ;;  %6065 = vmatpush.msrb.mxu1 %v10478_v28 }
 0x825   : > { %6194 = vmatpush.msra.mxu0 %v10516_v55  ;;  %6269 = vmatpush.msra.mxu2 %v12355_v4  ;;  %v6405_v4 = vld [vmem:[%s11116_s5 + $0x8] sm:$0xff] }
 0x826   : > { %6316 = vmatpush.msra.mxu3 %v10481_v32  ;;  %5910 = vmatmul.f32.vlgmr.msra.gmra.mxu1 %v10419_v63 }
 0x827   : > { %6197 = vmatpush.msra.mxu0 %v10532_v16  ;;  %6273 = vmatpush.msra.mxu2 %v12356_v53 }
 0x828   : > { %6226 = vmatpush.msra.mxu1 %v10422_v39  ;;  %6318 = vmatpush.msra.mxu3 %v10498_v58  ;;  %v5798_v39 = vld [vmem:[%s11115_s4] sm:$0xff] }
 0x829   : > { %6200 = vmatpush.msra.mxu0 %v10540_v6  ;;  %6277 = vmatpush.msra.mxu2 %v6138_v23 }
 0x82a   : > { %6228 = vmatpush.msra.mxu1 %v10430_v61  ;;  %6320 = vmatpush.msra.mxu3 %v10504_v20 }
 0x82b   : > { %6203 = vmatpush.msra.mxu0 %v10563_v60  ;;  %6281 = vmatpush.msra.mxu2 %v6144_v14 }
 0x82c   : > { %6230 = vmatpush.msra.mxu1 %v10464_v5  ;;  %6322 = vmatpush.msra.mxu3 %v10535_v13 }
 0x82d   : > { %6206 = vmatpush.msra.mxu0 %v10584_v35  ;;  %6285 = vmatpush.msra.mxu2 %v6150_v21 }
 0x82e   : > { %6232 = vmatpush.msra.mxu1 %v10481_v32  ;;  %6324 = vmatpush.msra.mxu3 %v10548_v59 }
 0x82f   : > { %6209 = vmatpush.msra.mxu0 %v10596_v15  ;;  %6289 = vmatpush.msra.mxu2 %v6156_v33 }
 0x830   : > { %6234 = vmatpush.msra.mxu1 %v10498_v58  ;;  %6326 = vmatpush.msra.mxu3 %v10559_v40 }
 0x831   : > { %6212 = vmatpush.msra.mxu0 %v10612_v51  ;;  %6293 = vmatpush.msra.mxu2 %v6162_v52 }
 0x832   : > { %6236 = vmatpush.msra.mxu1 %v10504_v20  ;;  %6328 = vmatpush.msra.mxu3 %v10580_v19 }
 0x833   : > { %6297 = vmatpush.msra.mxu2 %v6168_v50  ;;  %6036 = vmatmul.f32.vlgmr.msrb.gmra.mxu0 %v10419_v63  ;;  %v6415_v50 = vsel %vm5705_vm8, %v6408_v31, 0  ;;  %vm6394_vm8 = vcmask 48128  }
 0x834   : > { %6238 = vmatpush.msra.mxu1 %v10535_v13  ;;  %6102 = vmatmul.f32.vlgmr.msrb.gmra.mxu2 %v10555_v36  ;;  %v10734_v38 = vand.u32 4294901760, %v6415_v50 }
 0x835   : > { %6067 = vmatmul.f32.vlgmr.msrb.gmra.mxu1 %v10419_v63  ;;  %6173 = vmatmul.f32.vlgmr.msrb.gmra.mxu3 %v10419_v63 }
 0x836   : > { %6240 = vmatpush.msra.mxu1 %v10548_v59  ;;  %5801 = vperm.xlu0 %7127, %v5798_v39   ;;  %v10741_v29 = vsub.f32 %v6415_v50, %v10734_v38  ;;  %v6466_v39 = vand.u32 4294901760, %v10753_v10 }
 0x837   : > { %6429 = vmatpush.msrb.mxu0 %v10734_v38 }
 0x838   : > { %6242 = vmatpush.msra.mxu1 %v10559_v40  ;;  %v6460_v3 = vand.u32 4294901760, %v10741_v29 }
 0x839   : > { %6431 = vmatpush.msrb.mxu0 %v10743_v17 }
 0x83a   : > { %6244 = vmatpush.msra.mxu1 %v10580_v19  ;;  %v6461_v53 = vsub.f32 %v10741_v29, %v6460_v3 }
 0x83b   : > { %6215 = vmatmul.f32.vlgmr.msra.gmra.mxu0 %v10452_v48 }
 0x83c   : > { %6299 = vmatmul.f32.vlgmr.msra.gmra.mxu2 %v10419_v63  ;;  %6433 = vmatpush.msrb.mxu0 %v10750_v57 }
 0x83d   : > { %6330 = vmatmul.f32.vlgmr.msra.gmra.mxu3 %v10419_v63  ;;  %6248 = vmatmul.f32.vlgmr.msra.gmra.mxu1 %v10488_v54 }
 0x889   : > { %v5840_v61 = vpop.f32.mrf.mxu0 }
 0x88d   : > { %v5986_v28 = vpop.f32.mrf.mxu3 }
 0x88f   : > { %v5953_v34 = vpop.f32.mrf.mxu2 }
 0x8a3   : > { %v5911_v11 = vpop.f32.mrf.mxu1 }
 0x8a8   : > { %v5802_v27 = vpop.permute.xlu0 %5801 }
 0x8a9   : > { %v5841_v5 = vadd.f32 %v5840_v61, %v5802_v27  ;;  %v10763_v61 = vand.u32 4294901760, %v6405_v4 }
 0x8ab   : > { %v5912_v0 = vadd.f32 %v5911_v11, %v5841_v5  ;;  %v6404_v11 = vld [vmem:[%s11116_s5] sm:$0xff]  ;;  %v6462_v5 = vand.u32 4294901760, %v6461_v53  ;;  %6435 = vmatpush.msrb.mxu0 %v10763_v61 }
 0x8ad   : > { %v5954_v12 = vadd.f32 %v5953_v34, %v5912_v0  ;;  %v6467_v0 = vsub.f32 %v10753_v10, %v6466_v39  ;;  %6463 = vmatpush.msrb.mxu1 %v6462_v5 }
 0x8af   : > { %v5987_v32 = vadd.f32 %v5986_v28, %v5954_v12  ;;  %v10776_v12 = vand.u32 4294901760, %v6404_v11  ;;  %v10779_v28 = vsub.f32 %v6405_v4, %v10763_v61 }
 0x8b0   : > { %v6037_v9 = vpop.f32.mrf.mxu0 }
 0x8b1   : > { %v6038_v1 = vadd.f32 %v6037_v9, %v5987_v32  ;;  %v6468_v32 = vand.u32 4294901760, %v6467_v0  ;;  %6437 = vmatpush.msrb.mxu0 %v10776_v12 }
 0x8b2   : > { %v6068_v26 = vpop.f32.mrf.mxu1 }
 0x8b3   : > { %v6069_v58 = vadd.f32 %v6068_v26, %v6038_v1  ;;  %v10786_v1 = vsub.f32 %v6404_v11, %v10776_v12  ;;  %v6478_v26 = vand.u32 4294901760, %v10779_v28  ;;  %6506 = vmatpush.msra.mxu0 %v10741_v29  ;;  %6469 = vmatpush.msrb.mxu1 %v6468_v32 }
 0x8b5   : > { %v6334_v48 = vmax.f32 %v6069_v58, 0.0  ;;  %6509 = vmatpush.msra.mxu0 %v10753_v10 }
 0x8b7   : > { %v6103_v63 = vpop.f32.mrf.mxu2  ;;  %v6341_v46 = vsel %vm6340_vm0, %v6334_v48, -inf  ;;  %v6337_v54 = vsel %vm6336_vm1, %v6334_v48, -inf  ;;  %v6345_v20 = vsel %vm6344_vm2, %v6334_v48, -inf  ;;  %v6349_v35 = vsel %vm6348_vm6, %v6334_v48, -inf }
 0x8b8   : > { %v6104_v47 = vadd.f32 %v6103_v63, %v5802_v27  ;;  %v6174_v62 = vpop.f32.mrf.mxu3  ;;  %6342 = vmax.xlane.f32.xlu2 %v6341_v46  ;;  %6338 = vmax.xlane.f32.xlu1 %v6337_v54  ;;  %v6216_v55 = vpop.f32.mrf.mxu0  ;;  %v6353_v6 = vsel %vm6352_vm7, %v6334_v48, -inf  ;;  %v6357_v40 = vsel %vm6356_vm9, %v6334_v48, -inf  ;;  %v10766_v27 = vsub.f32 %v6406_v37, %v10750_v57 }
 0x8b9   : > { %6346 = vmax.xlane.f32.xlu0 %v6345_v20  ;;  %v6484_v48 = vand.u32 4294901760, %v10786_v1  ;;  %v6479_v63 = vsub.f32 %v10779_v28, %v6478_v26  ;;  %vm6402_vm0 = vcmask 244736   ;;  %vm6410_vm1 = vcmask 293888  }
 0x8ba   : > { %v6175_v30 = vadd.f32 %v6174_v62, %v6104_v47  ;;  %v6249_v16 = vpop.f32.mrf.mxu1  ;;  %v6472_v34 = vand.u32 4294901760, %v10766_v27  ;;  %6512 = vmatpush.msra.mxu0 %v10766_v27 }
 0x8bb   : > { %v6485_v46 = vsub.f32 %v10786_v1, %v6484_v48  ;;  %v6480_v54 = vand.u32 4294901760, %v6479_v63 }
 0x8bc   : > { %v6217_v13 = vadd.f32 %v6216_v55, %v6175_v30  ;;  %v6473_v9 = vsub.f32 %v10766_v27, %v6472_v34  ;;  %6515 = vmatpush.msra.mxu0 %v10779_v28 }
 0x8bd   : > { %v6486_v20 = vand.u32 4294901760, %v6485_v46 }
 0x8be   : > { %v6250_v8 = vadd.f32 %v6249_v16, %v6217_v13  ;;  %v6474_v58 = vand.u32 4294901760, %v6473_v9  ;;  %6518 = vmatpush.msra.mxu0 %v10786_v1  ;;  %v6631_v13 = vld [vmem:[%s11118_s7 + $0x78] sm:$0xff]  ;;  %v6620_v1 = vld [vmem:[%s11118_s7 + $0x20] sm:$0xff] }
 0x8bf   : > { %v6300_v56 = vpop.f32.mrf.mxu2  ;;  %v6623_v9 = vld [vmem:[%s11118_s7 + $0x38] sm:$0xff] }
 0x8c0   : > { %v6301_v59 = vadd.f32 %v6300_v56, %v6250_v8  ;;  %v6331_v21 = vpop.f32.mrf.mxu3  ;;  %6350 = vmax.xlane.f32.xlu2 %v6349_v35  ;;  %6354 = vmax.xlane.f32.xlu1 %v6353_v6  ;;  %v6630_v35 = vld [vmem:[%s11118_s7 + $0x70] sm:$0xff]  ;;  %v6629_v6 = vld [vmem:[%s11118_s7 + $0x68] sm:$0xff]  ;;  %v10816_v8 = vand.u32 4294901760, %v6631_v13 }
 0x8c1   : > { %6475 = vmatpush.msrb.mxu1 %v6474_v58  ;;  %v10818_v56 = vand.u32 4294901760, %v6630_v35  ;;  %v6622_v58 = vld [vmem:[%s11118_s7 + $0x30] sm:$0xff] }
 0x8c2   : > { %v6332_v36 = vadd.f32 %v6331_v21, %v6301_v59  ;;  %v10820_v59 = vand.u32 4294901760, %v6629_v6  ;;  %v6628_v21 = vld [vmem:[%s11118_s7 + $0x60] sm:$0xff]  ;;  %6634 = vmatpush.msrb.mxu2 %v10816_v8 }
 0x8c3   : > { %6481 = vmatpush.msrb.mxu1 %v6480_v54 }
 0x8c4   : > { %v6335_v7 = vmax.f32 %v6332_v36, 0.0  ;;  %v6627_v36 = vld [vmem:[%s11118_s7 + $0x58] sm:$0xff]  ;;  %6636 = vmatpush.msrb.mxu2 %v10818_v56 }
 0x8c5   : > { %6487 = vmatpush.msrb.mxu1 %v6486_v20 }
 0x8c6   : > { %v6359_v60 = vsel %vm6358_vm10, %v6335_v7, -inf  ;;  %v6626_v7 = vld [vmem:[%s11118_s7 + $0x50] sm:$0xff]  ;;  %6638 = vmatpush.msrb.mxu2 %v10820_v59 }
 0x8c7   : > { %v6360_v23 = vmax.f32 %v6357_v40, %v6359_v60  ;;  %6537 = vmatpush.msra.mxu1 %v10734_v38 }
 0x8c9   : > { %6361 = vmax.xlane.f32.xlu2 %v6360_v23  ;;  %6539 = vmatpush.msra.mxu1 %v10743_v17 }
 0x8cb   : > { %6541 = vmatpush.msra.mxu1 %v10750_v57 }
 0x8cd   : > { %6543 = vmatpush.msra.mxu1 %v10763_v61 }
 0x8cf   : > { %6545 = vmatpush.msra.mxu1 %v10776_v12 }
 0x92b   : > { %v6343_v25 = vpop.xlane.xlu2 %6342  ;;  %v6339_v19 = vpop.xlane.xlu1 %6338 }
 0x92c   : > { %v6364_v45 = vsel %vm6363_vm11, %v6339_v19, %v6343_v25  ;;  %v6347_v18 = vpop.xlane.xlu0 %6346  ;;  %v10831_v25 = vand.u32 4294901760, %v6628_v21  ;;  %v10833_v19 = vand.u32 4294901760, %v6627_v36 }
 0x92d   : > { %v6366_v15 = vsel %vm6365_vm12, %v6364_v45, %v6347_v18  ;;  %v10835_v45 = vand.u32 4294901760, %v6626_v7  ;;  %v6625_v18 = vld [vmem:[%s11118_s7 + $0x48] sm:$0xff] }
 0x92e   : > { %6640 = vmatpush.msrb.mxu2 %v10831_v25 }
 0x92f   : > { %v10872_v37 = vsub.f32 %v6626_v7, %v10835_v45 }
 0x930   : > { %6642 = vmatpush.msrb.mxu2 %v10833_v19 }
 0x932   : > { %6644 = vmatpush.msrb.mxu2 %v10835_v45 }
 0x933   : > { %v6351_v14 = vpop.xlane.xlu2 %6350  ;;  %v6355_v24 = vpop.xlane.xlu1 %6354 }
 0x934   : > { %v6368_v44 = vsel %vm6367_vm13, %v6366_v15, %v6351_v14  ;;  %v10843_v15 = vsub.f32 %v6631_v13, %v10816_v8 }
 0x935   : > { %v6370_v49 = vsel %vm6369_vm14, %v6368_v44, %v6355_v24  ;;  %v10846_v44 = vsub.f32 %v6630_v35, %v10818_v56  ;;  %v10849_v24 = vsub.f32 %v6629_v6, %v10820_v59 }
 0x937   : > { %v6688_v31 = vand.u32 4294901760, %v10849_v24 }
 0x939   : > { %v6689_v11 = vsub.f32 %v10849_v24, %v6688_v31 }
 0x93c   : > { %v6362_v2 = vpop.xlane.xlu2 %6361 }
 0x93d   : > { %v10723_v33 = vsel %vm6371_vm15, %v6370_v49, %v6362_v2  ;;  %v10853_v2 = vsub.f32 %v6628_v21, %v10831_v25 }
 0x93e   : > { %v6374_v51 = vrot.slane %v10723_v33, 1  ;;  %v6382_v22 = vrot.slane %v10723_v33, 3  ;;  %v6378_v42 = vrot.slane %v10723_v33, 2  ;;  %v6386_v52 = vrot.slane %v10723_v33, 4 }
 0x93f   : > { %v6390_v43 = vrot.slane %v10723_v33, 5  ;;  %v6694_v41 = vand.u32 4294901760, %v10853_v2 }
 0x940   : > { %6375 = vrot.lane.b32.xlu1 %v6374_v51, %s7210_s14  ;;  %6383 = vrot.lane.b32.xlu0 %v6382_v22, %s7211_s16  ;;  %v10858_v51 = vand.u32 4294901760, %v6625_v18  ;;  %v6624_v22 = vld [vmem:[%s11118_s7 + $0x40] sm:$0xff] }
 0x941   : > { %6379 = vrot.lane.b32.xlu2 %v6378_v42, %s7212_s17  ;;  %v10884_v5 = vand.u32 4294901760, %v6624_v22  ;;  %s7156_s17 = scalar_lea.hbm %s11120_s9, 2 }
 0x942   : > { %v10898_v54 = vsub.f32 %v6625_v18, %v10858_v51  ;;  %6646 = vmatpush.msrb.mxu2 %v10858_v51  ;;  %p7158_p1 = scmp.lt.s32.totalorder %s7156_s17, %s7152_s29 }
 0x944   : > { %6648 = vmatpush.msrb.mxu2 %v10884_v5  ;;  %p7159_p2 = por %p7158_p1, %p7157_p0 }
 0x946   : > { %p7160_p3 = pnand %p7159_p2, %p7155_p13 }
 0x948   : > { %6387 = vrot.lane.b32.xlu1 %v6386_v52, %s7213_s21  ;;  %6391 = vrot.lane.b32.xlu0 %v6390_v43, %s7214_s22  ;;  %v6676_v52 = vand.u32 4294901760, %v10843_v15  ;;  %v6682_v43 = vand.u32 4294901760, %v10846_v44  ;;  %s323_s21 = sand.u32 1, %s7190_s10  }
 0x949   : > { %s324_s25 = scalar_lea.vmem [#allocation2], %s323_s21  ;;  %s6995_s28 = scalar_lea.sflag [#allocation3], %s323_s21 }
 0x94a   : > { %v6677_v4 = vsub.f32 %v10843_v15, %v6676_v52  ;;  %v6683_v53 = vsub.f32 %v10846_v44, %v6682_v43  ;;  %s7005_s26 = sshll.u32 %s324_s25, 4  ;;  %s7006_s26 = int_to_ptr.vmem [resolvable:$true] %s7005_s26 }
 0x94c   : > { %v6678_v63 = vand.u32 4294901760, %v6677_v4  ;;  %v6684_v46 = vand.u32 4294901760, %v6683_v53  ;;  %v6618_v53 = vld [vmem:[%s11118_s7 + $0x10] sm:$0xff] }
 0x94e   : > { %6679 = vmatpush.msrb.mxu3 %v6678_v63  ;;  %v6617_v63 = vld [vmem:[%s11118_s7 + $0x8] sm:$0xff] }
 0x950   : > { %6685 = vmatpush.msrb.mxu3 %v6684_v46 }
 0x99b   : > { %v6380_v30 = vpop.permute.xlu2 %6379 }
 0x9b2   : > { %v6376_v47 = vpop.permute.xlu1 %6375  ;;  %v6384_v62 = vpop.permute.xlu0 %6383 }
 0x9b3   : > { %v6395_v55 = vsel %vm6394_vm8, %v10723_v33, %v6376_v47  ;;  %v10856_v33 = vsub.f32 %v6627_v36, %v10833_v19  ;;  %v6695_v47 = vsub.f32 %v10853_v2, %v6694_v41 }
 0x9b4   : > { %v6397_v16 = vsel %vm6396_vm3, %v6395_v55, %v6380_v30  ;;  %v6690_v55 = vand.u32 4294901760, %v6689_v11  ;;  %v10905_v30 = vand.u32 4294901760, %v6623_v9 }
 0x9b5   : > { %v6399_v40 = vsel %vm6398_vm4, %v6397_v16, %v6384_v62  ;;  %v6700_v32 = vand.u32 4294901760, %v10856_v33  ;;  %v6706_v62 = vand.u32 4294901760, %v10872_v37  ;;  %v10910_v16 = vand.u32 4294901760, %v6622_v58 }
 0x9b6   : > { %v10919_v6 = vsub.f32 %v6623_v9, %v10905_v30  ;;  %v6696_v36 = vand.u32 4294901760, %v6695_v47  ;;  %6691 = vmatpush.msrb.mxu3 %v6690_v55  ;;  %6650 = vmatpush.msrb.mxu2 %v10905_v30  ;;  %v11016_v9 = vand.u32 4294901760, %v6618_v53  ;;  %v11026_v55 = vand.u32 4294901760, %v6617_v63 }
 0x9b7   : > { %v6701_v35 = vsub.f32 %v10856_v33, %v6700_v32  ;;  %v6707_v7 = vsub.f32 %v10872_v37, %v6706_v62 }
 0x9b8   : > { %6697 = vmatpush.msrb.mxu3 %v6696_v36  ;;  %6652 = vmatpush.msrb.mxu2 %v10910_v16 }
 0x9b9   : > { %v6708_v18 = vand.u32 4294901760, %v6707_v7 }
 0x9ba   : > { %v6388_v60 = vpop.permute.xlu1 %6387  ;;  %v6392_v23 = vpop.permute.xlu0 %6391 }
 0x9bb   : > { %v6401_v14 = vsel %vm6400_vm5, %v6399_v40, %v6388_v60  ;;  %v6702_v60 = vand.u32 4294901760, %v6701_v35  ;;  %v6616_v35 = vld [vmem:[%s11118_s7] sm:$0xff] }
 0x9bc   : > { %v6403_v49 = vsel %vm6402_vm0, %v6401_v14, %v6392_v23  ;;  %v6621_v14 = vld [vmem:[%s11118_s7 + $0x28] sm:$0xff]  ;;  %v6663_v7 = vand.u32 4294901760, %v6616_v35 }
 0x9bd   : > { %v6412_v42 = vsel %vm6410_vm1, %v6403_v49, 0  ;;  %6703 = vmatpush.msrb.mxu3 %v6702_v60  ;;  %v10966_v28 = vand.u32 4294901760, %v6621_v14  ;;  %v6759_v60 = vsub.f32 %v6617_v63, %v11026_v55 }
 0x9be   : > { %v10868_v50 = vand.u32 4294901760, %v6412_v42 }
 0x9bf   : > { %6709 = vmatpush.msrb.mxu3 %v6708_v18  ;;  %6654 = vmatpush.msrb.mxu2 %v10966_v28  ;;  %v10994_v49 = vsub.f32 %v6621_v14, %v10966_v28 }
 0x9c0   : > { %v6439_v0 = vsub.f32 %v6412_v42, %v10868_v50  ;;  %6489 = vmatmul.f32.vlgmr.msrb.gmra.mxu1 %v10868_v50 }
 0x9c1   : > { %6601 = vmatpush.msrb.mxu1 %v10734_v38  ;;  %v10908_v38 = vsub.f32 %v6624_v22, %v10884_v5  ;;  %v6619_v22 = vld [vmem:[%s11118_s7 + $0x18] sm:$0xff]  ;;  %v6736_v42 = vand.u32 4294901760, %v10994_v49 }
 0x9c2   : > { %v6440_v20 = vand.u32 4294901760, %v6439_v0 }
 0x9c3   : > { %6603 = vmatpush.msrb.mxu1 %v10743_v17  ;;  %v6712_v17 = vand.u32 4294901760, %v10898_v54  ;;  %v6718_v40 = vand.u32 4294901760, %v10908_v38  ;;  %v6737_v11 = vsub.f32 %v10994_v49, %v6736_v42 }
 0x9c4   : > { %v6441_v13 = vsub.f32 %v6439_v0, %v6440_v20 }
 0x9c5   : > { %6605 = vmatpush.msrb.mxu1 %v10750_v57  ;;  %v10928_v57 = vsub.f32 %v6622_v58, %v10910_v16  ;;  %v6713_v23 = vsub.f32 %v10898_v54, %v6712_v17  ;;  %v6719_v29 = vsub.f32 %v10908_v38, %v6718_v40  ;;  %v6738_v46 = vand.u32 4294901760, %v6737_v11 }
 0x9c6   : > { %v6442_v21 = vand.u32 4294901760, %v6441_v13  ;;  %v6753_v13 = vsub.f32 %v6618_v53, %v11016_v9 }
 0x9c7   : > { %6607 = vmatpush.msrb.mxu1 %v10763_v61  ;;  %v6724_v61 = vand.u32 4294901760, %v10919_v6 }
 0x9c8   : > { %6443 = vmatmul.f32.vlgmr.msrb.gmra.mxu0 %v6442_v21  ;;  %6549 = vmatmul.f32.vlgmr.msra.gmra.mxu1 %v6440_v20 }
 0x9c9   : > { %6567 = vmatpush.msrb.mxu0 %v6460_v3  ;;  %6609 = vmatpush.msrb.mxu1 %v10776_v12  ;;  %v6730_v3 = vand.u32 4294901760, %v10928_v57  ;;  %v6714_v12 = vand.u32 4294901760, %v6713_v23  ;;  %v6725_v10 = vsub.f32 %v10919_v6, %v6724_v61  ;;  %v6754_v23 = vand.u32 4294901760, %v6753_v13 }
 0x9cb   : > { %6571 = vmatpush.msrb.mxu0 %v6466_v39  ;;  %6830 = vmatpush.msra.mxu1 %v10816_v8  ;;  %v6720_v39 = vand.u32 4294901760, %v6719_v29  ;;  %v6731_v27 = vsub.f32 %v10928_v57, %v6730_v3  ;;  %v6760_v29 = vand.u32 4294901760, %v6759_v60 }
 0x9cc   : > { %6715 = vmatpush.msrb.mxu3 %v6714_v12  ;;  %v6765_v12 = vsub.f32 %v6616_v35, %v6663_v7 }
 0x9cd   : > { %6575 = vmatpush.msrb.mxu0 %v6472_v34  ;;  %6832 = vmatpush.msra.mxu1 %v10818_v56  ;;  %v6726_v34 = vand.u32 4294901760, %v6725_v10  ;;  %v6755_v10 = vsub.f32 %v6753_v13, %v6754_v23 }
 0x9ce   : > { %6721 = vmatpush.msrb.mxu3 %v6720_v39  ;;  %v6761_v39 = vsub.f32 %v6759_v60, %v6760_v29  ;;  %v6766_v14 = vand.u32 4294901760, %v6765_v12 }
 0x9cf   : > { %6579 = vmatpush.msrb.mxu0 %v6478_v26  ;;  %6834 = vmatpush.msra.mxu1 %v10820_v59  ;;  %v6732_v26 = vand.u32 4294901760, %v6731_v27  ;;  %v6756_v27 = vand.u32 4294901760, %v6755_v10 }
 0x9d0   : > { %6521 = vmatmul.f32.vlgmr.msra.gmra.mxu0 %v6439_v0  ;;  %6611 = vmatmul.f32.vlgmr.msrb.gmra.mxu1 %v10868_v50 }
 0x9d1   : > { %6583 = vmatpush.msrb.mxu0 %v6484_v48  ;;  %6836 = vmatpush.msra.mxu1 %v10831_v25  ;;  %v10991_v48 = vand.u32 4294901760, %v6620_v1 }
 0x9d2   : > { %6727 = vmatpush.msrb.mxu3 %v6726_v34  ;;  %v6762_v34 = vand.u32 4294901760, %v6761_v39 }
 0x9d3   : > { %6777 = vmatpush.msra.mxu0 %v10843_v15  ;;  %6838 = vmatpush.msra.mxu1 %v10833_v19  ;;  %v11004_v4 = vsub.f32 %v6620_v1, %v10991_v48 }
 0x9d4   : > { %6733 = vmatpush.msrb.mxu3 %v6732_v26  ;;  %6656 = vmatpush.msrb.mxu2 %v10991_v48  ;;  %v6767_v26 = vsub.f32 %v6765_v12, %v6766_v14 }
 0x9d5   : > { %6780 = vmatpush.msra.mxu0 %v10846_v44  ;;  %6840 = vmatpush.msra.mxu1 %v10835_v45  ;;  %v6742_v0 = vand.u32 4294901760, %v11004_v4 }
 0x9d6   : > { %6739 = vmatpush.msrb.mxu3 %v6738_v46  ;;  %v6768_v1 = vand.u32 4294901760, %v6767_v26 }
 0x9d7   : > { %6783 = vmatpush.msra.mxu0 %v10849_v24  ;;  %6842 = vmatpush.msra.mxu1 %v10858_v51  ;;  %v6743_v20 = vsub.f32 %v11004_v4, %v6742_v0 }
 0x9d8   : > { %6585 = vmatmul.f32.vlgmr.msrb.gmra.mxu0 %v10868_v50  ;;  %v11001_v50 = vand.u32 4294901760, %v6619_v22 }
 0x9d9   : > { %6786 = vmatpush.msra.mxu0 %v10853_v2  ;;  %6844 = vmatpush.msra.mxu1 %v10884_v5  ;;  %v6744_v21 = vand.u32 4294901760, %v6743_v20 }
 0x9da   : > { %6658 = vmatpush.msrb.mxu2 %v11001_v50  ;;  %v6747_v58 = vsub.f32 %v6619_v22, %v11001_v50 }
 0x9db   : > { %6789 = vmatpush.msra.mxu0 %v10856_v33  ;;  %6846 = vmatpush.msra.mxu1 %v10905_v30 }
 0x9dc   : > { %6660 = vmatpush.msrb.mxu2 %v11016_v9  ;;  %v6748_v47 = vand.u32 4294901760, %v6747_v58  ;;  %6745 = vmatpush.msrb.mxu3 %v6744_v21 }
 0x9dd   : > { %6792 = vmatpush.msra.mxu0 %v10872_v37  ;;  %6848 = vmatpush.msra.mxu1 %v10910_v16 }
 0x9de   : > { %v6749_v36 = vsub.f32 %v6747_v58, %v6748_v47  ;;  %6662 = vmatpush.msrb.mxu2 %v11026_v55 }
 0x9df   : > { %6795 = vmatpush.msra.mxu0 %v10898_v54  ;;  %6850 = vmatpush.msra.mxu1 %v10966_v28  ;;  %v6632_v54 = vld [vmem:[%s11119_s8] sm:$0x1] }
 0x9e0   : > { %v6750_v18 = vand.u32 4294901760, %v6749_v36  ;;  %6664 = vmatpush.msrb.mxu2 %v6663_v7 }
 0x9e1   : > { %6798 = vmatpush.msra.mxu0 %v10908_v38  ;;  %6852 = vmatpush.msra.mxu1 %v10991_v48 }
 0x9e2   : > { %6871 = vmatpush.msra.mxu2 %v6676_v52  ;;  %6751 = vmatpush.msrb.mxu3 %v6750_v18 }
 0x9e3   : > { %6801 = vmatpush.msra.mxu0 %v10919_v6  ;;  %6854 = vmatpush.msra.mxu1 %v11001_v50 }
 0x9e4   : > { %6875 = vmatpush.msra.mxu2 %v6682_v43  ;;  %6757 = vmatpush.msrb.mxu3 %v6756_v27 }
 0x9e5   : > { %6804 = vmatpush.msra.mxu0 %v10928_v57  ;;  %6856 = vmatpush.msra.mxu1 %v11016_v9 }
 0x9e6   : > { %6879 = vmatpush.msra.mxu2 %v6688_v31  ;;  %6763 = vmatpush.msrb.mxu3 %v6762_v34 }
 0x9e7   : > { %6807 = vmatpush.msra.mxu0 %v10994_v49  ;;  %6858 = vmatpush.msra.mxu1 %v11026_v55 }
 0x9e8   : > { %6883 = vmatpush.msra.mxu2 %v6694_v41  ;;  %6769 = vmatpush.msrb.mxu3 %v6768_v1 }
 0x9e9   : > { %6810 = vmatpush.msra.mxu0 %v11004_v4  ;;  %6860 = vmatpush.msra.mxu1 %v6663_v7 }
 0x9ea   : > { %6887 = vmatpush.msra.mxu2 %v6700_v32  ;;  %6938 = vmatpush.msra.mxu3 %v10816_v8 }
 0x9eb   : > { %6813 = vmatpush.msra.mxu0 %v6747_v58 }
 0x9ec   : > { %6891 = vmatpush.msra.mxu2 %v6706_v62  ;;  %6940 = vmatpush.msra.mxu3 %v10818_v56 }
 0x9ed   : > { %6816 = vmatpush.msra.mxu0 %v6753_v13 }
 0x9ee   : > { %6895 = vmatpush.msra.mxu2 %v6712_v17  ;;  %6942 = vmatpush.msra.mxu3 %v10820_v59  ;;  %v6409_v59 = vld [vmem:[%s11117_s6] sm:$0x1] }
 0x9ef   : > { %6819 = vmatpush.msra.mxu0 %v6759_v60 }
 0x9f0   : > { %6899 = vmatpush.msra.mxu2 %v6718_v40  ;;  %6944 = vmatpush.msra.mxu3 %v10831_v25 }
 0x9f1   : > { %6822 = vmatpush.msra.mxu0 %v6765_v12 }
 0x9f2   : > { %6903 = vmatpush.msra.mxu2 %v6724_v61  ;;  %6946 = vmatpush.msra.mxu3 %v10833_v19 }
 0x9f4   : > { %6907 = vmatpush.msra.mxu2 %v6730_v3  ;;  %6948 = vmatpush.msra.mxu3 %v10835_v45 }
 0x9f6   : > { %6911 = vmatpush.msra.mxu2 %v6736_v42  ;;  %6950 = vmatpush.msra.mxu3 %v10858_v51 }
 0x9f8   : > { %6915 = vmatpush.msra.mxu2 %v6742_v0  ;;  %6952 = vmatpush.msra.mxu3 %v10884_v5 }
 0x9fa   : > { %6919 = vmatpush.msra.mxu2 %v6748_v47  ;;  %6954 = vmatpush.msra.mxu3 %v10905_v30 }
 0x9fc   : > { %6923 = vmatpush.msra.mxu2 %v6754_v23  ;;  %6956 = vmatpush.msra.mxu3 %v10910_v16 }
 0x9fe   : > { %6927 = vmatpush.msra.mxu2 %v6760_v29  ;;  %6958 = vmatpush.msra.mxu3 %v10966_v28 }
 0xa00   : > { %6931 = vmatpush.msra.mxu2 %v6766_v14  ;;  %6960 = vmatpush.msra.mxu3 %v10991_v48 }
 0xa02   : > { %6962 = vmatpush.msra.mxu3 %v11001_v50 }
 0xa04   : > { %6964 = vmatpush.msra.mxu3 %v11016_v9 }
 0xa06   : > { %6966 = vmatpush.msra.mxu3 %v11026_v55 }
 0xa08   : > { %6968 = vmatpush.msra.mxu3 %v6663_v7 }
 0xa3d   : > { %v6490_v8 = vpop.f32.mrf.mxu1 }
 0xa45   : > { %v6444_v56 = vpop.f32.mrf.mxu0  ;;  %v6550_v45 = vpop.f32.mrf.mxu1 }
 0xa46   : > { %v6445_v25 = vadd.f32 %v6444_v56, %v6409_v59 }
 0xa48   : > { %v6491_v15 = vadd.f32 %v6490_v8, %v6445_v25 }
 0xa4d   : > { %v6522_v19 = vpop.f32.mrf.mxu0  ;;  %v6612_v51 = vpop.f32.mrf.mxu1 }
 0xa4e   : > { %v6523_v44 = vadd.f32 %v6522_v19, %v6491_v15 }
 0xa50   : > { %v6551_v24 = vadd.f32 %v6550_v45, %v6523_v44 }
 0xa55   : > { %v6586_v2 = vpop.f32.mrf.mxu0 }
 0xa56   : > { %v6587_v33 = vadd.f32 %v6586_v2, %v6551_v24 }
 0xa58   : > { %v6613_v52 = vadd.f32 %v6612_v51, %v6587_v33 }
 0xa5a   : > { %v6615_v43 = vmax.f32 %v6613_v52, 0.0 }
 0xa5c   : > { %v6665_v31 = vand.u32 4294901760, %v6615_v43 }
 0xa5e   : > { %v6666_v41 = vsub.f32 %v6615_v43, %v6665_v31  ;;  %6771 = vmatmul.f32.vlgmr.msrb.gmra.mxu3 %v6665_v31 }
 0xa60   : > { %v6667_v37 = vand.u32 4294901760, %v6666_v41  ;;  %6825 = vmatmul.f32.vlgmr.msra.gmra.mxu0 %v6666_v41 }
 0xa62   : > { %v6668_v5 = vsub.f32 %v6666_v41, %v6667_v37  ;;  %6864 = vmatmul.f32.vlgmr.msra.gmra.mxu1 %v6667_v37 }
 0xa64   : > { %v6669_v32 = vand.u32 4294901760, %v6668_v5 }
 0xa66   : > { %6670 = vmatmul.f32.vlgmr.msrb.gmra.mxu2 %v6669_v32  ;;  %6970 = vmatmul.f32.vlgmr.msra.gmra.mxu3 %v6665_v31 }
 0xa6e   : > { %6933 = vmatmul.f32.vlgmr.msra.gmra.mxu2 %v6665_v31 }
 0xadd   : > { %v6826_v17 = vpop.f32.mrf.mxu0 }
 0xadf   : > { %v6865_v40 = vpop.f32.mrf.mxu1 }
 0xae1   : > { %v6772_v30 = vpop.f32.mrf.mxu3 }
 0xae9   : > { %v6671_v62 = vpop.f32.mrf.mxu2  ;;  %v6971_v28 = vpop.f32.mrf.mxu3 }
 0xaea   : > { %v6672_v38 = vadd.f32 %v6671_v62, %v6632_v54 }
 0xaec   : > { %v6773_v16 = vadd.f32 %v6772_v30, %v6672_v38 }
 0xaee   : > { %v6827_v6 = vadd.f32 %v6826_v17, %v6773_v16 }
 0xaf0   : > { %v6866_v57 = vadd.f32 %v6865_v40, %v6827_v6 }
 0xaf1   : > { %v6934_v61 = vpop.f32.mrf.mxu2 }
 0xaf2   : > { %v6935_v3 = vadd.f32 %v6934_v61, %v6866_v57 }
 0xaf4   : > { %v6972_v48 = vadd.f32 %v6971_v28, %v6935_v3 }
 0xaf6   : > { %v7068_v49 = vmul.f32 -1.442695, %v6972_v48 }
 0xaf8   : > { %7128 = vpow2.f32 %v7068_v49 }
 0xafe   : > { %v7129_v22 = vpop.eup %7128 }
 0xaff   : > { %v6977_v42 = vadd.f32 1.0, %v7129_v22 }
 0xb01   : > { %7130 = vrcp.f32 %v6977_v42  ;;  %v6989_v11 = vand.u32 2147483648, %v6977_v42  ;;  %v6987_v9 = vand.u32 2147483647, %v6977_v42  ;;  %vm6983_vm6 = vweird.f32 %v6977_v42 }
 0xb03   : > { %v6990_v63 = vor.u32 1.1754944e-38, %v6989_v11  ;;  %vm6988_vm9 = vcmp.eq.f32.partialorder %v6987_v9, 8.507059e+37 }
 0xb07   : > { %v7131_v50 = vpop.eup %7130 }
 0xb08   : > { %v6979_v4 = vmul.f32 %v7131_v50, %v6977_v42  ;;  %vm6984_vm2 = vweird.f32 %v7131_v50 }
 0xb09   : > { %vm6985_vm7 = vmor %vm6983_vm6, %vm6984_vm2 }
 0xb0a   : > { %v6980_v53 = vsub.f32 1.0, %v6979_v4 }
 0xb0c   : > { %v6981_v0 = vmul.f32 %v7131_v50, %v6980_v53 }
 0xb0e   : > { %v6982_v58 = vadd.f32 %v7131_v50, %v6981_v0 }
 0xb10   : > { %v6986_v46 = vsel %vm6985_vm7, %v7131_v50, %v6982_v58 }
 0xb11   : > { %v6991_v20 = vsel %vm6988_vm9, %v6990_v63, %v6986_v46 }
 0xb12   : > { %6993 = vst [vmem:[%s324_s25] sm:$0x1] %v6991_v20 }
 0xb13   : > { %7163 = shalt.err (!%p7160_p3)
}
 0xb14   : > { %7072 = dma.vmem_to_hbm [thread:$0]  (%p7303_p5), %s7006_s26, 16, %s7008_s27, %s6995_s28  }
 0xb15 PF: > { %p7078_p4 = scmp.ge.s32.totalorder %s7198_s12, 2  ;;  %s7019_s21 = sand.u32 1, %s7186_s30  }
 0xb16   : > { %s7020_s24 = scalar_lea.sflag [#allocation3], %s7019_s21 }
 0xb17   : > { %p7075_p7 = pnand %p7078_p4, %p7307_p6 }
 0xb19   : > { %p7076_p8 = pneg %p7075_p7 }
 0xb1b   : > { %7181 = dma.done.wait (%p7076_p8), %s7020_s24, 16  }
 0xb1c   : > { %7183 = vsyncadd (%p7076_p8), %s7020_s24, 4294967280  ;;  %p19_p9 = scmp.ge.s32.totalorder %s7290_s15, 4   ;;  %s12357_s30 = smov %s7190_s10 }
 0xb1d   : > { %s12358_s10 = smov %s7194_s11  ;;  %s12359_s11 = smov %s7301_s18 }
 0xb1e   : > { %s12360_s12 = smov %s7290_s15  ;;  %21 = sbr.rel (!%p19_p9) target bundleno = 3 (0x3), region = 91 }
 0xb23   :  { %7025 = vsyncpa [#allocation3], 1 }
 0xb24   :  { %7027 = vsyncpa [#allocation3 + $0x1], 1 }

</bundles_post_ra>
